<compile_context>
chip_gen: v7x
topology: tpu7x:2x2x1
jax: 0.10.0
libtpu: 0.0.40
codegen_flags: <defaults>
</compile_context>

<pallas_src>
import math

import numpy as np
import jax
import jax.numpy as jnp
from jax.experimental import pallas as pl
from jax.experimental.pallas import tpu as pltpu

HIDDEN = 192
FILTER = 768
N_HEADS = 2
N_LAYERS = 5
KERNEL = 5
PAD = KERNEL // 2
HEAD_DIM = HIDDEN // N_HEADS      # 96 — real head dim (softmax scale uses this)
HEAD_PAD = 128                    # heads zero-padded to 128 lanes (vreg aligned)
QKV_PAD = N_HEADS * HEAD_PAD      # 256
PROJ_PAD = 128                    # 1x1-proj output padded 2 -> 128 lanes
LN_EPS = 1e-5
NEG_INF = -1e4

_CPARAMS = pltpu.CompilerParams(
    # Layer axis carries resident activation state in scratch -> sequential.
    dimension_semantics=("arbitrary",),
    # <= 64 MiB so the kernel is deployable on v7x (64 MiB physical VMEM / TC).
    vmem_limit_bytes=48 * 1024 * 1024,
)

_WEIGHT_NAMES = ("wq", "bq", "wk", "bk", "wv", "bv", "wo", "bo",
                 "g1", "be1", "w1", "b1", "w2", "b2", "g2", "be2")


# ------------------------------ Pallas kernel --------------------------------

def _layer_norm(z, g, b):
    mu = jnp.mean(z, axis=-1, keepdims=True)
    zc = z - mu
    var = jnp.mean(zc * zc, axis=-1, keepdims=True)
    return zc * jax.lax.rsqrt(var + LN_EPS) * g + b


def _encoder_kernel(x0_ref, m_ref, amask_ref, shift_ref,
                    wq_ref, bq_ref, wk_ref, bk_ref, wv_ref, bv_ref,
                    wo_ref, bo_ref, g1_ref, be1_ref,
                    w1_ref, b1_ref, w2_ref, b2_ref, g2_ref, be2_ref,
                    pw_ref, pb_ref,
                    c_ref, mu_ref,
                    x_state):
    """One VITS encoder layer per grid step; activation resident in VMEM."""
    l = pl.program_id(0)

    @pl.when(l == 0)
    def _():
        x_state[...] = x0_ref[...]

    x = x_state[...]                                  # (M, C) f32
    m = m_ref[...]                                    # (M, 1) f32
    B, T, _ = amask_ref.shape
    M = x.shape[0]

    # ---- multi-head self-attention (heads padded 96->128 lanes; 1/sqrt(96)
    # query scale folded into wq/bq at pack time) ----
    xb = x.astype(jnp.bfloat16)
    q = jnp.dot(xb, wq_ref[0], preferred_element_type=jnp.float32) + bq_ref[0]
    k = jnp.dot(xb, wk_ref[0], preferred_element_type=jnp.float32) + bk_ref[0]
    v = jnp.dot(xb, wv_ref[0], preferred_element_type=jnp.float32) + bv_ref[0]

    ctx_rows = []
    for b in range(B):
        r0 = b * T
        amask_b = amask_ref[b]                        # (T, T) 1/0
        heads = []
        for h in range(N_HEADS):
            c0 = h * HEAD_PAD
            qh = q[r0:r0 + T, c0:c0 + HEAD_PAD].astype(jnp.bfloat16)
            kh = k[r0:r0 + T, c0:c0 + HEAD_PAD].astype(jnp.bfloat16)
            vh = v[r0:r0 + T, c0:c0 + HEAD_PAD].astype(jnp.bfloat16)
            s = jax.lax.dot_general(qh, kh, (((1,), (1,)), ((), ())),
                                    preferred_element_type=jnp.float32)
            s = jnp.where(amask_b > 0.0, s, NEG_INF)
            s = s - jnp.max(s, axis=-1, keepdims=True)
            e = jnp.exp(s)
            p = e * pl.reciprocal(jnp.sum(e, axis=-1, keepdims=True), approx=True)
            heads.append(jnp.dot(p.astype(jnp.bfloat16), vh,
                                 preferred_element_type=jnp.float32))
        ctx_rows.append(jnp.concatenate(heads, axis=-1))
    ctx = jnp.concatenate(ctx_rows, axis=0).astype(jnp.bfloat16)   # (M, 256)
    y = jnp.dot(ctx, wo_ref[0], preferred_element_type=jnp.float32) + bo_ref[0]

    x = _layer_norm(x + y, g1_ref[0], be1_ref[0])     # residual + LN1 (fp32)

    # ---- conv FFN (k=5, 'same'): tap shifts as one-hot shift matmuls.
    # Batch boundaries and zero padding are baked into shift_ref, so there are
    # no zero-filled scratch buffers and no sublane-misaligned slices. ----
    xm = (x * m).astype(jnp.bfloat16)
    acc = jnp.zeros((M, FILTER), jnp.float32)
    for kk in range(KERNEL):
        sh = jnp.dot(shift_ref[kk], xm, preferred_element_type=jnp.float32)
        acc = acc + jnp.dot(sh.astype(jnp.bfloat16), w1_ref[0, kk],
                            preferred_element_type=jnp.float32)
    hm = (jnp.maximum(acc + b1_ref[0], 0.0) * m).astype(jnp.bfloat16)
    acc2 = jnp.zeros((M, HIDDEN), jnp.float32)
    for kk in range(KERNEL):
        sh = jnp.dot(shift_ref[kk], hm, preferred_element_type=jnp.float32)
        acc2 = acc2 + jnp.dot(sh.astype(jnp.bfloat16), w2_ref[0, kk],
                              preferred_element_type=jnp.float32)
    y = (acc2 + b2_ref[0]) * m

    x = _layer_norm(x + y, g2_ref[0], be2_ref[0])     # residual + LN2 (fp32)
    x_state[...] = x

    # ---- epilogue (last layer): final mask + fused 1x1 projection ----
    @pl.when(l == pl.num_programs(0) - 1)
    def _():
        xf = x * m
        c_ref[...] = xf
        mu_ref[...] = (jnp.dot(xf.astype(jnp.bfloat16), pw_ref[...],
                               preferred_element_type=jnp.float32) + pb_ref[...])


# --------------------------- pallas_call wrapper ------------------------------

def _const_spec(a):
    nd = a.ndim
    return pl.BlockSpec(a.shape, lambda l, _n=nd: (0,) * _n)


def _layer_spec(a):
    nd = a.ndim
    return pl.BlockSpec((1,) + a.shape[1:], lambda l, _n=nd: (l,) + (0,) * (_n - 1))


def _run_encoder(packed, x0, mflat, amask, shifts):
    M, _ = x0.shape
    n_layers = packed["wq"].shape[0]
    weights = [packed[n] for n in _WEIGHT_NAMES]

    in_specs = ([_const_spec(x0), _const_spec(mflat), _const_spec(amask),
                 _const_spec(shifts)]
                + [_layer_spec(w) for w in weights]
                + [_const_spec(packed["proj_w"]), _const_spec(packed["proj_b"])])

    c_flat, mu_flat = pl.pallas_call(
        _encoder_kernel,
        grid=(n_layers,),
        in_specs=in_specs,
        out_specs=(pl.BlockSpec((M, HIDDEN), lambda l: (0, 0)),
                   pl.BlockSpec((M, PROJ_PAD), lambda l: (0, 0))),
        out_shape=(jax.ShapeDtypeStruct((M, HIDDEN), jnp.float32),
                   jax.ShapeDtypeStruct((M, PROJ_PAD), jnp.float32)),
        scratch_shapes=[pltpu.VMEM((M, HIDDEN), jnp.float32)],
        compiler_params=_CPARAMS,
    )(x0, mflat, amask, shifts, *weights, packed["proj_w"], packed["proj_b"])
    return c_flat, mu_flat


def _shift_matrices(batch, time):
    """One-hot shift matrices for the k=5 'same' conv on the flattened (B*T)
    axis; zeros across batch boundaries emulate zero padding."""
    m = batch * time
    i = np.arange(m)[:, None]
    j = np.arange(m)[None, :]
    mats = []
    for kk in range(KERNEL):
        d = kk - PAD
        mats.append((j == i + d) & (i // time == j // time))
    return jnp.asarray(np.stack(mats).astype(np.float32), dtype=jnp.bfloat16)


# ------------------------------- parameters -----------------------------------

def init_params(key):
    """PyTorch-layout parameters (fp32). Conv1d weights (Cout,Cin,K) are stored
    as (K, Cin, Cout) so each tap is a plain (Cin, Cout) matmul."""
    std_emb = HIDDEN ** (-0.5)
    w_std = 0.02
    state = [key]

    def nxt():
        state[0], sub = jax.random.split(state[0])
        return sub

    def rnd(shape, std):
        return jax.random.normal(nxt(), shape, jnp.float32) * std

    params = {
        "emb_phone": rnd((63, HIDDEN), std_emb),
        "emb_score": rnd((128, HIDDEN), std_emb),
        "emb_slurs": rnd((2, HIDDEN), std_emb),
        "proj_w": rnd((HIDDEN, 2), w_std),            # Conv1d(192, 2, 1)
        "proj_b": jnp.zeros((1, 2), jnp.float32),
        "layers": [],
    }
    for _ in range(N_LAYERS):
        params["layers"].append({
            "wq": rnd((HIDDEN, HIDDEN), w_std), "bq": jnp.zeros((1, HIDDEN), jnp.float32),
            "wk": rnd((HIDDEN, HIDDEN), w_std), "bk": jnp.zeros((1, HIDDEN), jnp.float32),
            "wv": rnd((HIDDEN, HIDDEN), w_std), "bv": jnp.zeros((1, HIDDEN), jnp.float32),
            "wo": rnd((HIDDEN, HIDDEN), w_std), "bo": jnp.zeros((1, HIDDEN), jnp.float32),
            "g1": jnp.ones((1, HIDDEN), jnp.float32), "be1": jnp.zeros((1, HIDDEN), jnp.float32),
            "w1": rnd((KERNEL, HIDDEN, FILTER), w_std), "b1": jnp.zeros((1, FILTER), jnp.float32),
            "w2": rnd((KERNEL, FILTER, HIDDEN), w_std), "b2": jnp.zeros((1, HIDDEN), jnp.float32),
            "g2": jnp.ones((1, HIDDEN), jnp.float32), "be2": jnp.zeros((1, HIDDEN), jnp.float32),
        })
    return params


def pack_encoder_params(params):
    """Kernel layout: stack a leading layer axis (grid-indexed, double-buffered),
    zero-pad each 96-wide head to 128 lanes (wq/wk/wv columns, wo rows), fold
    the 1/sqrt(head_dim) query scale into wq/bq, pad the 1x1 projection output
    to 128 lanes, and cast matmul weights to bf16 (fp32 biases / LN params)."""
    scale = HEAD_DIM ** -0.5

    def pad_heads_cols(w):            # (..., H*96) -> (..., H*128)
        out = jnp.zeros(w.shape[:-1] + (QKV_PAD,), w.dtype)
        for h in range(N_HEADS):
            out = out.at[..., h * HEAD_PAD:h * HEAD_PAD + HEAD_DIM].set(
                w[..., h * HEAD_DIM:(h + 1) * HEAD_DIM])
        return out

    def pad_heads_rows(w):            # (H*96, C) -> (H*128, C)
        out = jnp.zeros((QKV_PAD, w.shape[1]), w.dtype)
        for h in range(N_HEADS):
            out = out.at[h * HEAD_PAD:h * HEAD_PAD + HEAD_DIM, :].set(
                w[h * HEAD_DIM:(h + 1) * HEAD_DIM, :])
        return out

    layers = params["layers"]

    def stk(fn, name):
        return jnp.stack([fn(lyr[name]) for lyr in layers])

    ident = lambda a: a

    packed = {
        "emb_phone": params["emb_phone"],
        "emb_score": params["emb_score"],
        "emb_slurs": params["emb_slurs"],
        "wq": stk(lambda w: pad_heads_cols(w) * scale, "wq").astype(jnp.bfloat16),
        "bq": stk(lambda b: pad_heads_cols(b) * scale, "bq"),
        "wk": stk(pad_heads_cols, "wk").astype(jnp.bfloat16),
        "bk": stk(pad_heads_cols, "bk"),
        "wv": stk(pad_heads_cols, "wv").astype(jnp.bfloat16),
        "bv": stk(pad_heads_cols, "bv"),
        "wo": stk(pad_heads_rows, "wo").astype(jnp.bfloat16),
        "bo": stk(ident, "bo"),
        "g1": stk(ident, "g1"), "be1": stk(ident, "be1"),
        "w1": stk(ident, "w1").astype(jnp.bfloat16), "b1": stk(ident, "b1"),
        "w2": stk(ident, "w2").astype(jnp.bfloat16), "b2": stk(ident, "b2"),
        "g2": stk(ident, "g2"), "be2": stk(ident, "be2"),
        "proj_w": jnp.zeros((HIDDEN, PROJ_PAD), jnp.float32)
                     .at[:, :2].set(params["proj_w"]).astype(jnp.bfloat16),
        "proj_b": jnp.zeros((1, PROJ_PAD), jnp.float32).at[:, :2].set(params["proj_b"]),
    }
    return packed


# --------------------------------- forward ------------------------------------

def text_encoder_forward(packed, phone, lengths, score, slurs):
    B, T = phone.shape
    assert T % 8 == 0, "T must be a multiple of 8 (sublane tiling)"
    M = B * T

    # Embedding lookups + sum + sqrt(C) scale (glue, jnp.take).
    x = (jnp.take(packed["emb_phone"], phone, axis=0)
         + jnp.take(packed["emb_score"], score, axis=0)
         + jnp.take(packed["emb_slurs"], slurs, axis=0)) * math.sqrt(HIDDEN)

    # commons.sequence_mask(lengths, T)
    mask = (jnp.arange(T)[None, :] < lengths[:, None]).astype(jnp.float32)  # (B, T)
    x0 = (x * mask[:, :, None]).reshape(M, HIDDEN)                          # x * x_mask
    mflat = mask.reshape(M, 1)
    amask = mask[:, :, None] * mask[:, None, :]                             # (B, T, T)
    shifts = _shift_matrices(B, T)

    c_flat, mu_flat = _run_encoder(packed, x0, mflat, amask, shifts)

    c = jnp.transpose(c_flat.reshape(B, T, HIDDEN), (0, 2, 1))              # (B, 192, T)
    mu_x = jnp.transpose(mu_flat[:, :2].reshape(B, T, 2), (0, 2, 1))        # (B, 2, T)
    x_mask = mask[:, None, :]                                               # (B, 1, T)
    return mu_x, x_mask, c


def pitch_diffusion_forward(packed, phone, lengths, score, slurs,
                            n_timesteps, temperature=1.0, *, noise_key):
    mu_x, mask_x, c = text_encoder_forward(packed, phone, lengths, score, slurs)
    encoder_outputs = mu_x
    z = mu_x + jax.random.normal(noise_key, mu_x.shape, mu_x.dtype) / temperature
    # TODO(synk): Diffusion(2, 192, 64, beta_min=0.05, beta_max=20.0, pe_scale=1000)
    # reverse-diffusion sampler source not provided; returning the initial latent z
    # instead of running n_timesteps denoising steps.
    del n_timesteps, c, mask_x
    decoder_outputs = z
    return encoder_outputs, decoder_outputs


# ----------------------------------- main --------------------------------------

if __name__ == "__main__":
    key = jax.random.PRNGKey(0)
    pkey, dkey, nkey = jax.random.split(key, 3)
    params = init_params(pkey)
    packed = pack_encoder_params(params)

    B, T = 2, 16
    k1, k2, k3 = jax.random.split(dkey, 3)
    phone = jax.random.randint(k1, (B, T), 0, 63, dtype=jnp.int32)
    score = jax.random.randint(k2, (B, T), 0, 128, dtype=jnp.int32)
    slurs = jax.random.randint(k3, (B, T), 0, 2, dtype=jnp.int32)
    lengths = jnp.array([T, T - 4], dtype=jnp.int32)

    enc_out, dec_out = pitch_diffusion_forward(
        packed, phone, lengths, score, slurs, n_timesteps=10, temperature=1.0,
        noise_key=nkey)
    jax.block_until_ready((enc_out, dec_out))

    assert enc_out.shape == (B, 2, T), enc_out.shape
    assert dec_out.shape == (B, 2, T), dec_out.shape
    assert bool(jnp.all(jnp.isfinite(enc_out))) and bool(jnp.all(jnp.isfinite(dec_out)))
    print("KERNEL_OK")
</pallas_src>

<mosaic_0001>
module attributes {stable_mosaic.version = 11 : i64} {
  func.func @_encoder_kernel(%arg0: i32, %arg1: memref<32x192xf32, #tpu.memory_space<vmem>>, %arg2: memref<32x1xf32, #tpu.memory_space<vmem>>, %arg3: memref<2x16x16xf32, #tpu.memory_space<vmem>>, %arg4: memref<5x32x32xbf16, #tpu.memory_space<vmem>>, %arg5: memref<1x192x256xbf16, #tpu.memory_space<vmem>>, %arg6: memref<1x1x256xf32, #tpu.memory_space<vmem>>, %arg7: memref<1x192x256xbf16, #tpu.memory_space<vmem>>, %arg8: memref<1x1x256xf32, #tpu.memory_space<vmem>>, %arg9: memref<1x192x256xbf16, #tpu.memory_space<vmem>>, %arg10: memref<1x1x256xf32, #tpu.memory_space<vmem>>, %arg11: memref<1x256x192xbf16, #tpu.memory_space<vmem>>, %arg12: memref<1x1x192xf32, #tpu.memory_space<vmem>>, %arg13: memref<1x1x192xf32, #tpu.memory_space<vmem>>, %arg14: memref<1x1x192xf32, #tpu.memory_space<vmem>>, %arg15: memref<1x5x192x768xbf16, #tpu.memory_space<vmem>>, %arg16: memref<1x1x768xf32, #tpu.memory_space<vmem>>, %arg17: memref<1x5x768x192xbf16, #tpu.memory_space<vmem>>, %arg18: memref<1x1x192xf32, #tpu.memory_space<vmem>>, %arg19: memref<1x1x192xf32, #tpu.memory_space<vmem>>, %arg20: memref<1x1x192xf32, #tpu.memory_space<vmem>>, %arg21: memref<192x128xbf16, #tpu.memory_space<vmem>>, %arg22: memref<1x128xf32, #tpu.memory_space<vmem>>, %arg23: memref<32x192xf32, #tpu.memory_space<vmem>>, %arg24: memref<32x128xf32, #tpu.memory_space<vmem>>, %arg25: memref<32x192xf32, #tpu.memory_space<vmem>>) attributes {dimension_semantics = [#tpu.dimension_semantics<arbitrary>], iteration_bounds = array<i64: 5>, scalar_prefetch = 0 : i64, scratch_operands = 1 : i64, tpu.core_type = #tpu.core_type<tc>, window_params = [{pipeline_mode = #tpu.pipeline_mode<synchronous>, transform_indices = @transform_0, window_bounds = array<i64: 32, 192>}, {pipeline_mode = #tpu.pipeline_mode<synchronous>, transform_indices = @transform_1, window_bounds = array<i64: 32, 1>}, {pipeline_mode = #tpu.pipeline_mode<synchronous>, transform_indices = @transform_2, window_bounds = array<i64: 2, 16, 16>}, {pipeline_mode = #tpu.pipeline_mode<synchronous>, transform_indices = @transform_3, window_bounds = array<i64: 5, 32, 32>}, {transform_indices = @transform_4, window_bounds = array<i64: 1, 192, 256>}, {transform_indices = @transform_5, window_bounds = array<i64: 1, 1, 256>}, {transform_indices = @transform_6, window_bounds = array<i64: 1, 192, 256>}, {transform_indices = @transform_7, window_bounds = array<i64: 1, 1, 256>}, {transform_indices = @transform_8, window_bounds = array<i64: 1, 192, 256>}, {transform_indices = @transform_9, window_bounds = array<i64: 1, 1, 256>}, {transform_indices = @transform_10, window_bounds = array<i64: 1, 256, 192>}, {transform_indices = @transform_11, window_bounds = array<i64: 1, 1, 192>}, {transform_indices = @transform_12, window_bounds = array<i64: 1, 1, 192>}, {transform_indices = @transform_13, window_bounds = array<i64: 1, 1, 192>}, {transform_indices = @transform_14, window_bounds = array<i64: 1, 5, 192, 768>}, {transform_indices = @transform_15, window_bounds = array<i64: 1, 1, 768>}, {transform_indices = @transform_16, window_bounds = array<i64: 1, 5, 768, 192>}, {transform_indices = @transform_17, window_bounds = array<i64: 1, 1, 192>}, {transform_indices = @transform_18, window_bounds = array<i64: 1, 1, 192>}, {transform_indices = @transform_19, window_bounds = array<i64: 1, 1, 192>}, {pipeline_mode = #tpu.pipeline_mode<synchronous>, transform_indices = @transform_20, window_bounds = array<i64: 192, 128>}, {pipeline_mode = #tpu.pipeline_mode<synchronous>, transform_indices = @transform_21, window_bounds = array<i64: 1, 128>}, {pipeline_mode = #tpu.pipeline_mode<synchronous>, transform_indices = @transform_22, window_bounds = array<i64: 32, 192>}, {pipeline_mode = #tpu.pipeline_mode<synchronous>, transform_indices = @transform_23, window_bounds = array<i64: 32, 128>}]} {
    %c0_i32 = arith.constant 0 : i32
    %0 = arith.cmpi eq, %arg0, %c0_i32 : i32
    %1 = arith.extui %0 : i1 to i32
    %c0_i32_0 = arith.constant 0 : i32
    %2 = arith.cmpi ne, %1, %c0_i32_0 : i32
    scf.if %2 {
      %c0_181 = arith.constant 0 : index
      %c0_182 = arith.constant 0 : index
      %288 = vector.load %arg1[%c0_181, %c0_182] : memref<32x192xf32, #tpu.memory_space<vmem>>, vector<32x192xf32>
      %c0_183 = arith.constant 0 : index
      %c0_184 = arith.constant 0 : index
      %289 = vector.load %arg25[%c0_183, %c0_184] : memref<32x192xf32, #tpu.memory_space<vmem>>, vector<32x192xf32>
      tpu.vector_store %arg25[%c0_183, %c0_184], %288 {strides = array<i32>} : memref<32x192xf32, #tpu.memory_space<vmem>>, vector<32x192xf32>,
    } else {
    }
    %c0 = arith.constant 0 : index
    %c0_1 = arith.constant 0 : index
    %3 = vector.load %arg25[%c0, %c0_1] : memref<32x192xf32, #tpu.memory_space<vmem>>, vector<32x192xf32>
    %c0_2 = arith.constant 0 : index
    %c0_3 = arith.constant 0 : index
    %4 = vector.load %arg2[%c0_2, %c0_3] : memref<32x1xf32, #tpu.memory_space<vmem>>, vector<32x1xf32>
    %5 = arith.truncf %3 : vector<32x192xf32> to vector<32x192xbf16>
    %c0_4 = arith.constant 0 : index
    %c0_5 = arith.constant 0 : index
    %c0_6 = arith.constant 0 : index
    %6 = vector.load %arg5[%c0_4, %c0_5, %c0_6] : memref<1x192x256xbf16, #tpu.memory_space<vmem>>, vector<1x192x256xbf16>
    %7 = vector.shape_cast %6 : vector<1x192x256xbf16> to vector<192x256xbf16>
    %cst = arith.constant dense<0.000000e+00> : vector<32x256xf32>
    %8 = tpu.matmul %5, %7, %cst {dimension_numbers = #tpu.dot_dimension_numbers<[1], [0], [0], [1], [0, 0, 1, 1], [], []>} : vector<32x192xbf16>, vector<192x256xbf16>, vector<32x256xf32> -> vector<32x256xf32>
    %c0_7 = arith.constant 0 : index
    %c0_8 = arith.constant 0 : index
    %c0_9 = arith.constant 0 : index
    %9 = vector.load %arg6[%c0_7, %c0_8, %c0_9] : memref<1x1x256xf32, #tpu.memory_space<vmem>>, vector<1x1x256xf32>
    %10 = vector.shape_cast %9 : vector<1x1x256xf32> to vector<1x256xf32>
    %11 = vector.broadcast %10 : vector<1x256xf32> to vector<32x256xf32>
    %12 = arith.addf %8, %11 : vector<32x256xf32>
    %c0_10 = arith.constant 0 : index
    %c0_11 = arith.constant 0 : index
    %c0_12 = arith.constant 0 : index
    %13 = vector.load %arg7[%c0_10, %c0_11, %c0_12] : memref<1x192x256xbf16, #tpu.memory_space<vmem>>, vector<1x192x256xbf16>
    %14 = vector.shape_cast %13 : vector<1x192x256xbf16> to vector<192x256xbf16>
    %cst_13 = arith.constant dense<0.000000e+00> : vector<32x256xf32>
    %15 = tpu.matmul %5, %14, %cst_13 {dimension_numbers = #tpu.dot_dimension_numbers<[1], [0], [0], [1], [0, 0, 1, 1], [], []>} : vector<32x192xbf16>, vector<192x256xbf16>, vector<32x256xf32> -> vector<32x256xf32>
    %c0_14 = arith.constant 0 : index
    %c0_15 = arith.constant 0 : index
    %c0_16 = arith.constant 0 : index
    %16 = vector.load %arg8[%c0_14, %c0_15, %c0_16] : memref<1x1x256xf32, #tpu.memory_space<vmem>>, vector<1x1x256xf32>
    %17 = vector.shape_cast %16 : vector<1x1x256xf32> to vector<1x256xf32>
    %18 = vector.broadcast %17 : vector<1x256xf32> to vector<32x256xf32>
    %19 = arith.addf %15, %18 : vector<32x256xf32>
    %c0_17 = arith.constant 0 : index
    %c0_18 = arith.constant 0 : index
    %c0_19 = arith.constant 0 : index
    %20 = vector.load %arg9[%c0_17, %c0_18, %c0_19] : memref<1x192x256xbf16, #tpu.memory_space<vmem>>, vector<1x192x256xbf16>
    %21 = vector.shape_cast %20 : vector<1x192x256xbf16> to vector<192x256xbf16>
    %cst_20 = arith.constant dense<0.000000e+00> : vector<32x256xf32>
    %22 = tpu.matmul %5, %21, %cst_20 {dimension_numbers = #tpu.dot_dimension_numbers<[1], [0], [0], [1], [0, 0, 1, 1], [], []>} : vector<32x192xbf16>, vector<192x256xbf16>, vector<32x256xf32> -> vector<32x256xf32>
    %c0_21 = arith.constant 0 : index
    %c0_22 = arith.constant 0 : index
    %c0_23 = arith.constant 0 : index
    %23 = vector.load %arg10[%c0_21, %c0_22, %c0_23] : memref<1x1x256xf32, #tpu.memory_space<vmem>>, vector<1x1x256xf32>
    %24 = vector.shape_cast %23 : vector<1x1x256xf32> to vector<1x256xf32>
    %25 = vector.broadcast %24 : vector<1x256xf32> to vector<32x256xf32>
    %26 = arith.addf %22, %25 : vector<32x256xf32>
    %c0_24 = arith.constant 0 : index
    %c0_25 = arith.constant 0 : index
    %c0_26 = arith.constant 0 : index
    %27 = vector.load %arg3[%c0_24, %c0_25, %c0_26] : memref<2x16x16xf32, #tpu.memory_space<vmem>>, vector<1x16x16xf32>
    %28 = vector.shape_cast %27 : vector<1x16x16xf32> to vector<16x16xf32>
    %29 = vector.extract_strided_slice %12 {offsets = [0, 0], sizes = [16, 128], strides = [1, 1]} : vector<32x256xf32> to vector<16x128xf32>
    %30 = arith.truncf %29 : vector<16x128xf32> to vector<16x128xbf16>
    %31 = vector.extract_strided_slice %19 {offsets = [0, 0], sizes = [16, 128], strides = [1, 1]} : vector<32x256xf32> to vector<16x128xf32>
    %32 = arith.truncf %31 : vector<16x128xf32> to vector<16x128xbf16>
    %33 = vector.extract_strided_slice %26 {offsets = [0, 0], sizes = [16, 128], strides = [1, 1]} : vector<32x256xf32> to vector<16x128xf32>
    %34 = arith.truncf %33 : vector<16x128xf32> to vector<16x128xbf16>
    %cst_27 = arith.constant dense<0.000000e+00> : vector<16x16xf32>
    %35 = tpu.matmul %30, %32, %cst_27 {dimension_numbers = #tpu.dot_dimension_numbers<[1], [1], [0], [0], [0, 0, 1, 0], [], []>} : vector<16x128xbf16>, vector<16x128xbf16>, vector<16x16xf32> -> vector<16x16xf32>
    %cst_28 = arith.constant 0.000000e+00 : f32
    %36 = vector.broadcast %cst_28 : f32 to vector<16x16xf32>
    %37 = arith.cmpf ogt, %28, %36 : vector<16x16xf32>
    %cst_29 = arith.constant -1.000000e+04 : f32
    %38 = vector.broadcast %cst_29 : f32 to vector<16x16xf32>
    %39 = arith.select %37, %35, %38 : vector<16x16xi1>, vector<16x16xf32>
    %cst_30 = arith.constant dense<0xFF800000> : vector<16xf32>
    %40 = vector.multi_reduction <maximumf>, %39, %cst_30 [1] : vector<16x16xf32> to vector<16xf32>
    %41 = vector.shape_cast %40 : vector<16xf32> to vector<16x1xf32>
    %42 = vector.broadcast %41 : vector<16x1xf32> to vector<16x16xf32>
    %43 = arith.subf %39, %42 : vector<16x16xf32>
    %44 = math.exp %43 : vector<16x16xf32>
    %cst_31 = arith.constant dense<0.000000e+00> : vector<16xf32>
    %45 = vector.multi_reduction <add>, %44, %cst_31 [1] : vector<16x16xf32> to vector<16xf32>
    %46 = vector.shape_cast %45 : vector<16xf32> to vector<16x1xf32>
    %47 = tpu.reciprocal %46 {approx = true} : vector<16x1xf32> -> vector<16x1xf32>
    %48 = vector.broadcast %47 : vector<16x1xf32> to vector<16x16xf32>
    %49 = arith.mulf %44, %48 : vector<16x16xf32>
    %50 = arith.truncf %49 : vector<16x16xf32> to vector<16x16xbf16>
    %cst_32 = arith.constant dense<0.000000e+00> : vector<16x128xf32>
    %51 = tpu.matmul %50, %34, %cst_32 {dimension_numbers = #tpu.dot_dimension_numbers<[1], [0], [0], [1], [0, 0, 1, 1], [], []>} : vector<16x16xbf16>, vector<16x128xbf16>, vector<16x128xf32> -> vector<16x128xf32>
    %52 = vector.extract_strided_slice %12 {offsets = [0, 128], sizes = [16, 128], strides = [1, 1]} : vector<32x256xf32> to vector<16x128xf32>
    %53 = arith.truncf %52 : vector<16x128xf32> to vector<16x128xbf16>
    %54 = vector.extract_strided_slice %19 {offsets = [0, 128], sizes = [16, 128], strides = [1, 1]} : vector<32x256xf32> to vector<16x128xf32>
    %55 = arith.truncf %54 : vector<16x128xf32> to vector<16x128xbf16>
    %56 = vector.extract_strided_slice %26 {offsets = [0, 128], sizes = [16, 128], strides = [1, 1]} : vector<32x256xf32> to vector<16x128xf32>
    %57 = arith.truncf %56 : vector<16x128xf32> to vector<16x128xbf16>
    %cst_33 = arith.constant dense<0.000000e+00> : vector<16x16xf32>
    %58 = tpu.matmul %53, %55, %cst_33 {dimension_numbers = #tpu.dot_dimension_numbers<[1], [1], [0], [0], [0, 0, 1, 0], [], []>} : vector<16x128xbf16>, vector<16x128xbf16>, vector<16x16xf32> -> vector<16x16xf32>
    %cst_34 = arith.constant 0.000000e+00 : f32
    %59 = vector.broadcast %cst_34 : f32 to vector<16x16xf32>
    %60 = arith.cmpf ogt, %28, %59 : vector<16x16xf32>
    %cst_35 = arith.constant -1.000000e+04 : f32
    %61 = vector.broadcast %cst_35 : f32 to vector<16x16xf32>
    %62 = arith.select %60, %58, %61 : vector<16x16xi1>, vector<16x16xf32>
    %cst_36 = arith.constant dense<0xFF800000> : vector<16xf32>
    %63 = vector.multi_reduction <maximumf>, %62, %cst_36 [1] : vector<16x16xf32> to vector<16xf32>
    %64 = vector.shape_cast %63 : vector<16xf32> to vector<16x1xf32>
    %65 = vector.broadcast %64 : vector<16x1xf32> to vector<16x16xf32>
    %66 = arith.subf %62, %65 : vector<16x16xf32>
    %67 = math.exp %66 : vector<16x16xf32>
    %cst_37 = arith.constant dense<0.000000e+00> : vector<16xf32>
    %68 = vector.multi_reduction <add>, %67, %cst_37 [1] : vector<16x16xf32> to vector<16xf32>
    %69 = vector.shape_cast %68 : vector<16xf32> to vector<16x1xf32>
    %70 = tpu.reciprocal %69 {approx = true} : vector<16x1xf32> -> vector<16x1xf32>
    %71 = vector.broadcast %70 : vector<16x1xf32> to vector<16x16xf32>
    %72 = arith.mulf %67, %71 : vector<16x16xf32>
    %73 = arith.truncf %72 : vector<16x16xf32> to vector<16x16xbf16>
    %cst_38 = arith.constant dense<0.000000e+00> : vector<16x128xf32>
    %74 = tpu.matmul %73, %57, %cst_38 {dimension_numbers = #tpu.dot_dimension_numbers<[1], [0], [0], [1], [0, 0, 1, 1], [], []>} : vector<16x16xbf16>, vector<16x128xbf16>, vector<16x128xf32> -> vector<16x128xf32>
    %75 = tpu.concatenate %51, %74 in 1 : vector<16x128xf32>, vector<16x128xf32> -> vector<16x256xf32>
    %c1 = arith.constant 1 : index
    %c0_39 = arith.constant 0 : index
    %c0_40 = arith.constant 0 : index
    %76 = vector.load %arg3[%c1, %c0_39, %c0_40] : memref<2x16x16xf32, #tpu.memory_space<vmem>>, vector<1x16x16xf32>
    %77 = vector.shape_cast %76 : vector<1x16x16xf32> to vector<16x16xf32>
    %78 = vector.extract_strided_slice %12 {offsets = [16, 0], sizes = [16, 128], strides = [1, 1]} : vector<32x256xf32> to vector<16x128xf32>
    %79 = arith.truncf %78 : vector<16x128xf32> to vector<16x128xbf16>
    %80 = vector.extract_strided_slice %19 {offsets = [16, 0], sizes = [16, 128], strides = [1, 1]} : vector<32x256xf32> to vector<16x128xf32>
    %81 = arith.truncf %80 : vector<16x128xf32> to vector<16x128xbf16>
    %82 = vector.extract_strided_slice %26 {offsets = [16, 0], sizes = [16, 128], strides = [1, 1]} : vector<32x256xf32> to vector<16x128xf32>
    %83 = arith.truncf %82 : vector<16x128xf32> to vector<16x128xbf16>
    %cst_41 = arith.constant dense<0.000000e+00> : vector<16x16xf32>
    %84 = tpu.matmul %79, %81, %cst_41 {dimension_numbers = #tpu.dot_dimension_numbers<[1], [1], [0], [0], [0, 0, 1, 0], [], []>} : vector<16x128xbf16>, vector<16x128xbf16>, vector<16x16xf32> -> vector<16x16xf32>
    %cst_42 = arith.constant 0.000000e+00 : f32
    %85 = vector.broadcast %cst_42 : f32 to vector<16x16xf32>
    %86 = arith.cmpf ogt, %77, %85 : vector<16x16xf32>
    %cst_43 = arith.constant -1.000000e+04 : f32
    %87 = vector.broadcast %cst_43 : f32 to vector<16x16xf32>
    %88 = arith.select %86, %84, %87 : vector<16x16xi1>, vector<16x16xf32>
    %cst_44 = arith.constant dense<0xFF800000> : vector<16xf32>
    %89 = vector.multi_reduction <maximumf>, %88, %cst_44 [1] : vector<16x16xf32> to vector<16xf32>
    %90 = vector.shape_cast %89 : vector<16xf32> to vector<16x1xf32>
    %91 = vector.broadcast %90 : vector<16x1xf32> to vector<16x16xf32>
    %92 = arith.subf %88, %91 : vector<16x16xf32>
    %93 = math.exp %92 : vector<16x16xf32>
    %cst_45 = arith.constant dense<0.000000e+00> : vector<16xf32>
    %94 = vector.multi_reduction <add>, %93, %cst_45 [1] : vector<16x16xf32> to vector<16xf32>
    %95 = vector.shape_cast %94 : vector<16xf32> to vector<16x1xf32>
    %96 = tpu.reciprocal %95 {approx = true} : vector<16x1xf32> -> vector<16x1xf32>
    %97 = vector.broadcast %96 : vector<16x1xf32> to vector<16x16xf32>
    %98 = arith.mulf %93, %97 : vector<16x16xf32>
    %99 = arith.truncf %98 : vector<16x16xf32> to vector<16x16xbf16>
    %cst_46 = arith.constant dense<0.000000e+00> : vector<16x128xf32>
    %100 = tpu.matmul %99, %83, %cst_46 {dimension_numbers = #tpu.dot_dimension_numbers<[1], [0], [0], [1], [0, 0, 1, 1], [], []>} : vector<16x16xbf16>, vector<16x128xbf16>, vector<16x128xf32> -> vector<16x128xf32>
    %101 = vector.extract_strided_slice %12 {offsets = [16, 128], sizes = [16, 128], strides = [1, 1]} : vector<32x256xf32> to vector<16x128xf32>
    %102 = arith.truncf %101 : vector<16x128xf32> to vector<16x128xbf16>
    %103 = vector.extract_strided_slice %19 {offsets = [16, 128], sizes = [16, 128], strides = [1, 1]} : vector<32x256xf32> to vector<16x128xf32>
    %104 = arith.truncf %103 : vector<16x128xf32> to vector<16x128xbf16>
    %105 = vector.extract_strided_slice %26 {offsets = [16, 128], sizes = [16, 128], strides = [1, 1]} : vector<32x256xf32> to vector<16x128xf32>
    %106 = arith.truncf %105 : vector<16x128xf32> to vector<16x128xbf16>
    %cst_47 = arith.constant dense<0.000000e+00> : vector<16x16xf32>
    %107 = tpu.matmul %102, %104, %cst_47 {dimension_numbers = #tpu.dot_dimension_numbers<[1], [1], [0], [0], [0, 0, 1, 0], [], []>} : vector<16x128xbf16>, vector<16x128xbf16>, vector<16x16xf32> -> vector<16x16xf32>
    %cst_48 = arith.constant 0.000000e+00 : f32
    %108 = vector.broadcast %cst_48 : f32 to vector<16x16xf32>
    %109 = arith.cmpf ogt, %77, %108 : vector<16x16xf32>
    %cst_49 = arith.constant -1.000000e+04 : f32
    %110 = vector.broadcast %cst_49 : f32 to vector<16x16xf32>
    %111 = arith.select %109, %107, %110 : vector<16x16xi1>, vector<16x16xf32>
    %cst_50 = arith.constant dense<0xFF800000> : vector<16xf32>
    %112 = vector.multi_reduction <maximumf>, %111, %cst_50 [1] : vector<16x16xf32> to vector<16xf32>
    %113 = vector.shape_cast %112 : vector<16xf32> to vector<16x1xf32>
    %114 = vector.broadcast %113 : vector<16x1xf32> to vector<16x16xf32>
    %115 = arith.subf %111, %114 : vector<16x16xf32>
    %116 = math.exp %115 : vector<16x16xf32>
    %cst_51 = arith.constant dense<0.000000e+00> : vector<16xf32>
    %117 = vector.multi_reduction <add>, %116, %cst_51 [1] : vector<16x16xf32> to vector<16xf32>
    %118 = vector.shape_cast %117 : vector<16xf32> to vector<16x1xf32>
    %119 = tpu.reciprocal %118 {approx = true} : vector<16x1xf32> -> vector<16x1xf32>
    %120 = vector.broadcast %119 : vector<16x1xf32> to vector<16x16xf32>
    %121 = arith.mulf %116, %120 : vector<16x16xf32>
    %122 = arith.truncf %121 : vector<16x16xf32> to vector<16x16xbf16>
    %cst_52 = arith.constant dense<0.000000e+00> : vector<16x128xf32>
    %123 = tpu.matmul %122, %106, %cst_52 {dimension_numbers = #tpu.dot_dimension_numbers<[1], [0], [0], [1], [0, 0, 1, 1], [], []>} : vector<16x16xbf16>, vector<16x128xbf16>, vector<16x128xf32> -> vector<16x128xf32>
    %124 = tpu.concatenate %100, %123 in 1 : vector<16x128xf32>, vector<16x128xf32> -> vector<16x256xf32>
    %125 = tpu.concatenate %75, %124 in 0 : vector<16x256xf32>, vector<16x256xf32> -> vector<32x256xf32>
    %126 = arith.truncf %125 : vector<32x256xf32> to vector<32x256xbf16>
    %c0_53 = arith.constant 0 : index
    %c0_54 = arith.constant 0 : index
    %c0_55 = arith.constant 0 : index
    %127 = vector.load %arg11[%c0_53, %c0_54, %c0_55] : memref<1x256x192xbf16, #tpu.memory_space<vmem>>, vector<1x256x192xbf16>
    %128 = vector.shape_cast %127 : vector<1x256x192xbf16> to vector<256x192xbf16>
    %cst_56 = arith.constant dense<0.000000e+00> : vector<32x192xf32>
    %129 = tpu.matmul %126, %128, %cst_56 {dimension_numbers = #tpu.dot_dimension_numbers<[1], [0], [0], [1], [0, 0, 1, 1], [], []>} : vector<32x256xbf16>, vector<256x192xbf16>, vector<32x192xf32> -> vector<32x192xf32>
    %c0_57 = arith.constant 0 : index
    %c0_58 = arith.constant 0 : index
    %c0_59 = arith.constant 0 : index
    %130 = vector.load %arg12[%c0_57, %c0_58, %c0_59] : memref<1x1x192xf32, #tpu.memory_space<vmem>>, vector<1x1x192xf32>
    %131 = vector.shape_cast %130 : vector<1x1x192xf32> to vector<1x192xf32>
    %132 = vector.broadcast %131 : vector<1x192xf32> to vector<32x192xf32>
    %133 = arith.addf %129, %132 : vector<32x192xf32>
    %134 = arith.addf %3, %133 : vector<32x192xf32>
    %c0_60 = arith.constant 0 : index
    %c0_61 = arith.constant 0 : index
    %c0_62 = arith.constant 0 : index
    %135 = vector.load %arg13[%c0_60, %c0_61, %c0_62] : memref<1x1x192xf32, #tpu.memory_space<vmem>>, vector<1x1x192xf32>
    %136 = vector.shape_cast %135 : vector<1x1x192xf32> to vector<1x192xf32>
    %c0_63 = arith.constant 0 : index
    %c0_64 = arith.constant 0 : index
    %c0_65 = arith.constant 0 : index
    %137 = vector.load %arg14[%c0_63, %c0_64, %c0_65] : memref<1x1x192xf32, #tpu.memory_space<vmem>>, vector<1x1x192xf32>
    %138 = vector.shape_cast %137 : vector<1x1x192xf32> to vector<1x192xf32>
    %cst_66 = arith.constant dense<0.000000e+00> : vector<32xf32>
    %139 = vector.multi_reduction <add>, %134, %cst_66 [1] : vector<32x192xf32> to vector<32xf32>
    %140 = vector.shape_cast %139 : vector<32xf32> to vector<32x1xf32>
    %cst_67 = arith.constant 1.920000e+02 : f32
    %141 = vector.broadcast %cst_67 : f32 to vector<32x1xf32>
    %142 = arith.divf %140, %141 : vector<32x1xf32>
    %143 = vector.broadcast %142 : vector<32x1xf32> to vector<32x192xf32>
    %144 = arith.subf %134, %143 : vector<32x192xf32>
    %145 = arith.mulf %144, %144 : vector<32x192xf32>
    %cst_68 = arith.constant dense<0.000000e+00> : vector<32xf32>
    %146 = vector.multi_reduction <add>, %145, %cst_68 [1] : vector<32x192xf32> to vector<32xf32>
    %147 = vector.shape_cast %146 : vector<32xf32> to vector<32x1xf32>
    %cst_69 = arith.constant 1.920000e+02 : f32
    %148 = vector.broadcast %cst_69 : f32 to vector<32x1xf32>
    %149 = arith.divf %147, %148 : vector<32x1xf32>
    %cst_70 = arith.constant 9.99999974E-6 : f32
    %150 = vector.broadcast %cst_70 : f32 to vector<32x1xf32>
    %151 = arith.addf %149, %150 : vector<32x1xf32>
    %152 = math.rsqrt %151 : vector<32x1xf32>
    %153 = vector.broadcast %152 : vector<32x1xf32> to vector<32x192xf32>
    %154 = arith.mulf %144, %153 : vector<32x192xf32>
    %155 = vector.broadcast %136 : vector<1x192xf32> to vector<32x192xf32>
    %156 = arith.mulf %154, %155 : vector<32x192xf32>
    %157 = vector.broadcast %138 : vector<1x192xf32> to vector<32x192xf32>
    %158 = arith.addf %156, %157 : vector<32x192xf32>
    %159 = vector.broadcast %4 : vector<32x1xf32> to vector<32x192xf32>
    %160 = arith.mulf %158, %159 : vector<32x192xf32>
    %161 = arith.truncf %160 : vector<32x192xf32> to vector<32x192xbf16>
    %cst_71 = arith.constant 0.000000e+00 : f32
    %162 = vector.broadcast %cst_71 : f32 to vector<32x768xf32>
    %c0_72 = arith.constant 0 : index
    %c0_73 = arith.constant 0 : index
    %c0_74 = arith.constant 0 : index
    %163 = vector.load %arg4[%c0_72, %c0_73, %c0_74] : memref<5x32x32xbf16, #tpu.memory_space<vmem>>, vector<1x32x32xbf16>
    %164 = vector.shape_cast %163 : vector<1x32x32xbf16> to vector<32x32xbf16>
    %cst_75 = arith.constant dense<0.000000e+00> : vector<32x192xf32>
    %165 = tpu.matmul %164, %161, %cst_75 {dimension_numbers = #tpu.dot_dimension_numbers<[1], [0], [0], [1], [0, 0, 1, 1], [], []>} : vector<32x32xbf16>, vector<32x192xbf16>, vector<32x192xf32> -> vector<32x192xf32>
    %166 = arith.truncf %165 : vector<32x192xf32> to vector<32x192xbf16>
    %c0_76 = arith.constant 0 : index
    %c0_77 = arith.constant 0 : index
    %c0_78 = arith.constant 0 : index
    %c0_79 = arith.constant 0 : index
    %167 = vector.load %arg15[%c0_76, %c0_77, %c0_78, %c0_79] : memref<1x5x192x768xbf16, #tpu.memory_space<vmem>>, vector<1x1x192x768xbf16>
    %168 = vector.shape_cast %167 : vector<1x1x192x768xbf16> to vector<192x768xbf16>
    %cst_80 = arith.constant dense<0.000000e+00> : vector<32x768xf32>
    %169 = tpu.matmul %166, %168, %cst_80 {dimension_numbers = #tpu.dot_dimension_numbers<[1], [0], [0], [1], [0, 0, 1, 1], [], []>} : vector<32x192xbf16>, vector<192x768xbf16>, vector<32x768xf32> -> vector<32x768xf32>
    %170 = arith.addf %162, %169 : vector<32x768xf32>
    %c1_81 = arith.constant 1 : index
    %c0_82 = arith.constant 0 : index
    %c0_83 = arith.constant 0 : index
    %171 = vector.load %arg4[%c1_81, %c0_82, %c0_83] : memref<5x32x32xbf16, #tpu.memory_space<vmem>>, vector<1x32x32xbf16>
    %172 = vector.shape_cast %171 : vector<1x32x32xbf16> to vector<32x32xbf16>
    %cst_84 = arith.constant dense<0.000000e+00> : vector<32x192xf32>
    %173 = tpu.matmul %172, %161, %cst_84 {dimension_numbers = #tpu.dot_dimension_numbers<[1], [0], [0], [1], [0, 0, 1, 1], [], []>} : vector<32x32xbf16>, vector<32x192xbf16>, vector<32x192xf32> -> vector<32x192xf32>
    %174 = arith.truncf %173 : vector<32x192xf32> to vector<32x192xbf16>
    %c0_85 = arith.constant 0 : index
    %c1_86 = arith.constant 1 : index
    %c0_87 = arith.constant 0 : index
    %c0_88 = arith.constant 0 : index
    %175 = vector.load %arg15[%c0_85, %c1_86, %c0_87, %c0_88] : memref<1x5x192x768xbf16, #tpu.memory_space<vmem>>, vector<1x1x192x768xbf16>
    %176 = vector.shape_cast %175 : vector<1x1x192x768xbf16> to vector<192x768xbf16>
    %cst_89 = arith.constant dense<0.000000e+00> : vector<32x768xf32>
    %177 = tpu.matmul %174, %176, %cst_89 {dimension_numbers = #tpu.dot_dimension_numbers<[1], [0], [0], [1], [0, 0, 1, 1], [], []>} : vector<32x192xbf16>, vector<192x768xbf16>, vector<32x768xf32> -> vector<32x768xf32>
    %178 = arith.addf %170, %177 : vector<32x768xf32>
    %c2 = arith.constant 2 : index
    %c0_90 = arith.constant 0 : index
    %c0_91 = arith.constant 0 : index
    %179 = vector.load %arg4[%c2, %c0_90, %c0_91] : memref<5x32x32xbf16, #tpu.memory_space<vmem>>, vector<1x32x32xbf16>
    %180 = vector.shape_cast %179 : vector<1x32x32xbf16> to vector<32x32xbf16>
    %cst_92 = arith.constant dense<0.000000e+00> : vector<32x192xf32>
    %181 = tpu.matmul %180, %161, %cst_92 {dimension_numbers = #tpu.dot_dimension_numbers<[1], [0], [0], [1], [0, 0, 1, 1], [], []>} : vector<32x32xbf16>, vector<32x192xbf16>, vector<32x192xf32> -> vector<32x192xf32>
    %182 = arith.truncf %181 : vector<32x192xf32> to vector<32x192xbf16>
    %c0_93 = arith.constant 0 : index
    %c2_94 = arith.constant 2 : index
    %c0_95 = arith.constant 0 : index
    %c0_96 = arith.constant 0 : index
    %183 = vector.load %arg15[%c0_93, %c2_94, %c0_95, %c0_96] : memref<1x5x192x768xbf16, #tpu.memory_space<vmem>>, vector<1x1x192x768xbf16>
    %184 = vector.shape_cast %183 : vector<1x1x192x768xbf16> to vector<192x768xbf16>
    %cst_97 = arith.constant dense<0.000000e+00> : vector<32x768xf32>
    %185 = tpu.matmul %182, %184, %cst_97 {dimension_numbers = #tpu.dot_dimension_numbers<[1], [0], [0], [1], [0, 0, 1, 1], [], []>} : vector<32x192xbf16>, vector<192x768xbf16>, vector<32x768xf32> -> vector<32x768xf32>
    %186 = arith.addf %178, %185 : vector<32x768xf32>
    %c3 = arith.constant 3 : index
    %c0_98 = arith.constant 0 : index
    %c0_99 = arith.constant 0 : index
    %187 = vector.load %arg4[%c3, %c0_98, %c0_99] : memref<5x32x32xbf16, #tpu.memory_space<vmem>>, vector<1x32x32xbf16>
    %188 = vector.shape_cast %187 : vector<1x32x32xbf16> to vector<32x32xbf16>
    %cst_100 = arith.constant dense<0.000000e+00> : vector<32x192xf32>
    %189 = tpu.matmul %188, %161, %cst_100 {dimension_numbers = #tpu.dot_dimension_numbers<[1], [0], [0], [1], [0, 0, 1, 1], [], []>} : vector<32x32xbf16>, vector<32x192xbf16>, vector<32x192xf32> -> vector<32x192xf32>
    %190 = arith.truncf %189 : vector<32x192xf32> to vector<32x192xbf16>
    %c0_101 = arith.constant 0 : index
    %c3_102 = arith.constant 3 : index
    %c0_103 = arith.constant 0 : index
    %c0_104 = arith.constant 0 : index
    %191 = vector.load %arg15[%c0_101, %c3_102, %c0_103, %c0_104] : memref<1x5x192x768xbf16, #tpu.memory_space<vmem>>, vector<1x1x192x768xbf16>
    %192 = vector.shape_cast %191 : vector<1x1x192x768xbf16> to vector<192x768xbf16>
    %cst_105 = arith.constant dense<0.000000e+00> : vector<32x768xf32>
    %193 = tpu.matmul %190, %192, %cst_105 {dimension_numbers = #tpu.dot_dimension_numbers<[1], [0], [0], [1], [0, 0, 1, 1], [], []>} : vector<32x192xbf16>, vector<192x768xbf16>, vector<32x768xf32> -> vector<32x768xf32>
    %194 = arith.addf %186, %193 : vector<32x768xf32>
    %c4 = arith.constant 4 : index
    %c0_106 = arith.constant 0 : index
    %c0_107 = arith.constant 0 : index
    %195 = vector.load %arg4[%c4, %c0_106, %c0_107] : memref<5x32x32xbf16, #tpu.memory_space<vmem>>, vector<1x32x32xbf16>
    %196 = vector.shape_cast %195 : vector<1x32x32xbf16> to vector<32x32xbf16>
    %cst_108 = arith.constant dense<0.000000e+00> : vector<32x192xf32>
    %197 = tpu.matmul %196, %161, %cst_108 {dimension_numbers = #tpu.dot_dimension_numbers<[1], [0], [0], [1], [0, 0, 1, 1], [], []>} : vector<32x32xbf16>, vector<32x192xbf16>, vector<32x192xf32> -> vector<32x192xf32>
    %198 = arith.truncf %197 : vector<32x192xf32> to vector<32x192xbf16>
    %c0_109 = arith.constant 0 : index
    %c4_110 = arith.constant 4 : index
    %c0_111 = arith.constant 0 : index
    %c0_112 = arith.constant 0 : index
    %199 = vector.load %arg15[%c0_109, %c4_110, %c0_111, %c0_112] : memref<1x5x192x768xbf16, #tpu.memory_space<vmem>>, vector<1x1x192x768xbf16>
    %200 = vector.shape_cast %199 : vector<1x1x192x768xbf16> to vector<192x768xbf16>
    %cst_113 = arith.constant dense<0.000000e+00> : vector<32x768xf32>
    %201 = tpu.matmul %198, %200, %cst_113 {dimension_numbers = #tpu.dot_dimension_numbers<[1], [0], [0], [1], [0, 0, 1, 1], [], []>} : vector<32x192xbf16>, vector<192x768xbf16>, vector<32x768xf32> -> vector<32x768xf32>
    %202 = arith.addf %194, %201 : vector<32x768xf32>
    %c0_114 = arith.constant 0 : index
    %c0_115 = arith.constant 0 : index
    %c0_116 = arith.constant 0 : index
    %203 = vector.load %arg16[%c0_114, %c0_115, %c0_116] : memref<1x1x768xf32, #tpu.memory_space<vmem>>, vector<1x1x768xf32>
    %204 = vector.shape_cast %203 : vector<1x1x768xf32> to vector<1x768xf32>
    %205 = vector.broadcast %204 : vector<1x768xf32> to vector<32x768xf32>
    %206 = arith.addf %202, %205 : vector<32x768xf32>
    %cst_117 = arith.constant 0.000000e+00 : f32
    %207 = vector.broadcast %cst_117 : f32 to vector<32x768xf32>
    %208 = arith.maximumf %206, %207 : vector<32x768xf32>
    %209 = vector.broadcast %4 : vector<32x1xf32> to vector<32x768xf32>
    %210 = arith.mulf %208, %209 : vector<32x768xf32>
    %211 = arith.truncf %210 : vector<32x768xf32> to vector<32x768xbf16>
    %cst_118 = arith.constant 0.000000e+00 : f32
    %212 = vector.broadcast %cst_118 : f32 to vector<32x192xf32>
    %c0_119 = arith.constant 0 : index
    %c0_120 = arith.constant 0 : index
    %c0_121 = arith.constant 0 : index
    %213 = vector.load %arg4[%c0_119, %c0_120, %c0_121] : memref<5x32x32xbf16, #tpu.memory_space<vmem>>, vector<1x32x32xbf16>
    %214 = vector.shape_cast %213 : vector<1x32x32xbf16> to vector<32x32xbf16>
    %cst_122 = arith.constant dense<0.000000e+00> : vector<32x768xf32>
    %215 = tpu.matmul %214, %211, %cst_122 {dimension_numbers = #tpu.dot_dimension_numbers<[1], [0], [0], [1], [0, 0, 1, 1], [], []>} : vector<32x32xbf16>, vector<32x768xbf16>, vector<32x768xf32> -> vector<32x768xf32>
    %216 = arith.truncf %215 : vector<32x768xf32> to vector<32x768xbf16>
    %c0_123 = arith.constant 0 : index
    %c0_124 = arith.constant 0 : index
    %c0_125 = arith.constant 0 : index
    %c0_126 = arith.constant 0 : index
    %217 = vector.load %arg17[%c0_123, %c0_124, %c0_125, %c0_126] : memref<1x5x768x192xbf16, #tpu.memory_space<vmem>>, vector<1x1x768x192xbf16>
    %218 = vector.shape_cast %217 : vector<1x1x768x192xbf16> to vector<768x192xbf16>
    %cst_127 = arith.constant dense<0.000000e+00> : vector<32x192xf32>
    %219 = tpu.matmul %216, %218, %cst_127 {dimension_numbers = #tpu.dot_dimension_numbers<[1], [0], [0], [1], [0, 0, 1, 1], [], []>} : vector<32x768xbf16>, vector<768x192xbf16>, vector<32x192xf32> -> vector<32x192xf32>
    %220 = arith.addf %212, %219 : vector<32x192xf32>
    %c1_128 = arith.constant 1 : index
    %c0_129 = arith.constant 0 : index
    %c0_130 = arith.constant 0 : index
    %221 = vector.load %arg4[%c1_128, %c0_129, %c0_130] : memref<5x32x32xbf16, #tpu.memory_space<vmem>>, vector<1x32x32xbf16>
    %222 = vector.shape_cast %221 : vector<1x32x32xbf16> to vector<32x32xbf16>
    %cst_131 = arith.constant dense<0.000000e+00> : vector<32x768xf32>
    %223 = tpu.matmul %222, %211, %cst_131 {dimension_numbers = #tpu.dot_dimension_numbers<[1], [0], [0], [1], [0, 0, 1, 1], [], []>} : vector<32x32xbf16>, vector<32x768xbf16>, vector<32x768xf32> -> vector<32x768xf32>
    %224 = arith.truncf %223 : vector<32x768xf32> to vector<32x768xbf16>
    %c0_132 = arith.constant 0 : index
    %c1_133 = arith.constant 1 : index
    %c0_134 = arith.constant 0 : index
    %c0_135 = arith.constant 0 : index
    %225 = vector.load %arg17[%c0_132, %c1_133, %c0_134, %c0_135] : memref<1x5x768x192xbf16, #tpu.memory_space<vmem>>, vector<1x1x768x192xbf16>
    %226 = vector.shape_cast %225 : vector<1x1x768x192xbf16> to vector<768x192xbf16>
    %cst_136 = arith.constant dense<0.000000e+00> : vector<32x192xf32>
    %227 = tpu.matmul %224, %226, %cst_136 {dimension_numbers = #tpu.dot_dimension_numbers<[1], [0], [0], [1], [0, 0, 1, 1], [], []>} : vector<32x768xbf16>, vector<768x192xbf16>, vector<32x192xf32> -> vector<32x192xf32>
    %228 = arith.addf %220, %227 : vector<32x192xf32>
    %c2_137 = arith.constant 2 : index
    %c0_138 = arith.constant 0 : index
    %c0_139 = arith.constant 0 : index
    %229 = vector.load %arg4[%c2_137, %c0_138, %c0_139] : memref<5x32x32xbf16, #tpu.memory_space<vmem>>, vector<1x32x32xbf16>
    %230 = vector.shape_cast %229 : vector<1x32x32xbf16> to vector<32x32xbf16>
    %cst_140 = arith.constant dense<0.000000e+00> : vector<32x768xf32>
    %231 = tpu.matmul %230, %211, %cst_140 {dimension_numbers = #tpu.dot_dimension_numbers<[1], [0], [0], [1], [0, 0, 1, 1], [], []>} : vector<32x32xbf16>, vector<32x768xbf16>, vector<32x768xf32> -> vector<32x768xf32>
    %232 = arith.truncf %231 : vector<32x768xf32> to vector<32x768xbf16>
    %c0_141 = arith.constant 0 : index
    %c2_142 = arith.constant 2 : index
    %c0_143 = arith.constant 0 : index
    %c0_144 = arith.constant 0 : index
    %233 = vector.load %arg17[%c0_141, %c2_142, %c0_143, %c0_144] : memref<1x5x768x192xbf16, #tpu.memory_space<vmem>>, vector<1x1x768x192xbf16>
    %234 = vector.shape_cast %233 : vector<1x1x768x192xbf16> to vector<768x192xbf16>
    %cst_145 = arith.constant dense<0.000000e+00> : vector<32x192xf32>
    %235 = tpu.matmul %232, %234, %cst_145 {dimension_numbers = #tpu.dot_dimension_numbers<[1], [0], [0], [1], [0, 0, 1, 1], [], []>} : vector<32x768xbf16>, vector<768x192xbf16>, vector<32x192xf32> -> vector<32x192xf32>
    %236 = arith.addf %228, %235 : vector<32x192xf32>
    %c3_146 = arith.constant 3 : index
    %c0_147 = arith.constant 0 : index
    %c0_148 = arith.constant 0 : index
    %237 = vector.load %arg4[%c3_146, %c0_147, %c0_148] : memref<5x32x32xbf16, #tpu.memory_space<vmem>>, vector<1x32x32xbf16>
    %238 = vector.shape_cast %237 : vector<1x32x32xbf16> to vector<32x32xbf16>
    %cst_149 = arith.constant dense<0.000000e+00> : vector<32x768xf32>
    %239 = tpu.matmul %238, %211, %cst_149 {dimension_numbers = #tpu.dot_dimension_numbers<[1], [0], [0], [1], [0, 0, 1, 1], [], []>} : vector<32x32xbf16>, vector<32x768xbf16>, vector<32x768xf32> -> vector<32x768xf32>
    %240 = arith.truncf %239 : vector<32x768xf32> to vector<32x768xbf16>
    %c0_150 = arith.constant 0 : index
    %c3_151 = arith.constant 3 : index
    %c0_152 = arith.constant 0 : index
    %c0_153 = arith.constant 0 : index
    %241 = vector.load %arg17[%c0_150, %c3_151, %c0_152, %c0_153] : memref<1x5x768x192xbf16, #tpu.memory_space<vmem>>, vector<1x1x768x192xbf16>
    %242 = vector.shape_cast %241 : vector<1x1x768x192xbf16> to vector<768x192xbf16>
    %cst_154 = arith.constant dense<0.000000e+00> : vector<32x192xf32>
    %243 = tpu.matmul %240, %242, %cst_154 {dimension_numbers = #tpu.dot_dimension_numbers<[1], [0], [0], [1], [0, 0, 1, 1], [], []>} : vector<32x768xbf16>, vector<768x192xbf16>, vector<32x192xf32> -> vector<32x192xf32>
    %244 = arith.addf %236, %243 : vector<32x192xf32>
    %c4_155 = arith.constant 4 : index
    %c0_156 = arith.constant 0 : index
    %c0_157 = arith.constant 0 : index
    %245 = vector.load %arg4[%c4_155, %c0_156, %c0_157] : memref<5x32x32xbf16, #tpu.memory_space<vmem>>, vector<1x32x32xbf16>
    %246 = vector.shape_cast %245 : vector<1x32x32xbf16> to vector<32x32xbf16>
    %cst_158 = arith.constant dense<0.000000e+00> : vector<32x768xf32>
    %247 = tpu.matmul %246, %211, %cst_158 {dimension_numbers = #tpu.dot_dimension_numbers<[1], [0], [0], [1], [0, 0, 1, 1], [], []>} : vector<32x32xbf16>, vector<32x768xbf16>, vector<32x768xf32> -> vector<32x768xf32>
    %248 = arith.truncf %247 : vector<32x768xf32> to vector<32x768xbf16>
    %c0_159 = arith.constant 0 : index
    %c4_160 = arith.constant 4 : index
    %c0_161 = arith.constant 0 : index
    %c0_162 = arith.constant 0 : index
    %249 = vector.load %arg17[%c0_159, %c4_160, %c0_161, %c0_162] : memref<1x5x768x192xbf16, #tpu.memory_space<vmem>>, vector<1x1x768x192xbf16>
    %250 = vector.shape_cast %249 : vector<1x1x768x192xbf16> to vector<768x192xbf16>
    %cst_163 = arith.constant dense<0.000000e+00> : vector<32x192xf32>
    %251 = tpu.matmul %248, %250, %cst_163 {dimension_numbers = #tpu.dot_dimension_numbers<[1], [0], [0], [1], [0, 0, 1, 1], [], []>} : vector<32x768xbf16>, vector<768x192xbf16>, vector<32x192xf32> -> vector<32x192xf32>
    %252 = arith.addf %244, %251 : vector<32x192xf32>
    %c0_164 = arith.constant 0 : index
    %c0_165 = arith.constant 0 : index
    %c0_166 = arith.constant 0 : index
    %253 = vector.load %arg18[%c0_164, %c0_165, %c0_166] : memref<1x1x192xf32, #tpu.memory_space<vmem>>, vector<1x1x192xf32>
    %254 = vector.shape_cast %253 : vector<1x1x192xf32> to vector<1x192xf32>
    %255 = vector.broadcast %254 : vector<1x192xf32> to vector<32x192xf32>
    %256 = arith.addf %252, %255 : vector<32x192xf32>
    %257 = vector.broadcast %4 : vector<32x1xf32> to vector<32x192xf32>
    %258 = arith.mulf %256, %257 : vector<32x192xf32>
    %259 = arith.addf %158, %258 : vector<32x192xf32>
    %c0_167 = arith.constant 0 : index
    %c0_168 = arith.constant 0 : index
    %c0_169 = arith.constant 0 : index
    %260 = vector.load %arg19[%c0_167, %c0_168, %c0_169] : memref<1x1x192xf32, #tpu.memory_space<vmem>>, vector<1x1x192xf32>
    %261 = vector.shape_cast %260 : vector<1x1x192xf32> to vector<1x192xf32>
    %c0_170 = arith.constant 0 : index
    %c0_171 = arith.constant 0 : index
    %c0_172 = arith.constant 0 : index
    %262 = vector.load %arg20[%c0_170, %c0_171, %c0_172] : memref<1x1x192xf32, #tpu.memory_space<vmem>>, vector<1x1x192xf32>
    %263 = vector.shape_cast %262 : vector<1x1x192xf32> to vector<1x192xf32>
    %cst_173 = arith.constant dense<0.000000e+00> : vector<32xf32>
    %264 = vector.multi_reduction <add>, %259, %cst_173 [1] : vector<32x192xf32> to vector<32xf32>
    %265 = vector.shape_cast %264 : vector<32xf32> to vector<32x1xf32>
    %cst_174 = arith.constant 1.920000e+02 : f32
    %266 = vector.broadcast %cst_174 : f32 to vector<32x1xf32>
    %267 = arith.divf %265, %266 : vector<32x1xf32>
    %268 = vector.broadcast %267 : vector<32x1xf32> to vector<32x192xf32>
    %269 = arith.subf %259, %268 : vector<32x192xf32>
    %270 = arith.mulf %269, %269 : vector<32x192xf32>
    %cst_175 = arith.constant dense<0.000000e+00> : vector<32xf32>
    %271 = vector.multi_reduction <add>, %270, %cst_175 [1] : vector<32x192xf32> to vector<32xf32>
    %272 = vector.shape_cast %271 : vector<32xf32> to vector<32x1xf32>
    %cst_176 = arith.constant 1.920000e+02 : f32
    %273 = vector.broadcast %cst_176 : f32 to vector<32x1xf32>
    %274 = arith.divf %272, %273 : vector<32x1xf32>
    %cst_177 = arith.constant 9.99999974E-6 : f32
    %275 = vector.broadcast %cst_177 : f32 to vector<32x1xf32>
    %276 = arith.addf %274, %275 : vector<32x1xf32>
    %277 = math.rsqrt %276 : vector<32x1xf32>
    %278 = vector.broadcast %277 : vector<32x1xf32> to vector<32x192xf32>
    %279 = arith.mulf %269, %278 : vector<32x192xf32>
    %280 = vector.broadcast %261 : vector<1x192xf32> to vector<32x192xf32>
    %281 = arith.mulf %279, %280 : vector<32x192xf32>
    %282 = vector.broadcast %263 : vector<1x192xf32> to vector<32x192xf32>
    %283 = arith.addf %281, %282 : vector<32x192xf32>
    %c0_178 = arith.constant 0 : index
    %c0_179 = arith.constant 0 : index
    %284 = vector.load %arg25[%c0_178, %c0_179] : memref<32x192xf32, #tpu.memory_space<vmem>>, vector<32x192xf32>
    tpu.vector_store %arg25[%c0_178, %c0_179], %283 {strides = array<i32>} : memref<32x192xf32, #tpu.memory_space<vmem>>, vector<32x192xf32>,
    %c4_i32 = arith.constant 4 : i32
    %285 = arith.cmpi eq, %arg0, %c4_i32 : i32
    %286 = arith.extui %285 : i1 to i32
    %c0_i32_180 = arith.constant 0 : i32
    %287 = arith.cmpi ne, %286, %c0_i32_180 : i32
    scf.if %287 {
      %288 = vector.broadcast %4 : vector<32x1xf32> to vector<32x192xf32>
      %289 = arith.mulf %283, %288 : vector<32x192xf32>
      %c0_181 = arith.constant 0 : index
      %c0_182 = arith.constant 0 : index
      %290 = vector.load %arg23[%c0_181, %c0_182] : memref<32x192xf32, #tpu.memory_space<vmem>>, vector<32x192xf32>
      tpu.vector_store %arg23[%c0_181, %c0_182], %289 {strides = array<i32>} : memref<32x192xf32, #tpu.memory_space<vmem>>, vector<32x192xf32>,
      %291 = arith.truncf %289 : vector<32x192xf32> to vector<32x192xbf16>
      %c0_183 = arith.constant 0 : index
      %c0_184 = arith.constant 0 : index
      %292 = vector.load %arg21[%c0_183, %c0_184] : memref<192x128xbf16, #tpu.memory_space<vmem>>, vector<192x128xbf16>
      %cst_185 = arith.constant dense<0.000000e+00> : vector<32x128xf32>
      %293 = tpu.matmul %291, %292, %cst_185 {dimension_numbers = #tpu.dot_dimension_numbers<[1], [0], [0], [1], [0, 0, 1, 1], [], []>} : vector<32x192xbf16>, vector<192x128xbf16>, vector<32x128xf32> -> vector<32x128xf32>
      %c0_186 = arith.constant 0 : index
      %c0_187 = arith.constant 0 : index
      %294 = vector.load %arg22[%c0_186, %c0_187] : memref<1x128xf32, #tpu.memory_space<vmem>>, vector<1x128xf32>
      %295 = vector.broadcast %294 : vector<1x128xf32> to vector<32x128xf32>
      %296 = arith.addf %293, %295 : vector<32x128xf32>
      %c0_188 = arith.constant 0 : index
      %c0_189 = arith.constant 0 : index
      %297 = vector.load %arg24[%c0_188, %c0_189] : memref<32x128xf32, #tpu.memory_space<vmem>>, vector<32x128xf32>
      tpu.vector_store %arg24[%c0_188, %c0_189], %296 {strides = array<i32>} : memref<32x128xf32, #tpu.memory_space<vmem>>, vector<32x128xf32>,
    } else {
    }
    return
  }
  func.func @transform_0(%arg0: i32) -> (i32, i32) {
    %c0_i32 = arith.constant 0 : i32
    %c0_i32_0 = arith.constant 0 : i32
    %c0_i32_1 = arith.constant 0 : i32
    return %c0_i32, %c0_i32_0 : i32, i32
  }
  func.func @transform_1(%arg0: i32) -> (i32, i32) {
    %c0_i32 = arith.constant 0 : i32
    %c0_i32_0 = arith.constant 0 : i32
    %c0_i32_1 = arith.constant 0 : i32
    return %c0_i32, %c0_i32_0 : i32, i32
  }
  func.func @transform_2(%arg0: i32) -> (i32, i32, i32) {
    %c0_i32 = arith.constant 0 : i32
    %c0_i32_0 = arith.constant 0 : i32
    %c0_i32_1 = arith.constant 0 : i32
    %c0_i32_2 = arith.constant 0 : i32
    return %c0_i32, %c0_i32_0, %c0_i32_1 : i32, i32, i32
  }
  func.func @transform_3(%arg0: i32) -> (i32, i32, i32) {
    %c0_i32 = arith.constant 0 : i32
    %c0_i32_0 = arith.constant 0 : i32
    %c0_i32_1 = arith.constant 0 : i32
    %c0_i32_2 = arith.constant 0 : i32
    return %c0_i32, %c0_i32_0, %c0_i32_1 : i32, i32, i32
  }
  func.func @transform_4(%arg0: i32) -> (i32, i32, i32) {
    %c0_i32 = arith.constant 0 : i32
    %c0_i32_0 = arith.constant 0 : i32
    %c0_i32_1 = arith.constant 0 : i32
    return %arg0, %c0_i32, %c0_i32_0 : i32, i32, i32
  }
  func.func @transform_5(%arg0: i32) -> (i32, i32, i32) {
    %c0_i32 = arith.constant 0 : i32
    %c0_i32_0 = arith.constant 0 : i32
    %c0_i32_1 = arith.constant 0 : i32
    return %arg0, %c0_i32, %c0_i32_0 : i32, i32, i32
  }
  func.func @transform_6(%arg0: i32) -> (i32, i32, i32) {
    %c0_i32 = arith.constant 0 : i32
    %c0_i32_0 = arith.constant 0 : i32
    %c0_i32_1 = arith.constant 0 : i32
    return %arg0, %c0_i32, %c0_i32_0 : i32, i32, i32
  }
  func.func @transform_7(%arg0: i32) -> (i32, i32, i32) {
    %c0_i32 = arith.constant 0 : i32
    %c0_i32_0 = arith.constant 0 : i32
    %c0_i32_1 = arith.constant 0 : i32
    return %arg0, %c0_i32, %c0_i32_0 : i32, i32, i32
  }
  func.func @transform_8(%arg0: i32) -> (i32, i32, i32) {
    %c0_i32 = arith.constant 0 : i32
    %c0_i32_0 = arith.constant 0 : i32
    %c0_i32_1 = arith.constant 0 : i32
    return %arg0, %c0_i32, %c0_i32_0 : i32, i32, i32
  }
  func.func @transform_9(%arg0: i32) -> (i32, i32, i32) {
    %c0_i32 = arith.constant 0 : i32
    %c0_i32_0 = arith.constant 0 : i32
    %c0_i32_1 = arith.constant 0 : i32
    return %arg0, %c0_i32, %c0_i32_0 : i32, i32, i32
  }
  func.func @transform_10(%arg0: i32) -> (i32, i32, i32) {
    %c0_i32 = arith.constant 0 : i32
    %c0_i32_0 = arith.constant 0 : i32
    %c0_i32_1 = arith.constant 0 : i32
    return %arg0, %c0_i32, %c0_i32_0 : i32, i32, i32
  }
  func.func @transform_11(%arg0: i32) -> (i32, i32, i32) {
    %c0_i32 = arith.constant 0 : i32
    %c0_i32_0 = arith.constant 0 : i32
    %c0_i32_1 = arith.constant 0 : i32
    return %arg0, %c0_i32, %c0_i32_0 : i32, i32, i32
  }
  func.func @transform_12(%arg0: i32) -> (i32, i32, i32) {
    %c0_i32 = arith.constant 0 : i32
    %c0_i32_0 = arith.constant 0 : i32
    %c0_i32_1 = arith.constant 0 : i32
    return %arg0, %c0_i32, %c0_i32_0 : i32, i32, i32
  }
  func.func @transform_13(%arg0: i32) -> (i32, i32, i32) {
    %c0_i32 = arith.constant 0 : i32
    %c0_i32_0 = arith.constant 0 : i32
    %c0_i32_1 = arith.constant 0 : i32
    return %arg0, %c0_i32, %c0_i32_0 : i32, i32, i32
  }
  func.func @transform_14(%arg0: i32) -> (i32, i32, i32, i32) {
    %c0_i32 = arith.constant 0 : i32
    %c0_i32_0 = arith.constant 0 : i32
    %c0_i32_1 = arith.constant 0 : i32
    %c0_i32_2 = arith.constant 0 : i32
    return %arg0, %c0_i32, %c0_i32_0, %c0_i32_1 : i32, i32, i32, i32
  }
  func.func @transform_15(%arg0: i32) -> (i32, i32, i32) {
    %c0_i32 = arith.constant 0 : i32
    %c0_i32_0 = arith.constant 0 : i32
    %c0_i32_1 = arith.constant 0 : i32
    return %arg0, %c0_i32, %c0_i32_0 : i32, i32, i32
  }
  func.func @transform_16(%arg0: i32) -> (i32, i32, i32, i32) {
    %c0_i32 = arith.constant 0 : i32
    %c0_i32_0 = arith.constant 0 : i32
    %c0_i32_1 = arith.constant 0 : i32
    %c0_i32_2 = arith.constant 0 : i32
    return %arg0, %c0_i32, %c0_i32_0, %c0_i32_1 : i32, i32, i32, i32
  }
  func.func @transform_17(%arg0: i32) -> (i32, i32, i32) {
    %c0_i32 = arith.constant 0 : i32
    %c0_i32_0 = arith.constant 0 : i32
    %c0_i32_1 = arith.constant 0 : i32
    return %arg0, %c0_i32, %c0_i32_0 : i32, i32, i32
  }
  func.func @transform_18(%arg0: i32) -> (i32, i32, i32) {
    %c0_i32 = arith.constant 0 : i32
    %c0_i32_0 = arith.constant 0 : i32
    %c0_i32_1 = arith.constant 0 : i32
    return %arg0, %c0_i32, %c0_i32_0 : i32, i32, i32
  }
  func.func @transform_19(%arg0: i32) -> (i32, i32, i32) {
    %c0_i32 = arith.constant 0 : i32
    %c0_i32_0 = arith.constant 0 : i32
    %c0_i32_1 = arith.constant 0 : i32
    return %arg0, %c0_i32, %c0_i32_0 : i32, i32, i32
  }
  func.func @transform_20(%arg0: i32) -> (i32, i32) {
    %c0_i32 = arith.constant 0 : i32
    %c0_i32_0 = arith.constant 0 : i32
    %c0_i32_1 = arith.constant 0 : i32
    return %c0_i32, %c0_i32_0 : i32, i32
  }
  func.func @transform_21(%arg0: i32) -> (i32, i32) {
    %c0_i32 = arith.constant 0 : i32
    %c0_i32_0 = arith.constant 0 : i32
    %c0_i32_1 = arith.constant 0 : i32
    return %c0_i32, %c0_i32_0 : i32, i32
  }
  func.func @transform_22(%arg0: i32) -> (i32, i32) {
    %c0_i32 = arith.constant 0 : i32
    %c0_i32_0 = arith.constant 0 : i32
    %c0_i32_1 = arith.constant 0 : i32
    return %c0_i32, %c0_i32_0 : i32, i32
  }
  func.func @transform_23(%arg0: i32) -> (i32, i32) {
    %c0_i32 = arith.constant 0 : i32
    %c0_i32_0 = arith.constant 0 : i32
    %c0_i32_1 = arith.constant 0 : i32
    return %c0_i32, %c0_i32_0 : i32, i32
  }
}

</mosaic_0001>

<bundles_post_ra>
// kernel: tpu_custom_call.1
= control target key start
LH: loop header
LB: loop body
LE: loop exit
PB: predicated region body
PF: predicated region fallthrough
CT: control target
= control target key end

     0   :  { %s17646_s0 = inlined_call_operand.vmem [shape: f32[32,192], index: 0, kind: input, shape index: {}]   ;;  %s17647_s1 = inlined_call_operand.vmem [shape: f32[32,1], index: 1, kind: input, shape index: {}]   ;;  %s17648_s2 = inlined_call_operand.vmem [shape: f32[2,16,16], index: 2, kind: input, shape index: {}]   ;;  %s17649_s3 = inlined_call_operand.vmem [shape: bf16[5,32,32], index: 3, kind: input, shape index: {}]   ;;  %s17650_s4 = inlined_call_operand.vmem [shape: bf16[5,192,256], index: 4, kind: input, shape index: {}]   ;;  %s17651_s5 = inlined_call_operand.vmem [shape: f32[5,1,256], index: 5, kind: input, shape index: {}]   ;;  %s17652_s6 = inlined_call_operand.vmem [shape: bf16[5,192,256], index: 6, kind: input, shape index: {}]   ;;  %s17653_s7 = inlined_call_operand.vmem [shape: f32[5,1,256], index: 7, kind: input, shape index: {}]   ;;  %s17654_s8 = inlined_call_operand.vmem [shape: bf16[5,192,256], index: 8, kind: input, shape index: {}]   ;;  %s17655_s9 = inlined_call_operand.vmem [shape: f32[5,1,256], index: 9, kind: input, shape index: {}]   ;;  %s17656_s10 = inlined_call_operand.vmem [shape: bf16[5,256,192], index: 10, kind: input, shape index: {}]   ;;  %s17657_s11 = inlined_call_operand.vmem [shape: f32[5,1,192], index: 11, kind: input, shape index: {}]   ;;  %s17658_s12 = inlined_call_operand.vmem [shape: f32[5,1,192], index: 12, kind: input, shape index: {}]   ;;  %s17659_s13 = inlined_call_operand.vmem [shape: f32[5,1,192], index: 13, kind: input, shape index: {}]   ;;  %s17660_s14 = inlined_call_operand.hbm [shape: bf16[5,5,192,768], index: 14, kind: input, shape index: {}]   ;;  %s17661_s15 = inlined_call_operand.vmem [shape: f32[5,1,768], index: 15, kind: input, shape index: {}]   ;;  %s17662_s16 = inlined_call_operand.vmem [shape: bf16[5,5,768,192], index: 16, kind: input, shape index: {}]   ;;  %s17663_s17 = inlined_call_operand.vmem [shape: f32[5,1,192], index: 17, kind: input, shape index: {}]   ;;  %s17664_s18 = inlined_call_operand.vmem [shape: f32[5,1,192], index: 18, kind: input, shape index: {}]   ;;  %s17665_s19 = inlined_call_operand.vmem [shape: f32[5,1,192], index: 19, kind: input, shape index: {}]   ;;  %s17666_s20 = inlined_call_operand.vmem [shape: bf16[192,128], index: 20, kind: input, shape index: {}]   ;;  %s17667_s21 = inlined_call_operand.vmem [shape: f32[1,128], index: 21, kind: input, shape index: {}]   ;;  %s17668_s22 = inlined_call_operand.hbm [shape: f32[32,192], index: 22, kind: output, shape index: {0}]   ;;  %s17669_s23 = inlined_call_operand.hbm [shape: f32[32,128], index: 23, kind: output, shape index: {1}]  }
   0x1   :  { %17686 = sst [smem:[#allocation18_spill]] %s17646_s0 }
   0x2   :  { %17687 = sst [smem:[#allocation19_spill]] %s17647_s1 }
   0x3   :  { %17688 = sst [smem:[#allocation20_spill]] %s17648_s2 }
   0x4   :  { %17689 = sst [smem:[#allocation21_spill]] %s17649_s3 }
   0x5   :  { %17690 = sst [smem:[#allocation22_spill]] %s17650_s4 }
   0x6   :  { %17691 = sst [smem:[#allocation23_spill]] %s17651_s5 }
   0x7   :  { %17692 = sst [smem:[#allocation24_spill]] %s17652_s6 }
   0x8   :  { %17693 = sst [smem:[#allocation25_spill]] %s17653_s7 }
   0x9   :  { %17694 = sst [smem:[#allocation26_spill]] %s17654_s8 }
   0xa   :  { %17695 = sst [smem:[#allocation27_spill]] %s17655_s9 }
   0xb   :  { %17696 = sst [smem:[#allocation28_spill]] %s17660_s14 }
   0xc   :  { %17697 = sst [smem:[#allocation29_spill]] %s17666_s20 }
   0xd   :  { %17698 = sst [smem:[#allocation30_spill]] %s17667_s21 }
   0xe   :  { %17699 = sst [smem:[#allocation31_spill]] %s17668_s22 }
   0xf   :  { %17700 = sst [smem:[#allocation32_spill]] %s17669_s23 }
  0x10   :  { %29 = vsyncpa [#allocation4], 0 }
  0x11   :  { %31 = vsyncpa [#allocation4 + $0x1], 0 }
  0x12   :  { %32 = vsyncpa [#allocation5], 0 }
  0x13   :  { %33 = vsyncpa [#allocation8], 0  ;;  %s15162_s4 = smov 0   ;;  %s15164_s30 = smov 0  }
  0x14   :  { %s15166_s24 = smov 0   ;;  %s15168_s25 = smov 0  }
  0x15 LB: > { %17701 = sst [smem:[#allocation12_spill]] %s15019_s30  ;;  %s15181_s5 = sadd.s32 4294967295, %s15027_s25   ;;  %s15027_s25 = sphi %s15168_s25, %s17741_s25   ;;  %s15023_s24 = sphi %s15166_s24, %s17744_s24   ;;  %s15019_s30 = sphi %s15164_s30, %s17743_s30   ;;  %s15015_s4 = sphi %s15162_s4, %s17742_s4  }
  0x16   : > { %17702 = sst [smem:[#allocation13_spill]] %s15023_s24  ;;  %s15184_s1 = sadd.s32 1, %s15027_s25  }
  0x17   : > { %17703 = sst [smem:[#allocation14_spill]] %s15181_s5  ;;  %s387_s26 = ssub.s32 %s15027_s25, %s15184_s1 }
  0x18   : > { %17704 = sst [smem:[#allocation15_spill]] %s15184_s1  ;;  %s390_s2 = sadd.s32 1, %s15023_s24 }
  0x19   : > { %p388_p0 = scmp.eq.s32.totalorder %s387_s26, 0  ;;  %p397_p1 = scmp.ne.s32.totalorder %s15023_s24, %s15019_s30 }
  0x1a   : > { %p398_p2 = scmp.eq.s32.totalorder %s15027_s25, 0  ;;  %p403_p3 = scmp.ne.s32.totalorder %s15019_s30, %s15015_s4 }
  0x1b   : > { %s15194_s6 = scalar_select %p388_p0, %s15023_s24, %s390_s2  }
  0x1c   : > { %p399_p4 = por %p398_p2, %p397_p1  ;;  %p404_p5 = scmp.eq.s32.totalorder %s15181_s5, 0 }
  0x1d   : > { %17705 = sst [smem:[#allocation16_spill]] %s15194_s6  ;;  %p13348_p6 = scmp.lt.s32.totalorder %s15027_s25, 5 }
  0x1e   : > { %p15198_p7 = por %p404_p5, %p403_p3  ;;  %s733_s7 = sand.u32 1, %s15023_s24  }
  0x1f   : > { %s13328_s28 = smul.u32 2880, %s733_s7  ;;  %p15204_p8 = pnand %p13348_p6, %p399_p4 }
  0x20   : > { %s13329_s29 = smul.u32 46080, %s15027_s25  ;;  %s17708_s14 = sld [smem:[#allocation28_spill]] }
  0x21   : > { %s737_s2 = scalar_lea.vmem [#allocation3], %s13328_s28  ;;  %s15216_s24 = scalar_lea.sflag [#allocation4], %s733_s7 }
  0x22   : > { %s744_s6 = sshll.u32 %s737_s2, 4  ;;  %p14905_p11 = pneg %p15204_p8  ;;  %s15213_s6 = int_to_ptr.vmem [resolvable:$true] %s744_s6 }
  0x26   : > { %s15211_s4 = scalar_lea.hbm %s17708_s14, %s13329_s29  ;;  %s14908_s26 = scalar_lea.hbm %s17708_s14, 230400 }
  0x27   : > { %s14903_s1 = scalar_lea.hbm %s15211_s4, 46080  ;;  %p14909_p0 = scmp.lt.u32.totalorder %s15211_s4, %s17708_s14 }
  0x28   : > { %p14904_p10 = scmp.ne.s32.totalorder %s15211_s4, %s14903_s1  ;;  %p14910_p1 = scmp.lt.u32.totalorder %s14908_s26, %s14903_s1 }
  0x29   : > { %p14912_p3 = scmp.lt.u32.totalorder %s14903_s1, %s15211_s4 }
  0x2a   : > { %p14906_p12 = pnand %p14905_p11, %p14904_p10  ;;  %p14911_p2 = por %p14910_p1, %p14909_p0 }
  0x2c   : > { %p14907_p13 = pneg %p14906_p12  ;;  %p14913_p4 = por %p14912_p3, %p14911_p2 }
  0x2e   : > { %p14914_p5 = pnand %p14913_p4, %p14907_p13 }
  0x30   : > { %14917 = shalt.err (!%p14914_p5)
}
  0x31   : > { %s14918_s7 = scalar_lea.vmem %s15213_s6, 46080  ;;  %s15029_s2 = smov [#allocation3]  }
  0x32   : > { %p14919_p6 = scmp.ne.s32.totalorder %s15213_s6, %s14918_s7  ;;  %s14923_s29 = sshll.u32 %s15029_s2, 4  ;;  %s14924_s29 = int_to_ptr.vmem [resolvable:$false] %s14923_s29 }
  0x33   : > { %s14925_s23 = scalar_lea.vmem %s14924_s29, 92160  ;;  %p14926_p9 = scmp.lt.s32.totalorder %s15213_s6, %s14924_s29 }
  0x34   : > { %p14921_p10 = pnand %p14919_p6, %p14905_p11  ;;  %p14927_p0 = scmp.lt.s32.totalorder %s14925_s23, %s14918_s7 }
  0x36   : > { %p14922_p12 = pneg %p14921_p10  ;;  %p14928_p1 = por %p14927_p0, %p14926_p9 }
  0x38   : > { %p14929_p2 = pnand %p14928_p1, %p14922_p12 }
  0x3a   : > { %14932 = shalt.err (!%p14929_p2)
}
  0x3b   : > { %s15030_s1 = smov 384   ;;  %s15031_s0 = smov 24  }
  0x3c   : > { %13347 = dma.hbm_to_vmem [thread:$0]  (!%p15204_p8), %s15211_s4, 46080, %s15213_s6, %s15216_s24, %s15030_s1, %s15030_s1, %s15031_s0  }
  0x3d   : > { %p788_p11 = scmp.lt.s32.totalorder %s15027_s25, 6  ;;  %p17709_p13 = scmp.ge.s32.totalorder %s15027_s25, 1 }
  0x3f   : > { %p789_p3 = pnand %p17709_p13, %p788_p11 }
  0x41   : > { %792 = sbr.rel (%p789_p3) target bundleno = 6644 (0x19f4), region = 108 }
  0x48   : > { %s794_s26 = sand.u32 1, %s15019_s30  }
  0x49   : > { %s13330_s28 = smul.u32 2880, %s794_s26  ;;  %s795_s7 = scalar_lea.sflag [#allocation4], %s794_s26 }
  0x4b   : > { %s15248_s2 = scalar_lea.vmem [#allocation3], %s13330_s28 }
  0x4c   : > { %17710 = sst [smem:[#allocation17_spill]] %s15248_s2 }
  0x4d   : > { %15002 = dma.done.wait (%p15198_p7), %s795_s7, 46080  }
  0x4e   : > { %15004 = vsyncadd (%p15198_p7), %s795_s7, 4294921216  ;;  %p921_p9 = scmp.lt.s32.totalorder %s15181_s5, 4  ;;  %s17713_s14 = sld [smem:[#allocation22_spill]] }
  0x4f   : > { %s17714_s4 = sld [smem:[#allocation24_spill]]  ;;  %s17715_s8 = sld [smem:[#allocation26_spill]] }
  0x50   : > { %s922_s24 = scalar_select %p921_p9, %s15181_s5, 4 }
  0x51   : > { %s17717_s9 = sld [smem:[#allocation14_spill]] }
  0x52   : > { %s13331_s6 = smul.u32 192, %s922_s24  ;;  %s15256_s25 = sshll.u32 %s922_s24, 1 }
  0x53   : > { %s13031_s1 = sshll.u32 %s922_s24, 8  ;;  %s13332_s27 = smul.u32 6, %s922_s24 }
  0x54   : > { %s15269_s30 = scalar_lea.vmem %s17713_s14, %s13331_s6  ;;  %s15292_s22 = scalar_lea.vmem %s17656_s10, %s13031_s1 }
  0x55   : > { %s15274_s21 = scalar_lea.vmem %s17714_s4, %s13331_s6  ;;  %s15279_s5 = scalar_lea.vmem %s17715_s8, %s13331_s6 }
  0x56   : > { %s13333_s29 = smul.u32 3840, %s922_s24  ;;  %s15309_s26 = scalar_lea.vmem %s17661_s15, %s13332_s27 }
  0x57   : > { %s981_s3 = scalar_lea.vmem %s17664_s18, %s15256_s25  ;;  %s985_s8 = scalar_lea.vmem %s17665_s19, %s15256_s25 }
  0x58   : > { %s15318_s2 = scalar_lea.vmem %s17662_s16, %s13333_s29  ;;  %p11284_p7 = scmp.ne.s32.totalorder %s17717_s9, 0 }
  0x59   : > { %s17718_s27 = sld [smem:[#allocation18_spill]] (!%p11284_p7)  ;;  %vm1000_vm0 = vcmask (!%p11284_p7), 523264  }
  0x5a   : > { %990 = sbr.rel (%p11284_p7) target bundleno = 100 (0x64), region = 116 }
  0x5f   : > { %v991_v0 = vld [vmem:[%s17718_s27] sm:$0xff] (!%p11284_p7)  ;;  %v992_v1 = vld [vmem:[%s17718_s27 + $0x8] sm:$0xff] (!%p11284_p7)  ;;  %v993_v2 = vld [vmem:[%s17718_s27 + $0x10] sm:$0xff] (!%p11284_p7) }
  0x60   : > { %999 = vst [vmem:[#allocation2] sm:$0xff] (!%p11284_p7), %v991_v0  ;;  %1001 = vst.msk [vmem:[#allocation2 + $0x8] sm:$0xff] (!%p11284_p7), %vm1000_vm0, %v992_v1  ;;  %v994_v3 = vld [vmem:[%s17718_s27 + $0x18] sm:$0xff] (!%p11284_p7)  ;;  %v995_v4 = vld [vmem:[%s17718_s27 + $0x20] sm:$0xff] (!%p11284_p7) }
  0x61   : > { %1002 = vst [vmem:[#allocation2 + $0x10] sm:$0xff] %v993_v2  ;;  %v996_v5 = vld [vmem:[%s17718_s27 + $0x28] sm:$0xff]  ;;  %1003 = vst.msk [vmem:[#allocation2 + $0x18] sm:$0xff] %vm1000_vm0, %v994_v3  ;;  %v997_v6 = vld [vmem:[%s17718_s27 + $0x30] sm:$0xff] }
  0x62   : > { %1004 = vst [vmem:[#allocation2 + $0x20] sm:$0xff] %v995_v4  ;;  %1005 = vst.msk [vmem:[#allocation2 + $0x28] sm:$0xff] %vm1000_vm0, %v996_v5  ;;  %v998_v7 = vld [vmem:[%s17718_s27 + $0x38] sm:$0xff] }
  0x63   : > { %1006 = vst [vmem:[#allocation2 + $0x30] sm:$0xff] %v997_v6  ;;  %1007 = vst.msk [vmem:[#allocation2 + $0x38] sm:$0xff] %vm1000_vm0, %v998_v7 }
  0x64 PF: > { %v13399_v8 = vld [vmem:[%s15269_s30 + $0x4] ss:$8 sps:$4 sm:$0xff]   ;;  %v13401_v9 = vld [vmem:[%s15269_s30] ss:$8 sps:$4 sm:$0xff]   ;;  %v13402_v10 = vld [vmem:[%s15269_s30 + $0x14] ss:$8 sps:$4 sm:$0xff]   ;;  %v1050_v5 = vlaneseq  ;;  %s17730_s24 = scalar_lea.vmem %s17659_s13, %s15256_s25 }
  0x65   : > { %1187 = vmatprep.subr.bf16.mxu1 %v13399_v8  ;;  %v13404_v11 = vld [vmem:[%s15269_s30 + $0x10] ss:$8 sps:$4 sm:$0xff]   ;;  %v13405_v12 = vld [vmem:[%s15269_s30 + $0x24] ss:$8 sps:$4 sm:$0xff]   ;;  %v13407_v13 = vld [vmem:[%s15269_s30 + $0x20] ss:$8 sps:$4 sm:$0xff]  }
  0x66   : > { %1188 = vmatpush1.bf16.msra.mxu1 %v13401_v9  ;;  %v13408_v14 = vld [vmem:[%s15269_s30 + $0x34] ss:$8 sps:$4 sm:$0xff]   ;;  %v13410_v15 = vld [vmem:[%s15269_s30 + $0x30] ss:$8 sps:$4 sm:$0xff]   ;;  %v13411_v16 = vld [vmem:[%s15269_s30 + $0x44] ss:$8 sps:$4 sm:$0xff]  }
  0x67   : > { %1189 = vmatprep.subr.bf16.mxu1 %v13402_v10  ;;  %v13413_v17 = vld [vmem:[%s15269_s30 + $0x40] ss:$8 sps:$4 sm:$0xff]   ;;  %v13414_v18 = vld [vmem:[%s15269_s30 + $0x54] ss:$8 sps:$4 sm:$0xff]   ;;  %vm1180_vm1 = vcmask 523264   ;;  %v15032_v4 = vmov 0.0  }
  0x68   : > { %v13416_v22 = vld [vmem:[%s15269_s30 + $0x50] ss:$8 sps:$4 sm:$0xff]   ;;  %v13417_v23 = vld [vmem:[%s15269_s30 + $0x64] ss:$8 sps:$4 sm:$0xff]   ;;  %v13419_v24 = vld [vmem:[%s15269_s30 + $0x60] ss:$8 sps:$4 sm:$0xff]  }
  0x69   : > { %v13420_v25 = vld [vmem:[%s15269_s30 + $0x74] ss:$8 sps:$4 sm:$0xff]   ;;  %v13422_v26 = vld [vmem:[%s15269_s30 + $0x70] ss:$8 sps:$4 sm:$0xff]   ;;  %v13423_v27 = vld [vmem:[%s15269_s30 + $0x84] ss:$8 sps:$4 sm:$0xff]  }
  0x6a   : > { %1190 = vmatpush1.bf16.msra.mxu1 %v13404_v11  ;;  %v1009_v19 = vld [vmem:[#allocation2 + $0x8] sm:$0xff]  ;;  %v13426_v29 = vld [vmem:[%s15269_s30 + $0x94] ss:$8 sps:$4 sm:$0xff]   ;;  %v13428_v30 = vld [vmem:[%s15269_s30 + $0x90] ss:$8 sps:$4 sm:$0xff]   ;;  %vm15033_vm2 = vmmov 0  }
  0x6b   : > { %1191 = vmatprep.subr.bf16.mxu1 %v13405_v12  ;;  %v1011_v20 = vld [vmem:[#allocation2 + $0x18] sm:$0xff]  ;;  %v13425_v28 = vld [vmem:[%s15269_s30 + $0x80] ss:$8 sps:$4 sm:$0xff]   ;;  %v13429_v31 = vld [vmem:[%s15269_s30 + $0xa4] ss:$8 sps:$4 sm:$0xff]   ;;  %v15417_v6 = vshrl.u32 %v1050_v5, 7 }
  0x6c   : > { %v1021_v21 = vpack.c.bf16 %v1011_v20, %v1009_v19  ;;  %v13431_v32 = vld [vmem:[%s15269_s30 + $0xa0] ss:$8 sps:$4 sm:$0xff]   ;;  %v13432_v33 = vld [vmem:[%s15269_s30 + $0xb4] ss:$8 sps:$4 sm:$0xff]   ;;  %v13434_v34 = vld [vmem:[%s15269_s30 + $0xb0] ss:$8 sps:$4 sm:$0xff]  }
  0x6d   : > { %v1008_v35 = vld [vmem:[#allocation2] sm:$0xff]  ;;  %v1010_v36 = vld [vmem:[#allocation2 + $0x10] sm:$0xff]  ;;  %v1013_v38 = vld [vmem:[#allocation2 + $0x28] sm:$0xff]  ;;  %s17719_s1 = sld [smem:[#allocation23_spill]]  ;;  %v15425_v8 = vsub.s32 0, %v15417_v6  ;;  %v15428_v9 = vsub.s32 1, %v15417_v6 }
  0x6e   : > { %1192 = vmatpush1.bf16.msra.mxu1 %v13407_v13  ;;  %11309 = vmatprep.mubr.msk.bf16.mxu1 %vm1180_vm1, %v1021_v21  ;;  %v13437_v37 = vld [vmem:[%s15274_s21 + $0x4] ss:$8 sps:$4 sm:$0xff]   ;;  %v1015_v39 = vld [vmem:[#allocation2 + $0x38] sm:$0xff]  ;;  %v13435_v40 = vld [vmem:[%s15274_s21] ss:$8 sps:$4 sm:$0xff]   ;;  %v15377_v41 = vpack.c.bf16 %v1010_v36, %v1008_v35  ;;  %s17721_s4 = sld [smem:[#allocation25_spill]] }
  0x6f   : > { %1193 = vmatprep.subr.bf16.mxu1 %v13408_v14  ;;  %11361 = vmatprep.mubr.msk.bf16.mxu0 %vm1180_vm1, %v1021_v21  ;;  %v13440_v42 = vld [vmem:[%s15274_s21 + $0x14] ss:$8 sps:$4 sm:$0xff]   ;;  %v15380_v43 = vpack.c.bf16 %v1015_v39, %v1013_v38  ;;  %v13438_v44 = vld [vmem:[%s15274_s21 + $0x10] ss:$8 sps:$4 sm:$0xff]   ;;  %v1012_v45 = vld [vmem:[#allocation2 + $0x20] sm:$0xff]  ;;  %s17723_s0 = sld [smem:[#allocation20_spill]] }
  0x70   : > { %v1014_v46 = vld [vmem:[#allocation2 + $0x30] sm:$0xff]  ;;  %v13443_v47 = vld [vmem:[%s15274_s21 + $0x24] ss:$8 sps:$4 sm:$0xff]   ;;  %v13441_v48 = vld [vmem:[%s15274_s21 + $0x20] ss:$8 sps:$4 sm:$0xff]   ;;  %vm1708_vm4 = vcmask 130048  }
  0x71   : > { %v13446_v49 = vld [vmem:[%s15274_s21 + $0x34] ss:$8 sps:$4 sm:$0xff]   ;;  %v15389_v50 = vpack.c.bf16 %v1014_v46, %v1012_v45  ;;  %v13444_v51 = vld [vmem:[%s15274_s21 + $0x30] ss:$8 sps:$4 sm:$0xff]   ;;  %v13449_v52 = vld [vmem:[%s15274_s21 + $0x44] ss:$8 sps:$4 sm:$0xff]  }
  0x72   : > { %1194 = vmatpush1.bf16.msra.mxu1 %v13410_v15  ;;  %v13447_v53 = vld [vmem:[%s15274_s21 + $0x40] ss:$8 sps:$4 sm:$0xff]   ;;  %v13452_v54 = vld [vmem:[%s15274_s21 + $0x54] ss:$8 sps:$4 sm:$0xff]   ;;  %v13450_v55 = vld [vmem:[%s15274_s21 + $0x50] ss:$8 sps:$4 sm:$0xff]  }
  0x73   : > { %1195 = vmatprep.subr.bf16.mxu1 %v13411_v16  ;;  %v13455_v56 = vld [vmem:[%s15274_s21 + $0x64] ss:$8 sps:$4 sm:$0xff]   ;;  %v13453_v57 = vld [vmem:[%s15274_s21 + $0x60] ss:$8 sps:$4 sm:$0xff]   ;;  %v13458_v58 = vld [vmem:[%s15274_s21 + $0x74] ss:$8 sps:$4 sm:$0xff]   ;;  %s17720_s20 = scalar_lea.vmem %s17719_s1, %s15256_s25 }
  0x74   : > { %v13456_v59 = vld [vmem:[%s15274_s21 + $0x70] ss:$8 sps:$4 sm:$0xff]   ;;  %v13461_v60 = vld [vmem:[%s15274_s21 + $0x84] ss:$8 sps:$4 sm:$0xff]   ;;  %v13459_v61 = vld [vmem:[%s15274_s21 + $0x80] ss:$8 sps:$4 sm:$0xff]   ;;  %s17722_s6 = scalar_lea.vmem %s17721_s4, %s15256_s25  ;;  %s17729_s4 = scalar_lea.vmem %s17658_s12, %s15256_s25 }
  0x75   : > { %v13464_v62 = vld [vmem:[%s15274_s21 + $0x94] ss:$8 sps:$4 sm:$0xff]   ;;  %v13462_v63 = vld [vmem:[%s15274_s21 + $0x90] ss:$8 sps:$4 sm:$0xff]   ;;  %v13467_v0 = vld [vmem:[%s15274_s21 + $0xa4] ss:$8 sps:$4 sm:$0xff]  }
  0x76   : > { %1196 = vmatpush1.bf16.msra.mxu1 %v13413_v17  ;;  %v13465_v1 = vld [vmem:[%s15274_s21 + $0xa0] ss:$8 sps:$4 sm:$0xff]   ;;  %v13470_v2 = vld [vmem:[%s15274_s21 + $0xb4] ss:$8 sps:$4 sm:$0xff]   ;;  %v13468_v3 = vld [vmem:[%s15274_s21 + $0xb0] ss:$8 sps:$4 sm:$0xff]  }
  0x77   : > { %1197 = vmatprep.subr.bf16.mxu1 %v13414_v18  ;;  %v1048_v7 = vld [vmem:[%s17720_s20] sm:$0x3]  ;;  %v13486_v5 = vld [vmem:[%s15279_s5 + $0x54] ss:$8 sps:$4 sm:$0xff]   ;;  %s17724_s21 = sld [smem:[#allocation27_spill]]  ;;  %s17728_s28 = sld [smem:[#allocation17_spill]] }
  0x78   : > { %v1053_v10 = vrot.slane %v1048_v7, %v15425_v8  ;;  %v1057_v12 = vrot.slane %v1048_v7, %v15428_v9  ;;  %v13488_v7 = vld [vmem:[%s15279_s5 + $0x50] ss:$8 sps:$4 sm:$0xff]   ;;  %s17727_s23 = sld [smem:[#allocation19_spill]]  ;;  %vm2548_vm8 = vcmask 261120  }
  0x7a   : > { %1198 = vmatpush1.bf16.msra.mxu1 %v13416_v22 }
  0x7b   : > { %1199 = vmatprep.subr.bf16.mxu1 %v13417_v23 }
  0x7d   : > { %s17725_s30 = scalar_lea.vmem %s17724_s21, %s15256_s25  ;;  %s17733_s21 = scalar_lea.vmem %s17663_s17, %s15256_s25 }
  0x7e   : > { %1200 = vmatpush1.bf16.msra.mxu1 %v13419_v24 }
  0x7f   : > { %1201 = vmatprep.subr.bf16.mxu1 %v13420_v25 }
  0x82   : > { %1202 = vmatpush1.bf16.msra.mxu1 %v13422_v26 }
  0x83   : > { %1203 = vmatprep.subr.bf16.mxu1 %v13423_v27 }
  0x86   : > { %1204 = vmatpush1.bf16.msra.mxu1 %v13425_v28 }
  0x87   : > { %1205 = vmatprep.subr.bf16.mxu1 %v13426_v29 }
  0x8a   : > { %1206 = vmatpush1.bf16.msra.mxu1 %v13428_v30 }
  0x8b   : > { %1207 = vmatprep.subr.bf16.mxu1 %v13429_v31 }
  0x8e   : > { %1208 = vmatpush1.bf16.msra.mxu1 %v13431_v32  ;;  %v1264_v32 = vld [vmem:[%s17722_s6] sm:$0x3] }
  0x8f   : > { %1209 = vmatprep.subr.bf16.mxu1 %v13432_v33  ;;  %v1273_v33 = vrot.slane %v1264_v32, %v15428_v9 }
  0x92   : > { %1210 = vmatpush1.bf16.msra.mxu1 %v13434_v34  ;;  %v1269_v34 = vrot.slane %v1264_v32, %v15425_v8  ;;  %v15514_v32 = vld [vmem:[%s17723_s0 + $0x8] sm:$0xff] }
  0x93   : > { %1396 = vmatprep.subr.bf16.mxu1 %v13437_v37  ;;  %vm1705_vm5 = vcmp.gt.f32.partialorder %v15514_v32, 0.0 }
  0x95   : > { %1220 = vmatmul.mubr.bf16.vlgmr.msra.gmra.mrb[0].mxu1 %v15377_v41 }
  0x96   : > { %1397 = vmatpush1.bf16.msra.mxu1 %v13435_v40  ;;  %11310 = vmatprep.mubr.msk.bf16.mxu1 %vm1180_vm1, %v15380_v43 }
  0x97   : > { %1398 = vmatprep.subr.bf16.mxu1 %v13440_v42 }
  0x9a   : > { %1399 = vmatpush1.bf16.msra.mxu1 %v13438_v44 }
  0x9b   : > { %1400 = vmatprep.subr.bf16.mxu1 %v13443_v47 }
  0x9d   : > { %1230 = vmatmul.mubr.bf16.gmra.mrb[4].mxu1 %v15389_v50 }
  0x9e   : > { %1401 = vmatpush1.bf16.msra.mxu1 %v13441_v48  ;;  %11335 = vmatprep.mubr.msk.bf16.mxu1 %vm1180_vm1, %v1021_v21 }
  0x9f   : > { %1402 = vmatprep.subr.bf16.mxu1 %v13446_v49 }
  0xa2   : > { %1403 = vmatpush1.bf16.msra.mxu1 %v13444_v51 }
  0xa3   : > { %1404 = vmatprep.subr.bf16.mxu1 %v13449_v52 }
  0xa6   : > { %1405 = vmatpush1.bf16.msra.mxu1 %v13447_v53 }
  0xa7   : > { %1406 = vmatprep.subr.bf16.mxu1 %v13452_v54 }
  0xaa   : > { %1407 = vmatpush1.bf16.msra.mxu1 %v13450_v55 }
  0xab   : > { %1408 = vmatprep.subr.bf16.mxu1 %v13455_v56 }
  0xae   : > { %1409 = vmatpush1.bf16.msra.mxu1 %v13453_v57 }
  0xaf   : > { %1410 = vmatprep.subr.bf16.mxu1 %v13458_v58  ;;  %v13471_v58 = vld [vmem:[%s15279_s5 + $0x4] ss:$8 sps:$4 sm:$0xff]  }
  0xb0   : > { %1605 = vmatprep.subr.bf16.mxu0 %v13471_v58 }
  0xb2   : > { %1411 = vmatpush1.bf16.msra.mxu1 %v13456_v59  ;;  %v13473_v59 = vld [vmem:[%s15279_s5] ss:$8 sps:$4 sm:$0xff]  }
  0xb3   : > { %1412 = vmatprep.subr.bf16.mxu1 %v13461_v60  ;;  %v13474_v60 = vld [vmem:[%s15279_s5 + $0x14] ss:$8 sps:$4 sm:$0xff]   ;;  %1606 = vmatpush1.bf16.msra.mxu0 %v13473_v59 }
  0xb4   : > { %1607 = vmatprep.subr.bf16.mxu0 %v13474_v60 }
  0xb6   : > { %1413 = vmatpush1.bf16.msra.mxu1 %v13459_v61  ;;  %v13476_v61 = vld [vmem:[%s15279_s5 + $0x10] ss:$8 sps:$4 sm:$0xff]  }
  0xb7   : > { %1414 = vmatprep.subr.bf16.mxu1 %v13464_v62  ;;  %v13477_v62 = vld [vmem:[%s15279_s5 + $0x24] ss:$8 sps:$4 sm:$0xff]   ;;  %1608 = vmatpush1.bf16.msra.mxu0 %v13476_v61  ;;  %v1473_v61 = vld [vmem:[%s17725_s30] sm:$0x3] }
  0xb8   : > { %1609 = vmatprep.subr.bf16.mxu0 %v13477_v62 }
  0xba   : > { %1415 = vmatpush1.bf16.msra.mxu1 %v13462_v63  ;;  %v13479_v63 = vld [vmem:[%s15279_s5 + $0x20] ss:$8 sps:$4 sm:$0xff]  }
  0xbb   : > { %1416 = vmatprep.subr.bf16.mxu1 %v13467_v0  ;;  %v13480_v0 = vld [vmem:[%s15279_s5 + $0x34] ss:$8 sps:$4 sm:$0xff]   ;;  %1610 = vmatpush1.bf16.msra.mxu0 %v13479_v63  ;;  %v15532_v63 = vrot.slane %v1473_v61, %v15425_v8 }
  0xbc   : > { %1611 = vmatprep.subr.bf16.mxu0 %v13480_v0  ;;  %v15535_v0 = vrot.slane %v1473_v61, %v15428_v9 }
  0xbe   : > { %1417 = vmatpush1.bf16.msra.mxu1 %v13465_v1  ;;  %v13482_v1 = vld [vmem:[%s15279_s5 + $0x30] ss:$8 sps:$4 sm:$0xff]  }
  0xbf   : > { %1418 = vmatprep.subr.bf16.mxu1 %v13470_v2  ;;  %v13483_v2 = vld [vmem:[%s15279_s5 + $0x44] ss:$8 sps:$4 sm:$0xff]   ;;  %1612 = vmatpush1.bf16.msra.mxu0 %v13482_v1 }
  0xc0   : > { %1613 = vmatprep.subr.bf16.mxu0 %v13483_v2 }
  0xc2   : > { %1419 = vmatpush1.bf16.msra.mxu1 %v13468_v3  ;;  %v13485_v3 = vld [vmem:[%s15279_s5 + $0x40] ss:$8 sps:$4 sm:$0xff]  }
  0xc3   : > { %13048 = vmatprep.subr.bf16.mxu1 %v15032_v4  ;;  %1614 = vmatpush1.bf16.msra.mxu0 %v13485_v3 }
  0xc4   : > { %1615 = vmatprep.subr.bf16.mxu0 %v13486_v5 }
  0xc5   : > { %1429 = vmatmul.mubr.bf16.vlgmr.msra.gmra.mrb[8].mxu1 %v15377_v41 }
  0xc6   : > { %11336 = vmatprep.mubr.msk.bf16.mxu1 %vm1180_vm1, %v15380_v43 }
  0xc7   : > { %1616 = vmatpush1.bf16.msra.mxu0 %v13488_v7 }
  0xcd   : > { %1439 = vmatmul.mubr.bf16.gmra.mrb[12].mxu1 %v15389_v50 }
  0xce   : > { %13050 = vmatprep.mubr.msk.bf16.mxu1 %vm15033_vm2, %v15032_v4 }
 0x168   : > { %v1221_v11 = vpop.f32.mrb[0].mxu1 }
 0x169   : > { %v1222_v13 = vadd.f32 %v1221_v11, %v1053_v10  ;;  %v1223_v14 = vpop.f32.mrb[1].mxu1  ;;  %v13491_v11 = vld [vmem:[%s15279_s5 + $0x60] ss:$8 sps:$4 sm:$0xff]  }
 0x16a   : > { %v1225_v15 = vpop.f32.mrb[2].mxu1  ;;  %v15432_v18 = vadd.f32 %v1223_v14, %v1057_v12  ;;  %v13495_v14 = vld [vmem:[%s15279_s5 + $0x84] ss:$8 sps:$4 sm:$0xff]  }
 0x16b   : > { %v1226_v16 = vadd.f32 %v1225_v15, %v1053_v10  ;;  %v1227_v17 = vpop.f32.mrb[3].mxu1  ;;  %v13497_v15 = vld [vmem:[%s15279_s5 + $0x80] ss:$8 sps:$4 sm:$0xff]  }
 0x16c   : > { %v15434_v19 = vadd.f32 %v1227_v17, %v1057_v12  ;;  %v13500_v17 = vld [vmem:[%s15279_s5 + $0x90] ss:$8 sps:$4 sm:$0xff]  }
 0x16d   : > { %v1660_v20 = vpack.c.bf16 %v1226_v16, %v1222_v13  ;;  %v13494_v13 = vld [vmem:[%s15279_s5 + $0x70] ss:$8 sps:$4 sm:$0xff]   ;;  %v13498_v16 = vld [vmem:[%s15279_s5 + $0x94] ss:$8 sps:$4 sm:$0xff]  }
 0x16e   : > { %v1776_v21 = vpack.c.bf16 %v15434_v19, %v15432_v18 }
 0x170   : > { %v1231_v22 = vpop.f32.mrb[4].mxu1 }
 0x171   : > { %v15438_v23 = vadd.f32 %v1231_v22, %v1053_v10  ;;  %v1233_v24 = vpop.f32.mrb[5].mxu1  ;;  %v13503_v22 = vld [vmem:[%s15279_s5 + $0xa0] ss:$8 sps:$4 sm:$0xff]  }
 0x172   : > { %v15440_v25 = vadd.f32 %v1233_v24, %v1057_v12  ;;  %v1235_v26 = vpop.f32.mrb[6].mxu1  ;;  %v13504_v24 = vld [vmem:[%s15279_s5 + $0xb4] ss:$8 sps:$4 sm:$0xff]  }
 0x173   : > { %v15442_v27 = vadd.f32 %v1235_v26, %v1053_v10  ;;  %v1237_v28 = vpop.f32.mrb[7].mxu1  ;;  %v13489_v10 = vld [vmem:[%s15279_s5 + $0x64] ss:$8 sps:$4 sm:$0xff]   ;;  %v13506_v26 = vld [vmem:[%s15279_s5 + $0xb0] ss:$8 sps:$4 sm:$0xff]  }
 0x174   : > { %v15444_v29 = vadd.f32 %v1237_v28, %v1057_v12  ;;  %1617 = vmatprep.subr.bf16.mxu0 %v13489_v10  ;;  %v13492_v12 = vld [vmem:[%s15279_s5 + $0x74] ss:$8 sps:$4 sm:$0xff]   ;;  %v15509_v28 = vld [vmem:[%s17723_s0] sm:$0xff] }
 0x175   : > { %v1892_v30 = vpack.c.bf16 %v15442_v27, %v15438_v23  ;;  %1618 = vmatpush1.bf16.msra.mxu0 %v13491_v11  ;;  %vm1704_vm3 = vcmp.gt.f32.partialorder %v15509_v28, 0.0  ;;  %v15595_v23 = vld [vmem:[%s17723_s0 + $0x18] sm:$0xff] }
 0x176   : > { %v2007_v31 = vpack.c.bf16 %v15444_v29, %v15440_v25  ;;  %1619 = vmatprep.subr.bf16.mxu0 %v13492_v12  ;;  %vm1937_vm7 = vcmp.gt.f32.partialorder %v15595_v23, 0.0 }
 0x179   : > { %1620 = vmatpush1.bf16.msra.mxu0 %v13494_v13 }
 0x17a   : > { %1621 = vmatprep.subr.bf16.mxu0 %v13495_v14 }
 0x17d   : > { %1622 = vmatpush1.bf16.msra.mxu0 %v13497_v15 }
 0x17e   : > { %1623 = vmatprep.subr.bf16.mxu0 %v13498_v16 }
 0x181   : > { %1624 = vmatpush1.bf16.msra.mxu0 %v13500_v17 }
 0x198   : > { %v1430_v35 = vpop.f32.mrb[8].mxu1 }
 0x199   : > { %v1432_v36 = vpop.f32.mrb[9].mxu1  ;;  %v1431_v39 = vadd.f32 %v1430_v35, %v1269_v34 }
 0x19a   : > { %v15457_v37 = vadd.f32 %v1432_v36, %v1273_v33  ;;  %v1434_v38 = vpop.f32.mrb[10].mxu1 }
 0x19b   : > { %v1435_v40 = vadd.f32 %v1434_v38, %v1269_v34  ;;  %v1436_v42 = vpop.f32.mrb[11].mxu1 }
 0x19c   : > { %v15459_v44 = vadd.f32 %v1436_v42, %v1273_v33 }
 0x19d   : > { %v1661_v45 = vpack.c.bf16 %v1435_v40, %v1431_v39 }
 0x19e   : > { %v1777_v46 = vpack.c.bf16 %v15459_v44, %v15457_v37 }
 0x19f   : > { %13049 = vmatpush3.bf16.xpose.msra.mxu1 %v1661_v45 }
 0x1a0   : > { %v1440_v47 = vpop.f32.mrb[12].mxu1  ;;  %13054 = vmatprep.subr.bf16.mxu1 %v15032_v4 }
 0x1a1   : > { %v15464_v48 = vadd.f32 %v1440_v47, %v1269_v34  ;;  %v1442_v49 = vpop.f32.mrb[13].mxu1 }
 0x1a2   : > { %v15466_v51 = vadd.f32 %v1442_v49, %v1273_v33  ;;  %v1444_v52 = vpop.f32.mrb[14].mxu1 }
 0x1a3   : > { %v15468_v53 = vadd.f32 %v1444_v52, %v1269_v34  ;;  %v1446_v54 = vpop.f32.mrb[15].mxu1 }
 0x1a4   : > { %v15470_v55 = vadd.f32 %v1446_v54, %v1273_v33 }
 0x1a5   : > { %v1893_v56 = vpack.c.bf16 %v15468_v53, %v15464_v48 }
 0x1a6   : > { %13051 = vmatmul.mubr.bf16.vlgmr.msra.gmra.mrb[16].mxu1 %v1660_v20  ;;  %v2008_v57 = vpack.c.bf16 %v15470_v55, %v15466_v51  ;;  %v13501_v20 = vld [vmem:[%s15279_s5 + $0xa4] ss:$8 sps:$4 sm:$0xff]   ;;  %s17731_s5 = sld [smem:[#allocation21_spill]] }
 0x1a7   : > { %13056 = vmatprep.mubr.msk.bf16.mxu1 %vm15033_vm2, %v15032_v4  ;;  %1625 = vmatprep.subr.bf16.mxu0 %v13501_v20 }
 0x1a8   : > { %1626 = vmatpush1.bf16.msra.mxu0 %v13503_v22 }
 0x1a9   : > { %1627 = vmatprep.subr.bf16.mxu0 %v13504_v24 }
 0x1ac   : > { %1628 = vmatpush1.bf16.msra.mxu0 %v13506_v26 }
 0x1af   : > { %1638 = vmatmul.mubr.bf16.vlgmr.msra.gmra.mrb[0].mxu0 %v15377_v41 }
 0x1b0   : > { %11362 = vmatprep.mubr.msk.bf16.mxu0 %vm1180_vm1, %v15380_v43 }
 0x1b7   : > { %1648 = vmatmul.mubr.bf16.gmra.mrb[4].mxu0 %v15389_v50 }
 0x279   : > { %v1697_v33 = vpop.f32.mrb[16].mxu1 }
 0x27a   : > { %v1706_v41 = vsel %vm1704_vm3, %v1697_v33, -10000.0  ;;  %v13052_v43 = vpop.f32.mrb[17].mxu1 }
 0x27b   : > { %v1700_v50 = vpop.f32.mrb[18].mxu1  ;;  %v1709_v34 = vsel %vm1708_vm4, %v1706_v41, -inf }
 0x27c   : > { %v1707_v35 = vsel %vm1705_vm5, %v1700_v50, -10000.0  ;;  %1710 = vmax.xlane.f32.xlu0 %v1709_v34  ;;  %v13053_v36 = vpop.f32.mrb[19].mxu1 }
 0x27d   : > { %v1712_v38 = vsel %vm1708_vm4, %v1707_v35, -inf }
 0x280   : > { %1713 = vmax.xlane.f32.xlu0 %v1712_v38 }
 0x282   : > { %v1639_v60 = vpop.f32.mrb[0].mxu0 }
 0x283   : > { %v1641_v62 = vpop.f32.mrb[1].mxu0  ;;  %v1640_v3 = vadd.f32 %v1639_v60, %v15532_v63 }
 0x284   : > { %v1643_v1 = vpop.f32.mrb[2].mxu0  ;;  %v1642_v5 = vadd.f32 %v1641_v62, %v15535_v0 }
 0x285   : > { %v1645_v2 = vpop.f32.mrb[3].mxu0  ;;  %v1644_v7 = vadd.f32 %v1643_v1, %v15532_v63 }
 0x286   : > { %v1646_v10 = vadd.f32 %v1645_v2, %v15535_v0 }
 0x287   : > { %v1662_v11 = vpack.c.bf16 %v1644_v7, %v1640_v3 }
 0x288   : > { %v1778_v12 = vpack.c.bf16 %v1646_v10, %v1642_v5 }
 0x289   : > { %13055 = vmatpush3.bf16.msra.mxu1 %v1662_v11 }
 0x28a   : > { %13060 = vmatprep.subr.bf16.mxu1 %v15032_v4 }
 0x309   : > { %v1711_v39 = vpop.xlane.xlu0 %1710 }
 0x30a   : > { %v1715_v40 = vsub.f32 %v1706_v41, %v1711_v39 }
 0x30c   : > { %v1717_v42 = vmul.f32 1.442695, %v1715_v40 }
 0x30d   : > { %v1714_v45 = vpop.xlane.xlu0 %1713 }
 0x30e   : > { %14825 = vpow2.f32 %v1717_v42  ;;  %v1716_v47 = vsub.f32 %v1707_v35, %v1714_v45 }
 0x310   : > { %v1719_v49 = vmul.f32 1.442695, %v1716_v47 }
 0x312   : > { %14827 = vpow2.f32 %v1719_v49 }
 0x318   : > { %v14826_v52 = vpop.eup %14825 }
 0x319   : > { %v1721_v54 = vsel %vm1708_vm4, %v14826_v52, 0.0 }
 0x31a   : > { %1722 = vadd.xlane.f32.xlu1 %v1721_v54 }
 0x31c   : > { %v14828_v58 = vpop.eup %14827 }
 0x31d   : > { %v1724_v59 = vsel %vm1708_vm4, %v14828_v58, 0.0 }
 0x31e   : > { %1725 = vadd.xlane.f32.xlu1 %v1724_v59 }
 0x3a7   : > { %v1723_v13 = vpop.xlane.xlu1 %1722 }
 0x3a8   : > { %14829 = vrcp.f32 %v1723_v13 }
 0x3ab   : > { %v1726_v14 = vpop.xlane.xlu1 %1725 }
 0x3ac   : > { %14831 = vrcp.f32 %v1726_v14 }
 0x3b2   : > { %v14830_v15 = vpop.eup %14829 }
 0x3b3   : > { %v1729_v17 = vmul.f32 %v14830_v15, %v14826_v52 }
 0x3b6   : > { %v14832_v16 = vpop.eup %14831 }
 0x3b7   : > { %v1730_v20 = vmul.f32 %v14832_v16, %v14828_v58 }
 0x3b9   : > { %v1731_v22 = vpack.c.bf16 %v1730_v20, %v1729_v17 }
 0x3bb   : > { %13057 = vmatmul.mubr.msk.bf16.vlgmr.msra.gmra.mrb[20].mxu1 %vm1708_vm4, %v1731_v22 }
 0x3bc   : > { %13061 = vmatpush3.bf16.xpose.msra.mxu1 %v1777_v46  ;;  %13062 = vmatprep.mubr.msk.bf16.mxu1 %vm15033_vm2, %v15032_v4 }
 0x3bd   : > { %13066 = vmatprep.subr.bf16.mxu1 %v15032_v4 }
 0x3c3   : > { %13063 = vmatmul.mubr.bf16.vlgmr.msra.gmra.mrb[24].mxu1 %v1776_v21 }
 0x3c4   : > { %13067 = vmatpush3.bf16.msra.mxu1 %v1778_v12  ;;  %13068 = vmatprep.mubr.msk.bf16.mxu1 %vm15033_vm2, %v15032_v4 }
 0x3c5   : > { %13072 = vmatprep.subr.bf16.mxu1 %v15032_v4 }
 0x48e   : > { %v15555_v24 = vpop.f32.mrb[20].mxu1 }
 0x48f   : > { %v13058_v26 = vpop.f32.mrb[21].mxu1 }
 0x490   : > { %v15557_v37 = vpop.f32.mrb[22].mxu1 }
 0x491   : > { %v2120_v44 = vpack.c.bf16 %v15557_v37, %v15555_v24  ;;  %v13059_v46 = vpop.f32.mrb[23].mxu1 }
 0x496   : > { %v1813_v33 = vpop.f32.mrb[24].mxu1 }
 0x497   : > { %v1820_v18 = vsel %vm1704_vm3, %v1813_v33, -10000.0  ;;  %v13064_v19 = vpop.f32.mrb[25].mxu1 }
 0x498   : > { %v1816_v21 = vpop.f32.mrb[26].mxu1  ;;  %v1822_v41 = vsel %vm1708_vm4, %v1820_v18, -inf }
 0x499   : > { %v1821_v43 = vsel %vm1705_vm5, %v1816_v21, -10000.0  ;;  %1823 = vmax.xlane.f32.xlu0 %v1822_v41  ;;  %v13065_v50 = vpop.f32.mrb[27].mxu1 }
 0x49a   : > { %v1825_v34 = vsel %vm1708_vm4, %v1821_v43, -inf }
 0x49b   : > { %1826 = vmax.xlane.f32.xlu1 %v1825_v34 }
 0x526   : > { %v1824_v35 = vpop.xlane.xlu0 %1823 }
 0x527   : > { %v1828_v36 = vsub.f32 %v1820_v18, %v1824_v35  ;;  %v1649_v18 = vpop.f32.mrb[4].mxu0 }
 0x528   : > { %v1827_v38 = vpop.xlane.xlu1 %1826  ;;  %v1651_v19 = vpop.f32.mrb[5].mxu0 }
 0x529   : > { %v1830_v39 = vmul.f32 1.442695, %v1828_v36  ;;  %v1829_v40 = vsub.f32 %v1821_v43, %v1827_v38  ;;  %v1653_v21 = vpop.f32.mrb[6].mxu0  ;;  %v1650_v43 = vadd.f32 %v1649_v18, %v15532_v63  ;;  %v1652_v50 = vadd.f32 %v1651_v19, %v15535_v0  ;;  %v13521_v18 = vld [vmem:[%s15292_s22 + $0x44] ss:$8 sps:$4 sm:$0xff]  }
 0x52a   : > { %v1655_v41 = vpop.f32.mrb[7].mxu0  ;;  %v1654_v34 = vadd.f32 %v1653_v21, %v15532_v63  ;;  %v13527_v19 = vld [vmem:[%s15292_s22 + $0x64] ss:$8 sps:$4 sm:$0xff]   ;;  %v13525_v21 = vld [vmem:[%s15292_s22 + $0x60] ss:$8 sps:$4 sm:$0xff]  }
 0x52b   : > { %14833 = vpow2.f32 %v1830_v39  ;;  %v1832_v28 = vmul.f32 1.442695, %v1829_v40  ;;  %v1656_v35 = vadd.f32 %v1655_v41, %v15535_v0  ;;  %v13530_v41 = vld [vmem:[%s15292_s22 + $0x74] ss:$8 sps:$4 sm:$0xff]  }
 0x52c   : > { %v1894_v36 = vpack.c.bf16 %v1654_v34, %v1650_v43  ;;  %v13528_v43 = vld [vmem:[%s15292_s22 + $0x70] ss:$8 sps:$4 sm:$0xff]   ;;  %v13531_v34 = vld [vmem:[%s15292_s22 + $0x80] ss:$8 sps:$4 sm:$0xff]  }
 0x52d   : > { %14835 = vpow2.f32 %v1832_v28  ;;  %v2009_v38 = vpack.c.bf16 %v1656_v35, %v1652_v50  ;;  %v13533_v50 = vld [vmem:[%s15292_s22 + $0x84] ss:$8 sps:$4 sm:$0xff]   ;;  %v13536_v35 = vld [vmem:[%s15292_s22 + $0x94] ss:$8 sps:$4 sm:$0xff]  }
 0x535   : > { %v14834_v42 = vpop.eup %14833 }
 0x536   : > { %v1834_v45 = vsel %vm1708_vm4, %v14834_v42, 0.0 }
 0x537   : > { %v14836_v47 = vpop.eup %14835  ;;  %1835 = vadd.xlane.f32.xlu0 %v1834_v45 }
 0x538   : > { %v1837_v32 = vsel %vm1708_vm4, %v14836_v47, 0.0 }
 0x539   : > { %1838 = vadd.xlane.f32.xlu1 %v1837_v32 }
 0x5c4   : > { %v1836_v49 = vpop.xlane.xlu0 %1835 }
 0x5c5   : > { %14837 = vrcp.f32 %v1836_v49 }
 0x5c6   : > { %v1839_v52 = vpop.xlane.xlu1 %1838 }
 0x5c7   : > { %14839 = vrcp.f32 %v1839_v52 }
 0x5cf   : > { %v14838_v54 = vpop.eup %14837 }
 0x5d0   : > { %v1842_v59 = vmul.f32 %v14838_v54, %v14834_v42 }
 0x5d1   : > { %v14840_v58 = vpop.eup %14839 }
 0x5d2   : > { %v1843_v60 = vmul.f32 %v14840_v58, %v14836_v47 }
 0x5d4   : > { %v1844_v61 = vpack.c.bf16 %v1843_v60, %v1842_v59 }
 0x5d6   : > { %13069 = vmatmul.mubr.msk.bf16.vlgmr.msra.gmra.mrb[28].mxu1 %vm1708_vm4, %v1844_v61 }
 0x5d7   : > { %13073 = vmatpush3.bf16.xpose.msra.mxu1 %v1893_v56  ;;  %13074 = vmatprep.mubr.msk.bf16.mxu1 %vm15033_vm2, %v15032_v4  ;;  %v15590_v56 = vld [vmem:[%s17723_s0 + $0x10] sm:$0xff] }
 0x5d8   : > { %13078 = vmatprep.subr.bf16.mxu1 %v15032_v4  ;;  %vm1936_vm6 = vcmp.gt.f32.partialorder %v15590_v56, 0.0 }
 0x5de   : > { %13075 = vmatmul.mubr.bf16.vlgmr.msra.gmra.mrb[32].mxu1 %v1892_v30 }
 0x5df   : > { %13080 = vmatprep.mubr.msk.bf16.mxu1 %vm15033_vm2, %v15032_v4  ;;  %13079 = vmatpush3.bf16.msra.mxu1 %v1894_v36  ;;  %v13534_v36 = vld [vmem:[%s15292_s22 + $0x90] ss:$8 sps:$4 sm:$0xff]  }
 0x5e0   : > { %13084 = vmatprep.subr.bf16.mxu1 %v15032_v4 }
 0x6a9   : > { %v15581_v62 = vpop.f32.mrb[28].mxu1 }
 0x6aa   : > { %v13070_v1 = vpop.f32.mrb[29].mxu1 }
 0x6ab   : > { %v15583_v2 = vpop.f32.mrb[30].mxu1 }
 0x6ac   : > { %v2121_v48 = vpack.c.bf16 %v15583_v2, %v15581_v62  ;;  %v13071_v53 = vpop.f32.mrb[31].mxu1  ;;  %v13519_v62 = vld [vmem:[%s15292_s22 + $0x40] ss:$8 sps:$4 sm:$0xff]   ;;  %v13524_v2 = vld [vmem:[%s15292_s22 + $0x54] ss:$8 sps:$4 sm:$0xff]  }
 0x6b1   : > { %v1929_v27 = vpop.f32.mrb[32].mxu1 }
 0x6b2   : > { %v1938_v30 = vsel %vm1936_vm6, %v1929_v27, -10000.0  ;;  %v13076_v3 = vpop.f32.mrb[33].mxu1 }
 0x6b3   : > { %v1932_v5 = vpop.f32.mrb[34].mxu1  ;;  %v1940_v7 = vsel %vm1708_vm4, %v1938_v30, -inf }
 0x6b4   : > { %v1939_v10 = vsel %vm1937_vm7, %v1932_v5, -10000.0  ;;  %1941 = vmax.xlane.f32.xlu0 %v1940_v7  ;;  %v13077_v11 = vpop.f32.mrb[35].mxu1  ;;  %v13509_v5 = vld [vmem:[%s15292_s22 + $0x4] ss:$8 sps:$4 sm:$0xff]  }
 0x6b5   : > { %v1943_v12 = vsel %vm1708_vm4, %v1939_v10, -inf }
 0x6b6   : > { %1944 = vmax.xlane.f32.xlu1 %v1943_v12 }
 0x741   : > { %v1942_v13 = vpop.xlane.xlu0 %1941 }
 0x742   : > { %v1946_v14 = vsub.f32 %v1938_v30, %v1942_v13 }
 0x743   : > { %v1945_v15 = vpop.xlane.xlu1 %1944 }
 0x744   : > { %v1948_v16 = vmul.f32 1.442695, %v1946_v14  ;;  %v1947_v17 = vsub.f32 %v1939_v10, %v1945_v15  ;;  %v13507_v15 = vld [vmem:[%s15292_s22] ss:$8 sps:$4 sm:$0xff]  }
 0x746   : > { %14841 = vpow2.f32 %v1948_v16  ;;  %v1950_v20 = vmul.f32 1.442695, %v1947_v17  ;;  %v13512_v17 = vld [vmem:[%s15292_s22 + $0x14] ss:$8 sps:$4 sm:$0xff]  }
 0x748   : > { %14843 = vpow2.f32 %v1950_v20  ;;  %v13510_v20 = vld [vmem:[%s15292_s22 + $0x10] ss:$8 sps:$4 sm:$0xff]  }
 0x750   : > { %v14842_v22 = vpop.eup %14841 }
 0x751   : > { %v1952_v26 = vsel %vm1708_vm4, %v14842_v22, 0.0 }
 0x752   : > { %v14844_v46 = vpop.eup %14843  ;;  %1953 = vadd.xlane.f32.xlu0 %v1952_v26  ;;  %v13513_v26 = vld [vmem:[%s15292_s22 + $0x20] ss:$8 sps:$4 sm:$0xff]  }
 0x753   : > { %v1955_v33 = vsel %vm1708_vm4, %v14844_v46, 0.0 }
 0x754   : > { %1956 = vadd.xlane.f32.xlu1 %v1955_v33  ;;  %v13516_v33 = vld [vmem:[%s15292_s22 + $0x30] ss:$8 sps:$4 sm:$0xff]  }
 0x7df   : > { %v1954_v39 = vpop.xlane.xlu0 %1953 }
 0x7e0   : > { %14845 = vrcp.f32 %v1954_v39  ;;  %v13537_v39 = vld [vmem:[%s15292_s22 + $0xa0] ss:$8 sps:$4 sm:$0xff]  }
 0x7e1   : > { %v1957_v40 = vpop.xlane.xlu1 %1956 }
 0x7e2   : > { %14847 = vrcp.f32 %v1957_v40  ;;  %v13542_v40 = vld [vmem:[%s15292_s22 + $0xb4] ss:$8 sps:$4 sm:$0xff]  }
 0x7ea   : > { %v14846_v28 = vpop.eup %14845 }
 0x7eb   : > { %v1960_v45 = vmul.f32 %v14846_v28, %v14842_v22  ;;  %v13515_v22 = vld [vmem:[%s15292_s22 + $0x24] ss:$8 sps:$4 sm:$0xff]   ;;  %v13540_v28 = vld [vmem:[%s15292_s22 + $0xb0] ss:$8 sps:$4 sm:$0xff]  }
 0x7ec   : > { %v14848_v42 = vpop.eup %14847 }
 0x7ed   : > { %v1961_v47 = vmul.f32 %v14848_v42, %v14844_v46  ;;  %v13518_v46 = vld [vmem:[%s15292_s22 + $0x34] ss:$8 sps:$4 sm:$0xff]   ;;  %v13545_v42 = vld [vmem:[%s15292_s22 + $0xc4] ss:$8 sps:$4 sm:$0xff]  }
 0x7ef   : > { %v1962_v32 = vpack.c.bf16 %v1961_v47, %v1960_v45  ;;  %v13543_v45 = vld [vmem:[%s15292_s22 + $0xc0] ss:$8 sps:$4 sm:$0xff]   ;;  %v13548_v47 = vld [vmem:[%s15292_s22 + $0xd4] ss:$8 sps:$4 sm:$0xff]  }
 0x7f1   : > { %13081 = vmatmul.mubr.msk.bf16.vlgmr.msra.gmra.mrb[36].mxu1 %vm1708_vm4, %v1962_v32  ;;  %v13546_v32 = vld [vmem:[%s15292_s22 + $0xd0] ss:$8 sps:$4 sm:$0xff]  }
 0x7f2   : > { %13085 = vmatpush3.bf16.xpose.msra.mxu1 %v2008_v57  ;;  %13086 = vmatprep.mubr.msk.bf16.mxu1 %vm15033_vm2, %v15032_v4 }
 0x7f3   : > { %13090 = vmatprep.subr.bf16.mxu1 %v15032_v4 }
 0x7f9   : > { %13087 = vmatmul.mubr.bf16.vlgmr.msra.gmra.mrb[40].mxu1 %v2007_v31 }
 0x7fa   : > { %13091 = vmatpush3.bf16.msra.mxu1 %v2009_v38  ;;  %13092 = vmatprep.mubr.msk.bf16.mxu1 %vm15033_vm2, %v15032_v4  ;;  %v13539_v38 = vld [vmem:[%s15292_s22 + $0xa4] ss:$8 sps:$4 sm:$0xff]  }
 0x7fb   : > { %2328 = vmatprep.subr.bf16.mxu1 %v13509_v5 }
 0x8c4   : > { %v15624_v63 = vpop.f32.mrb[36].mxu1 }
 0x8c5   : > { %v13082_v0 = vpop.f32.mrb[37].mxu1 }
 0x8c6   : > { %v15626_v49 = vpop.f32.mrb[38].mxu1  ;;  %v13551_v0 = vld [vmem:[%s15292_s22 + $0xe4] ss:$8 sps:$4 sm:$0xff]  }
 0x8c7   : > { %v2122_v51 = vpack.c.bf16 %v15626_v49, %v15624_v63  ;;  %v13083_v55 = vpop.f32.mrb[39].mxu1  ;;  %v14874_v49 = vld [vmem:[#allocation2] sm:$0xff] }
 0x8c8   : > { %v13549_v55 = vld [vmem:[%s15292_s22 + $0xe0] ss:$8 sps:$4 sm:$0xff]  }
 0x8cc   : > { %v2044_v57 = vpop.f32.mrb[40].mxu1 }
 0x8cd   : > { %v2051_v52 = vsel %vm1936_vm6, %v2044_v57, -10000.0  ;;  %v13088_v54 = vpop.f32.mrb[41].mxu1  ;;  %v13554_v57 = vld [vmem:[%s15292_s22 + $0xf4] ss:$8 sps:$4 sm:$0xff]  }
 0x8ce   : > { %v2047_v25 = vpop.f32.mrb[42].mxu1  ;;  %v2053_v29 = vsel %vm1708_vm4, %v2051_v52, -inf }
 0x8cf   : > { %v2052_v4 = vsel %vm1937_vm7, %v2047_v25, -10000.0  ;;  %2054 = vmax.xlane.f32.xlu0 %v2053_v29  ;;  %v13089_v31 = vpop.f32.mrb[43].mxu1 }
 0x8d0   : > { %v2056_v58 = vsel %vm1708_vm4, %v2052_v4, -inf }
 0x8d1   : > { %2057 = vmax.xlane.f32.xlu1 %v2056_v58 }
 0x95c   : > { %v2055_v59 = vpop.xlane.xlu0 %2054 }
 0x95d   : > { %v2059_v60 = vsub.f32 %v2051_v52, %v2055_v59  ;;  %v13552_v52 = vld [vmem:[%s15292_s22 + $0xf0] ss:$8 sps:$4 sm:$0xff]  }
 0x95e   : > { %v2058_v61 = vpop.xlane.xlu1 %2057 }
 0x95f   : > { %v2061_v1 = vmul.f32 1.442695, %v2059_v60  ;;  %v2060_v53 = vsub.f32 %v2052_v4, %v2058_v61 }
 0x961   : > { %14849 = vpow2.f32 %v2061_v1  ;;  %v2063_v56 = vmul.f32 1.442695, %v2060_v53 }
 0x963   : > { %14851 = vpow2.f32 %v2063_v56 }
 0x96b   : > { %v14850_v27 = vpop.eup %14849 }
 0x96c   : > { %v2065_v30 = vsel %vm1708_vm4, %v14850_v27, 0.0 }
 0x96d   : > { %v14852_v23 = vpop.eup %14851  ;;  %2066 = vadd.xlane.f32.xlu0 %v2065_v30 }
 0x96e   : > { %v2068_v3 = vsel %vm1708_vm4, %v14852_v23, 0.0 }
 0x96f   : > { %2069 = vadd.xlane.f32.xlu1 %v2068_v3 }
 0x9fa   : > { %v2067_v7 = vpop.xlane.xlu0 %2066 }
 0x9fb   : > { %14853 = vrcp.f32 %v2067_v7  ;;  %v14876_v7 = vld [vmem:[#allocation2 + $0x10] sm:$0xff] }
 0x9fc   : > { %v2070_v10 = vpop.xlane.xlu1 %2069 }
 0x9fd   : > { %14855 = vrcp.f32 %v2070_v10 }
 0xa05   : > { %v14854_v11 = vpop.eup %14853 }
 0xa06   : > { %v2073_v13 = vmul.f32 %v14854_v11, %v14850_v27  ;;  %v14873_v27 = vld [vmem:[#allocation2 + $0x8] sm:$0xff] }
 0xa07   : > { %v14856_v12 = vpop.eup %14855 }
 0xa08   : > { %v2074_v14 = vmul.f32 %v14856_v12, %v14852_v23  ;;  %v14875_v23 = vld [vmem:[#allocation2 + $0x18] sm:$0xff] }
 0xa0a   : > { %v2075_v16 = vpack.c.bf16 %v2074_v14, %v2073_v13  ;;  %v17684_v14 = vmov 0  }
 0xa0b   : > { %13398 = vset.pattern.permute.xlu1 %v17684_v14  ;;  %13397 = vset.pattern.permute.xlu0 %v17684_v14 }
 0xa0c   : > { %13093 = vmatmul.mubr.msk.bf16.vlgmr.msra.gmra.mrb[44].mxu1 %vm1708_vm4, %v2075_v16 }
 0xa0d   : > { %2329 = vmatpush1.bf16.msra.mxu1 %v13507_v15  ;;  %2360 = vmatprep.mubr.bf16.mxu1 %v2121_v48  ;;  %v13522_v48 = vld [vmem:[%s15292_s22 + $0x50] ss:$8 sps:$4 sm:$0xff]   ;;  %s17726_s22 = scalar_lea.vmem %s17657_s11, %s15256_s25 }
 0xa0e   : > { %2330 = vmatprep.subr.bf16.mxu1 %v13512_v17  ;;  %v2156_v58 = vld [vmem:[%s17726_s22] sm:$0x3] }
 0xa0f   : > { %v2161_v59 = vrot.slane %v2156_v58, %v15425_v8  ;;  %v2165_v24 = vrot.slane %v2156_v58, %v15428_v9  ;;  %v1018_v58 = vld [vmem:[%s17727_s23 + $0x10] sm:$0xff] }
 0xa11   : > { %2331 = vmatpush1.bf16.msra.mxu1 %v13510_v20 }
 0xa12   : > { %2332 = vmatprep.subr.bf16.mxu1 %v13515_v22 }
 0xa15   : > { %2333 = vmatpush1.bf16.msra.mxu1 %v13513_v26 }
 0xa16   : > { %2334 = vmatprep.subr.bf16.mxu1 %v13518_v46 }
 0xa19   : > { %2335 = vmatpush1.bf16.msra.mxu1 %v13516_v33 }
 0xa1a   : > { %2336 = vmatprep.subr.bf16.mxu1 %v13521_v18 }
 0xa1d   : > { %2337 = vmatpush1.bf16.msra.mxu1 %v13519_v62 }
 0xa1e   : > { %2338 = vmatprep.subr.bf16.mxu1 %v13524_v2 }
 0xa21   : > { %2339 = vmatpush1.bf16.msra.mxu1 %v13522_v48 }
 0xa22   : > { %2340 = vmatprep.subr.bf16.mxu1 %v13527_v19 }
 0xa25   : > { %2341 = vmatpush1.bf16.msra.mxu1 %v13525_v21 }
 0xa26   : > { %2342 = vmatprep.subr.bf16.mxu1 %v13530_v41  ;;  %v14877_v41 = vld [vmem:[#allocation2 + $0x28] sm:$0xff] }
 0xa29   : > { %2343 = vmatpush1.bf16.msra.mxu1 %v13528_v43 }
 0xa2a   : > { %2344 = vmatprep.subr.bf16.mxu1 %v13533_v50 }
 0xa2d   : > { %2345 = vmatpush1.bf16.msra.mxu1 %v13531_v34 }
 0xa2e   : > { %2346 = vmatprep.subr.bf16.mxu1 %v13536_v35 }
 0xa31   : > { %2347 = vmatpush1.bf16.msra.mxu1 %v13534_v36  ;;  %v14878_v36 = vld [vmem:[#allocation2 + $0x20] sm:$0xff] }
 0xa32   : > { %2348 = vmatprep.subr.bf16.mxu1 %v13539_v38 }
 0xa35   : > { %2349 = vmatpush1.bf16.msra.mxu1 %v13537_v39  ;;  %v14879_v39 = vld [vmem:[#allocation2 + $0x38] sm:$0xff] }
 0xa36   : > { %2350 = vmatprep.subr.bf16.mxu1 %v13542_v40 }
 0xa39   : > { %2351 = vmatpush1.bf16.msra.mxu1 %v13540_v28 }
 0xa3a   : > { %2352 = vmatprep.subr.bf16.mxu1 %v13545_v42 }
 0xa3d   : > { %2353 = vmatpush1.bf16.msra.mxu1 %v13543_v45  ;;  %v14880_v45 = vld [vmem:[#allocation2 + $0x30] sm:$0xff] }
 0xa3e   : > { %2354 = vmatprep.subr.bf16.mxu1 %v13548_v47 }
 0xa41   : > { %2355 = vmatpush1.bf16.msra.mxu1 %v13546_v32 }
 0xa42   : > { %2356 = vmatprep.subr.bf16.mxu1 %v13551_v0 }
 0xa45   : > { %2357 = vmatpush1.bf16.msra.mxu1 %v13549_v55 }
 0xa46   : > { %2358 = vmatprep.subr.bf16.mxu1 %v13554_v57 }
 0xa49   : > { %2359 = vmatpush1.bf16.msra.mxu1 %v13552_v52 }
 0xa4c   : > { %2361 = vmatmul.mubr.bf16.vlgmr.msra.gmra.mrb[48].mxu1 %v2120_v44 }
 0xadf   : > { %v2113_v54 = vpop.f32.mrb[44].mxu1 }
 0xae0   : > { %v13094_v25 = vpop.f32.mrb[45].mxu1 }
 0xae1   : > { %v2116_v29 = vpop.f32.mrb[46].mxu1 }
 0xae2   : > { %v2123_v4 = vpack.c.bf16 %v2116_v29, %v2113_v54  ;;  %v13095_v31 = vpop.f32.mrb[47].mxu1 }
 0xae3   : > { %v1017_v31 = vld [vmem:[%s17727_s23 + $0x8] sm:$0xff] }
 0xae4   : > { %2370 = vmatprep.mubr.bf16.mxu1 %v2123_v4 }
 0xae5   : > { %2371 = vmatmul.mubr.bf16.gmra.mrb[52].mxu1 %v2122_v51 }
 0xae6   : > { %2587 = vmatprep.mubr.bf16.mxu1 %v17684_v14 }
 0xb1f   : > { %v2362_v37 = vpop.f32.mrb[48].mxu1 }
 0xb20   : > { %v2363_v44 = vadd.f32 %v2362_v37, %v2161_v59  ;;  %v2364_v60 = vpop.f32.mrb[49].mxu1 }
 0xb21   : > { %v2365_v61 = vadd.f32 %v2364_v60, %v2165_v24  ;;  %v2366_v1 = vpop.f32.mrb[50].mxu1 }
 0xb22   : > { %v2367_v53 = vadd.f32 %v2366_v1, %v2161_v59  ;;  %v2368_v56 = vpop.f32.mrb[51].mxu1  ;;  %v2381_v51 = vadd.f32 %v14874_v49, %v2363_v44 }
 0xb23   : > { %v2382_v30 = vadd.f32 %v14873_v27, %v2365_v61  ;;  %v2369_v63 = vadd.f32 %v2368_v56, %v2165_v24 }
 0xb24   : > { %v2383_v10 = vadd.f32 %v14876_v7, %v2367_v53  ;;  %v1016_v7 = vld [vmem:[%s17727_s23] sm:$0xff] }
 0xb25   : > { %v2384_v3 = vadd.f32 %v14875_v23, %v2369_v63  ;;  %v2391_v5 = vsel %vm1180_vm1, %v2382_v30, 0.0 }
 0xb26   : > { %v2392_v11 = vadd.f32 %v2391_v5, %v2381_v51  ;;  %v1019_v5 = vld [vmem:[%s17727_s23 + $0x18] sm:$0xff] }
 0xb27   : > { %v2395_v12 = vsel %vm1180_vm1, %v2384_v3, 0.0 }
 0xb28   : > { %2393 = vadd.xlane.f32.xlu0 %v2392_v11  ;;  %v2396_v13 = vadd.f32 %v2395_v12, %v2383_v10  ;;  %v13564_v11 = vld [vmem:[%s17728_s28 + $0x24c] ss:$24 sps:$4 sm:$0xff]   ;;  %v13570_v12 = vld [vmem:[%s17728_s28 + $0x27c] ss:$24 sps:$4 sm:$0xff]  }
 0xb29   : > { %3254 = vmatprep.subr.bf16.mxu0 %v13564_v11 }
 0xb2a   : > { %2397 = vadd.xlane.f32.xlu1 %v2396_v13  ;;  %v13568_v13 = vld [vmem:[%s17728_s28 + $0x278] ss:$24 sps:$4 sm:$0xff]  }
 0xbb5   : > { %v2394_v15 = vpop.xlane.xlu0 %2393 }
 0xbb6   : > { %v2408_v16 = vmul.f32 0.0052083335, %v2394_v15  ;;  %v13576_v15 = vld [vmem:[%s17728_s28 + $0x2ac] ss:$24 sps:$4 sm:$0xff]  }
 0xbb7   : > { %v2398_v17 = vpop.xlane.xlu1 %2397 }
 0xbb8   : > { %v15692_v20 = vsub.f32 %v2382_v30, %v2408_v16  ;;  %v2409_v22 = vmul.f32 0.0052083335, %v2398_v17  ;;  %v2372_v26 = vpop.f32.mrb[52].mxu1  ;;  %v15696_v48 = vsub.f32 %v2381_v51, %v2408_v16  ;;  %v13574_v16 = vld [vmem:[%s17728_s28 + $0x2a8] ss:$24 sps:$4 sm:$0xff]  }
 0xbb9   : > { %v2373_v46 = vadd.f32 %v2372_v26, %v2161_v59  ;;  %v2374_v33 = vpop.f32.mrb[53].mxu1  ;;  %v13582_v17 = vld [vmem:[%s17728_s28 + $0x2dc] ss:$24 sps:$4 sm:$0xff]   ;;  %v13588_v26 = vld [vmem:[%s17728_s28 + $0x30c] ss:$24 sps:$4 sm:$0xff]  }
 0xbba   : > { %v15694_v18 = vsub.f32 %v2384_v3, %v2409_v22  ;;  %v2375_v62 = vadd.f32 %v2374_v33, %v2165_v24  ;;  %v2376_v2 = vpop.f32.mrb[54].mxu1  ;;  %v2421_v34 = vmul.f32 %v15692_v20, %v15692_v20  ;;  %v15700_v35 = vsub.f32 %v2383_v10, %v2409_v22  ;;  %v13562_v10 = vld [vmem:[%s17728_s28 + $0x248] ss:$24 sps:$4 sm:$0xff]   ;;  %v13580_v22 = vld [vmem:[%s17728_s28 + $0x2d8] ss:$24 sps:$4 sm:$0xff]  }
 0xbbb   : > { %v2377_v19 = vadd.f32 %v2376_v2, %v2161_v59  ;;  %v2378_v21 = vpop.f32.mrb[55].mxu1  ;;  %v2385_v38 = vadd.f32 %v14878_v36, %v2373_v46  ;;  %v2420_v0 = vmul.f32 %v15696_v48, %v15696_v48  ;;  %3255 = vmatpush1.bf16.msra.mxu0 %v13562_v10  ;;  %v13586_v46 = vld [vmem:[%s17728_s28 + $0x308] ss:$24 sps:$4 sm:$0xff]   ;;  %v13594_v33 = vld [vmem:[%s17728_s28 + $0x33c] ss:$24 sps:$4 sm:$0xff]  }
 0xbbc   : > { %v2386_v43 = vadd.f32 %v14877_v41, %v2375_v62  ;;  %v2379_v50 = vadd.f32 %v2378_v21, %v2165_v24  ;;  %v2423_v42 = vmul.f32 %v15694_v18, %v15694_v18  ;;  %v2428_v57 = vsel %vm1180_vm1, %v2421_v34, 0.0  ;;  %3256 = vmatprep.subr.bf16.mxu0 %v13570_v12  ;;  %v13592_v62 = vld [vmem:[%s17728_s28 + $0x338] ss:$24 sps:$4 sm:$0xff]   ;;  %v13600_v2 = vld [vmem:[%s17728_s28 + $0x36c] ss:$24 sps:$4 sm:$0xff]  }
 0xbbd   : > { %v2387_v47 = vadd.f32 %v14880_v45, %v2377_v19  ;;  %v2422_v54 = vmul.f32 %v15700_v35, %v15700_v35  ;;  %v2429_v29 = vadd.f32 %v2428_v57, %v2420_v0  ;;  %v13598_v19 = vld [vmem:[%s17728_s28 + $0x368] ss:$24 sps:$4 sm:$0xff]  }
 0xbbe   : > { %v2388_v40 = vadd.f32 %v14879_v39, %v2379_v50  ;;  %v2399_v28 = vsel %vm1180_vm1, %v2386_v43, 0.0  ;;  %v2432_v25 = vsel %vm1180_vm1, %v2423_v42, 0.0 }
 0xbbf   : > { %v2400_v32 = vadd.f32 %v2399_v28, %v2385_v38  ;;  %v2433_v4 = vadd.f32 %v2432_v25, %v2422_v54  ;;  %3257 = vmatpush1.bf16.msra.mxu0 %v13568_v13  ;;  %v2389_v28 = vld [vmem:[%s17729_s4] sm:$0x3] }
 0xbc0   : > { %v2403_v55 = vsel %vm1180_vm1, %v2388_v40, 0.0  ;;  %3258 = vmatprep.subr.bf16.mxu0 %v13576_v15  ;;  %v2472_v0 = vrot.slane %v2389_v28, %v15428_v9 }
 0xbc1   : > { %2401 = vadd.xlane.f32.xlu0 %v2400_v32  ;;  %v2404_v52 = vadd.f32 %v2403_v55, %v2387_v47  ;;  %v2468_v32 = vrot.slane %v2389_v28, %v15425_v8  ;;  %v13565_v28 = vld [vmem:[%s17728_s28 + $0x270] ss:$24 sps:$4 sm:$0xff]  }
 0xbc3   : > { %2405 = vadd.xlane.f32.xlu1 %v2404_v52  ;;  %3259 = vmatpush1.bf16.msra.mxu0 %v13574_v16  ;;  %v2390_v52 = vld [vmem:[%s17730_s24] sm:$0x3] }
 0xbc4   : > { %3260 = vmatprep.subr.bf16.mxu0 %v13582_v17 }
 0xbc5   : > { %2430 = vadd.xlane.f32.xlu0 %v2429_v29 }
 0xbc7   : > { %2434 = vadd.xlane.f32.xlu1 %v2433_v4  ;;  %3261 = vmatpush1.bf16.msra.mxu0 %v13580_v22 }
 0xbc8   : > { %3262 = vmatprep.subr.bf16.mxu0 %v13588_v26 }
 0xbcb   : > { %3263 = vmatpush1.bf16.msra.mxu0 %v13586_v46 }
 0xbcc   : > { %3264 = vmatprep.subr.bf16.mxu0 %v13594_v33 }
 0xbcf   : > { %3265 = vmatpush1.bf16.msra.mxu0 %v13592_v62 }
 0xbd0   : > { %3266 = vmatprep.subr.bf16.mxu0 %v13600_v2 }
 0xbd3   : > { %3267 = vmatpush1.bf16.msra.mxu0 %v13598_v19 }
 0xbd8   : > { %2509 = vperm.xlu1 %13398, %v1017_v31   ;;  %v2491_v31 = vrot.slane %v2390_v52, %v15428_v9 }
 0xbdc   : > { %2514 = vperm.xlu1 %13398, %v1018_v58  }
 0xc4e   : > { %v2402_v59 = vpop.xlane.xlu0 %2401 }
 0xc4f   : > { %v2410_v24 = vmul.f32 0.0052083335, %v2402_v59 }
 0xc50   : > { %v2406_v37 = vpop.xlane.xlu1 %2405 }
 0xc51   : > { %v15718_v44 = vsub.f32 %v2385_v38, %v2410_v24  ;;  %v15720_v60 = vsub.f32 %v2386_v43, %v2410_v24  ;;  %v2411_v61 = vmul.f32 0.0052083335, %v2406_v37 }
 0xc52   : > { %v2431_v41 = vpop.xlane.xlu0 %2430 }
 0xc53   : > { %v15722_v1 = vsub.f32 %v2387_v47, %v2411_v61  ;;  %v15724_v53 = vsub.f32 %v2388_v40, %v2411_v61  ;;  %v2424_v56 = vmul.f32 %v15718_v44, %v15718_v44  ;;  %v2425_v27 = vmul.f32 %v15720_v60, %v15720_v60 }
 0xc54   : > { %v2435_v21 = vpop.xlane.xlu1 %2434  ;;  %v2444_v50 = vmul.f32 0.0052083335, %v2431_v41 }
 0xc55   : > { %v2426_v30 = vmul.f32 %v15722_v1, %v15722_v1  ;;  %v2427_v63 = vmul.f32 %v15724_v53, %v15724_v53  ;;  %v2436_v49 = vsel %vm1180_vm1, %v2425_v27, 0.0  ;;  %v2445_v43 = vmul.f32 0.0052083335, %v2435_v21 }
 0xc56   : > { %v2437_v51 = vadd.f32 %v2436_v49, %v2424_v56  ;;  %v2448_v36 = vadd.f32 1e-05, %v2444_v50  ;;  %v13561_v50 = vld [vmem:[%s17728_s28 + $0x244] ss:$24 sps:$4 sm:$0xff]  }
 0xc57   : > { %v2440_v23 = vsel %vm1180_vm1, %v2427_v63, 0.0  ;;  %v2449_v34 = vadd.f32 1e-05, %v2445_v43  ;;  %v13555_v43 = vld [vmem:[%s17731_s5] sm:$0xff]  }
 0xc58   : > { %v2441_v3 = vadd.f32 %v2440_v23, %v2426_v30  ;;  %2438 = vadd.xlane.f32.xlu0 %v2437_v51  ;;  %v15756_v38 = vpop.permute.xlu1 %2509 }
 0xc59   : > { %14857 = vrsqrt.f32 %v2449_v34  ;;  %v13556_v34 = vld [vmem:[%s17731_s5 + $0x8] sm:$0xff]  }
 0xc5a   : > { %2442 = vadd.xlane.f32.xlu1 %v2441_v3  ;;  %14859 = vrsqrt.f32 %v2448_v36  ;;  %v13557_v36 = vld [vmem:[%s17731_s5 + $0x10] sm:$0xff]  }
 0xc5c   : > { %v15765_v47 = vpop.permute.xlu1 %2514 }
 0xc63   : > { %v14858_v39 = vpop.eup %14857 }
 0xc64   : > { %v14860_v40 = vpop.eup %14859  ;;  %v2458_v42 = vmul.f32 %v14858_v39, %v15700_v35  ;;  %v2459_v45 = vmul.f32 %v14858_v39, %v15694_v18  ;;  %v13559_v39 = vld [vmem:[%s17728_s28 + $0x240] ss:$24 sps:$4 sm:$0xff]  }
 0xc65   : > { %v2456_v55 = vmul.f32 %v14860_v40, %v15696_v48  ;;  %v2457_v57 = vmul.f32 %v14860_v40, %v15692_v20  ;;  %v2487_v48 = vrot.slane %v2390_v52, %v15425_v8  ;;  %v13567_v40 = vld [vmem:[%s17728_s28 + $0x274] ss:$24 sps:$4 sm:$0xff]   ;;  %v13583_v52 = vld [vmem:[%s17728_s28 + $0x300] ss:$24 sps:$4 sm:$0xff]  }
 0xc66   : > { %v2477_v25 = vmul.f32 %v2468_v32, %v2458_v42  ;;  %v2478_v35 = vmul.f32 %v2472_v0, %v2459_v45  ;;  %v13573_v42 = vld [vmem:[%s17728_s28 + $0x2a4] ss:$24 sps:$4 sm:$0xff]  }
 0xc67   : > { %v2475_v58 = vmul.f32 %v2468_v32, %v2456_v55  ;;  %v2476_v59 = vmul.f32 %v2472_v0, %v2457_v57  ;;  %v13558_v45 = vld [vmem:[%s17731_s5 + $0x18] sm:$0xff]   ;;  %v13577_v55 = vld [vmem:[%s17728_s28 + $0x2d0] ss:$24 sps:$4 sm:$0xff]  }
 0xc68   : > { %v15778_v20 = vadd.f32 %v2491_v31, %v2478_v35  ;;  %v15780_v61 = vadd.f32 %v2487_v48, %v2477_v25  ;;  %v13585_v57 = vld [vmem:[%s17728_s28 + $0x304] ss:$24 sps:$4 sm:$0xff]   ;;  %v13589_v25 = vld [vmem:[%s17728_s28 + $0x330] ss:$24 sps:$4 sm:$0xff]  }
 0xc69   : > { %v15782_v56 = vadd.f32 %v2491_v31, %v2476_v59  ;;  %v15784_v27 = vadd.f32 %v2487_v48, %v2475_v58  ;;  %v13597_v35 = vld [vmem:[%s17728_s28 + $0x364] ss:$24 sps:$4 sm:$0xff]   ;;  %v13607_v59 = vld [vmem:[%s17728_s28 + $0x3c0] ss:$24 sps:$4 sm:$0xff]  }
 0xc6a   : > { %v2525_v49 = vmul.f32 %v15756_v38, %v15778_v20  ;;  %v2524_v23 = vmul.f32 %v15756_v38, %v15780_v61  ;;  %v13606_v58 = vld [vmem:[%s17728_s28 + $0x39c] ss:$24 sps:$4 sm:$0xff]  }
 0xc6b   : > { %2519 = vperm.xlu1 %13398, %v1019_v5   ;;  %3268 = vmatprep.subr.bf16.mxu0 %v13606_v58 }
 0xc6e   : > { %2504 = vperm.xlu0 %13397, %v1016_v7  }
 0xce5   : > { %v2439_v54 = vpop.xlane.xlu0 %2438 }
 0xce6   : > { %v2446_v29 = vmul.f32 0.0052083335, %v2439_v54  ;;  %v13591_v54 = vld [vmem:[%s17728_s28 + $0x334] ss:$24 sps:$4 sm:$0xff]  }
 0xce7   : > { %v2443_v18 = vpop.xlane.xlu1 %2442 }
 0xce8   : > { %v2447_v4 = vmul.f32 0.0052083335, %v2443_v18  ;;  %v2450_v24 = vadd.f32 1e-05, %v2446_v29  ;;  %v13595_v29 = vld [vmem:[%s17728_s28 + $0x360] ss:$24 sps:$4 sm:$0xff]  }
 0xce9   : > { %v13601_v18 = vld [vmem:[%s17728_s28 + $0x390] ss:$24 sps:$4 sm:$0xff]  }
 0xcea   : > { %v2451_v37 = vadd.f32 1e-05, %v2447_v4  ;;  %14861 = vrsqrt.f32 %v2450_v24  ;;  %v13603_v4 = vld [vmem:[%s17728_s28 + $0x394] ss:$24 sps:$4 sm:$0xff]   ;;  %v13609_v24 = vld [vmem:[%s17728_s28 + $0x3c4] ss:$24 sps:$4 sm:$0xff]  }
 0xceb   : > { %v15814_v19 = vpop.permute.xlu1 %2519 }
 0xcec   : > { %14863 = vrsqrt.f32 %v2451_v37  ;;  %v13612_v37 = vld [vmem:[%s17728_s28 + $0x3cc] ss:$24 sps:$4 sm:$0xff]  }
 0xced   : > { %v15786_v30 = vpop.permute.xlu0 %2504 }
 0xcee   : > { %v2523_v63 = vmul.f32 %v15786_v30, %v15782_v56  ;;  %v2522_v51 = vmul.f32 %v15786_v30, %v15784_v27 }
 0xcf0   : > { %v15796_v3 = vpack.c.bf16 %v2525_v49, %v2523_v63  ;;  %v15798_v5 = vpack.c.bf16 %v2524_v23, %v2522_v51  ;;  %v13613_v63 = vld [vmem:[%s17728_s28 + $0x3f0] ss:$24 sps:$4 sm:$0xff]   ;;  %v13615_v49 = vld [vmem:[%s17728_s28 + $0x3f4] ss:$24 sps:$4 sm:$0xff]  }
 0xcf1   : > { %v13616_v51 = vld [vmem:[%s17728_s28 + $0x3f8] ss:$24 sps:$4 sm:$0xff]   ;;  %v13618_v23 = vld [vmem:[%s17728_s28 + $0x3fc] ss:$24 sps:$4 sm:$0xff]  }
 0xcf2   : > { %2555 = vmatprep.subr.bf16.mxu1 %v15796_v3 }
 0xcf3   : > { %2556 = vmatpush1.bf16.msra.mxu1 %v15798_v5 }
 0xcf4   : > { %v14862_v7 = vpop.eup %14861 }
 0xcf5   : > { %v2460_v11 = vmul.f32 %v14862_v7, %v15718_v44  ;;  %v2461_v12 = vmul.f32 %v14862_v7, %v15720_v60  ;;  %v13619_v7 = vld [vmem:[%s17728_s28 + $0x420] ss:$24 sps:$4 sm:$0xff]  }
 0xcf6   : > { %v14864_v10 = vpop.eup %14863 }
 0xcf7   : > { %v2462_v13 = vmul.f32 %v14864_v10, %v15722_v1  ;;  %v2463_v15 = vmul.f32 %v14864_v10, %v15724_v53  ;;  %v2479_v16 = vmul.f32 %v2468_v32, %v2460_v11  ;;  %v2480_v17 = vmul.f32 %v2472_v0, %v2461_v12  ;;  %v13621_v10 = vld [vmem:[%s17728_s28 + $0x424] ss:$24 sps:$4 sm:$0xff]   ;;  %v13622_v11 = vld [vmem:[%s17728_s28 + $0x428] ss:$24 sps:$4 sm:$0xff]  }
 0xcf8   : > { %v13624_v12 = vld [vmem:[%s17728_s28 + $0x42c] ss:$24 sps:$4 sm:$0xff]  }
 0xcf9   : > { %v2481_v22 = vmul.f32 %v2468_v32, %v2462_v13  ;;  %v2482_v26 = vmul.f32 %v2472_v0, %v2463_v15  ;;  %v15806_v46 = vadd.f32 %v2491_v31, %v2480_v17  ;;  %v15808_v33 = vadd.f32 %v2487_v48, %v2479_v16  ;;  %v13571_v32 = vld [vmem:[%s17728_s28 + $0x2a0] ss:$24 sps:$4 sm:$0xff]   ;;  %v13579_v0 = vld [vmem:[%s17728_s28 + $0x2d4] ss:$24 sps:$4 sm:$0xff]   ;;  %v13625_v16 = vld [vmem:[%s17728_s28 + $0x450] ss:$24 sps:$4 sm:$0xff]  }
 0xcfa   : > { %v13627_v13 = vld [vmem:[%s17728_s28 + $0x454] ss:$24 sps:$4 sm:$0xff]   ;;  %v13628_v17 = vld [vmem:[%s17728_s28 + $0x458] ss:$24 sps:$4 sm:$0xff]  }
 0xcfb   : > { %v15810_v62 = vadd.f32 %v2491_v31, %v2482_v26  ;;  %v15812_v2 = vadd.f32 %v2487_v48, %v2481_v22  ;;  %v2527_v44 = vmul.f32 %v15765_v47, %v15806_v46  ;;  %v2526_v1 = vmul.f32 %v15765_v47, %v15808_v33  ;;  %v13604_v31 = vld [vmem:[%s17728_s28 + $0x398] ss:$24 sps:$4 sm:$0xff]   ;;  %v13610_v48 = vld [vmem:[%s17728_s28 + $0x3c8] ss:$24 sps:$4 sm:$0xff]   ;;  %v13630_v15 = vld [vmem:[%s17728_s28 + $0x45c] ss:$24 sps:$4 sm:$0xff]  }
 0xcfc   : > { %3269 = vmatpush1.bf16.msra.mxu0 %v13604_v31  ;;  %v13633_v22 = vld [vmem:[%s17728_s28 + $0x254] ss:$24 sps:$4 sm:$0xff]   ;;  %v13640_v31 = vld [vmem:[%s17728_s28 + $0x38] ss:$24 sps:$4 sm:$0xff]  }
 0xcfd   : > { %v2529_v60 = vmul.f32 %v15814_v19, %v15810_v62  ;;  %v2528_v53 = vmul.f32 %v15814_v19, %v15812_v2  ;;  %3270 = vmatprep.subr.bf16.mxu0 %v13612_v37  ;;  %v13636_v26 = vld [vmem:[%s17728_s28 + $0xc] ss:$24 sps:$4 sm:$0xff]  }
 0xcff   : > { %v15824_v21 = vpack.c.bf16 %v2529_v60, %v2527_v44  ;;  %v15826_v41 = vpack.c.bf16 %v2528_v53, %v2526_v1 }
 0xd00   : > { %3271 = vmatpush1.bf16.msra.mxu0 %v13610_v48 }
 0xd01   : > { %2557 = vmatprep.subr.bf16.mxu1 %v15824_v21  ;;  %3272 = vmatprep.subr.bf16.mxu0 %v13618_v23  ;;  %v13646_v23 = vld [vmem:[%s17728_s28 + $0x68] ss:$24 sps:$4 sm:$0xff]  }
 0xd02   : > { %2558 = vmatpush1.bf16.msra.mxu1 %v15826_v41 }
 0xd03   : > { %2705 = vmatprep.subr.bf16.mxu1 %v15796_v3 }
 0xd04   : > { %3273 = vmatpush1.bf16.msra.mxu0 %v13616_v51  ;;  %v13643_v51 = vld [vmem:[%s17728_s28 + $0x2b0] ss:$24 sps:$4 sm:$0xff]  }
 0xd05   : > { %11403 = vmatmul.mubr.msk.bf16.vlgmr.msra.gmra.mrb[56].mxu1 %vm2548_vm8, %v13555_v43  ;;  %3274 = vmatprep.subr.bf16.mxu0 %v13624_v12  ;;  %v13652_v12 = vld [vmem:[%s17728_s28 + $0x98] ss:$24 sps:$4 sm:$0xff]  }
 0xd06   : > { %2706 = vmatpush1.bf16.msra.mxu1 %v15798_v5  ;;  %2597 = vmatprep.mubr.bf16.mxu1 %v17684_v14 }
 0xd07   : > { %2707 = vmatprep.subr.bf16.mxu1 %v15824_v21 }
 0xd08   : > { %3275 = vmatpush1.bf16.msra.mxu0 %v13622_v11  ;;  %v13649_v11 = vld [vmem:[%s17728_s28 + $0x2e0] ss:$24 sps:$4 sm:$0xff]  }
 0xd09   : > { %3276 = vmatprep.subr.bf16.mxu0 %v13630_v15  ;;  %v13660_v15 = vld [vmem:[%s17728_s28 + $0xcc] ss:$24 sps:$4 sm:$0xff]  }
 0xd0a   : > { %2708 = vmatpush1.bf16.msra.mxu1 %v15826_v41 }
 0xd0b   : > { %3201 = vmatprep.subr.bf16.mxu1 %v13561_v50 }
 0xd0c   : > { %3277 = vmatpush1.bf16.msra.mxu0 %v13628_v17  ;;  %v13658_v17 = vld [vmem:[%s17728_s28 + $0xc8] ss:$24 sps:$4 sm:$0xff]  }
 0xd0d   : > { %11404 = vmatmul.mubr.msk.bf16.gmra.mrb[60].mxu1 %vm2548_vm8, %v13556_v34  ;;  %3779 = vmatprep.subr.bf16.mxu0 %v13636_v26  ;;  %v13666_v26 = vld [vmem:[%s17728_s28 + $0xfc] ss:$24 sps:$4 sm:$0xff]  }
 0xd0e   : > { %2737 = vmatprep.mubr.bf16.mxu1 %v17684_v14 }
 0xd15   : > { %11411 = vmatmul.mubr.msk.bf16.vlgmr.msra.gmra.mrb[64].mxu1 %vm2548_vm8, %v13557_v36 }
 0xd16   : > { %2747 = vmatprep.mubr.bf16.mxu1 %v17684_v14  ;;  %3202 = vmatpush1.bf16.msra.mxu1 %v13559_v39 }
 0xd17   : > { %3203 = vmatprep.subr.bf16.mxu1 %v13567_v40 }
 0xd1a   : > { %3204 = vmatpush1.bf16.msra.mxu1 %v13565_v28 }
 0xd1b   : > { %3205 = vmatprep.subr.bf16.mxu1 %v13573_v42 }
 0xd1d   : > { %11412 = vmatmul.mubr.msk.bf16.gmra.mrb[68].mxu1 %vm2548_vm8, %v13558_v45 }
 0xd1e   : > { %3206 = vmatpush1.bf16.msra.mxu1 %v13571_v32 }
 0xd1f   : > { %3207 = vmatprep.subr.bf16.mxu1 %v13579_v0 }
 0xd22   : > { %3208 = vmatpush1.bf16.msra.mxu1 %v13577_v55 }
 0xd23   : > { %3209 = vmatprep.subr.bf16.mxu1 %v13585_v57 }
 0xd26   : > { %3210 = vmatpush1.bf16.msra.mxu1 %v13583_v52 }
 0xd27   : > { %3211 = vmatprep.subr.bf16.mxu1 %v13591_v54  ;;  %v13631_v54 = vld [vmem:[%s17728_s28 + $0x250] ss:$24 sps:$4 sm:$0xff]  }
 0xd2a   : > { %3212 = vmatpush1.bf16.msra.mxu1 %v13589_v25  ;;  %v13634_v25 = vld [vmem:[%s17728_s28 + $0x8] ss:$24 sps:$4 sm:$0xff]  }
 0xd2b   : > { %3213 = vmatprep.subr.bf16.mxu1 %v13597_v35  ;;  %v13639_v35 = vld [vmem:[%s17728_s28 + $0x284] ss:$24 sps:$4 sm:$0xff]  }
 0xd2e   : > { %3214 = vmatpush1.bf16.msra.mxu1 %v13595_v29  ;;  %v13642_v29 = vld [vmem:[%s17728_s28 + $0x3c] ss:$24 sps:$4 sm:$0xff]  }
 0xd2f   : > { %3215 = vmatprep.subr.bf16.mxu1 %v13603_v4  ;;  %v13637_v4 = vld [vmem:[%s17728_s28 + $0x280] ss:$24 sps:$4 sm:$0xff]  }
 0xd32   : > { %3216 = vmatpush1.bf16.msra.mxu1 %v13601_v18 }
 0xd33   : > { %3217 = vmatprep.subr.bf16.mxu1 %v13609_v24  ;;  %v13648_v24 = vld [vmem:[%s17728_s28 + $0x6c] ss:$24 sps:$4 sm:$0xff]  }
 0xd36   : > { %3218 = vmatpush1.bf16.msra.mxu1 %v13607_v59  ;;  %v13645_v59 = vld [vmem:[%s17728_s28 + $0x2b4] ss:$24 sps:$4 sm:$0xff]  }
 0xd37   : > { %3219 = vmatprep.subr.bf16.mxu1 %v13615_v49 }
 0xd3a   : > { %3220 = vmatpush1.bf16.msra.mxu1 %v13613_v63 }
 0xd3b   : > { %3221 = vmatprep.subr.bf16.mxu1 %v13621_v10  ;;  %v13654_v10 = vld [vmem:[%s17728_s28 + $0x9c] ss:$24 sps:$4 sm:$0xff]  }
 0xd3e   : > { %3222 = vmatpush1.bf16.msra.mxu1 %v13619_v7  ;;  %v13651_v7 = vld [vmem:[%s17728_s28 + $0x2e4] ss:$24 sps:$4 sm:$0xff]  }
 0xd3f   : > { %3223 = vmatprep.subr.bf16.mxu1 %v13627_v13  ;;  %v13657_v13 = vld [vmem:[%s17728_s28 + $0x314] ss:$24 sps:$4 sm:$0xff]  }
 0xd42   : > { %3224 = vmatpush1.bf16.msra.mxu1 %v13625_v16  ;;  %v13655_v16 = vld [vmem:[%s17728_s28 + $0x310] ss:$24 sps:$4 sm:$0xff]  }
 0xd43   : > { %3307 = vmatprep.subr.bf16.mxu1 %v13633_v22  ;;  %v13663_v22 = vld [vmem:[%s17728_s28 + $0x344] ss:$24 sps:$4 sm:$0xff]  }
 0xdd8   : > { %v2589_v44 = vpop.f32.mrb[56].mxu1 }
 0xdd9   : > { %v2591_v60 = vpop.f32.mrb[57].mxu1 }
 0xdda   : > { %v2593_v1 = vpop.f32.mrb[58].mxu1 }
 0xddb   : > { %v15889_v53 = vpack.c.bf16 %v2593_v1, %v2589_v44  ;;  %v2595_v43 = vpop.f32.mrb[59].mxu1  ;;  %v13661_v44 = vld [vmem:[%s17728_s28 + $0x340] ss:$24 sps:$4 sm:$0xff]   ;;  %v13669_v1 = vld [vmem:[%s17728_s28 + $0x374] ss:$24 sps:$4 sm:$0xff]  }
 0xddc   : > { %v15891_v50 = vpack.c.bf16 %v2595_v43, %v2591_v60  ;;  %v13664_v60 = vld [vmem:[%s17728_s28 + $0xf8] ss:$24 sps:$4 sm:$0xff]   ;;  %v13672_v43 = vld [vmem:[%s17728_s28 + $0x12c] ss:$24 sps:$4 sm:$0xff]  }
 0xde0   : > { %v2599_v34 = vpop.f32.mrb[60].mxu1 }
 0xde1   : > { %v2601_v36 = vpop.f32.mrb[61].mxu1 }
 0xde2   : > { %v2603_v39 = vpop.f32.mrb[62].mxu1 }
 0xde3   : > { %v15893_v40 = vpack.c.bf16 %v2603_v39, %v2599_v34  ;;  %v2605_v28 = vpop.f32.mrb[63].mxu1  ;;  %v13667_v34 = vld [vmem:[%s17728_s28 + $0x370] ss:$24 sps:$4 sm:$0xff]   ;;  %v13675_v39 = vld [vmem:[%s17728_s28 + $0x3a4] ss:$24 sps:$4 sm:$0xff]  }
 0xde4   : > { %v15895_v42 = vpack.c.bf16 %v2605_v28, %v2601_v36  ;;  %v13670_v36 = vld [vmem:[%s17728_s28 + $0x128] ss:$24 sps:$4 sm:$0xff]   ;;  %v13678_v28 = vld [vmem:[%s17728_s28 + $0x15c] ss:$24 sps:$4 sm:$0xff]  }
 0xde8   : > { %v2739_v45 = vpop.f32.mrb[64].mxu1 }
 0xde9   : > { %v2741_v32 = vpop.f32.mrb[65].mxu1 }
 0xdea   : > { %v2743_v0 = vpop.f32.mrb[66].mxu1 }
 0xdeb   : > { %v15897_v55 = vpack.c.bf16 %v2743_v0, %v2739_v45  ;;  %v2745_v57 = vpop.f32.mrb[67].mxu1  ;;  %v13673_v45 = vld [vmem:[%s17728_s28 + $0x3a0] ss:$24 sps:$4 sm:$0xff]   ;;  %v13681_v0 = vld [vmem:[%s17728_s28 + $0x3d4] ss:$24 sps:$4 sm:$0xff]  }
 0xdec   : > { %v2759_v52 = vpack.c.bf16 %v2745_v57, %v2741_v32  ;;  %v13676_v32 = vld [vmem:[%s17728_s28 + $0x158] ss:$24 sps:$4 sm:$0xff]   ;;  %v13684_v57 = vld [vmem:[%s17728_s28 + $0x18c] ss:$24 sps:$4 sm:$0xff]  }
 0xdee   : > { %11557 = vmatprep.mubr.msk.bf16.mxu1 %vm1180_vm1, %v2759_v52  ;;  %11559 = vmatprep.mubr.msk.bf16.mxu0 %vm1180_vm1, %v2759_v52 }
 0xdef   : > { %3234 = vmatmul.mubr.bf16.vlgmr.msra.gmra.mrb[72].mxu1 %v15897_v55  ;;  %3287 = vmatmul.mubr.bf16.vlgmr.msra.gmra.mrb[8].mxu0 %v15897_v55 }
 0xdf0   : > { %3308 = vmatpush1.bf16.msra.mxu1 %v13631_v54  ;;  %3780 = vmatpush1.bf16.msra.mxu0 %v13634_v25  ;;  %v2749_v18 = vpop.f32.mrb[68].mxu1  ;;  %v13682_v54 = vld [vmem:[%s17728_s28 + $0x188] ss:$24 sps:$4 sm:$0xff]   ;;  %v13687_v25 = vld [vmem:[%s17728_s28 + $0x404] ss:$24 sps:$4 sm:$0xff]  }
 0xdf1   : > { %v2751_v58 = vpop.f32.mrb[69].mxu1  ;;  %3309 = vmatprep.subr.bf16.mxu1 %v13639_v35  ;;  %3781 = vmatprep.subr.bf16.mxu0 %v13642_v29  ;;  %v13690_v35 = vld [vmem:[%s17728_s28 + $0x1bc] ss:$24 sps:$4 sm:$0xff]   ;;  %v13685_v29 = vld [vmem:[%s17728_s28 + $0x400] ss:$24 sps:$4 sm:$0xff]  }
 0xdf2   : > { %v2753_v48 = vpop.f32.mrb[70].mxu1 }
 0xdf3   : > { %v15911_v37 = vpack.c.bf16 %v2753_v48, %v2749_v18  ;;  %v2755_v63 = vpop.f32.mrb[71].mxu1  ;;  %v13688_v18 = vld [vmem:[%s17728_s28 + $0x1b8] ss:$24 sps:$4 sm:$0xff]   ;;  %v13702_v48 = vld [vmem:[%s17728_s28 + $0x21c] ss:$24 sps:$4 sm:$0xff]  }
 0xdf4   : > { %v15913_v49 = vpack.c.bf16 %v2755_v63, %v2751_v58  ;;  %3310 = vmatpush1.bf16.msra.mxu1 %v13637_v4  ;;  %3782 = vmatpush1.bf16.msra.mxu0 %v13640_v31  ;;  %v13693_v4 = vld [vmem:[%s17728_s28 + $0x434] ss:$24 sps:$4 sm:$0xff]   ;;  %v13691_v58 = vld [vmem:[%s17728_s28 + $0x430] ss:$24 sps:$4 sm:$0xff]   ;;  %v13697_v63 = vld [vmem:[%s17728_s28 + $0x460] ss:$24 sps:$4 sm:$0xff]  }
 0xdf5   : > { %3311 = vmatprep.subr.bf16.mxu1 %v13645_v59  ;;  %3783 = vmatprep.subr.bf16.mxu0 %v13648_v24  ;;  %v13696_v31 = vld [vmem:[%s17728_s28 + $0x1ec] ss:$24 sps:$4 sm:$0xff]   ;;  %v13694_v59 = vld [vmem:[%s17728_s28 + $0x1e8] ss:$24 sps:$4 sm:$0xff]  }
 0xdf6   : > { %11558 = vmatprep.mubr.msk.bf16.mxu1 %vm1180_vm1, %v15913_v49  ;;  %11560 = vmatprep.mubr.msk.bf16.mxu0 %vm1180_vm1, %v15913_v49  ;;  %v13699_v24 = vld [vmem:[%s17728_s28 + $0x464] ss:$24 sps:$4 sm:$0xff]  }
 0xdf7   : > { %3244 = vmatmul.mubr.bf16.gmra.mrb[76].mxu1 %v15911_v37  ;;  %3297 = vmatmul.mubr.bf16.gmra.mrb[12].mxu0 %v15911_v37 }
 0xdf8   : > { %3312 = vmatpush1.bf16.msra.mxu1 %v13643_v51  ;;  %3784 = vmatpush1.bf16.msra.mxu0 %v13646_v23  ;;  %v13700_v51 = vld [vmem:[%s17728_s28 + $0x218] ss:$24 sps:$4 sm:$0xff]   ;;  %v13705_v23 = vld [vmem:[%s17728_s28 + $0x4] ss:$24 sps:$4 sm:$0xff]  }
 0xdf9   : > { %11561 = vmatprep.mubr.msk.bf16.mxu1 %vm1180_vm1, %v2759_v52  ;;  %11637 = vmatprep.mubr.msk.bf16.mxu0 %vm1180_vm1, %v15891_v50  ;;  %v13679_v52 = vld [vmem:[%s17728_s28 + $0x3d0] ss:$24 sps:$4 sm:$0xff]  }
 0xdfa   : > { %3313 = vmatprep.subr.bf16.mxu1 %v13651_v7  ;;  %3785 = vmatprep.subr.bf16.mxu0 %v13654_v10  ;;  %v13703_v7 = vld [vmem:[%s17728_s28] ss:$24 sps:$4 sm:$0xff]   ;;  %v13708_v10 = vld [vmem:[%s17728_s28 + $0x34] ss:$24 sps:$4 sm:$0xff]  }
 0xdfc   : > { %3314 = vmatpush1.bf16.msra.mxu1 %v13649_v11  ;;  %3786 = vmatpush1.bf16.msra.mxu0 %v13652_v12  ;;  %v13706_v11 = vld [vmem:[%s17728_s28 + $0x30] ss:$24 sps:$4 sm:$0xff]   ;;  %v13711_v12 = vld [vmem:[%s17728_s28 + $0x64] ss:$24 sps:$4 sm:$0xff]  }
 0xdfd   : > { %3315 = vmatprep.subr.bf16.mxu1 %v13657_v13  ;;  %3787 = vmatprep.subr.bf16.mxu0 %v13660_v15  ;;  %v13717_v13 = vld [vmem:[%s17728_s28 + $0x48c] ss:$24 sps:$4 sm:$0xff]   ;;  %v13712_v15 = vld [vmem:[%s17728_s28 + $0x90] ss:$24 sps:$4 sm:$0xff]  }
 0xe00   : > { %3316 = vmatpush1.bf16.msra.mxu1 %v13655_v16  ;;  %3788 = vmatpush1.bf16.msra.mxu0 %v13658_v17  ;;  %v13720_v16 = vld [vmem:[%s17728_s28 + $0xc4] ss:$24 sps:$4 sm:$0xff]  }
 0xe01   : > { %3317 = vmatprep.subr.bf16.mxu1 %v13663_v22  ;;  %3789 = vmatprep.subr.bf16.mxu0 %v13666_v26  ;;  %v13721_v17 = vld [vmem:[%s17731_s5 + $0x20] sm:$0xff]   ;;  %v13724_v26 = vld [vmem:[%s17728_s28 + $0x4bc] ss:$24 sps:$4 sm:$0xff]  }
 0xe02   : > { %v13718_v22 = vld [vmem:[%s17728_s28 + $0xc0] ss:$24 sps:$4 sm:$0xff]  }
 0xe04   : > { %3318 = vmatpush1.bf16.msra.mxu1 %v13661_v44  ;;  %3790 = vmatpush1.bf16.msra.mxu0 %v13664_v60  ;;  %v13727_v44 = vld [vmem:[%s17728_s28 + $0xf4] ss:$24 sps:$4 sm:$0xff]   ;;  %v13722_v60 = vld [vmem:[%s17728_s28 + $0x4b8] ss:$24 sps:$4 sm:$0xff]  }
 0xe05   : > { %3319 = vmatprep.subr.bf16.mxu1 %v13669_v1  ;;  %3791 = vmatprep.subr.bf16.mxu0 %v13672_v43  ;;  %v13725_v1 = vld [vmem:[%s17728_s28 + $0xf0] ss:$24 sps:$4 sm:$0xff]   ;;  %v13730_v43 = vld [vmem:[%s17728_s28 + $0x4ec] ss:$24 sps:$4 sm:$0xff]  }
 0xe08   : > { %3320 = vmatpush1.bf16.msra.mxu1 %v13667_v34  ;;  %3792 = vmatpush1.bf16.msra.mxu0 %v13670_v36  ;;  %v13733_v34 = vld [vmem:[%s17728_s28 + $0x124] ss:$24 sps:$4 sm:$0xff]   ;;  %v13734_v36 = vld [vmem:[%s17731_s5 + $0x28] sm:$0xff]  }
 0xe09   : > { %3321 = vmatprep.subr.bf16.mxu1 %v13675_v39  ;;  %3793 = vmatprep.subr.bf16.mxu0 %v13678_v28  ;;  %v13728_v39 = vld [vmem:[%s17728_s28 + $0x4e8] ss:$24 sps:$4 sm:$0xff]  }
 0xe0a   : > { %v13731_v28 = vld [vmem:[%s17728_s28 + $0x120] ss:$24 sps:$4 sm:$0xff]  }
 0xe0c   : > { %3322 = vmatpush1.bf16.msra.mxu1 %v13673_v45  ;;  %3794 = vmatpush1.bf16.msra.mxu0 %v13676_v32  ;;  %v13737_v45 = vld [vmem:[%s17728_s28 + $0x51c] ss:$24 sps:$4 sm:$0xff]  }
 0xe0d   : > { %3323 = vmatprep.subr.bf16.mxu1 %v13681_v0  ;;  %3795 = vmatprep.subr.bf16.mxu0 %v13684_v57  ;;  %v13740_v32 = vld [vmem:[%s17728_s28 + $0x154] ss:$24 sps:$4 sm:$0xff]   ;;  %v13735_v0 = vld [vmem:[%s17728_s28 + $0x518] ss:$24 sps:$4 sm:$0xff]  }
 0xe0e   : > { %v13738_v57 = vld [vmem:[%s17728_s28 + $0x150] ss:$24 sps:$4 sm:$0xff]  }
 0xe10   : > { %3324 = vmatpush1.bf16.msra.mxu1 %v13679_v52  ;;  %3796 = vmatpush1.bf16.msra.mxu0 %v13682_v54  ;;  %v13743_v52 = vld [vmem:[%s17728_s28 + $0x54c] ss:$24 sps:$4 sm:$0xff]  }
 0xe11   : > { %3325 = vmatprep.subr.bf16.mxu1 %v13687_v25  ;;  %3797 = vmatprep.subr.bf16.mxu0 %v13690_v35  ;;  %v13746_v54 = vld [vmem:[%s17728_s28 + $0x184] ss:$24 sps:$4 sm:$0xff]   ;;  %v13741_v25 = vld [vmem:[%s17728_s28 + $0x548] ss:$24 sps:$4 sm:$0xff]  }
 0xe12   : > { %v13744_v35 = vld [vmem:[%s17728_s28 + $0x180] ss:$24 sps:$4 sm:$0xff]  }
 0xe14   : > { %3326 = vmatpush1.bf16.msra.mxu1 %v13685_v29  ;;  %3798 = vmatpush1.bf16.msra.mxu0 %v13688_v18  ;;  %v13749_v29 = vld [vmem:[%s17728_s28 + $0x57c] ss:$24 sps:$4 sm:$0xff]  }
 0xe15   : > { %3327 = vmatprep.subr.bf16.mxu1 %v13693_v4  ;;  %3799 = vmatprep.subr.bf16.mxu0 %v13696_v31  ;;  %v13752_v18 = vld [vmem:[%s17728_s28 + $0x1b4] ss:$24 sps:$4 sm:$0xff]   ;;  %v13747_v4 = vld [vmem:[%s17728_s28 + $0x578] ss:$24 sps:$4 sm:$0xff]  }
 0xe16   : > { %v13750_v31 = vld [vmem:[%s17728_s28 + $0x1b0] ss:$24 sps:$4 sm:$0xff]  }
 0xe18   : > { %3328 = vmatpush1.bf16.msra.mxu1 %v13691_v58  ;;  %3800 = vmatpush1.bf16.msra.mxu0 %v13694_v59  ;;  %v13755_v58 = vld [vmem:[%s17728_s28 + $0x5ac] ss:$24 sps:$4 sm:$0xff]  }
 0xe19   : > { %3329 = vmatprep.subr.bf16.mxu1 %v13699_v24  ;;  %3801 = vmatprep.subr.bf16.mxu0 %v13702_v48  ;;  %v13758_v59 = vld [vmem:[%s17728_s28 + $0x1e4] ss:$24 sps:$4 sm:$0xff]   ;;  %v13753_v24 = vld [vmem:[%s17728_s28 + $0x5a8] ss:$24 sps:$4 sm:$0xff]  }
 0xe1a   : > { %v13756_v48 = vld [vmem:[%s17728_s28 + $0x1e0] ss:$24 sps:$4 sm:$0xff]  }
 0xe1c   : > { %3330 = vmatpush1.bf16.msra.mxu1 %v13697_v63  ;;  %3802 = vmatpush1.bf16.msra.mxu0 %v13700_v51  ;;  %v13761_v63 = vld [vmem:[%s17728_s28 + $0x5dc] ss:$24 sps:$4 sm:$0xff]  }
 0xe1d   : > { %3906 = vmatprep.subr.bf16.mxu0 %v15796_v3  ;;  %3726 = vmatprep.subr.bf16.mxu1 %v13705_v23  ;;  %v13764_v51 = vld [vmem:[%s17728_s28 + $0x214] ss:$24 sps:$4 sm:$0xff]   ;;  %v13759_v23 = vld [vmem:[%s17728_s28 + $0x5d8] ss:$24 sps:$4 sm:$0xff]  }
 0xe1f   : > { %3340 = vmatmul.mubr.bf16.vlgmr.msra.gmra.mrb[80].mxu1 %v15897_v55  ;;  %3812 = vmatmul.mubr.bf16.vlgmr.msra.gmra.mrb[8].mxu0 %v15889_v53  ;;  %v13709_v55 = vld [vmem:[%s17728_s28 + $0x60] ss:$24 sps:$4 sm:$0xff]  }
 0xe20   : > { %11562 = vmatprep.mubr.msk.bf16.mxu1 %vm1180_vm1, %v15913_v49  ;;  %3727 = vmatpush1.bf16.msra.mxu1 %v13703_v7  ;;  %v13714_v49 = vld [vmem:[%s17728_s28 + $0x94] ss:$24 sps:$4 sm:$0xff]   ;;  %v13762_v7 = vld [vmem:[%s17728_s28 + $0x210] ss:$24 sps:$4 sm:$0xff]  }
 0xe21   : > { %11638 = vmatprep.mubr.msk.bf16.mxu0 %vm1180_vm1, %v15895_v42  ;;  %3907 = vmatpush1.bf16.msra.mxu0 %v15798_v5 }
 0xe22   : > { %3908 = vmatprep.subr.bf16.mxu0 %v15824_v21  ;;  %3728 = vmatprep.subr.bf16.mxu1 %v13708_v10  ;;  %v13767_v10 = vld [vmem:[%s17728_s28 + $0x60c] ss:$24 sps:$4 sm:$0xff]  }
 0xe24   : > { %3729 = vmatpush1.bf16.msra.mxu1 %v13706_v11  ;;  %v13770_v11 = vld [vmem:[%s17728_s28 + $0x14] ss:$24 sps:$4 sm:$0xff]  }
 0xe25   : > { %3909 = vmatpush1.bf16.msra.mxu0 %v15826_v41  ;;  %3730 = vmatprep.subr.bf16.mxu1 %v13711_v12  ;;  %v13765_v12 = vld [vmem:[%s17728_s28 + $0x608] ss:$24 sps:$4 sm:$0xff]  }
 0xe26   : > { %4455 = vmatprep.subr.bf16.mxu0 %v13717_v13  ;;  %v13768_v13 = vld [vmem:[%s17728_s28 + $0x10] ss:$24 sps:$4 sm:$0xff]  }
 0xe27   : > { %3350 = vmatmul.mubr.bf16.gmra.mrb[84].mxu1 %v15911_v37  ;;  %3822 = vmatmul.mubr.bf16.gmra.mrb[12].mxu0 %v15893_v40  ;;  %v13715_v37 = vld [vmem:[%s17728_s28 + $0x488] ss:$24 sps:$4 sm:$0xff]  }
 0xe28   : > { %3731 = vmatpush1.bf16.msra.mxu1 %v13709_v55  ;;  %11635 = vmatprep.mubr.msk.bf16.mxu1 %vm1180_vm1, %v15891_v50  ;;  %v13773_v55 = vld [vmem:[%s17728_s28 + $0x63c] ss:$24 sps:$4 sm:$0xff]  }
 0xe29   : > { %3732 = vmatprep.subr.bf16.mxu1 %v13714_v49  ;;  %3938 = vmatprep.mubr.bf16.mxu0 %v17684_v14  ;;  %v13776_v49 = vld [vmem:[%s17728_s28 + $0x44] ss:$24 sps:$4 sm:$0xff]  }
 0xe2c   : > { %3733 = vmatpush1.bf16.msra.mxu1 %v13712_v15  ;;  %v13771_v15 = vld [vmem:[%s17728_s28 + $0x638] ss:$24 sps:$4 sm:$0xff]  }
 0xe2d   : > { %3734 = vmatprep.subr.bf16.mxu1 %v13720_v16  ;;  %v13774_v16 = vld [vmem:[%s17728_s28 + $0x40] ss:$24 sps:$4 sm:$0xff]  }
 0xe2f   : > { %11647 = vmatmul.mubr.msk.bf16.vlgmr.msra.gmra.mrb[16].mxu0 %vm2548_vm8, %v13721_v17  ;;  %v13779_v17 = vld [vmem:[%s17728_s28 + $0x66c] ss:$24 sps:$4 sm:$0xff]  }
 0xe30   : > { %4456 = vmatpush1.bf16.msra.mxu0 %v13715_v37  ;;  %3735 = vmatpush1.bf16.msra.mxu1 %v13718_v22  ;;  %v13782_v37 = vld [vmem:[%s17728_s28 + $0x74] ss:$24 sps:$4 sm:$0xff]   ;;  %v13777_v22 = vld [vmem:[%s17728_s28 + $0x668] ss:$24 sps:$4 sm:$0xff]  }
 0xe31   : > { %4457 = vmatprep.subr.bf16.mxu0 %v13724_v26  ;;  %3736 = vmatprep.subr.bf16.mxu1 %v13727_v44  ;;  %v13780_v26 = vld [vmem:[%s17728_s28 + $0x70] ss:$24 sps:$4 sm:$0xff]   ;;  %v13785_v44 = vld [vmem:[%s17728_s28 + $0x69c] ss:$24 sps:$4 sm:$0xff]  }
 0xe32   : > { %3948 = vmatprep.mubr.bf16.mxu0 %v17684_v14 }
 0xe34   : > { %4458 = vmatpush1.bf16.msra.mxu0 %v13722_v60  ;;  %3737 = vmatpush1.bf16.msra.mxu1 %v13725_v1  ;;  %v13788_v60 = vld [vmem:[%s17728_s28 + $0xa4] ss:$24 sps:$4 sm:$0xff]   ;;  %v13783_v1 = vld [vmem:[%s17728_s28 + $0x698] ss:$24 sps:$4 sm:$0xff]  }
 0xe35   : > { %4459 = vmatprep.subr.bf16.mxu0 %v13730_v43  ;;  %3738 = vmatprep.subr.bf16.mxu1 %v13733_v34  ;;  %v13786_v43 = vld [vmem:[%s17728_s28 + $0xa0] ss:$24 sps:$4 sm:$0xff]   ;;  %v13791_v34 = vld [vmem:[%s17728_s28 + $0xd4] ss:$24 sps:$4 sm:$0xff]  }
 0xe37   : > { %11648 = vmatmul.mubr.msk.bf16.gmra.mrb[20].mxu0 %vm2548_vm8, %v13734_v36  ;;  %v13789_v36 = vld [vmem:[%s17728_s28 + $0xd0] ss:$24 sps:$4 sm:$0xff]  }
 0xe38   : > { %4460 = vmatpush1.bf16.msra.mxu0 %v13728_v39  ;;  %3739 = vmatpush1.bf16.msra.mxu1 %v13731_v28  ;;  %v13794_v39 = vld [vmem:[%s17728_s28 + $0x104] ss:$24 sps:$4 sm:$0xff]   ;;  %v13797_v28 = vld [vmem:[%s17728_s28 + $0x134] ss:$24 sps:$4 sm:$0xff]  }
 0xe39   : > { %4461 = vmatprep.subr.bf16.mxu0 %v13737_v45  ;;  %3740 = vmatprep.subr.bf16.mxu1 %v13740_v32  ;;  %v13795_v45 = vld [vmem:[%s17728_s28 + $0x130] ss:$24 sps:$4 sm:$0xff]   ;;  %v13800_v32 = vld [vmem:[%s17728_s28 + $0x164] ss:$24 sps:$4 sm:$0xff]  }
 0xe3c   : > { %4462 = vmatpush1.bf16.msra.mxu0 %v13735_v0  ;;  %3741 = vmatpush1.bf16.msra.mxu1 %v13738_v57  ;;  %v13798_v0 = vld [vmem:[%s17728_s28 + $0x160] ss:$24 sps:$4 sm:$0xff]   ;;  %v13803_v57 = vld [vmem:[%s17728_s28 + $0x194] ss:$24 sps:$4 sm:$0xff]  }
 0xe3d   : > { %4463 = vmatprep.subr.bf16.mxu0 %v13743_v52  ;;  %3742 = vmatprep.subr.bf16.mxu1 %v13746_v54  ;;  %v13801_v52 = vld [vmem:[%s17728_s28 + $0x190] ss:$24 sps:$4 sm:$0xff]   ;;  %v13806_v54 = vld [vmem:[%s17728_s28 + $0x1c4] ss:$24 sps:$4 sm:$0xff]  }
 0xe40   : > { %4464 = vmatpush1.bf16.msra.mxu0 %v13741_v25  ;;  %3743 = vmatpush1.bf16.msra.mxu1 %v13744_v35  ;;  %v13804_v25 = vld [vmem:[%s17728_s28 + $0x1c0] ss:$24 sps:$4 sm:$0xff]   ;;  %v13809_v35 = vld [vmem:[%s17728_s28 + $0x1f4] ss:$24 sps:$4 sm:$0xff]  }
 0xe41   : > { %4465 = vmatprep.subr.bf16.mxu0 %v13749_v29  ;;  %3744 = vmatprep.subr.bf16.mxu1 %v13752_v18  ;;  %v13807_v29 = vld [vmem:[%s17728_s28 + $0x1f0] ss:$24 sps:$4 sm:$0xff]   ;;  %v13812_v18 = vld [vmem:[%s17728_s28 + $0x224] ss:$24 sps:$4 sm:$0xff]  }
 0xe44   : > { %4466 = vmatpush1.bf16.msra.mxu0 %v13747_v4  ;;  %3745 = vmatpush1.bf16.msra.mxu1 %v13750_v31  ;;  %v13810_v4 = vld [vmem:[%s17728_s28 + $0x220] ss:$24 sps:$4 sm:$0xff]   ;;  %v13815_v31 = vld [vmem:[%s17728_s28 + $0x484] ss:$24 sps:$4 sm:$0xff]  }
 0xe45   : > { %4467 = vmatprep.subr.bf16.mxu0 %v13755_v58  ;;  %3746 = vmatprep.subr.bf16.mxu1 %v13758_v59  ;;  %v13813_v58 = vld [vmem:[%s17728_s28 + $0x480] ss:$24 sps:$4 sm:$0xff]   ;;  %v13818_v59 = vld [vmem:[%s17728_s28 + $0x4b4] ss:$24 sps:$4 sm:$0xff]  }
 0xe48   : > { %4468 = vmatpush1.bf16.msra.mxu0 %v13753_v24  ;;  %3747 = vmatpush1.bf16.msra.mxu1 %v13756_v48  ;;  %v13816_v24 = vld [vmem:[%s17728_s28 + $0x4b0] ss:$24 sps:$4 sm:$0xff]   ;;  %v13821_v48 = vld [vmem:[%s17728_s28 + $0x4e4] ss:$24 sps:$4 sm:$0xff]  }
 0xe49   : > { %4469 = vmatprep.subr.bf16.mxu0 %v13761_v63  ;;  %3748 = vmatprep.subr.bf16.mxu1 %v13764_v51  ;;  %v13819_v63 = vld [vmem:[%s17728_s28 + $0x4e0] ss:$24 sps:$4 sm:$0xff]   ;;  %v13824_v51 = vld [vmem:[%s17728_s28 + $0x514] ss:$24 sps:$4 sm:$0xff]  }
 0xe4c   : > { %4470 = vmatpush1.bf16.msra.mxu0 %v13759_v23  ;;  %3749 = vmatpush1.bf16.msra.mxu1 %v13762_v7  ;;  %v13825_v23 = vld [vmem:[%s17728_s28 + $0x540] ss:$24 sps:$4 sm:$0xff]   ;;  %v13830_v7 = vld [vmem:[%s17728_s28 + $0x574] ss:$24 sps:$4 sm:$0xff]  }
 0xe4d   : > { %4471 = vmatprep.subr.bf16.mxu0 %v13767_v10  ;;  %3832 = vmatprep.subr.bf16.mxu1 %v13770_v11  ;;  %v13828_v10 = vld [vmem:[%s17728_s28 + $0x570] ss:$24 sps:$4 sm:$0xff]   ;;  %v13833_v11 = vld [vmem:[%s17728_s28 + $0x5a4] ss:$24 sps:$4 sm:$0xff]  }
 0xe4f   : > { %3759 = vmatmul.mubr.bf16.vlgmr.msra.gmra.mrb[72].mxu1 %v15889_v53 }
 0xe50   : > { %4472 = vmatpush1.bf16.msra.mxu0 %v13765_v12  ;;  %11636 = vmatprep.mubr.msk.bf16.mxu1 %vm1180_vm1, %v15895_v42  ;;  %v13836_v12 = vld [vmem:[%s17728_s28 + $0x5d4] ss:$24 sps:$4 sm:$0xff]  }
 0xe51   : > { %3833 = vmatpush1.bf16.msra.mxu1 %v13768_v13  ;;  %4473 = vmatprep.subr.bf16.mxu0 %v13773_v55  ;;  %v13834_v13 = vld [vmem:[%s17728_s28 + $0x5d0] ss:$24 sps:$4 sm:$0xff]   ;;  %v13839_v55 = vld [vmem:[%s17728_s28 + $0x604] ss:$24 sps:$4 sm:$0xff]  }
 0xe52   : > { %3834 = vmatprep.subr.bf16.mxu1 %v13776_v49  ;;  %v13837_v49 = vld [vmem:[%s17728_s28 + $0x600] ss:$24 sps:$4 sm:$0xff]  }
 0xe54   : > { %4474 = vmatpush1.bf16.msra.mxu0 %v13771_v15  ;;  %v13842_v15 = vld [vmem:[%s17728_s28 + $0x634] ss:$24 sps:$4 sm:$0xff]  }
 0xe55   : > { %3835 = vmatpush1.bf16.msra.mxu1 %v13774_v16  ;;  %4475 = vmatprep.subr.bf16.mxu0 %v13779_v17  ;;  %v13840_v16 = vld [vmem:[%s17728_s28 + $0x630] ss:$24 sps:$4 sm:$0xff]   ;;  %v13845_v17 = vld [vmem:[%s17728_s28 + $0x664] ss:$24 sps:$4 sm:$0xff]  }
 0xe56   : > { %3836 = vmatprep.subr.bf16.mxu1 %v13782_v37  ;;  %v13843_v37 = vld [vmem:[%s17728_s28 + $0x660] ss:$24 sps:$4 sm:$0xff]  }
 0xe57   : > { %3769 = vmatmul.mubr.bf16.gmra.mrb[76].mxu1 %v15893_v40 }
 0xe58   : > { %4476 = vmatpush1.bf16.msra.mxu0 %v13777_v22  ;;  %11639 = vmatprep.mubr.msk.bf16.mxu1 %vm1180_vm1, %v15891_v50  ;;  %v13792_v50 = vld [vmem:[%s17728_s28 + $0x100] ss:$24 sps:$4 sm:$0xff]   ;;  %v13848_v22 = vld [vmem:[%s17728_s28 + $0x694] ss:$24 sps:$4 sm:$0xff]  }
 0xe59   : > { %3837 = vmatpush1.bf16.msra.mxu1 %v13780_v26  ;;  %4477 = vmatprep.subr.bf16.mxu0 %v13785_v44  ;;  %v13846_v26 = vld [vmem:[%s17728_s28 + $0x690] ss:$24 sps:$4 sm:$0xff]   ;;  %v13851_v44 = vld [vmem:[%s17728_s28 + $0x494] ss:$24 sps:$4 sm:$0xff]  }
 0xe5a   : > { %3838 = vmatprep.subr.bf16.mxu1 %v13788_v60 }
 0xe5c   : > { %4478 = vmatpush1.bf16.msra.mxu0 %v13783_v1 }
 0xe5d   : > { %3839 = vmatpush1.bf16.msra.mxu1 %v13786_v43  ;;  %4606 = vmatprep.subr.bf16.mxu0 %v15796_v3 }
 0xe5e   : > { %3840 = vmatprep.subr.bf16.mxu1 %v13791_v34 }
 0xe61   : > { %3841 = vmatpush1.bf16.msra.mxu1 %v13789_v36 }
 0xe62   : > { %3842 = vmatprep.subr.bf16.mxu1 %v13794_v39 }
 0xe65   : > { %3843 = vmatpush1.bf16.msra.mxu1 %v13792_v50  ;;  %v13849_v50 = vld [vmem:[%s17728_s28 + $0x490] ss:$24 sps:$4 sm:$0xff]  }
 0xe66   : > { %3844 = vmatprep.subr.bf16.mxu1 %v13797_v28  ;;  %v13854_v28 = vld [vmem:[%s17728_s28 + $0x4c4] ss:$24 sps:$4 sm:$0xff]  }
 0xe69   : > { %3845 = vmatpush1.bf16.msra.mxu1 %v13795_v45 }
 0xe6a   : > { %3846 = vmatprep.subr.bf16.mxu1 %v13800_v32  ;;  %v13852_v32 = vld [vmem:[%s17728_s28 + $0x4c0] ss:$24 sps:$4 sm:$0xff]  }
 0xe6d   : > { %3847 = vmatpush1.bf16.msra.mxu1 %v13798_v0 }
 0xe6e   : > { %3848 = vmatprep.subr.bf16.mxu1 %v13803_v57  ;;  %v13857_v57 = vld [vmem:[%s17728_s28 + $0x4f4] ss:$24 sps:$4 sm:$0xff]  }
 0xe71   : > { %3849 = vmatpush1.bf16.msra.mxu1 %v13801_v52  ;;  %v13866_v52 = vld [vmem:[%s17728_s28 + $0x6cc] ss:$24 sps:$4 sm:$0xff]  }
 0xe72   : > { %3850 = vmatprep.subr.bf16.mxu1 %v13806_v54 }
 0xe75   : > { %3851 = vmatpush1.bf16.msra.mxu1 %v13804_v25 }
 0xe76   : > { %3852 = vmatprep.subr.bf16.mxu1 %v13809_v35 }
 0xe79   : > { %3853 = vmatpush1.bf16.msra.mxu1 %v13807_v29 }
 0xe7a   : > { %3854 = vmatprep.subr.bf16.mxu1 %v13812_v18  ;;  %v13855_v18 = vld [vmem:[%s17728_s28 + $0x4f0] ss:$24 sps:$4 sm:$0xff]  }
 0xe7d   : > { %3855 = vmatpush1.bf16.msra.mxu1 %v13810_v4  ;;  %v13860_v4 = vld [vmem:[%s17728_s28 + $0x524] ss:$24 sps:$4 sm:$0xff]  }
 0xe7e   : > { %4402 = vmatprep.subr.bf16.mxu1 %v13815_v31  ;;  %v13858_v31 = vld [vmem:[%s17728_s28 + $0x520] ss:$24 sps:$4 sm:$0xff]  }
 0xe80   : > { %3865 = vmatmul.mubr.bf16.vlgmr.msra.gmra.mrb[80].mxu1 %v15889_v53  ;;  %v13822_v53 = vld [vmem:[%s17728_s28 + $0x510] ss:$24 sps:$4 sm:$0xff]  }
 0xe81   : > { %11640 = vmatprep.mubr.msk.bf16.mxu1 %vm1180_vm1, %v15895_v42  ;;  %4403 = vmatpush1.bf16.msra.mxu1 %v13813_v58  ;;  %v13827_v42 = vld [vmem:[%s17728_s28 + $0x544] ss:$24 sps:$4 sm:$0xff]   ;;  %v13863_v58 = vld [vmem:[%s17728_s28 + $0x554] ss:$24 sps:$4 sm:$0xff]  }
 0xe82   : > { %4404 = vmatprep.subr.bf16.mxu1 %v13818_v59  ;;  %v13867_v59 = vld [vmem:[%s17731_s5 + $0x30] sm:$0xff]  }
 0xe85   : > { %4405 = vmatpush1.bf16.msra.mxu1 %v13816_v24  ;;  %v13861_v24 = vld [vmem:[%s17728_s28 + $0x550] ss:$24 sps:$4 sm:$0xff]  }
 0xe86   : > { %4406 = vmatprep.subr.bf16.mxu1 %v13821_v48  ;;  %v13864_v48 = vld [vmem:[%s17728_s28 + $0x6c8] ss:$24 sps:$4 sm:$0xff]  }
 0xe88   : > { %3875 = vmatmul.mubr.bf16.gmra.mrb[84].mxu1 %v15893_v40  ;;  %v13831_v40 = vld [vmem:[%s17728_s28 + $0x5a0] ss:$24 sps:$4 sm:$0xff]  }
 0xe89   : > { %4407 = vmatpush1.bf16.msra.mxu1 %v13819_v63  ;;  %v13870_v63 = vld [vmem:[%s17728_s28 + $0x584] ss:$24 sps:$4 sm:$0xff]  }
 0xe8a   : > { %4408 = vmatprep.subr.bf16.mxu1 %v13824_v51  ;;  %v13873_v51 = vld [vmem:[%s17728_s28 + $0x6fc] ss:$24 sps:$4 sm:$0xff]  }
 0xe8d   : > { %4409 = vmatpush1.bf16.msra.mxu1 %v13822_v53  ;;  %v13868_v53 = vld [vmem:[%s17728_s28 + $0x580] ss:$24 sps:$4 sm:$0xff]  }
 0xe8e   : > { %4410 = vmatprep.subr.bf16.mxu1 %v13827_v42  ;;  %v13871_v42 = vld [vmem:[%s17728_s28 + $0x6f8] ss:$24 sps:$4 sm:$0xff]  }
 0xe91   : > { %4411 = vmatpush1.bf16.msra.mxu1 %v13825_v23  ;;  %v13876_v23 = vld [vmem:[%s17728_s28 + $0x5b4] ss:$24 sps:$4 sm:$0xff]  }
 0xe92   : > { %4412 = vmatprep.subr.bf16.mxu1 %v13830_v7  ;;  %v13879_v7 = vld [vmem:[%s17728_s28 + $0x72c] ss:$24 sps:$4 sm:$0xff]  }
 0xe95   : > { %4413 = vmatpush1.bf16.msra.mxu1 %v13828_v10  ;;  %v13880_v10 = vld [vmem:[%s17731_s5 + $0x38] sm:$0xff]  }
 0xe96   : > { %4414 = vmatprep.subr.bf16.mxu1 %v13833_v11  ;;  %v13874_v11 = vld [vmem:[%s17728_s28 + $0x5b0] ss:$24 sps:$4 sm:$0xff]  }
 0xe99   : > { %4415 = vmatpush1.bf16.msra.mxu1 %v13831_v40  ;;  %v13877_v40 = vld [vmem:[%s17728_s28 + $0x728] ss:$24 sps:$4 sm:$0xff]  }
 0xe9a   : > { %4416 = vmatprep.subr.bf16.mxu1 %v13836_v12  ;;  %v13883_v12 = vld [vmem:[%s17728_s28 + $0x5e4] ss:$24 sps:$4 sm:$0xff]  }
 0xe9d   : > { %4417 = vmatpush1.bf16.msra.mxu1 %v13834_v13  ;;  %v13886_v13 = vld [vmem:[%s17728_s28 + $0x75c] ss:$24 sps:$4 sm:$0xff]  }
 0xe9e   : > { %4418 = vmatprep.subr.bf16.mxu1 %v13839_v55  ;;  %v13881_v55 = vld [vmem:[%s17728_s28 + $0x5e0] ss:$24 sps:$4 sm:$0xff]  }
 0xea1   : > { %4419 = vmatpush1.bf16.msra.mxu1 %v13837_v49  ;;  %v13884_v49 = vld [vmem:[%s17728_s28 + $0x758] ss:$24 sps:$4 sm:$0xff]  }
 0xea2   : > { %4420 = vmatprep.subr.bf16.mxu1 %v13842_v15  ;;  %v13889_v15 = vld [vmem:[%s17728_s28 + $0x614] ss:$24 sps:$4 sm:$0xff]  }
 0xea5   : > { %4421 = vmatpush1.bf16.msra.mxu1 %v13840_v16  ;;  %v13892_v16 = vld [vmem:[%s17728_s28 + $0x78c] ss:$24 sps:$4 sm:$0xff]  }
 0xea6   : > { %4422 = vmatprep.subr.bf16.mxu1 %v13845_v17  ;;  %v13887_v17 = vld [vmem:[%s17728_s28 + $0x610] ss:$24 sps:$4 sm:$0xff]  }
 0xea9   : > { %4423 = vmatpush1.bf16.msra.mxu1 %v13843_v37  ;;  %v13890_v37 = vld [vmem:[%s17728_s28 + $0x788] ss:$24 sps:$4 sm:$0xff]  }
 0xeaa   : > { %4424 = vmatprep.subr.bf16.mxu1 %v13848_v22  ;;  %v13895_v22 = vld [vmem:[%s17728_s28 + $0x644] ss:$24 sps:$4 sm:$0xff]  }
 0xead   : > { %4425 = vmatpush1.bf16.msra.mxu1 %v13846_v26  ;;  %v13898_v26 = vld [vmem:[%s17728_s28 + $0x7bc] ss:$24 sps:$4 sm:$0xff]  }
 0xeae   : > { %4508 = vmatprep.subr.bf16.mxu1 %v13851_v44  ;;  %v13893_v44 = vld [vmem:[%s17728_s28 + $0x640] ss:$24 sps:$4 sm:$0xff]  }
 0xf02   : > { %v3940_v60 = vpop.f32.mrb[16].mxu0 }
 0xf03   : > { %v3942_v1 = vpop.f32.mrb[17].mxu0 }
 0xf04   : > { %v3944_v43 = vpop.f32.mrb[18].mxu0 }
 0xf05   : > { %v16094_v34 = vpack.c.bf16 %v3944_v43, %v3940_v60  ;;  %v3946_v36 = vpop.f32.mrb[19].mxu0  ;;  %v13896_v60 = vld [vmem:[%s17728_s28 + $0x7b8] ss:$24 sps:$4 sm:$0xff]   ;;  %v13904_v43 = vld [vmem:[%s17728_s28 + $0x7ec] ss:$24 sps:$4 sm:$0xff]  }
 0xf06   : > { %v3960_v39 = vpack.c.bf16 %v3946_v36, %v3942_v1  ;;  %v13901_v1 = vld [vmem:[%s17728_s28 + $0x674] ss:$24 sps:$4 sm:$0xff]   ;;  %v13899_v36 = vld [vmem:[%s17728_s28 + $0x670] ss:$24 sps:$4 sm:$0xff]  }
 0xf08   : > { %11793 = vmatprep.mubr.msk.bf16.mxu1 %vm1180_vm1, %v3960_v39  ;;  %11795 = vmatprep.mubr.msk.bf16.mxu0 %vm1180_vm1, %v3960_v39 }
 0xf09   : > { %4435 = vmatmul.mubr.bf16.vlgmr.msra.gmra.mrb[72].mxu1 %v16094_v34  ;;  %4488 = vmatmul.mubr.bf16.vlgmr.msra.gmra.mrb[8].mxu0 %v16094_v34 }
 0xf0a   : > { %4509 = vmatpush1.bf16.msra.mxu1 %v13849_v50  ;;  %4607 = vmatpush1.bf16.msra.mxu0 %v15798_v5  ;;  %v3950_v45 = vpop.f32.mrb[20].mxu0  ;;  %v13907_v50 = vld [vmem:[%s17728_s28 + $0x6a4] ss:$24 sps:$4 sm:$0xff]  }
 0xf0b   : > { %4608 = vmatprep.subr.bf16.mxu0 %v15824_v21  ;;  %v3952_v0 = vpop.f32.mrb[21].mxu0  ;;  %4510 = vmatprep.subr.bf16.mxu1 %v13854_v28  ;;  %v13910_v28 = vld [vmem:[%s17728_s28 + $0x81c] ss:$24 sps:$4 sm:$0xff]  }
 0xf0c   : > { %v3954_v54 = vpop.f32.mrb[22].mxu0 }
 0xf0d   : > { %v16107_v25 = vpack.c.bf16 %v3954_v54, %v3950_v45  ;;  %v3956_v35 = vpop.f32.mrb[23].mxu0  ;;  %v13905_v45 = vld [vmem:[%s17728_s28 + $0x6a0] ss:$24 sps:$4 sm:$0xff]   ;;  %v13916_v54 = vld [vmem:[%s17728_s28 + $0x87c] ss:$24 sps:$4 sm:$0xff]  }
 0xf0e   : > { %v16109_v29 = vpack.c.bf16 %v3956_v35, %v3952_v0  ;;  %4511 = vmatpush1.bf16.msra.mxu1 %v13852_v32  ;;  %4609 = vmatpush1.bf16.msra.mxu0 %v15826_v41  ;;  %v13908_v32 = vld [vmem:[%s17728_s28 + $0x818] ss:$24 sps:$4 sm:$0xff]   ;;  %v13913_v0 = vld [vmem:[%s17728_s28 + $0x84c] ss:$24 sps:$4 sm:$0xff]  }
 0xf0f   : > { %4512 = vmatprep.subr.bf16.mxu1 %v13857_v57  ;;  %5155 = vmatprep.subr.bf16.mxu0 %v13866_v52  ;;  %v13925_v57 = vld [vmem:[%s17728_s28 + $0x6c4] ss:$24 sps:$4 sm:$0xff]   ;;  %v13911_v52 = vld [vmem:[%s17728_s28 + $0x848] ss:$24 sps:$4 sm:$0xff]  }
 0xf10   : > { %11794 = vmatprep.mubr.msk.bf16.mxu1 %vm1180_vm1, %v16109_v29  ;;  %11796 = vmatprep.mubr.msk.bf16.mxu0 %vm1180_vm1, %v16109_v29  ;;  %v13923_v35 = vld [vmem:[%s17728_s28 + $0x6c0] ss:$24 sps:$4 sm:$0xff]  }
 0xf11   : > { %4445 = vmatmul.mubr.bf16.gmra.mrb[76].mxu1 %v16107_v25  ;;  %4498 = vmatmul.mubr.bf16.gmra.mrb[12].mxu0 %v16107_v25 }
 0xf12   : > { %4513 = vmatpush1.bf16.msra.mxu1 %v13855_v18  ;;  %11797 = vmatprep.mubr.msk.bf16.mxu1 %vm1180_vm1, %v3960_v39  ;;  %v13902_v39 = vld [vmem:[%s17728_s28 + $0x7e8] ss:$24 sps:$4 sm:$0xff]   ;;  %v13928_v18 = vld [vmem:[%s17728_s28 + $0x6f4] ss:$24 sps:$4 sm:$0xff]  }
 0xf13   : > { %4514 = vmatprep.subr.bf16.mxu1 %v13860_v4  ;;  %4638 = vmatprep.mubr.bf16.mxu0 %v17684_v14  ;;  %v13914_v4 = vld [vmem:[%s17728_s28 + $0x878] ss:$24 sps:$4 sm:$0xff]  }
 0xf16   : > { %4515 = vmatpush1.bf16.msra.mxu1 %v13858_v31  ;;  %v13919_v31 = vld [vmem:[%s17728_s28 + $0x8ac] ss:$24 sps:$4 sm:$0xff]  }
 0xf17   : > { %4516 = vmatprep.subr.bf16.mxu1 %v13863_v58  ;;  %v13926_v58 = vld [vmem:[%s17728_s28 + $0x6f0] ss:$24 sps:$4 sm:$0xff]  }
 0xf19   : > { %11805 = vmatmul.mubr.msk.bf16.vlgmr.msra.gmra.mrb[24].mxu0 %vm2548_vm8, %v13867_v59  ;;  %v13931_v59 = vld [vmem:[%s17728_s28 + $0x724] ss:$24 sps:$4 sm:$0xff]  }
 0xf1a   : > { %4517 = vmatpush1.bf16.msra.mxu1 %v13861_v24  ;;  %5156 = vmatpush1.bf16.msra.mxu0 %v13864_v48  ;;  %v13917_v24 = vld [vmem:[%s17728_s28 + $0x8a8] ss:$24 sps:$4 sm:$0xff]   ;;  %v13922_v48 = vld [vmem:[%s17728_s28 + $0x8dc] ss:$24 sps:$4 sm:$0xff]  }
 0xf1b   : > { %4518 = vmatprep.subr.bf16.mxu1 %v13870_v63  ;;  %5157 = vmatprep.subr.bf16.mxu0 %v13873_v51  ;;  %v13920_v63 = vld [vmem:[%s17728_s28 + $0x8d8] ss:$24 sps:$4 sm:$0xff]  }
 0xf1c   : > { %4648 = vmatprep.mubr.bf16.mxu0 %v17684_v14  ;;  %v13932_v51 = vld [vmem:[%s17728_s28 + $0x750] ss:$24 sps:$4 sm:$0xff]  }
 0xf1e   : > { %4519 = vmatpush1.bf16.msra.mxu1 %v13868_v53  ;;  %5158 = vmatpush1.bf16.msra.mxu0 %v13871_v42  ;;  %v13937_v53 = vld [vmem:[%s17728_s28 + $0x784] ss:$24 sps:$4 sm:$0xff]   ;;  %v13935_v42 = vld [vmem:[%s17728_s28 + $0x780] ss:$24 sps:$4 sm:$0xff]  }
 0xf1f   : > { %4520 = vmatprep.subr.bf16.mxu1 %v13876_v23  ;;  %5159 = vmatprep.subr.bf16.mxu0 %v13879_v7  ;;  %v13938_v23 = vld [vmem:[%s17728_s28 + $0x7b0] ss:$24 sps:$4 sm:$0xff]   ;;  %v13943_v7 = vld [vmem:[%s17728_s28 + $0x7e4] ss:$24 sps:$4 sm:$0xff]  }
 0xf21   : > { %11806 = vmatmul.mubr.msk.bf16.gmra.mrb[28].mxu0 %vm2548_vm8, %v13880_v10  ;;  %v13941_v10 = vld [vmem:[%s17728_s28 + $0x7e0] ss:$24 sps:$4 sm:$0xff]  }
 0xf22   : > { %4521 = vmatpush1.bf16.msra.mxu1 %v13874_v11  ;;  %5160 = vmatpush1.bf16.msra.mxu0 %v13877_v40  ;;  %v13946_v11 = vld [vmem:[%s17728_s28 + $0x814] ss:$24 sps:$4 sm:$0xff]   ;;  %v13949_v40 = vld [vmem:[%s17728_s28 + $0x844] ss:$24 sps:$4 sm:$0xff]  }
 0xf23   : > { %4522 = vmatprep.subr.bf16.mxu1 %v13883_v12  ;;  %5161 = vmatprep.subr.bf16.mxu0 %v13886_v13  ;;  %v13947_v12 = vld [vmem:[%s17728_s28 + $0x840] ss:$24 sps:$4 sm:$0xff]   ;;  %v13952_v13 = vld [vmem:[%s17728_s28 + $0x874] ss:$24 sps:$4 sm:$0xff]  }
 0xf26   : > { %4523 = vmatpush1.bf16.msra.mxu1 %v13881_v55  ;;  %5162 = vmatpush1.bf16.msra.mxu0 %v13884_v49  ;;  %v13950_v55 = vld [vmem:[%s17728_s28 + $0x870] ss:$24 sps:$4 sm:$0xff]   ;;  %v13955_v49 = vld [vmem:[%s17728_s28 + $0x8a4] ss:$24 sps:$4 sm:$0xff]  }
 0xf27   : > { %4524 = vmatprep.subr.bf16.mxu1 %v13889_v15  ;;  %5163 = vmatprep.subr.bf16.mxu0 %v13892_v16  ;;  %v13953_v15 = vld [vmem:[%s17728_s28 + $0x8a0] ss:$24 sps:$4 sm:$0xff]   ;;  %v13958_v16 = vld [vmem:[%s17728_s28 + $0x8d4] ss:$24 sps:$4 sm:$0xff]  }
 0xf2a   : > { %4525 = vmatpush1.bf16.msra.mxu1 %v13887_v17  ;;  %5164 = vmatpush1.bf16.msra.mxu0 %v13890_v37  ;;  %v13956_v17 = vld [vmem:[%s17728_s28 + $0x8d0] ss:$24 sps:$4 sm:$0xff]   ;;  %v13961_v37 = vld [vmem:[%s17728_s28 + $0x6d4] ss:$24 sps:$4 sm:$0xff]  }
 0xf2b   : > { %4526 = vmatprep.subr.bf16.mxu1 %v13895_v22  ;;  %5165 = vmatprep.subr.bf16.mxu0 %v13898_v26 }
 0xf2e   : > { %4527 = vmatpush1.bf16.msra.mxu1 %v13893_v44  ;;  %5166 = vmatpush1.bf16.msra.mxu0 %v13896_v60 }
 0xf2f   : > { %4528 = vmatprep.subr.bf16.mxu1 %v13901_v1  ;;  %5167 = vmatprep.subr.bf16.mxu0 %v13904_v43 }
 0xf32   : > { %4529 = vmatpush1.bf16.msra.mxu1 %v13899_v36  ;;  %5168 = vmatpush1.bf16.msra.mxu0 %v13902_v39  ;;  %v13959_v36 = vld [vmem:[%s17728_s28 + $0x6d0] ss:$24 sps:$4 sm:$0xff]   ;;  %v13964_v39 = vld [vmem:[%s17728_s28 + $0x704] ss:$24 sps:$4 sm:$0xff]  }
 0xf33   : > { %4530 = vmatprep.subr.bf16.mxu1 %v13907_v50  ;;  %5169 = vmatprep.subr.bf16.mxu0 %v13910_v28  ;;  %v13962_v28 = vld [vmem:[%s17728_s28 + $0x700] ss:$24 sps:$4 sm:$0xff]  }
 0xf36   : > { %4531 = vmatpush1.bf16.msra.mxu1 %v13905_v45  ;;  %5170 = vmatpush1.bf16.msra.mxu0 %v13908_v32  ;;  %v13967_v32 = vld [vmem:[%s17728_s28 + $0x734] ss:$24 sps:$4 sm:$0xff]  }
 0xf37   : > { %5171 = vmatprep.subr.bf16.mxu0 %v13913_v0  ;;  %5102 = vmatprep.subr.bf16.mxu1 %v13925_v57  ;;  %v14002_v0 = vld [vmem:[%s17728_s28 + $0x90c] ss:$24 sps:$4 sm:$0xff]  }
 0xf39   : > { %4541 = vmatmul.mubr.bf16.vlgmr.msra.gmra.mrb[80].mxu1 %v16094_v34  ;;  %v13929_v34 = vld [vmem:[%s17728_s28 + $0x720] ss:$24 sps:$4 sm:$0xff]  }
 0xf3a   : > { %11798 = vmatprep.mubr.msk.bf16.mxu1 %vm1180_vm1, %v16109_v29  ;;  %5172 = vmatpush1.bf16.msra.mxu0 %v13911_v52  ;;  %v13934_v29 = vld [vmem:[%s17728_s28 + $0x754] ss:$24 sps:$4 sm:$0xff]  }
 0xf3b   : > { %5173 = vmatprep.subr.bf16.mxu0 %v13916_v54  ;;  %5103 = vmatpush1.bf16.msra.mxu1 %v13923_v35 }
 0xf3c   : > { %5104 = vmatprep.subr.bf16.mxu1 %v13928_v18  ;;  %v13970_v18 = vld [vmem:[%s17728_s28 + $0x764] ss:$24 sps:$4 sm:$0xff]  }
 0xf3e   : > { %5174 = vmatpush1.bf16.msra.mxu0 %v13914_v4  ;;  %v13974_v4 = vld [vmem:[%s17731_s5 + $0x40] sm:$0xff]  }
 0xf3f   : > { %5175 = vmatprep.subr.bf16.mxu0 %v13919_v31  ;;  %5105 = vmatpush1.bf16.msra.mxu1 %v13926_v58  ;;  %v13971_v31 = vld [vmem:[%s17728_s28 + $0x790] ss:$24 sps:$4 sm:$0xff]   ;;  %v13977_v58 = vld [vmem:[%s17728_s28 + $0x7c4] ss:$24 sps:$4 sm:$0xff]  }
 0xf40   : > { %5106 = vmatprep.subr.bf16.mxu1 %v13931_v59  ;;  %v14000_v59 = vld [vmem:[%s17728_s28 + $0x908] ss:$24 sps:$4 sm:$0xff]  }
 0xf41   : > { %4551 = vmatmul.mubr.bf16.gmra.mrb[84].mxu1 %v16107_v25  ;;  %v13940_v25 = vld [vmem:[%s17728_s28 + $0x7b4] ss:$24 sps:$4 sm:$0xff]  }
 0xf42   : > { %5176 = vmatpush1.bf16.msra.mxu0 %v13917_v24  ;;  %v14008_v24 = vld [vmem:[%s17728_s28 + $0x93c] ss:$24 sps:$4 sm:$0xff]  }
 0xf43   : > { %5177 = vmatprep.subr.bf16.mxu0 %v13922_v48  ;;  %5107 = vmatpush1.bf16.msra.mxu1 %v13929_v34  ;;  %v13975_v48 = vld [vmem:[%s17728_s28 + $0x7c0] ss:$24 sps:$4 sm:$0xff]   ;;  %v13980_v34 = vld [vmem:[%s17728_s28 + $0x7f4] ss:$24 sps:$4 sm:$0xff]  }
 0xf44   : > { %5108 = vmatprep.subr.bf16.mxu1 %v13934_v29  ;;  %v14006_v29 = vld [vmem:[%s17728_s28 + $0x938] ss:$24 sps:$4 sm:$0xff]  }
 0xf46   : > { %5178 = vmatpush1.bf16.msra.mxu0 %v13920_v63  ;;  %v14014_v63 = vld [vmem:[%s17728_s28 + $0x96c] ss:$24 sps:$4 sm:$0xff]  }
 0xf47   : > { %5306 = vmatprep.subr.bf16.mxu0 %v15796_v3  ;;  %5109 = vmatpush1.bf16.msra.mxu1 %v13932_v51  ;;  %v13944_v3 = vld [vmem:[%s17728_s28 + $0x810] ss:$24 sps:$4 sm:$0xff]  }
 0xf48   : > { %5110 = vmatprep.subr.bf16.mxu1 %v13937_v53  ;;  %v13981_v51 = vld [vmem:[%s17731_s5 + $0x48] sm:$0xff]  }
 0xf49   : > { %v13978_v53 = vld [vmem:[%s17728_s28 + $0x7f0] ss:$24 sps:$4 sm:$0xff]  }
 0xf4b   : > { %5111 = vmatpush1.bf16.msra.mxu1 %v13935_v42  ;;  %v13984_v42 = vld [vmem:[%s17728_s28 + $0x824] ss:$24 sps:$4 sm:$0xff]  }
 0xf4c   : > { %5112 = vmatprep.subr.bf16.mxu1 %v13940_v25  ;;  %v14012_v25 = vld [vmem:[%s17728_s28 + $0x968] ss:$24 sps:$4 sm:$0xff]  }
 0xf4f   : > { %5113 = vmatpush1.bf16.msra.mxu1 %v13938_v23  ;;  %v14020_v23 = vld [vmem:[%s17728_s28 + $0x99c] ss:$24 sps:$4 sm:$0xff]  }
 0xf50   : > { %5114 = vmatprep.subr.bf16.mxu1 %v13943_v7  ;;  %v13982_v7 = vld [vmem:[%s17728_s28 + $0x820] ss:$24 sps:$4 sm:$0xff]  }
 0xf53   : > { %5115 = vmatpush1.bf16.msra.mxu1 %v13941_v10  ;;  %v13987_v10 = vld [vmem:[%s17728_s28 + $0x854] ss:$24 sps:$4 sm:$0xff]  }
 0xf54   : > { %5116 = vmatprep.subr.bf16.mxu1 %v13946_v11  ;;  %v14018_v11 = vld [vmem:[%s17728_s28 + $0x998] ss:$24 sps:$4 sm:$0xff]  }
 0xf57   : > { %5117 = vmatpush1.bf16.msra.mxu1 %v13944_v3  ;;  %v14026_v3 = vld [vmem:[%s17728_s28 + $0x9cc] ss:$24 sps:$4 sm:$0xff]  }
 0xf58   : > { %5118 = vmatprep.subr.bf16.mxu1 %v13949_v40  ;;  %v13985_v40 = vld [vmem:[%s17728_s28 + $0x850] ss:$24 sps:$4 sm:$0xff]  }
 0xf5b   : > { %5119 = vmatpush1.bf16.msra.mxu1 %v13947_v12  ;;  %v13990_v12 = vld [vmem:[%s17728_s28 + $0x884] ss:$24 sps:$4 sm:$0xff]  }
 0xf5c   : > { %5120 = vmatprep.subr.bf16.mxu1 %v13952_v13  ;;  %v14024_v13 = vld [vmem:[%s17728_s28 + $0x9c8] ss:$24 sps:$4 sm:$0xff]  }
 0xf5f   : > { %5121 = vmatpush1.bf16.msra.mxu1 %v13950_v55  ;;  %v14032_v55 = vld [vmem:[%s17728_s28 + $0x9fc] ss:$24 sps:$4 sm:$0xff]  }
 0xf60   : > { %5122 = vmatprep.subr.bf16.mxu1 %v13955_v49  ;;  %v13988_v49 = vld [vmem:[%s17728_s28 + $0x880] ss:$24 sps:$4 sm:$0xff]  }
 0xf63   : > { %5123 = vmatpush1.bf16.msra.mxu1 %v13953_v15  ;;  %v13993_v15 = vld [vmem:[%s17728_s28 + $0x8b4] ss:$24 sps:$4 sm:$0xff]  }
 0xf64   : > { %5124 = vmatprep.subr.bf16.mxu1 %v13958_v16  ;;  %v14030_v16 = vld [vmem:[%s17728_s28 + $0x9f8] ss:$24 sps:$4 sm:$0xff]  }
 0xf67   : > { %5125 = vmatpush1.bf16.msra.mxu1 %v13956_v17  ;;  %v14038_v17 = vld [vmem:[%s17728_s28 + $0xa2c] ss:$24 sps:$4 sm:$0xff]  }
 0xf68   : > { %5208 = vmatprep.subr.bf16.mxu1 %v13961_v37  ;;  %v13991_v37 = vld [vmem:[%s17728_s28 + $0x8b0] ss:$24 sps:$4 sm:$0xff]  }
 0xfec   : > { %v4640_v22 = vpop.f32.mrb[24].mxu0 }
 0xfed   : > { %v4642_v26 = vpop.f32.mrb[25].mxu0 }
 0xfee   : > { %v4644_v44 = vpop.f32.mrb[26].mxu0 }
 0xfef   : > { %v16201_v60 = vpack.c.bf16 %v4644_v44, %v4640_v22  ;;  %v4646_v1 = vpop.f32.mrb[27].mxu0  ;;  %v13996_v22 = vld [vmem:[%s17728_s28 + $0x8e4] ss:$24 sps:$4 sm:$0xff]  }
 0xff0   : > { %v4660_v43 = vpack.c.bf16 %v4646_v1, %v4642_v26  ;;  %v14036_v26 = vld [vmem:[%s17728_s28 + $0xa28] ss:$24 sps:$4 sm:$0xff]   ;;  %v14044_v44 = vld [vmem:[%s17728_s28 + $0xa5c] ss:$24 sps:$4 sm:$0xff]  }
 0xff1   : > { %v13994_v1 = vld [vmem:[%s17728_s28 + $0x8e0] ss:$24 sps:$4 sm:$0xff]  }
 0xff2   : > { %11951 = vmatprep.mubr.msk.bf16.mxu1 %vm1180_vm1, %v4660_v43  ;;  %11953 = vmatprep.mubr.msk.bf16.mxu0 %vm1180_vm1, %v4660_v43 }
 0xff3   : > { %5135 = vmatmul.mubr.bf16.vlgmr.msra.gmra.mrb[72].mxu1 %v16201_v60  ;;  %5188 = vmatmul.mubr.bf16.vlgmr.msra.gmra.mrb[8].mxu0 %v16201_v60 }
 0xff4   : > { %5209 = vmatpush1.bf16.msra.mxu1 %v13959_v36  ;;  %5307 = vmatpush1.bf16.msra.mxu0 %v15798_v5  ;;  %v4650_v50 = vpop.f32.mrb[28].mxu0  ;;  %v13965_v5 = vld [vmem:[%s17728_s28 + $0x730] ss:$24 sps:$4 sm:$0xff]  }
 0xff5   : > { %5308 = vmatprep.subr.bf16.mxu0 %v15824_v21  ;;  %v4652_v45 = vpop.f32.mrb[29].mxu0  ;;  %5210 = vmatprep.subr.bf16.mxu1 %v13964_v39  ;;  %v13968_v21 = vld [vmem:[%s17728_s28 + $0x760] ss:$24 sps:$4 sm:$0xff]   ;;  %v14050_v39 = vld [vmem:[%s17728_s28 + $0xa8c] ss:$24 sps:$4 sm:$0xff]  }
 0xff6   : > { %v4654_v57 = vpop.f32.mrb[30].mxu0  ;;  %v14042_v36 = vld [vmem:[%s17728_s28 + $0xa58] ss:$24 sps:$4 sm:$0xff]  }
 0xff7   : > { %v16214_v52 = vpack.c.bf16 %v4654_v57, %v4650_v50  ;;  %v4656_v54 = vpop.f32.mrb[31].mxu0  ;;  %v13997_v50 = vld [vmem:[%s17728_s28 + $0x900] ss:$24 sps:$4 sm:$0xff]   ;;  %v14011_v57 = vld [vmem:[%s17728_s28 + $0x964] ss:$24 sps:$4 sm:$0xff]  }
 0xff8   : > { %v16216_v35 = vpack.c.bf16 %v4656_v54, %v4652_v45  ;;  %5211 = vmatpush1.bf16.msra.mxu1 %v13962_v28  ;;  %5309 = vmatpush1.bf16.msra.mxu0 %v15826_v41  ;;  %v13973_v41 = vld [vmem:[%s17728_s28 + $0x794] ss:$24 sps:$4 sm:$0xff]   ;;  %v14048_v45 = vld [vmem:[%s17728_s28 + $0xa88] ss:$24 sps:$4 sm:$0xff]   ;;  %v14054_v54 = vld [vmem:[%s17728_s28 + $0xab8] ss:$24 sps:$4 sm:$0xff]  }
 0xff9   : > { %5212 = vmatprep.subr.bf16.mxu1 %v13967_v32  ;;  %5855 = vmatprep.subr.bf16.mxu0 %v14002_v0  ;;  %v14005_v28 = vld [vmem:[%s17728_s28 + $0x934] ss:$24 sps:$4 sm:$0xff]   ;;  %v14003_v0 = vld [vmem:[%s17728_s28 + $0x930] ss:$24 sps:$4 sm:$0xff]  }
 0xffa   : > { %11952 = vmatprep.mubr.msk.bf16.mxu1 %vm1180_vm1, %v16216_v35  ;;  %11954 = vmatprep.mubr.msk.bf16.mxu0 %vm1180_vm1, %v16216_v35  ;;  %v14056_v32 = vld [vmem:[%s17728_s28 + $0xabc] ss:$24 sps:$4 sm:$0xff]  }
 0xffb   : > { %5145 = vmatmul.mubr.bf16.gmra.mrb[76].mxu1 %v16214_v52  ;;  %5198 = vmatmul.mubr.bf16.gmra.mrb[12].mxu0 %v16214_v52 }
 0xffc   : > { %5213 = vmatpush1.bf16.msra.mxu1 %v13965_v5  ;;  %11955 = vmatprep.mubr.msk.bf16.mxu1 %vm1180_vm1, %v4660_v43  ;;  %v13999_v43 = vld [vmem:[%s17728_s28 + $0x904] ss:$24 sps:$4 sm:$0xff]  }
 0xffd   : > { %5214 = vmatprep.subr.bf16.mxu1 %v13970_v18  ;;  %5338 = vmatprep.mubr.bf16.mxu0 %v17684_v14  ;;  %v14062_v5 = vld [vmem:[%s17728_s28 + $0xaec] ss:$24 sps:$4 sm:$0xff]   ;;  %v14009_v18 = vld [vmem:[%s17728_s28 + $0x960] ss:$24 sps:$4 sm:$0xff]  }
0x1000   : > { %5215 = vmatpush1.bf16.msra.mxu1 %v13968_v21  ;;  %v14015_v21 = vld [vmem:[%s17728_s28 + $0x990] ss:$24 sps:$4 sm:$0xff]  }
0x1001   : > { %5216 = vmatprep.subr.bf16.mxu1 %v13973_v41  ;;  %v14023_v41 = vld [vmem:[%s17728_s28 + $0x9c4] ss:$24 sps:$4 sm:$0xff]  }
0x1003   : > { %11963 = vmatmul.mubr.msk.bf16.vlgmr.msra.gmra.mrb[32].mxu0 %vm2548_vm8, %v13974_v4  ;;  %v14021_v4 = vld [vmem:[%s17728_s28 + $0x9c0] ss:$24 sps:$4 sm:$0xff]  }
0x1004   : > { %5217 = vmatpush1.bf16.msra.mxu1 %v13971_v31  ;;  %5348 = vmatprep.mubr.bf16.mxu0 %v17684_v14  ;;  %v14029_v31 = vld [vmem:[%s17728_s28 + $0x9f4] ss:$24 sps:$4 sm:$0xff]  }
0x1005   : > { %5218 = vmatprep.subr.bf16.mxu1 %v13977_v58  ;;  %5856 = vmatpush1.bf16.msra.mxu0 %v14000_v59  ;;  %v14027_v58 = vld [vmem:[%s17728_s28 + $0x9f0] ss:$24 sps:$4 sm:$0xff]   ;;  %v14035_v59 = vld [vmem:[%s17728_s28 + $0xa24] ss:$24 sps:$4 sm:$0xff]  }
0x1006   : > { %5857 = vmatprep.subr.bf16.mxu0 %v14008_v24  ;;  %v14041_v24 = vld [vmem:[%s17728_s28 + $0xa54] ss:$24 sps:$4 sm:$0xff]  }
0x1008   : > { %5219 = vmatpush1.bf16.msra.mxu1 %v13975_v48  ;;  %v14039_v48 = vld [vmem:[%s17728_s28 + $0xa50] ss:$24 sps:$4 sm:$0xff]  }
0x1009   : > { %5220 = vmatprep.subr.bf16.mxu1 %v13980_v34  ;;  %5858 = vmatpush1.bf16.msra.mxu0 %v14006_v29  ;;  %v14047_v34 = vld [vmem:[%s17728_s28 + $0xa84] ss:$24 sps:$4 sm:$0xff]   ;;  %v14045_v29 = vld [vmem:[%s17728_s28 + $0xa80] ss:$24 sps:$4 sm:$0xff]  }
0x100a   : > { %5859 = vmatprep.subr.bf16.mxu0 %v14014_v63  ;;  %v14053_v63 = vld [vmem:[%s17728_s28 + $0xab4] ss:$24 sps:$4 sm:$0xff]  }
0x100b   : > { %11964 = vmatmul.mubr.msk.bf16.gmra.mrb[36].mxu0 %vm2548_vm8, %v13981_v51  ;;  %v14051_v51 = vld [vmem:[%s17728_s28 + $0xab0] ss:$24 sps:$4 sm:$0xff]  }
0x100c   : > { %5221 = vmatpush1.bf16.msra.mxu1 %v13978_v53  ;;  %v14059_v53 = vld [vmem:[%s17728_s28 + $0xae4] ss:$24 sps:$4 sm:$0xff]  }
0x100d   : > { %5222 = vmatprep.subr.bf16.mxu1 %v13984_v42  ;;  %5860 = vmatpush1.bf16.msra.mxu0 %v14012_v25  ;;  %v14057_v42 = vld [vmem:[%s17728_s28 + $0xae0] ss:$24 sps:$4 sm:$0xff]   ;;  %v14065_v25 = vld [vmem:[%s17728_s28 + $0xb14] ss:$24 sps:$4 sm:$0xff]  }
0x100e   : > { %5861 = vmatprep.subr.bf16.mxu0 %v14020_v23  ;;  %v14063_v23 = vld [vmem:[%s17728_s28 + $0xb10] ss:$24 sps:$4 sm:$0xff]  }
0x1010   : > { %5223 = vmatpush1.bf16.msra.mxu1 %v13982_v7  ;;  %v14068_v7 = vld [vmem:[%s17728_s28 + $0xb1c] ss:$24 sps:$4 sm:$0xff]  }
0x1011   : > { %5224 = vmatprep.subr.bf16.mxu1 %v13987_v10  ;;  %5862 = vmatpush1.bf16.msra.mxu0 %v14018_v11  ;;  %v14066_v10 = vld [vmem:[%s17728_s28 + $0xb18] ss:$24 sps:$4 sm:$0xff]   ;;  %v14071_v11 = vld [vmem:[%s17728_s28 + $0x914] ss:$24 sps:$4 sm:$0xff]  }
0x1012   : > { %5863 = vmatprep.subr.bf16.mxu0 %v14026_v3 }
0x1014   : > { %5225 = vmatpush1.bf16.msra.mxu1 %v13985_v40 }
0x1015   : > { %5226 = vmatprep.subr.bf16.mxu1 %v13990_v12  ;;  %5864 = vmatpush1.bf16.msra.mxu0 %v14024_v13 }
0x1016   : > { %5865 = vmatprep.subr.bf16.mxu0 %v14032_v55 }
0x1018   : > { %5227 = vmatpush1.bf16.msra.mxu1 %v13988_v49 }
0x1019   : > { %5228 = vmatprep.subr.bf16.mxu1 %v13993_v15  ;;  %5866 = vmatpush1.bf16.msra.mxu0 %v14030_v16  ;;  %v14069_v15 = vld [vmem:[%s17728_s28 + $0x910] ss:$24 sps:$4 sm:$0xff]   ;;  %v14074_v16 = vld [vmem:[%s17728_s28 + $0x944] ss:$24 sps:$4 sm:$0xff]  }
0x101a   : > { %5867 = vmatprep.subr.bf16.mxu0 %v14038_v17 }
0x101c   : > { %5229 = vmatpush1.bf16.msra.mxu1 %v13991_v37  ;;  %v14072_v37 = vld [vmem:[%s17728_s28 + $0x940] ss:$24 sps:$4 sm:$0xff]  }
0x101d   : > { %5230 = vmatprep.subr.bf16.mxu1 %v13996_v22  ;;  %5868 = vmatpush1.bf16.msra.mxu0 %v14036_v26  ;;  %v14077_v26 = vld [vmem:[%s17728_s28 + $0x974] ss:$24 sps:$4 sm:$0xff]  }
0x101e   : > { %5869 = vmatprep.subr.bf16.mxu0 %v14044_v44 }
0x1020   : > { %5231 = vmatpush1.bf16.msra.mxu1 %v13994_v1 }
0x1021   : > { %5802 = vmatprep.subr.bf16.mxu1 %v13999_v43  ;;  %5870 = vmatpush1.bf16.msra.mxu0 %v14042_v36 }
0x1022   : > { %5871 = vmatprep.subr.bf16.mxu0 %v14050_v39  ;;  %v14075_v39 = vld [vmem:[%s17728_s28 + $0x970] ss:$24 sps:$4 sm:$0xff]  }
0x1023   : > { %5241 = vmatmul.mubr.bf16.vlgmr.msra.gmra.mrb[80].mxu1 %v16201_v60  ;;  %v14017_v60 = vld [vmem:[%s17728_s28 + $0x994] ss:$24 sps:$4 sm:$0xff]  }
0x1024   : > { %11956 = vmatprep.mubr.msk.bf16.mxu1 %vm1180_vm1, %v16216_v35  ;;  %5803 = vmatpush1.bf16.msra.mxu1 %v13997_v50  ;;  %v14060_v35 = vld [vmem:[%s17728_s28 + $0xae8] ss:$24 sps:$4 sm:$0xff]   ;;  %v14080_v50 = vld [vmem:[%s17728_s28 + $0x9a4] ss:$24 sps:$4 sm:$0xff]  }
0x1025   : > { %5804 = vmatprep.subr.bf16.mxu1 %v14005_v28  ;;  %5872 = vmatpush1.bf16.msra.mxu0 %v14048_v45  ;;  %v14078_v28 = vld [vmem:[%s17728_s28 + $0x9a0] ss:$24 sps:$4 sm:$0xff]   ;;  %v14083_v45 = vld [vmem:[%s17728_s28 + $0x9d4] ss:$24 sps:$4 sm:$0xff]  }
0x1026   : > { %5873 = vmatprep.subr.bf16.mxu0 %v14056_v32  ;;  %v14081_v32 = vld [vmem:[%s17728_s28 + $0x9d0] ss:$24 sps:$4 sm:$0xff]  }
0x1028   : > { %5805 = vmatpush1.bf16.msra.mxu1 %v14003_v0  ;;  %v14086_v0 = vld [vmem:[%s17728_s28 + $0xa04] ss:$24 sps:$4 sm:$0xff]  }
0x1029   : > { %5806 = vmatprep.subr.bf16.mxu1 %v14011_v57  ;;  %5874 = vmatpush1.bf16.msra.mxu0 %v14054_v54  ;;  %v14084_v57 = vld [vmem:[%s17728_s28 + $0xa00] ss:$24 sps:$4 sm:$0xff]   ;;  %v14089_v54 = vld [vmem:[%s17728_s28 + $0xa34] ss:$24 sps:$4 sm:$0xff]  }
0x102a   : > { %5875 = vmatprep.subr.bf16.mxu0 %v14062_v5  ;;  %v14087_v5 = vld [vmem:[%s17728_s28 + $0xa30] ss:$24 sps:$4 sm:$0xff]  }
0x102b   : > { %5251 = vmatmul.mubr.bf16.gmra.mrb[84].mxu1 %v16214_v52  ;;  %v14033_v52 = vld [vmem:[%s17728_s28 + $0xa20] ss:$24 sps:$4 sm:$0xff]  }
0x102c   : > { %5807 = vmatpush1.bf16.msra.mxu1 %v14009_v18  ;;  %v14092_v18 = vld [vmem:[%s17728_s28 + $0xa64] ss:$24 sps:$4 sm:$0xff]  }
0x102d   : > { %5808 = vmatprep.subr.bf16.mxu1 %v14017_v60  ;;  %5876 = vmatpush1.bf16.msra.mxu0 %v14060_v35  ;;  %v14090_v60 = vld [vmem:[%s17728_s28 + $0xa60] ss:$24 sps:$4 sm:$0xff]   ;;  %v14095_v35 = vld [vmem:[%s17728_s28 + $0xa94] ss:$24 sps:$4 sm:$0xff]  }
0x102e   : > { %5877 = vmatprep.subr.bf16.mxu0 %v14068_v7 }
0x1030   : > { %5809 = vmatpush1.bf16.msra.mxu1 %v14015_v21  ;;  %v14093_v21 = vld [vmem:[%s17728_s28 + $0xa90] ss:$24 sps:$4 sm:$0xff]  }
0x1031   : > { %5810 = vmatprep.subr.bf16.mxu1 %v14023_v41  ;;  %5878 = vmatpush1.bf16.msra.mxu0 %v14066_v10  ;;  %v14098_v41 = vld [vmem:[%s17728_s28 + $0xac4] ss:$24 sps:$4 sm:$0xff]  }
0x1034   : > { %5811 = vmatpush1.bf16.msra.mxu1 %v14021_v4  ;;  %v14096_v4 = vld [vmem:[%s17728_s28 + $0xac0] ss:$24 sps:$4 sm:$0xff]  }
0x1035   : > { %5812 = vmatprep.subr.bf16.mxu1 %v14029_v31  ;;  %v14101_v31 = vld [vmem:[%s17728_s28 + $0xaf4] ss:$24 sps:$4 sm:$0xff]  }
0x1038   : > { %5813 = vmatpush1.bf16.msra.mxu1 %v14027_v58  ;;  %v14099_v58 = vld [vmem:[%s17728_s28 + $0xaf0] ss:$24 sps:$4 sm:$0xff]  }
0x1039   : > { %5814 = vmatprep.subr.bf16.mxu1 %v14035_v59  ;;  %v14104_v59 = vld [vmem:[%s17728_s28 + $0xb24] ss:$24 sps:$4 sm:$0xff]  }
0x103c   : > { %5815 = vmatpush1.bf16.msra.mxu1 %v14033_v52  ;;  %v14102_v52 = vld [vmem:[%s17728_s28 + $0xb20] ss:$24 sps:$4 sm:$0xff]  }
0x103d   : > { %5816 = vmatprep.subr.bf16.mxu1 %v14041_v24  ;;  %v5997_v24 = vsub.s32 2, %v15417_v6 }
0x1040   : > { %5817 = vmatpush1.bf16.msra.mxu1 %v14039_v48  ;;  %v16344_v48 = vld [vmem:[%s15309_s26] sm:$0x3f] }
0x1041   : > { %5818 = vmatprep.subr.bf16.mxu1 %v14047_v34  ;;  %v6001_v34 = vsub.s32 3, %v15417_v6 }
0x1044   : > { %5819 = vmatpush1.bf16.msra.mxu1 %v14045_v29  ;;  %v5990_v29 = vrot.slane %v16344_v48, %v15425_v8 }
0x1045   : > { %5820 = vmatprep.subr.bf16.mxu1 %v14053_v63  ;;  %v5998_v63 = vrot.slane %v16344_v48, %v5997_v24 }
0x1048   : > { %5821 = vmatpush1.bf16.msra.mxu1 %v14051_v51  ;;  %v5994_v51 = vrot.slane %v16344_v48, %v15428_v9 }
0x1049   : > { %5822 = vmatprep.subr.bf16.mxu1 %v14059_v53  ;;  %v6002_v53 = vrot.slane %v16344_v48, %v6001_v34 }
0x104c   : > { %5823 = vmatpush1.bf16.msra.mxu1 %v14057_v42 }
0x104d   : > { %5824 = vmatprep.subr.bf16.mxu1 %v14065_v25 }
0x1050   : > { %5825 = vmatpush1.bf16.msra.mxu1 %v14063_v23 }
0x1051   : > { %5908 = vmatprep.subr.bf16.mxu1 %v14071_v11 }
0x10d6   : > { %v5340_v3 = vpop.f32.mrb[32].mxu0 }
0x10d7   : > { %v5342_v40 = vpop.f32.mrb[33].mxu0 }
0x10d8   : > { %v5344_v12 = vpop.f32.mrb[34].mxu0 }
0x10d9   : > { %v16307_v13 = vpack.c.bf16 %v5344_v12, %v5340_v3  ;;  %v5346_v55 = vpop.f32.mrb[35].mxu0 }
0x10da   : > { %v5360_v49 = vpack.c.bf16 %v5346_v55, %v5342_v40 }
0x10dc   : > { %12109 = vmatprep.mubr.msk.bf16.mxu1 %vm1180_vm1, %v5360_v49  ;;  %12111 = vmatprep.mubr.msk.bf16.mxu0 %vm1180_vm1, %v5360_v49 }
0x10dd   : > { %5835 = vmatmul.mubr.bf16.vlgmr.msra.gmra.mrb[72].mxu1 %v16307_v13  ;;  %5888 = vmatmul.mubr.bf16.vlgmr.msra.gmra.mrb[8].mxu0 %v16307_v13 }
0x10de   : > { %5909 = vmatpush1.bf16.msra.mxu1 %v14069_v15  ;;  %v5350_v17 = vpop.f32.mrb[36].mxu0 }
0x10df   : > { %v5352_v22 = vpop.f32.mrb[37].mxu0  ;;  %5910 = vmatprep.subr.bf16.mxu1 %v14074_v16 }
0x10e0   : > { %v5354_v44 = vpop.f32.mrb[38].mxu0 }
0x10e1   : > { %v5361_v1 = vpack.c.bf16 %v5354_v44, %v5350_v17  ;;  %v5356_v43 = vpop.f32.mrb[39].mxu0 }
0x10e2   : > { %v5362_v36 = vpack.c.bf16 %v5356_v43, %v5352_v22  ;;  %5911 = vmatpush1.bf16.msra.mxu1 %v14072_v37 }
0x10e3   : > { %5912 = vmatprep.subr.bf16.mxu1 %v14077_v26 }
0x10e4   : > { %12110 = vmatprep.mubr.msk.bf16.mxu1 %vm1180_vm1, %v5362_v36  ;;  %12112 = vmatprep.mubr.msk.bf16.mxu0 %vm1180_vm1, %v5362_v36 }
0x10e5   : > { %5845 = vmatmul.mubr.bf16.gmra.mrb[76].mxu1 %v5361_v1  ;;  %5898 = vmatmul.mubr.bf16.gmra.mrb[12].mxu0 %v5361_v1 }
0x10e6   : > { %5913 = vmatpush1.bf16.msra.mxu1 %v14075_v39  ;;  %12113 = vmatprep.mubr.msk.bf16.mxu1 %vm1180_vm1, %v5360_v49 }
0x10e7   : > { %5914 = vmatprep.subr.bf16.mxu1 %v14080_v50  ;;  %6133 = vmatprep.mubr.bf16.mxu0 %v17684_v14 }
0x10ea   : > { %5915 = vmatpush1.bf16.msra.mxu1 %v14078_v28 }
0x10eb   : > { %5916 = vmatprep.subr.bf16.mxu1 %v14083_v45 }
0x10ee   : > { %5917 = vmatpush1.bf16.msra.mxu1 %v14081_v32 }
0x10ef   : > { %5918 = vmatprep.subr.bf16.mxu1 %v14086_v0 }
0x10f2   : > { %5919 = vmatpush1.bf16.msra.mxu1 %v14084_v57 }
0x10f3   : > { %5920 = vmatprep.subr.bf16.mxu1 %v14089_v54 }
0x10f6   : > { %5921 = vmatpush1.bf16.msra.mxu1 %v14087_v5 }
0x10f7   : > { %5922 = vmatprep.subr.bf16.mxu1 %v14092_v18 }
0x10fa   : > { %5923 = vmatpush1.bf16.msra.mxu1 %v14090_v60 }
0x10fb   : > { %5924 = vmatprep.subr.bf16.mxu1 %v14095_v35 }
0x10fe   : > { %5925 = vmatpush1.bf16.msra.mxu1 %v14093_v21 }
0x10ff   : > { %5926 = vmatprep.subr.bf16.mxu1 %v14098_v41 }
0x1102   : > { %5927 = vmatpush1.bf16.msra.mxu1 %v14096_v4 }
0x1103   : > { %5928 = vmatprep.subr.bf16.mxu1 %v14101_v31 }
0x1106   : > { %5929 = vmatpush1.bf16.msra.mxu1 %v14099_v58 }
0x1107   : > { %5930 = vmatprep.subr.bf16.mxu1 %v14104_v59 }
0x110a   : > { %5931 = vmatpush1.bf16.msra.mxu1 %v14102_v52 }
0x110d   : > { %5941 = vmatmul.mubr.bf16.vlgmr.msra.gmra.mrb[80].mxu1 %v16307_v13 }
0x110e   : > { %12114 = vmatprep.mubr.msk.bf16.mxu1 %vm1180_vm1, %v5362_v36 }
0x1115   : > { %5951 = vmatmul.mubr.bf16.gmra.mrb[84].mxu1 %v5361_v1 }
0x11b0   : > { %v5836_v42 = vpop.f32.mrb[72].mxu1  ;;  %v5889_v25 = vpop.f32.mrb[8].mxu0 }
0x11b1   : > { %v6017_v23 = vadd.f32 %v5990_v29, %v5836_v42  ;;  %v6019_v7 = vadd.f32 %v5998_v63, %v5889_v25  ;;  %v5838_v10 = vpop.f32.mrb[73].mxu1  ;;  %v5891_v11 = vpop.f32.mrb[9].mxu0 }
0x11b2   : > { %v6018_v3 = vadd.f32 %v5994_v51, %v5838_v10  ;;  %v6020_v40 = vadd.f32 %v6002_v53, %v5891_v11  ;;  %v5840_v12 = vpop.f32.mrb[74].mxu1  ;;  %v5893_v13 = vpop.f32.mrb[10].mxu0 }
0x11b3   : > { %v6041_v55 = vmax.f32 %v6017_v23, 0.0  ;;  %v6043_v49 = vmax.f32 %v6019_v7, 0.0  ;;  %v6023_v15 = vadd.f32 %v5990_v29, %v5840_v12  ;;  %v6025_v16 = vadd.f32 %v5998_v63, %v5893_v13  ;;  %v5842_v17 = vpop.f32.mrb[75].mxu1  ;;  %v5895_v37 = vpop.f32.mrb[11].mxu0 }
0x11b4   : > { %v6042_v22 = vmax.f32 %v6018_v3, 0.0  ;;  %v6044_v26 = vmax.f32 %v6020_v40, 0.0  ;;  %v6024_v44 = vadd.f32 %v5994_v51, %v5842_v17  ;;  %v6026_v1 = vadd.f32 %v6002_v53, %v5895_v37 }
0x11b5   : > { %v6047_v43 = vmax.f32 %v6023_v15, 0.0  ;;  %v6049_v36 = vmax.f32 %v6025_v16, 0.0  ;;  %v6065_v28 = vmul.f32 %v6041_v55, %v15786_v30  ;;  %v6067_v45 = vmul.f32 %v6043_v49, %v15786_v30 }
0x11b6   : > { %v6048_v39 = vmax.f32 %v6024_v44, 0.0  ;;  %v6050_v50 = vmax.f32 %v6026_v1, 0.0  ;;  %v6066_v57 = vmul.f32 %v6042_v22, %v15786_v30  ;;  %v6068_v54 = vmul.f32 %v6044_v26, %v15786_v30 }
0x11b7   : > { %v6071_v32 = vmul.f32 %v6047_v43, %v15756_v38  ;;  %v6073_v0 = vmul.f32 %v6049_v36, %v15756_v38 }
0x11b8   : > { %v6072_v5 = vmul.f32 %v6048_v39, %v15756_v38  ;;  %v6074_v18 = vmul.f32 %v6050_v50, %v15756_v38  ;;  %v5846_v60 = vpop.f32.mrb[76].mxu1  ;;  %v5899_v35 = vpop.f32.mrb[12].mxu0 }
0x11b9   : > { %v16361_v21 = vpack.c.bf16 %v6071_v32, %v6065_v28  ;;  %v16363_v41 = vpack.c.bf16 %v6073_v0, %v6067_v45  ;;  %v6029_v4 = vadd.f32 %v5990_v29, %v5846_v60  ;;  %v6031_v31 = vadd.f32 %v5998_v63, %v5899_v35  ;;  %v5848_v58 = vpop.f32.mrb[77].mxu1  ;;  %v5901_v59 = vpop.f32.mrb[13].mxu0  ;;  %v14881_v45 = vld [vmem:[%s17731_s5] sm:$0xff]   ;;  %v14882_v32 = vld [vmem:[%s17731_s5 + $0x8] sm:$0xff]  }
0x11ba   : > { %v16365_v52 = vpack.c.bf16 %v6072_v5, %v6066_v57  ;;  %v16367_v24 = vpack.c.bf16 %v6074_v18, %v6068_v54  ;;  %v6030_v34 = vadd.f32 %v5994_v51, %v5848_v58  ;;  %v6032_v42 = vadd.f32 %v6002_v53, %v5901_v59  ;;  %v5850_v25 = vpop.f32.mrb[78].mxu1  ;;  %v5903_v23 = vpop.f32.mrb[14].mxu0  ;;  %v14141_v0 = vld [vmem:[%s15318_s2 + $0x300] ss:$8 sps:$4 sm:$0xff]   ;;  %v14143_v57 = vld [vmem:[%s15318_s2 + $0x304] ss:$8 sps:$4 sm:$0xff]  }
0x11bb   : > { %v6053_v7 = vmax.f32 %v6029_v4, 0.0  ;;  %v6055_v10 = vmax.f32 %v6031_v31, 0.0  ;;  %v6035_v11 = vadd.f32 %v5990_v29, %v5850_v25  ;;  %v6037_v3 = vadd.f32 %v5998_v63, %v5903_v23  ;;  %v5852_v40 = vpop.f32.mrb[79].mxu1  ;;  %v5905_v12 = vpop.f32.mrb[15].mxu0  ;;  %7116 = vmatprep.subr.bf16.mxu1 %v14143_v57 }
0x11bc   : > { %v6054_v13 = vmax.f32 %v6030_v34, 0.0  ;;  %v6056_v55 = vmax.f32 %v6032_v42, 0.0  ;;  %v6036_v49 = vadd.f32 %v5994_v51, %v5852_v40  ;;  %v6038_v15 = vadd.f32 %v6002_v53, %v5905_v12  ;;  %6101 = vmatprep.subr.bf16.mxu0 %v16365_v52  ;;  %7117 = vmatpush1.bf16.msra.mxu1 %v14141_v0 }
0x11bd   : > { %v6059_v16 = vmax.f32 %v6035_v11, 0.0  ;;  %v6061_v17 = vmax.f32 %v6037_v3, 0.0  ;;  %6102 = vmatpush1.bf16.msra.mxu0 %v16361_v21  ;;  %v6077_v26 = vmul.f32 %v6053_v7, %v15765_v47  ;;  %v6079_v44 = vmul.f32 %v6055_v10, %v15765_v47 }
0x11be   : > { %v6060_v37 = vmax.f32 %v6036_v49, 0.0  ;;  %v6062_v22 = vmax.f32 %v6038_v15, 0.0  ;;  %v6078_v1 = vmul.f32 %v6054_v13, %v15765_v47  ;;  %v6080_v51 = vmul.f32 %v6056_v55, %v15765_v47 }
0x11bf   : > { %v6083_v29 = vmul.f32 %v6059_v16, %v15814_v19  ;;  %v6085_v63 = vmul.f32 %v6061_v17, %v15814_v19  ;;  %v6005_v54 = vsub.s32 4, %v15417_v6  ;;  %v6009_v5 = vsub.s32 5, %v15417_v6 }
0x11c0   : > { %v6084_v53 = vmul.f32 %v6060_v37, %v15814_v19  ;;  %v6086_v43 = vmul.f32 %v6062_v22, %v15814_v19 }
0x11c1   : > { %v16379_v36 = vpack.c.bf16 %v6083_v29, %v6077_v26  ;;  %v16381_v39 = vpack.c.bf16 %v6085_v63, %v6079_v44  ;;  %v6006_v18 = vrot.slane %v16344_v48, %v6005_v54  ;;  %v6010_v60 = vrot.slane %v16344_v48, %v6009_v5  ;;  %v14107_v5 = vld [vmem:[%s15318_s2 + $0x104] ss:$8 sps:$4 sm:$0xff]  }
0x11c2   : > { %v16383_v50 = vpack.c.bf16 %v6084_v53, %v6078_v1  ;;  %v16385_v28 = vpack.c.bf16 %v6086_v43, %v6080_v51 }
0x11c4   : > { %6103 = vmatprep.subr.bf16.mxu0 %v16383_v50 }
0x11c5   : > { %6104 = vmatpush1.bf16.msra.mxu0 %v16379_v36 }
0x11c6   : > { %6154 = vmatprep.subr.bf16.mxu0 %v16367_v24 }
0x11c8   : > { %12115 = vmatmul.mubr.msk.bf16.vlgmr.msra.gmra.mrb[40].mxu0 %vm2548_vm8, %v14881_v45 }
0x11c9   : > { %6155 = vmatpush1.bf16.msra.mxu0 %v16363_v41  ;;  %6143 = vmatprep.mubr.bf16.mxu0 %v17684_v14 }
0x11ca   : > { %6156 = vmatprep.subr.bf16.mxu0 %v16385_v28 }
0x11cd   : > { %6157 = vmatpush1.bf16.msra.mxu0 %v16381_v39 }
0x11d0   : > { %12116 = vmatmul.mubr.msk.bf16.gmra.mrb[44].mxu0 %vm2548_vm8, %v14882_v32 }
0x11d1   : > { %6186 = vmatprep.mubr.bf16.mxu0 %v17684_v14 }
0x11d8   : > { %12117 = vmatmul.mubr.msk.bf16.vlgmr.msra.gmra.mrb[48].mxu0 %vm2548_vm8, %v14881_v45 }
0x11d9   : > { %6196 = vmatprep.mubr.bf16.mxu0 %v17684_v14 }
0x11e0   : > { %v5942_v35 = vpop.f32.mrb[80].mxu1  ;;  %12118 = vmatmul.mubr.msk.bf16.gmra.mrb[52].mxu0 %vm2548_vm8, %v14882_v32 }
0x11e1   : > { %v6021_v4 = vadd.f32 %v6006_v18, %v5942_v35  ;;  %v5944_v31 = vpop.f32.mrb[81].mxu1  ;;  %6239 = vmatprep.mubr.bf16.mxu0 %v17684_v14  ;;  %v14153_v35 = vld [vmem:[%s15318_s2 + $0x320] ss:$8 sps:$4 sm:$0xff]  }
0x11e2   : > { %v6022_v58 = vadd.f32 %v6010_v60, %v5944_v31  ;;  %v5946_v59 = vpop.f32.mrb[82].mxu1  ;;  %v14105_v31 = vld [vmem:[%s15318_s2 + $0x100] ss:$8 sps:$4 sm:$0xff]  }
0x11e3   : > { %v6045_v34 = vmax.f32 %v6021_v4, 0.0  ;;  %v6027_v42 = vadd.f32 %v6006_v18, %v5946_v59  ;;  %v5948_v25 = vpop.f32.mrb[83].mxu1  ;;  %v14155_v4 = vld [vmem:[%s15318_s2 + $0x324] ss:$8 sps:$4 sm:$0xff]   ;;  %v14108_v59 = vld [vmem:[%s15318_s2 + $0x110] ss:$8 sps:$4 sm:$0xff]  }
0x11e4   : > { %v6046_v23 = vmax.f32 %v6022_v58, 0.0  ;;  %v6028_v7 = vadd.f32 %v6010_v60, %v5948_v25  ;;  %v14110_v58 = vld [vmem:[%s15318_s2 + $0x114] ss:$8 sps:$4 sm:$0xff]  }
0x11e5   : > { %v6051_v10 = vmax.f32 %v6027_v42, 0.0  ;;  %v6069_v11 = vmul.f32 %v6045_v34, %v15786_v30  ;;  %v14113_v34 = vld [vmem:[%s15318_s2 + $0x124] ss:$8 sps:$4 sm:$0xff]   ;;  %v14159_v42 = vld [vmem:[%s15318_s2 + $0x330] ss:$8 sps:$4 sm:$0xff]  }
0x11e6   : > { %v6052_v6 = vmax.f32 %v6028_v7, 0.0  ;;  %v6070_v3 = vmul.f32 %v6046_v23, %v15786_v30  ;;  %v14161_v25 = vld [vmem:[%s15318_s2 + $0x334] ss:$8 sps:$4 sm:$0xff]   ;;  %v14111_v23 = vld [vmem:[%s15318_s2 + $0x120] ss:$8 sps:$4 sm:$0xff]  }
0x11e7   : > { %v6075_v48 = vmul.f32 %v6051_v10, %v15756_v38  ;;  %v14116_v7 = vld [vmem:[%s15318_s2 + $0x134] ss:$8 sps:$4 sm:$0xff]   ;;  %v14165_v10 = vld [vmem:[%s15318_s2 + $0x340] ss:$8 sps:$4 sm:$0xff]  }
0x11e8   : > { %v6076_v40 = vmul.f32 %v6052_v6, %v15756_v38  ;;  %v5952_v12 = vpop.f32.mrb[84].mxu1  ;;  %v14167_v6 = vld [vmem:[%s15318_s2 + $0x344] ss:$8 sps:$4 sm:$0xff]  }
0x11e9   : > { %v16417_v13 = vpack.c.bf16 %v6075_v48, %v6069_v11  ;;  %v6033_v55 = vadd.f32 %v6006_v18, %v5952_v12  ;;  %v5954_v49 = vpop.f32.mrb[85].mxu1  ;;  %v14114_v11 = vld [vmem:[%s15318_s2 + $0x130] ss:$8 sps:$4 sm:$0xff]   ;;  %v14119_v48 = vld [vmem:[%s15318_s2 + $0x144] ss:$8 sps:$4 sm:$0xff]  }
0x11ea   : > { %v16419_v15 = vpack.c.bf16 %v6076_v40, %v6070_v3  ;;  %v6034_v16 = vadd.f32 %v6010_v60, %v5954_v49  ;;  %v5956_v17 = vpop.f32.mrb[86].mxu1  ;;  %v14171_v3 = vld [vmem:[%s15318_s2 + $0x350] ss:$8 sps:$4 sm:$0xff]   ;;  %v14173_v40 = vld [vmem:[%s15318_s2 + $0x354] ss:$8 sps:$4 sm:$0xff]  }
0x11eb   : > { %v6057_v37 = vmax.f32 %v6033_v55, 0.0  ;;  %v6039_v22 = vadd.f32 %v6006_v18, %v5956_v17  ;;  %v5958_v26 = vpop.f32.mrb[87].mxu1  ;;  %v14147_v18 = vld [vmem:[%s15318_s2 + $0x310] ss:$8 sps:$4 sm:$0xff]   ;;  %v14117_v12 = vld [vmem:[%s15318_s2 + $0x140] ss:$8 sps:$4 sm:$0xff]  }
0x11ec   : > { %v6058_v44 = vmax.f32 %v6034_v16, 0.0  ;;  %v6040_v29 = vadd.f32 %v6010_v60, %v5958_v26  ;;  %6207 = vmatprep.subr.bf16.mxu0 %v16419_v15  ;;  %v14149_v60 = vld [vmem:[%s15318_s2 + $0x314] ss:$8 sps:$4 sm:$0xff]   ;;  %v14177_v49 = vld [vmem:[%s15318_s2 + $0x360] ss:$8 sps:$4 sm:$0xff]  }
0x11ed   : > { %v6063_v63 = vmax.f32 %v6039_v22, 0.0  ;;  %6208 = vmatpush1.bf16.msra.mxu0 %v16417_v13  ;;  %v6081_v51 = vmul.f32 %v6057_v37, %v15765_v47  ;;  %7118 = vmatprep.subr.bf16.mxu1 %v14149_v60  ;;  %v14122_v55 = vld [vmem:[%s15318_s2 + $0x154] ss:$8 sps:$4 sm:$0xff]   ;;  %v14179_v16 = vld [vmem:[%s15318_s2 + $0x364] ss:$8 sps:$4 sm:$0xff]  }
0x11ee   : > { %v6064_v1 = vmax.f32 %v6040_v29, 0.0  ;;  %v6082_v43 = vmul.f32 %v6058_v44, %v15765_v47  ;;  %7119 = vmatpush1.bf16.msra.mxu1 %v14147_v18  ;;  %v14120_v17 = vld [vmem:[%s15318_s2 + $0x150] ss:$8 sps:$4 sm:$0xff]   ;;  %v14125_v37 = vld [vmem:[%s15318_s2 + $0x164] ss:$8 sps:$4 sm:$0xff]  }
0x11ef   : > { %v6087_v53 = vmul.f32 %v6063_v63, %v15814_v19  ;;  %7120 = vmatprep.subr.bf16.mxu1 %v14155_v4  ;;  %v14183_v22 = vld [vmem:[%s15318_s2 + $0x370] ss:$8 sps:$4 sm:$0xff]   ;;  %v14185_v26 = vld [vmem:[%s15318_s2 + $0x374] ss:$8 sps:$4 sm:$0xff]   ;;  %v14123_v44 = vld [vmem:[%s15318_s2 + $0x160] ss:$8 sps:$4 sm:$0xff]  }
0x11f0   : > { %v6088_v0 = vmul.f32 %v6064_v1, %v15814_v19  ;;  %v14128_v29 = vld [vmem:[%s15318_s2 + $0x174] ss:$8 sps:$4 sm:$0xff]   ;;  %v14189_v63 = vld [vmem:[%s15318_s2 + $0x380] ss:$8 sps:$4 sm:$0xff]   ;;  %v14191_v1 = vld [vmem:[%s15318_s2 + $0x384] ss:$8 sps:$4 sm:$0xff]  }
0x11f1   : > { %v16427_v57 = vpack.c.bf16 %v6087_v53, %v6081_v51  ;;  %v14126_v51 = vld [vmem:[%s15318_s2 + $0x170] ss:$8 sps:$4 sm:$0xff]   ;;  %v14131_v53 = vld [vmem:[%s15318_s2 + $0x184] ss:$8 sps:$4 sm:$0xff]  }
0x11f2   : > { %v16429_v54 = vpack.c.bf16 %v6088_v0, %v6082_v43  ;;  %7121 = vmatpush1.bf16.msra.mxu1 %v14153_v35  ;;  %v14195_v43 = vld [vmem:[%s15318_s2 + $0x390] ss:$8 sps:$4 sm:$0xff]   ;;  %v14197_v0 = vld [vmem:[%s15318_s2 + $0x394] ss:$8 sps:$4 sm:$0xff]   ;;  %v14203_v18 = vld [vmem:[%s15318_s2 + $0x3a4] ss:$8 sps:$4 sm:$0xff]  }
0x11f3   : > { %7122 = vmatprep.subr.bf16.mxu1 %v14161_v25  ;;  %v14132_v60 = vld [vmem:[%s15318_s2 + $0x190] ss:$8 sps:$4 sm:$0xff]   ;;  %v14137_v35 = vld [vmem:[%s15318_s2 + $0x1a4] ss:$8 sps:$4 sm:$0xff]  }
0x11f4   : > { %6209 = vmatprep.subr.bf16.mxu0 %v16429_v54  ;;  %v14207_v4 = vld [vmem:[%s15318_s2 + $0x3b0] ss:$8 sps:$4 sm:$0xff]  }
0x11f5   : > { %6210 = vmatpush1.bf16.msra.mxu0 %v16427_v57  ;;  %v14138_v25 = vld [vmem:[%s15318_s2 + $0x1b0] ss:$8 sps:$4 sm:$0xff]  }
0x11f6   : > { %6368 = vmatprep.subr.bf16.mxu0 %v16365_v52  ;;  %7123 = vmatpush1.bf16.msra.mxu1 %v14159_v42  ;;  %v14215_v42 = vld [vmem:[%s15318_s2 + $0x3c4] ss:$8 sps:$4 sm:$0xff]  }
0x11f7   : > { %7124 = vmatprep.subr.bf16.mxu1 %v14167_v6  ;;  %v14144_v6 = vld [vmem:[%s15318_s2 + $0x1c0] ss:$8 sps:$4 sm:$0xff]  }
0x11f8   : > { %12119 = vmatmul.mubr.msk.bf16.vlgmr.msra.gmra.mrb[56].mxu0 %vm2548_vm8, %v14881_v45  ;;  %v14883_v45 = vld [vmem:[%s17731_s5 + $0x10] sm:$0xff]  }
0x11f9   : > { %6369 = vmatpush1.bf16.msra.mxu0 %v16361_v21  ;;  %6249 = vmatprep.mubr.bf16.mxu0 %v17684_v14 }
0x11fa   : > { %6370 = vmatprep.subr.bf16.mxu0 %v16383_v50  ;;  %7125 = vmatpush1.bf16.msra.mxu1 %v14165_v10  ;;  %v14221_v10 = vld [vmem:[%s15318_s2 + $0x3d4] ss:$8 sps:$4 sm:$0xff]  }
0x11fb   : > { %7126 = vmatprep.subr.bf16.mxu1 %v14173_v40  ;;  %v14150_v40 = vld [vmem:[%s15318_s2 + $0x1d0] ss:$8 sps:$4 sm:$0xff]  }
0x11fd   : > { %6371 = vmatpush1.bf16.msra.mxu0 %v16379_v36 }
0x11fe   : > { %6421 = vmatprep.subr.bf16.mxu0 %v16367_v24  ;;  %7127 = vmatpush1.bf16.msra.mxu1 %v14171_v3  ;;  %v14227_v3 = vld [vmem:[%s15318_s2 + $0x3e4] ss:$8 sps:$4 sm:$0xff]  }
0x11ff   : > { %7128 = vmatprep.subr.bf16.mxu1 %v14179_v16  ;;  %v14231_v16 = vld [vmem:[%s15318_s2 + $0x3f0] ss:$8 sps:$4 sm:$0xff]  }
0x1200   : > { %12120 = vmatmul.mubr.msk.bf16.gmra.mrb[60].mxu0 %vm2548_vm8, %v14882_v32  ;;  %v14884_v32 = vld [vmem:[%s17731_s5 + $0x18] sm:$0xff]  }
0x1201   : > { %6400 = vmatprep.mubr.bf16.mxu0 %v17684_v14 }
0x1202   : > { %7129 = vmatpush1.bf16.msra.mxu1 %v14177_v49  ;;  %v14156_v49 = vld [vmem:[%s15318_s2 + $0x1e0] ss:$8 sps:$4 sm:$0xff]  }
0x1203   : > { %7130 = vmatprep.subr.bf16.mxu1 %v14185_v26  ;;  %v14170_v26 = vld [vmem:[%s15318_s2 + $0x204] ss:$8 sps:$4 sm:$0xff]  }
0x1206   : > { %7131 = vmatpush1.bf16.msra.mxu1 %v14183_v22  ;;  %v14162_v22 = vld [vmem:[%s15318_s2 + $0x1f0] ss:$8 sps:$4 sm:$0xff]  }
0x1207   : > { %7132 = vmatprep.subr.bf16.mxu1 %v14191_v1 }
0x1208   : > { %12121 = vmatmul.mubr.msk.bf16.vlgmr.msra.gmra.mrb[64].mxu0 %vm2548_vm8, %v14883_v45 }
0x1209   : > { %6422 = vmatpush1.bf16.msra.mxu0 %v16363_v41  ;;  %6410 = vmatprep.mubr.bf16.mxu0 %v17684_v14 }
0x120a   : > { %6423 = vmatprep.subr.bf16.mxu0 %v16385_v28  ;;  %7133 = vmatpush1.bf16.msra.mxu1 %v14189_v63 }
0x120b   : > { %7134 = vmatprep.subr.bf16.mxu1 %v14197_v0 }
0x120d   : > { %6424 = vmatpush1.bf16.msra.mxu0 %v16381_v39 }
0x120e   : > { %6474 = vmatprep.subr.bf16.mxu0 %v16419_v15  ;;  %7135 = vmatpush1.bf16.msra.mxu1 %v14195_v43 }
0x120f   : > { %7136 = vmatprep.subr.bf16.mxu1 %v14203_v18 }
0x1210   : > { %12122 = vmatmul.mubr.msk.bf16.gmra.mrb[68].mxu0 %vm2548_vm8, %v14884_v32 }
0x1211   : > { %6453 = vmatprep.mubr.bf16.mxu0 %v17684_v14 }
0x1218   : > { %12123 = vmatmul.mubr.msk.bf16.vlgmr.msra.gmra.mrb[72].mxu0 %vm2548_vm8, %v14883_v45 }
0x1219   : > { %6475 = vmatpush1.bf16.msra.mxu0 %v16417_v13  ;;  %6463 = vmatprep.mubr.bf16.mxu0 %v17684_v14 }
0x121a   : > { %6476 = vmatprep.subr.bf16.mxu0 %v16429_v54 }
0x121d   : > { %6477 = vmatpush1.bf16.msra.mxu0 %v16427_v57 }
0x121e   : > { %7808 = vmatprep.subr.bf16.mxu0 %v14107_v5  ;;  %v14201_v5 = vld [vmem:[%s15318_s2 + $0x3a0] ss:$8 sps:$4 sm:$0xff]  }
0x121f   : > { %7137 = vmatpush1.bf16.msra.mxu1 %v14201_v5 }
0x1220   : > { %12124 = vmatmul.mubr.msk.bf16.gmra.mrb[76].mxu0 %vm2548_vm8, %v14884_v32 }
0x1221   : > { %6506 = vmatprep.mubr.bf16.mxu0 %v17684_v14 }
0x1228   : > { %12125 = vmatmul.mubr.msk.bf16.vlgmr.msra.gmra.mrb[80].mxu0 %vm2548_vm8, %v14883_v45  ;;  %v14129_v45 = vld [vmem:[%s15318_s2 + $0x180] ss:$8 sps:$4 sm:$0xff]  }
0x1229   : > { %7809 = vmatpush1.bf16.msra.mxu0 %v14105_v31  ;;  %6516 = vmatprep.mubr.bf16.mxu0 %v17684_v14  ;;  %v14209_v31 = vld [vmem:[%s15318_s2 + $0x3b4] ss:$8 sps:$4 sm:$0xff]   ;;  %v14293_v14 = vld [vmem:[%s15318_s2 + $0x4e4] ss:$8 sps:$4 sm:$0xff]  }
0x122a   : > { %7810 = vmatprep.subr.bf16.mxu0 %v14110_v58  ;;  %v14135_v58 = vld [vmem:[%s15318_s2 + $0x1a0] ss:$8 sps:$4 sm:$0xff]   ;;  %7138 = vmatprep.subr.bf16.mxu1 %v14209_v31 }
0x122b   : > { %7139 = vmatpush1.bf16.msra.mxu1 %v14207_v4 }
0x122c   : > { %7140 = vmatprep.subr.bf16.mxu1 %v14215_v42  ;;  %v14176_v42 = vld [vmem:[%s15318_s2 + $0x214] ss:$8 sps:$4 sm:$0xff]  }
0x122d   : > { %7811 = vmatpush1.bf16.msra.mxu0 %v14108_v59  ;;  %v14140_v59 = vld [vmem:[%s15318_s2 + $0x1b4] ss:$8 sps:$4 sm:$0xff]  }
0x122e   : > { %7812 = vmatprep.subr.bf16.mxu0 %v14113_v34  ;;  %v14213_v34 = vld [vmem:[%s15318_s2 + $0x3c0] ss:$8 sps:$4 sm:$0xff]  }
0x122f   : > { %7141 = vmatpush1.bf16.msra.mxu1 %v14213_v34  ;;  %v14168_v34 = vld [vmem:[%s15318_s2 + $0x200] ss:$8 sps:$4 sm:$0xff]  }
0x1230   : > { %12126 = vmatmul.mubr.msk.bf16.gmra.mrb[84].mxu0 %vm2548_vm8, %v14884_v32  ;;  %v14134_v32 = vld [vmem:[%s15318_s2 + $0x194] ss:$8 sps:$4 sm:$0xff]   ;;  %7142 = vmatprep.subr.bf16.mxu1 %v14221_v10 }
0x1231   : > { %7813 = vmatpush1.bf16.msra.mxu0 %v14111_v23  ;;  %v14146_v23 = vld [vmem:[%s15318_s2 + $0x1c4] ss:$8 sps:$4 sm:$0xff]  }
0x1232   : > { %7814 = vmatprep.subr.bf16.mxu0 %v14116_v7  ;;  %v14219_v7 = vld [vmem:[%s15318_s2 + $0x3d0] ss:$8 sps:$4 sm:$0xff]  }
0x1233   : > { %7143 = vmatpush1.bf16.msra.mxu1 %v14219_v7  ;;  %v14182_v7 = vld [vmem:[%s15318_s2 + $0x224] ss:$8 sps:$4 sm:$0xff]  }
0x1234   : > { %7144 = vmatprep.subr.bf16.mxu1 %v14227_v3  ;;  %v14180_v3 = vld [vmem:[%s15318_s2 + $0x220] ss:$8 sps:$4 sm:$0xff]  }
0x1235   : > { %7815 = vmatpush1.bf16.msra.mxu0 %v14114_v11  ;;  %v14152_v11 = vld [vmem:[%s15318_s2 + $0x1d4] ss:$8 sps:$4 sm:$0xff]  }
0x1236   : > { %7816 = vmatprep.subr.bf16.mxu0 %v14119_v48  ;;  %v14225_v48 = vld [vmem:[%s15318_s2 + $0x3e0] ss:$8 sps:$4 sm:$0xff]  }
0x1237   : > { %7145 = vmatpush1.bf16.msra.mxu1 %v14225_v48 }
0x1239   : > { %7817 = vmatpush1.bf16.msra.mxu0 %v14117_v12  ;;  %v14158_v12 = vld [vmem:[%s15318_s2 + $0x1e4] ss:$8 sps:$4 sm:$0xff]  }
0x123a   : > { %7818 = vmatprep.subr.bf16.mxu0 %v14122_v55  ;;  %v14233_v55 = vld [vmem:[%s15318_s2 + $0x3f4] ss:$8 sps:$4 sm:$0xff]  }
0x123b   : > { %7146 = vmatprep.subr.bf16.mxu1 %v14233_v55  ;;  %v14186_v55 = vld [vmem:[%s15318_s2 + $0x230] ss:$8 sps:$4 sm:$0xff]  }
0x123c   : > { %7147 = vmatpush1.bf16.msra.mxu1 %v14231_v16  ;;  %v14192_v16 = vld [vmem:[%s15318_s2 + $0x240] ss:$8 sps:$4 sm:$0xff]  }
0x123d   : > { %7819 = vmatpush1.bf16.msra.mxu0 %v14120_v17  ;;  %v14164_v17 = vld [vmem:[%s15318_s2 + $0x1f4] ss:$8 sps:$4 sm:$0xff]  }
0x123e   : > { %7820 = vmatprep.subr.bf16.mxu0 %v14125_v37  ;;  %v14239_v37 = vld [vmem:[%s15318_s2 + $0x404] ss:$8 sps:$4 sm:$0xff]  }
0x123f   : > { %7169 = vmatprep.subr.bf16.mxu1 %v14239_v37  ;;  %v14198_v37 = vld [vmem:[%s15318_s2 + $0x250] ss:$8 sps:$4 sm:$0xff]  }
0x1241   : > { %7821 = vmatpush1.bf16.msra.mxu0 %v14123_v44 }
0x1242   : > { %7822 = vmatprep.subr.bf16.mxu0 %v14128_v29 }
0x1245   : > { %7823 = vmatpush1.bf16.msra.mxu0 %v14126_v51 }
0x1246   : > { %7824 = vmatprep.subr.bf16.mxu0 %v14131_v53 }
0x1249   : > { %7825 = vmatpush1.bf16.msra.mxu0 %v14129_v45 }
0x124a   : > { %7826 = vmatprep.subr.bf16.mxu0 %v14134_v32 }
0x124d   : > { %7827 = vmatpush1.bf16.msra.mxu0 %v14132_v60 }
0x124e   : > { %7828 = vmatprep.subr.bf16.mxu0 %v14137_v35 }
0x1251   : > { %7829 = vmatpush1.bf16.msra.mxu0 %v14135_v58 }
0x1252   : > { %7830 = vmatprep.subr.bf16.mxu0 %v14140_v59 }
0x1255   : > { %7831 = vmatpush1.bf16.msra.mxu0 %v14138_v25  ;;  %v14174_v25 = vld [vmem:[%s15318_s2 + $0x210] ss:$8 sps:$4 sm:$0xff]  }
0x1256   : > { %7832 = vmatprep.subr.bf16.mxu0 %v14146_v23 }
0x1259   : > { %7833 = vmatpush1.bf16.msra.mxu0 %v14144_v6 }
0x125a   : > { %7834 = vmatprep.subr.bf16.mxu0 %v14152_v11 }
0x125d   : > { %7835 = vmatpush1.bf16.msra.mxu0 %v14150_v40 }
0x125e   : > { %7836 = vmatprep.subr.bf16.mxu0 %v14158_v12  ;;  %v14188_v12 = vld [vmem:[%s15318_s2 + $0x234] ss:$8 sps:$4 sm:$0xff]  }
0x1261   : > { %7837 = vmatpush1.bf16.msra.mxu0 %v14156_v49  ;;  %v14194_v49 = vld [vmem:[%s15318_s2 + $0x244] ss:$8 sps:$4 sm:$0xff]  }
0x1262   : > { %7838 = vmatprep.subr.bf16.mxu0 %v14164_v17  ;;  %v14200_v17 = vld [vmem:[%s15318_s2 + $0x254] ss:$8 sps:$4 sm:$0xff]  }
0x1265   : > { %7839 = vmatpush1.bf16.msra.mxu0 %v14162_v22  ;;  %v14206_v22 = vld [vmem:[%s15318_s2 + $0x264] ss:$8 sps:$4 sm:$0xff]  }
0x1266   : > { %7861 = vmatprep.subr.bf16.mxu0 %v14170_v26  ;;  %v14204_v26 = vld [vmem:[%s15318_s2 + $0x260] ss:$8 sps:$4 sm:$0xff]  }
0x129b   : > { %v16530_v44 = vpop.f32.mrb[40].mxu0 }
0x129c   : > { %v16532_v29 = vpop.f32.mrb[41].mxu0 }
0x129d   : > { %v16534_v63 = vpop.f32.mrb[42].mxu0 }
0x129e   : > { %v6260_v1 = vpack.c.bf16 %v16534_v63, %v16530_v44  ;;  %v16538_v51 = vpop.f32.mrb[43].mxu0  ;;  %v14398_v44 = vld [vmem:[%s15318_s2 + $0x614] ss:$8 sps:$4 sm:$0xff]   ;;  %v14396_v63 = vld [vmem:[%s15318_s2 + $0x610] ss:$8 sps:$4 sm:$0xff]  }
0x129f   : > { %v6261_v53 = vpack.c.bf16 %v16538_v51, %v16532_v29  ;;  %v14363_v29 = vld [vmem:[%s15318_s2 + $0x60] ss:$8 sps:$4 sm:$0xff]   ;;  %v14368_v51 = vld [vmem:[%s15318_s2 + $0x74] ss:$8 sps:$4 sm:$0xff]  }
0x12a3   : > { %v16542_v43 = vpop.f32.mrb[44].mxu0 }
0x12a4   : > { %v16544_v0 = vpop.f32.mrb[45].mxu0 }
0x12a5   : > { %v16546_v45 = vpop.f32.mrb[46].mxu0 }
0x12a6   : > { %v6266_v32 = vpack.c.bf16 %v16546_v45, %v16542_v43  ;;  %v16550_v5 = vpop.f32.mrb[47].mxu0  ;;  %v14402_v43 = vld [vmem:[%s15318_s2 + $0x630] ss:$8 sps:$4 sm:$0xff]   ;;  %v14407_v45 = vld [vmem:[%s15318_s2 + $0x644] ss:$8 sps:$4 sm:$0xff]  }
0x12a7   : > { %v6267_v18 = vpack.c.bf16 %v16550_v5, %v16544_v0  ;;  %v14401_v0 = vld [vmem:[%s15318_s2 + $0x624] ss:$8 sps:$4 sm:$0xff]   ;;  %v14399_v5 = vld [vmem:[%s15318_s2 + $0x620] ss:$8 sps:$4 sm:$0xff]  }
0x12ab   : > { %v6188_v60 = vpop.f32.mrb[48].mxu0 }
0x12ac   : > { %v6190_v35 = vpop.f32.mrb[49].mxu0 }
0x12ad   : > { %v6192_v4 = vpop.f32.mrb[50].mxu0 }
0x12ae   : > { %v6262_v31 = vpack.c.bf16 %v6192_v4, %v6188_v60  ;;  %v6194_v58 = vpop.f32.mrb[51].mxu0  ;;  %v14212_v60 = vld [vmem:[%s15318_s2 + $0x274] ss:$8 sps:$4 sm:$0xff]  }
0x12af   : > { %v6263_v59 = vpack.c.bf16 %v6194_v58, %v6190_v35  ;;  %v14210_v35 = vld [vmem:[%s15318_s2 + $0x270] ss:$8 sps:$4 sm:$0xff]   ;;  %v14218_v58 = vld [vmem:[%s15318_s2 + $0x284] ss:$8 sps:$4 sm:$0xff]  }
0x12b1   : > { %7840 = vmatprep.mubr.bf16.mxu0 %v6263_v59 }
0x12b2   : > { %7841 = vmatmul.mubr.bf16.vlgmr.msra.gmra.mrb[88].mxu0 %v6262_v31 }
0x12b3   : > { %7862 = vmatpush1.bf16.msra.mxu0 %v14168_v34  ;;  %v6198_v23 = vpop.f32.mrb[52].mxu0 }
0x12b4   : > { %7863 = vmatprep.subr.bf16.mxu0 %v14176_v42  ;;  %v6200_v10 = vpop.f32.mrb[53].mxu0 }
0x12b5   : > { %v6202_v6 = vpop.f32.mrb[54].mxu0 }
0x12b6   : > { %v6268_v11 = vpack.c.bf16 %v6202_v6, %v6198_v23  ;;  %v6204_v48 = vpop.f32.mrb[55].mxu0 }
0x12b7   : > { %7864 = vmatpush1.bf16.msra.mxu0 %v14174_v25  ;;  %v6269_v40 = vpack.c.bf16 %v6204_v48, %v6200_v10  ;;  %v14216_v25 = vld [vmem:[%s15318_s2 + $0x280] ss:$8 sps:$4 sm:$0xff]   ;;  %v14222_v10 = vld [vmem:[%s15318_s2 + $0x290] ss:$8 sps:$4 sm:$0xff]   ;;  %v14230_v48 = vld [vmem:[%s15318_s2 + $0x2a4] ss:$8 sps:$4 sm:$0xff]  }
0x12b8   : > { %7865 = vmatprep.subr.bf16.mxu0 %v14182_v7  ;;  %v14224_v7 = vld [vmem:[%s15318_s2 + $0x294] ss:$8 sps:$4 sm:$0xff]  }
0x12b9   : > { %7850 = vmatprep.mubr.bf16.mxu0 %v6269_v40 }
0x12ba   : > { %7851 = vmatmul.mubr.bf16.gmra.mrb[92].mxu0 %v6268_v11 }
0x12bb   : > { %7866 = vmatpush1.bf16.msra.mxu0 %v14180_v3 }
0x12bc   : > { %7867 = vmatprep.subr.bf16.mxu0 %v14188_v12 }
0x12bf   : > { %7868 = vmatpush1.bf16.msra.mxu0 %v14186_v55 }
0x12c0   : > { %7869 = vmatprep.subr.bf16.mxu0 %v14194_v49  ;;  %v14228_v49 = vld [vmem:[%s15318_s2 + $0x2a0] ss:$8 sps:$4 sm:$0xff]  }
0x12c3   : > { %7870 = vmatpush1.bf16.msra.mxu0 %v14192_v16  ;;  %v14236_v16 = vld [vmem:[%s15318_s2 + $0x2b4] ss:$8 sps:$4 sm:$0xff]  }
0x12c4   : > { %7871 = vmatprep.subr.bf16.mxu0 %v14200_v17 }
0x12c7   : > { %7872 = vmatpush1.bf16.msra.mxu0 %v14198_v37  ;;  %v14234_v37 = vld [vmem:[%s15318_s2 + $0x2b0] ss:$8 sps:$4 sm:$0xff]  }
0x12c8   : > { %7873 = vmatprep.subr.bf16.mxu0 %v14206_v22 }
0x12cb   : > { %7874 = vmatpush1.bf16.msra.mxu0 %v14204_v26  ;;  %v16569_v4 = vpop.f32.mrb[56].mxu0  ;;  %v14242_v26 = vld [vmem:[%s15318_s2 + $0x2c4] ss:$8 sps:$4 sm:$0xff]  }
0x12cc   : > { %7875 = vmatprep.subr.bf16.mxu0 %v14212_v60  ;;  %v6243_v31 = vpop.f32.mrb[57].mxu0 }
0x12cd   : > { %v16572_v59 = vpop.f32.mrb[58].mxu0 }
0x12ce   : > { %v6264_v34 = vpack.c.bf16 %v16572_v59, %v16569_v4  ;;  %v6247_v42 = vpop.f32.mrb[59].mxu0 }
0x12cf   : > { %7876 = vmatpush1.bf16.msra.mxu0 %v14210_v35  ;;  %v6265_v23 = vpack.c.bf16 %v6247_v42, %v6243_v31  ;;  %v14237_v42 = vld [vmem:[%s15318_s2 + $0x400] ss:$8 sps:$4 sm:$0xff]  }
0x12d0   : > { %7877 = vmatprep.subr.bf16.mxu0 %v14218_v58 }
0x12d1   : > { %7893 = vmatprep.mubr.bf16.mxu0 %v6265_v23  ;;  %v14245_v23 = vld [vmem:[%s15318_s2 + $0x414] ss:$8 sps:$4 sm:$0xff]  }
0x12d3   : > { %7878 = vmatpush1.bf16.msra.mxu0 %v14216_v25  ;;  %v16579_v6 = vpop.f32.mrb[60].mxu0  ;;  %v14240_v25 = vld [vmem:[%s15318_s2 + $0x2c0] ss:$8 sps:$4 sm:$0xff]  }
0x12d4   : > { %7879 = vmatprep.subr.bf16.mxu0 %v14224_v7  ;;  %v16581_v11 = vpop.f32.mrb[61].mxu0  ;;  %v14248_v7 = vld [vmem:[%s15318_s2 + $0x2d4] ss:$8 sps:$4 sm:$0xff]  }
0x12d5   : > { %v16584_v3 = vpop.f32.mrb[62].mxu0 }
0x12d6   : > { %v6270_v40 = vpack.c.bf16 %v16584_v3, %v16579_v6  ;;  %v16588_v12 = vpop.f32.mrb[63].mxu0  ;;  %v14278_v3 = vld [vmem:[%s15318_s2 + $0x494] ss:$8 sps:$4 sm:$0xff]  }
0x12d7   : > { %7880 = vmatpush1.bf16.msra.mxu0 %v14222_v10  ;;  %v6271_v55 = vpack.c.bf16 %v16588_v12, %v16581_v11  ;;  %v14243_v10 = vld [vmem:[%s15318_s2 + $0x410] ss:$8 sps:$4 sm:$0xff]   ;;  %v14272_v12 = vld [vmem:[%s15318_s2 + $0x474] ss:$8 sps:$4 sm:$0xff]  }
0x12d8   : > { %7881 = vmatprep.subr.bf16.mxu0 %v14230_v48  ;;  %v14246_v48 = vld [vmem:[%s15318_s2 + $0x2d0] ss:$8 sps:$4 sm:$0xff]  }
0x12db   : > { %v6402_v17 = vpop.f32.mrb[64].mxu0  ;;  %7882 = vmatpush1.bf16.msra.mxu0 %v14228_v49 }
0x12dc   : > { %v6404_v22 = vpop.f32.mrb[65].mxu0  ;;  %7883 = vmatprep.subr.bf16.mxu0 %v14236_v16  ;;  %v14251_v16 = vld [vmem:[%s15318_s2 + $0x424] ss:$8 sps:$4 sm:$0xff]  }
0x12dd   : > { %v6406_v60 = vpop.f32.mrb[66].mxu0 }
0x12de   : > { %v6527_v35 = vpack.c.bf16 %v6406_v60, %v6402_v17  ;;  %v6408_v31 = vpop.f32.mrb[67].mxu0  ;;  %v14254_v17 = vld [vmem:[%s15318_s2 + $0x2e4] ss:$8 sps:$4 sm:$0xff]  }
0x12df   : > { %v6528_v58 = vpack.c.bf16 %v6408_v31, %v6404_v22  ;;  %7884 = vmatpush1.bf16.msra.mxu0 %v14234_v37  ;;  %v14252_v31 = vld [vmem:[%s15318_s2 + $0x2e0] ss:$8 sps:$4 sm:$0xff]  }
0x12e0   : > { %7885 = vmatprep.subr.bf16.mxu0 %v14242_v26 }
0x12e1   : > { %7148 = vmatprep.mubr.bf16.mxu1 %v6528_v58 }
0x12e2   : > { %7149 = vmatmul.mubr.bf16.vlgmr.msra.gmra.mrb[88].mxu1 %v6527_v35  ;;  %v14249_v35 = vld [vmem:[%s15318_s2 + $0x420] ss:$8 sps:$4 sm:$0xff]  }
0x12e3   : > { %7170 = vmatpush1.bf16.msra.mxu1 %v14237_v42  ;;  %7886 = vmatpush1.bf16.msra.mxu0 %v14240_v25  ;;  %v6412_v49 = vpop.f32.mrb[68].mxu0  ;;  %v14257_v42 = vld [vmem:[%s15318_s2 + $0x434] ss:$8 sps:$4 sm:$0xff]  }
0x12e4   : > { %7171 = vmatprep.subr.bf16.mxu1 %v14245_v23  ;;  %7887 = vmatprep.subr.bf16.mxu0 %v14248_v7  ;;  %v6414_v37 = vpop.f32.mrb[69].mxu0  ;;  %v14260_v25 = vld [vmem:[%s15318_s2 + $0x2f4] ss:$8 sps:$4 sm:$0xff]   ;;  %v14255_v23 = vld [vmem:[%s15318_s2 + $0x430] ss:$8 sps:$4 sm:$0xff]  }
0x12e5   : > { %v6416_v22 = vpop.f32.mrb[70].mxu0  ;;  %v14258_v7 = vld [vmem:[%s15318_s2 + $0x2f0] ss:$8 sps:$4 sm:$0xff]  }
0x12e6   : > { %v6533_v26 = vpack.c.bf16 %v6416_v22, %v6412_v49  ;;  %v6418_v60 = vpop.f32.mrb[71].mxu0  ;;  %v14261_v22 = vld [vmem:[%s15318_s2 + $0x440] ss:$8 sps:$4 sm:$0xff]  }
0x12e7   : > { %7172 = vmatpush1.bf16.msra.mxu1 %v14243_v10  ;;  %7888 = vmatpush1.bf16.msra.mxu0 %v14246_v48  ;;  %v6534_v58 = vpack.c.bf16 %v6418_v60, %v6414_v37  ;;  %v14263_v10 = vld [vmem:[%s15318_s2 + $0x444] ss:$8 sps:$4 sm:$0xff]   ;;  %v14266_v60 = vld [vmem:[%s15318_s2 + $0x454] ss:$8 sps:$4 sm:$0xff]  }
0x12e8   : > { %7173 = vmatprep.subr.bf16.mxu1 %v14251_v16  ;;  %7889 = vmatprep.subr.bf16.mxu0 %v14254_v17 }
0x12e9   : > { %7158 = vmatprep.mubr.bf16.mxu1 %v6534_v58  ;;  %v14269_v58 = vld [vmem:[%s15318_s2 + $0x464] ss:$8 sps:$4 sm:$0xff]  }
0x12ea   : > { %7159 = vmatmul.mubr.bf16.gmra.mrb[92].mxu1 %v6533_v26 }
0x12eb   : > { %7174 = vmatpush1.bf16.msra.mxu1 %v14249_v35  ;;  %7890 = vmatpush1.bf16.msra.mxu0 %v14252_v31  ;;  %v16610_v49 = vpop.f32.mrb[72].mxu0  ;;  %v14264_v35 = vld [vmem:[%s15318_s2 + $0x450] ss:$8 sps:$4 sm:$0xff]  }
0x12ec   : > { %7175 = vmatprep.subr.bf16.mxu1 %v14257_v42  ;;  %7891 = vmatprep.subr.bf16.mxu0 %v14260_v25  ;;  %v6457_v48 = vpop.f32.mrb[73].mxu0 }
0x12ed   : > { %v16613_v37 = vpop.f32.mrb[74].mxu0 }
0x12ee   : > { %v6529_v16 = vpack.c.bf16 %v16613_v37, %v16610_v49  ;;  %v6461_v17 = vpop.f32.mrb[75].mxu0  ;;  %v14306_v49 = vld [vmem:[%s15318_s2 + $0x530] ss:$8 sps:$4 sm:$0xff]   ;;  %v14311_v37 = vld [vmem:[%s15318_s2 + $0x544] ss:$8 sps:$4 sm:$0xff]  }
0x12ef   : > { %7176 = vmatpush1.bf16.msra.mxu1 %v14255_v23  ;;  %7892 = vmatpush1.bf16.msra.mxu0 %v14258_v7  ;;  %v6530_v26 = vpack.c.bf16 %v6461_v17, %v6457_v48  ;;  %v14275_v7 = vld [vmem:[%s15318_s2 + $0x484] ss:$8 sps:$4 sm:$0xff]  }
0x12f0   : > { %7177 = vmatprep.subr.bf16.mxu1 %v14263_v10 }
0x12f1   : > { %7201 = vmatprep.mubr.bf16.mxu1 %v6530_v26  ;;  %v14273_v26 = vld [vmem:[%s15318_s2 + $0x480] ss:$8 sps:$4 sm:$0xff]  }
0x12f2   : > { %7894 = vmatmul.mubr.bf16.vlgmr.msra.gmra.mrb[88].mxu0 %v6264_v34  ;;  %v14267_v34 = vld [vmem:[%s15318_s2 + $0x460] ss:$8 sps:$4 sm:$0xff]  }
0x12f3   : > { %7178 = vmatpush1.bf16.msra.mxu1 %v14261_v22  ;;  %7903 = vmatprep.mubr.bf16.mxu0 %v6271_v55  ;;  %v16626_v31 = vpop.f32.mrb[76].mxu0  ;;  %v14270_v55 = vld [vmem:[%s15318_s2 + $0x470] ss:$8 sps:$4 sm:$0xff]  }
0x12f4   : > { %7179 = vmatprep.subr.bf16.mxu1 %v14266_v60  ;;  %v16629_v42 = vpop.f32.mrb[77].mxu0 }
0x12f5   : > { %v16631_v25 = vpop.f32.mrb[78].mxu0 }
0x12f6   : > { %v6535_v4 = vpack.c.bf16 %v16631_v25, %v16626_v31  ;;  %v6471_v59 = vpop.f32.mrb[79].mxu0  ;;  %v14317_v31 = vld [vmem:[%s15318_s2 + $0x564] ss:$8 sps:$4 sm:$0xff]   ;;  %v14315_v25 = vld [vmem:[%s15318_s2 + $0x560] ss:$8 sps:$4 sm:$0xff]  }
0x12f7   : > { %7180 = vmatpush1.bf16.msra.mxu1 %v14264_v35  ;;  %v6536_v11 = vpack.c.bf16 %v6471_v59, %v16629_v42  ;;  %v14281_v35 = vld [vmem:[%s15318_s2 + $0x4a4] ss:$8 sps:$4 sm:$0xff]  }
0x12f8   : > { %7181 = vmatprep.subr.bf16.mxu1 %v14269_v58 }
0x12fa   : > { %7904 = vmatmul.mubr.bf16.gmra.mrb[92].mxu0 %v6270_v40  ;;  %v14276_v40 = vld [vmem:[%s15318_s2 + $0x490] ss:$8 sps:$4 sm:$0xff]  }
0x12fb   : > { %7182 = vmatpush1.bf16.msra.mxu1 %v14267_v34  ;;  %v16642_v23 = vpop.f32.mrb[80].mxu0 }
0x12fc   : > { %7183 = vmatprep.subr.bf16.mxu1 %v14272_v12  ;;  %v6510_v10 = vpop.f32.mrb[81].mxu0  ;;  %v14279_v12 = vld [vmem:[%s15318_s2 + $0x4a0] ss:$8 sps:$4 sm:$0xff]  }
0x12fd   : > { %v16645_v48 = vpop.f32.mrb[82].mxu0 }
0x12fe   : > { %v6531_v17 = vpack.c.bf16 %v16645_v48, %v16642_v23  ;;  %v6514_v22 = vpop.f32.mrb[83].mxu0  ;;  %v14354_v23 = vld [vmem:[%s15318_s2 + $0x30] ss:$8 sps:$4 sm:$0xff]   ;;  %v14359_v48 = vld [vmem:[%s15318_s2 + $0x44] ss:$8 sps:$4 sm:$0xff]  }
0x12ff   : > { %7184 = vmatpush1.bf16.msra.mxu1 %v14270_v55  ;;  %v6532_v6 = vpack.c.bf16 %v6514_v22, %v6510_v10  ;;  %v14282_v10 = vld [vmem:[%s15318_s2 + $0x4b0] ss:$8 sps:$4 sm:$0xff]   ;;  %v14287_v22 = vld [vmem:[%s15318_s2 + $0x4c4] ss:$8 sps:$4 sm:$0xff]  }
0x1300   : > { %7185 = vmatprep.subr.bf16.mxu1 %v14275_v7  ;;  %v14284_v7 = vld [vmem:[%s15318_s2 + $0x4b4] ss:$8 sps:$4 sm:$0xff]  }
0x1303   : > { %7186 = vmatpush1.bf16.msra.mxu1 %v14273_v26  ;;  %v16652_v60 = vpop.f32.mrb[84].mxu0  ;;  %v14285_v26 = vld [vmem:[%s15318_s2 + $0x4c0] ss:$8 sps:$4 sm:$0xff]  }
0x1304   : > { %7187 = vmatprep.subr.bf16.mxu1 %v14278_v3  ;;  %v16655_v58 = vpop.f32.mrb[85].mxu0  ;;  %v14290_v3 = vld [vmem:[%s15318_s2 + $0x4d4] ss:$8 sps:$4 sm:$0xff]  }
0x1305   : > { %v16657_v42 = vpop.f32.mrb[86].mxu0 }
0x1306   : > { %v6537_v59 = vpack.c.bf16 %v16657_v42, %v16652_v60  ;;  %v16661_v34 = vpop.f32.mrb[87].mxu0  ;;  %v14360_v60 = vld [vmem:[%s15318_s2 + $0x50] ss:$8 sps:$4 sm:$0xff]   ;;  %v14365_v42 = vld [vmem:[%s15318_s2 + $0x64] ss:$8 sps:$4 sm:$0xff]  }
0x1307   : > { %7188 = vmatpush1.bf16.msra.mxu1 %v14276_v40  ;;  %v6538_v55 = vpack.c.bf16 %v16661_v34, %v16655_v58  ;;  %v14288_v40 = vld [vmem:[%s15318_s2 + $0x4d0] ss:$8 sps:$4 sm:$0xff]   ;;  %v14362_v58 = vld [vmem:[%s15318_s2 + $0x54] ss:$8 sps:$4 sm:$0xff]   ;;  %v14369_v34 = vld [vmem:[%s15318_s2 + $0x80] ss:$8 sps:$4 sm:$0xff]  }
0x1308   : > { %7189 = vmatprep.subr.bf16.mxu1 %v14281_v35  ;;  %v14291_v35 = vld [vmem:[%s15318_s2 + $0x4e0] ss:$8 sps:$4 sm:$0xff]  }
0x130b   : > { %7190 = vmatpush1.bf16.msra.mxu1 %v14279_v12  ;;  %v14296_v12 = vld [vmem:[%s15318_s2 + $0x4f4] ss:$8 sps:$4 sm:$0xff]  }
0x130c   : > { %7191 = vmatprep.subr.bf16.mxu1 %v14284_v7  ;;  %v14294_v7 = vld [vmem:[%s15318_s2 + $0x4f0] ss:$8 sps:$4 sm:$0xff]  }
0x130f   : > { %7192 = vmatpush1.bf16.msra.mxu1 %v14282_v10  ;;  %v14299_v10 = vld [vmem:[%s15318_s2 + $0x504] ss:$8 sps:$4 sm:$0xff]  }
0x1310   : > { %7193 = vmatprep.subr.bf16.mxu1 %v14287_v22  ;;  %v14297_v22 = vld [vmem:[%s15318_s2 + $0x500] ss:$8 sps:$4 sm:$0xff]  }
0x1313   : > { %7194 = vmatpush1.bf16.msra.mxu1 %v14285_v26  ;;  %v14302_v26 = vld [vmem:[%s15318_s2 + $0x514] ss:$8 sps:$4 sm:$0xff]  }
0x1314   : > { %7195 = vmatprep.subr.bf16.mxu1 %v14290_v3  ;;  %v14305_v3 = vld [vmem:[%s15318_s2 + $0x524] ss:$8 sps:$4 sm:$0xff]  }
0x1317   : > { %7196 = vmatpush1.bf16.msra.mxu1 %v14288_v40  ;;  %v14303_v40 = vld [vmem:[%s15318_s2 + $0x520] ss:$8 sps:$4 sm:$0xff]  }
0x1318   : > { %7197 = vmatprep.subr.bf16.mxu1 %v14293_v14  ;;  %v14300_v14 = vld [vmem:[%s15318_s2 + $0x510] ss:$8 sps:$4 sm:$0xff]  }
0x131b   : > { %7198 = vmatpush1.bf16.msra.mxu1 %v14291_v35  ;;  %v14308_v35 = vld [vmem:[%s15318_s2 + $0x534] ss:$8 sps:$4 sm:$0xff]  }
0x131c   : > { %7199 = vmatprep.subr.bf16.mxu1 %v14296_v12  ;;  %v14312_v12 = vld [vmem:[%s15318_s2 + $0x550] ss:$8 sps:$4 sm:$0xff]  }
0x131f   : > { %7200 = vmatpush1.bf16.msra.mxu1 %v14294_v7  ;;  %v14323_v7 = vld [vmem:[%s15318_s2 + $0x584] ss:$8 sps:$4 sm:$0xff]  }
0x1320   : > { %7222 = vmatprep.subr.bf16.mxu1 %v14299_v10  ;;  %v14321_v10 = vld [vmem:[%s15318_s2 + $0x580] ss:$8 sps:$4 sm:$0xff]  }
0x1322   : > { %7202 = vmatmul.mubr.bf16.vlgmr.msra.gmra.mrb[88].mxu1 %v6529_v16  ;;  %v14309_v16 = vld [vmem:[%s15318_s2 + $0x540] ss:$8 sps:$4 sm:$0xff]  }
0x1323   : > { %7223 = vmatpush1.bf16.msra.mxu1 %v14297_v22  ;;  %7211 = vmatprep.mubr.bf16.mxu1 %v6536_v11  ;;  %v14314_v11 = vld [vmem:[%s15318_s2 + $0x554] ss:$8 sps:$4 sm:$0xff]  }
0x1324   : > { %7224 = vmatprep.subr.bf16.mxu1 %v14302_v26  ;;  %v14326_v22 = vld [vmem:[%s15318_s2 + $0x594] ss:$8 sps:$4 sm:$0xff]   ;;  %v14324_v26 = vld [vmem:[%s15318_s2 + $0x590] ss:$8 sps:$4 sm:$0xff]  }
0x1327   : > { %7225 = vmatpush1.bf16.msra.mxu1 %v14300_v14  ;;  %v14329_v14 = vld [vmem:[%s15318_s2 + $0x5a4] ss:$8 sps:$4 sm:$0xff]  }
0x1328   : > { %7226 = vmatprep.subr.bf16.mxu1 %v14305_v3  ;;  %v14327_v3 = vld [vmem:[%s15318_s2 + $0x5a0] ss:$8 sps:$4 sm:$0xff]  }
0x132a   : > { %7212 = vmatmul.mubr.bf16.gmra.mrb[92].mxu1 %v6535_v4  ;;  %v14320_v4 = vld [vmem:[%s15318_s2 + $0x574] ss:$8 sps:$4 sm:$0xff]  }
0x132b   : > { %7227 = vmatpush1.bf16.msra.mxu1 %v14303_v40  ;;  %7254 = vmatprep.mubr.bf16.mxu1 %v6532_v6  ;;  %v14318_v6 = vld [vmem:[%s15318_s2 + $0x570] ss:$8 sps:$4 sm:$0xff]   ;;  %v14332_v40 = vld [vmem:[%s15318_s2 + $0x5b4] ss:$8 sps:$4 sm:$0xff]  }
0x132c   : > { %7228 = vmatprep.subr.bf16.mxu1 %v14308_v35  ;;  %v14330_v35 = vld [vmem:[%s15318_s2 + $0x5b0] ss:$8 sps:$4 sm:$0xff]  }
0x132f   : > { %7229 = vmatpush1.bf16.msra.mxu1 %v14306_v49  ;;  %v14335_v49 = vld [vmem:[%s15318_s2 + $0x5c4] ss:$8 sps:$4 sm:$0xff]  }
0x1330   : > { %7230 = vmatprep.subr.bf16.mxu1 %v14311_v37  ;;  %v14333_v37 = vld [vmem:[%s15318_s2 + $0x5c0] ss:$8 sps:$4 sm:$0xff]  }
0x1333   : > { %7231 = vmatpush1.bf16.msra.mxu1 %v14309_v16  ;;  %v14338_v16 = vld [vmem:[%s15318_s2 + $0x5d4] ss:$8 sps:$4 sm:$0xff]  }
0x1334   : > { %7232 = vmatprep.subr.bf16.mxu1 %v14314_v11  ;;  %v14336_v11 = vld [vmem:[%s15318_s2 + $0x5d0] ss:$8 sps:$4 sm:$0xff]  }
0x1337   : > { %7233 = vmatpush1.bf16.msra.mxu1 %v14312_v12  ;;  %v14341_v12 = vld [vmem:[%s15318_s2 + $0x5e4] ss:$8 sps:$4 sm:$0xff]  }
0x1338   : > { %7234 = vmatprep.subr.bf16.mxu1 %v14317_v31  ;;  %v14339_v31 = vld [vmem:[%s15318_s2 + $0x5e0] ss:$8 sps:$4 sm:$0xff]  }
0x133b   : > { %7235 = vmatpush1.bf16.msra.mxu1 %v14315_v25  ;;  %v14344_v25 = vld [vmem:[%s15318_s2 + $0x5f4] ss:$8 sps:$4 sm:$0xff]  }
0x133c   : > { %7236 = vmatprep.subr.bf16.mxu1 %v14320_v4  ;;  %v14342_v4 = vld [vmem:[%s15318_s2 + $0x5f0] ss:$8 sps:$4 sm:$0xff]  }
0x133f   : > { %7237 = vmatpush1.bf16.msra.mxu1 %v14318_v6  ;;  %v14347_v6 = vld [vmem:[%s15318_s2 + $0x4] ss:$8 sps:$4 sm:$0xff]  }
0x1340   : > { %7238 = vmatprep.subr.bf16.mxu1 %v14323_v7  ;;  %v14345_v7 = vld [vmem:[%s15318_s2] ss:$8 sps:$4 sm:$0xff]  }
0x1343   : > { %7239 = vmatpush1.bf16.msra.mxu1 %v14321_v10  ;;  %v14350_v10 = vld [vmem:[%s15318_s2 + $0x14] ss:$8 sps:$4 sm:$0xff]  }
0x1344   : > { %7240 = vmatprep.subr.bf16.mxu1 %v14326_v22  ;;  %v14348_v22 = vld [vmem:[%s15318_s2 + $0x10] ss:$8 sps:$4 sm:$0xff]  }
0x1347   : > { %7241 = vmatpush1.bf16.msra.mxu1 %v14324_v26  ;;  %v14353_v26 = vld [vmem:[%s15318_s2 + $0x24] ss:$8 sps:$4 sm:$0xff]  }
0x1348   : > { %7242 = vmatprep.subr.bf16.mxu1 %v14329_v14  ;;  %v14351_v14 = vld [vmem:[%s15318_s2 + $0x20] ss:$8 sps:$4 sm:$0xff]  }
0x134b   : > { %7243 = vmatpush1.bf16.msra.mxu1 %v14327_v3  ;;  %v14356_v3 = vld [vmem:[%s15318_s2 + $0x34] ss:$8 sps:$4 sm:$0xff]  }
0x134c   : > { %7244 = vmatprep.subr.bf16.mxu1 %v14332_v40  ;;  %v14372_v40 = vld [vmem:[%s15318_s2 + $0x90] ss:$8 sps:$4 sm:$0xff]  }
0x134f   : > { %7245 = vmatpush1.bf16.msra.mxu1 %v14330_v35  ;;  %v14377_v35 = vld [vmem:[%s15318_s2 + $0xa4] ss:$8 sps:$4 sm:$0xff]  }
0x1350   : > { %7246 = vmatprep.subr.bf16.mxu1 %v14335_v49  ;;  %v14375_v49 = vld [vmem:[%s15318_s2 + $0xa0] ss:$8 sps:$4 sm:$0xff]  }
0x1353   : > { %7247 = vmatpush1.bf16.msra.mxu1 %v14333_v37  ;;  %v14380_v37 = vld [vmem:[%s15318_s2 + $0xb4] ss:$8 sps:$4 sm:$0xff]  }
0x1354   : > { %7248 = vmatprep.subr.bf16.mxu1 %v14338_v16  ;;  %v14378_v16 = vld [vmem:[%s15318_s2 + $0xb0] ss:$8 sps:$4 sm:$0xff]  }
0x1357   : > { %7249 = vmatpush1.bf16.msra.mxu1 %v14336_v11  ;;  %v14383_v11 = vld [vmem:[%s15318_s2 + $0xc4] ss:$8 sps:$4 sm:$0xff]  }
0x1358   : > { %7250 = vmatprep.subr.bf16.mxu1 %v14341_v12  ;;  %v14381_v12 = vld [vmem:[%s15318_s2 + $0xc0] ss:$8 sps:$4 sm:$0xff]  }
0x135b   : > { %7251 = vmatpush1.bf16.msra.mxu1 %v14339_v31  ;;  %v14386_v31 = vld [vmem:[%s15318_s2 + $0xd4] ss:$8 sps:$4 sm:$0xff]  }
0x135c   : > { %7252 = vmatprep.subr.bf16.mxu1 %v14344_v25  ;;  %v14384_v25 = vld [vmem:[%s15318_s2 + $0xd0] ss:$8 sps:$4 sm:$0xff]  }
0x135f   : > { %7253 = vmatpush1.bf16.msra.mxu1 %v14342_v4  ;;  %v14389_v4 = vld [vmem:[%s15318_s2 + $0xe4] ss:$8 sps:$4 sm:$0xff]  }
0x1360   : > { %7755 = vmatprep.subr.bf16.mxu1 %v14347_v6  ;;  %v14387_v6 = vld [vmem:[%s15318_s2 + $0xe0] ss:$8 sps:$4 sm:$0xff]  }
0x1362   : > { %7255 = vmatmul.mubr.bf16.vlgmr.msra.gmra.mrb[88].mxu1 %v6531_v17  ;;  %v14357_v17 = vld [vmem:[%s15318_s2 + $0x40] ss:$8 sps:$4 sm:$0xff]  }
0x1363   : > { %7756 = vmatpush1.bf16.msra.mxu1 %v14345_v7  ;;  %7264 = vmatprep.mubr.bf16.mxu1 %v6538_v55  ;;  %v14374_v55 = vld [vmem:[%s15318_s2 + $0x94] ss:$8 sps:$4 sm:$0xff]  }
0x1364   : > { %7757 = vmatprep.subr.bf16.mxu1 %v14350_v10  ;;  %v14392_v7 = vld [vmem:[%s15318_s2 + $0xf4] ss:$8 sps:$4 sm:$0xff]   ;;  %v14390_v10 = vld [vmem:[%s15318_s2 + $0xf0] ss:$8 sps:$4 sm:$0xff]  }
0x1367   : > { %7758 = vmatpush1.bf16.msra.mxu1 %v14348_v22  ;;  %v14393_v22 = vld [vmem:[%s15318_s2 + $0x600] ss:$8 sps:$4 sm:$0xff]  }
0x1368   : > { %7759 = vmatprep.subr.bf16.mxu1 %v14353_v26  ;;  %v14395_v26 = vld [vmem:[%s15318_s2 + $0x604] ss:$8 sps:$4 sm:$0xff]  }
0x1369   : > { %8662 = vmatprep.subr.bf16.mxu0 %v14395_v26 }
0x136a   : > { %7265 = vmatmul.mubr.bf16.gmra.mrb[92].mxu1 %v6537_v59  ;;  %v14371_v59 = vld [vmem:[%s15318_s2 + $0x84] ss:$8 sps:$4 sm:$0xff]   ;;  %8663 = vmatpush1.bf16.msra.mxu0 %v14393_v22 }
0x136b   : > { %7760 = vmatpush1.bf16.msra.mxu1 %v14351_v14  ;;  %7787 = vmatprep.mubr.bf16.mxu1 %v6261_v53  ;;  %v14366_v53 = vld [vmem:[%s15318_s2 + $0x70] ss:$8 sps:$4 sm:$0xff]   ;;  %v14885_v14 = vld [vmem:[%s17731_s5 + $0x20] sm:$0xff]  }
0x136c   : > { %7761 = vmatprep.subr.bf16.mxu1 %v14356_v3  ;;  %8664 = vmatprep.subr.bf16.mxu0 %v14398_v44  ;;  %v14410_v3 = vld [vmem:[%s15318_s2 + $0x654] ss:$8 sps:$4 sm:$0xff]  }
0x136e   : > { %8665 = vmatpush1.bf16.msra.mxu0 %v14396_v63 }
0x136f   : > { %7762 = vmatpush1.bf16.msra.mxu1 %v14354_v23  ;;  %8666 = vmatprep.subr.bf16.mxu0 %v14401_v0  ;;  %v14886_v23 = vld [vmem:[%s17731_s5 + $0x28] sm:$0xff]   ;;  %v14446_v0 = vld [vmem:[%s15318_s2 + $0x714] ss:$8 sps:$4 sm:$0xff]  }
0x1370   : > { %7763 = vmatprep.subr.bf16.mxu1 %v14359_v48  ;;  %v14408_v48 = vld [vmem:[%s15318_s2 + $0x650] ss:$8 sps:$4 sm:$0xff]  }
0x1372   : > { %8667 = vmatpush1.bf16.msra.mxu0 %v14399_v5  ;;  %v14444_v5 = vld [vmem:[%s15318_s2 + $0x710] ss:$8 sps:$4 sm:$0xff]  }
0x1373   : > { %7764 = vmatpush1.bf16.msra.mxu1 %v14357_v17  ;;  %v14413_v17 = vld [vmem:[%s15318_s2 + $0x664] ss:$8 sps:$4 sm:$0xff]  }
0x1374   : > { %7765 = vmatprep.subr.bf16.mxu1 %v14362_v58  ;;  %v14411_v58 = vld [vmem:[%s15318_s2 + $0x660] ss:$8 sps:$4 sm:$0xff]  }
0x1377   : > { %7766 = vmatpush1.bf16.msra.mxu1 %v14360_v60  ;;  %v14416_v60 = vld [vmem:[%s15318_s2 + $0x674] ss:$8 sps:$4 sm:$0xff]  }
0x1378   : > { %7767 = vmatprep.subr.bf16.mxu1 %v14365_v42  ;;  %v14414_v42 = vld [vmem:[%s15318_s2 + $0x670] ss:$8 sps:$4 sm:$0xff]  }
0x137b   : > { %7768 = vmatpush1.bf16.msra.mxu1 %v14363_v29  ;;  %v14419_v29 = vld [vmem:[%s15318_s2 + $0x684] ss:$8 sps:$4 sm:$0xff]  }
0x137c   : > { %7769 = vmatprep.subr.bf16.mxu1 %v14368_v51  ;;  %v14417_v51 = vld [vmem:[%s15318_s2 + $0x680] ss:$8 sps:$4 sm:$0xff]  }
0x137f   : > { %7770 = vmatpush1.bf16.msra.mxu1 %v14366_v53  ;;  %v14422_v53 = vld [vmem:[%s15318_s2 + $0x694] ss:$8 sps:$4 sm:$0xff]  }
0x1380   : > { %7771 = vmatprep.subr.bf16.mxu1 %v14371_v59  ;;  %v14420_v59 = vld [vmem:[%s15318_s2 + $0x690] ss:$8 sps:$4 sm:$0xff]  }
0x1383   : > { %7772 = vmatpush1.bf16.msra.mxu1 %v14369_v34  ;;  %v14425_v34 = vld [vmem:[%s15318_s2 + $0x6a4] ss:$8 sps:$4 sm:$0xff]  }
0x1384   : > { %7773 = vmatprep.subr.bf16.mxu1 %v14374_v55  ;;  %v14423_v55 = vld [vmem:[%s15318_s2 + $0x6a0] ss:$8 sps:$4 sm:$0xff]  }
0x1387   : > { %7774 = vmatpush1.bf16.msra.mxu1 %v14372_v40  ;;  %v14887_v40 = vld [vmem:[%s17731_s5 + $0x30] sm:$0xff]  }
0x1388   : > { %7775 = vmatprep.subr.bf16.mxu1 %v14377_v35  ;;  %v14888_v35 = vld [vmem:[%s17731_s5 + $0x38] sm:$0xff]  }
0x138b   : > { %7776 = vmatpush1.bf16.msra.mxu1 %v14375_v49  ;;  %v14428_v49 = vld [vmem:[%s15318_s2 + $0x6b4] ss:$8 sps:$4 sm:$0xff]  }
0x138c   : > { %7777 = vmatprep.subr.bf16.mxu1 %v14380_v37  ;;  %v14426_v37 = vld [vmem:[%s15318_s2 + $0x6b0] ss:$8 sps:$4 sm:$0xff]  }
0x138f   : > { %7778 = vmatpush1.bf16.msra.mxu1 %v14378_v16  ;;  %v14431_v16 = vld [vmem:[%s15318_s2 + $0x6c4] ss:$8 sps:$4 sm:$0xff]  }
0x1390   : > { %7779 = vmatprep.subr.bf16.mxu1 %v14383_v11  ;;  %v14429_v11 = vld [vmem:[%s15318_s2 + $0x6c0] ss:$8 sps:$4 sm:$0xff]  }
0x1393   : > { %7780 = vmatpush1.bf16.msra.mxu1 %v14381_v12  ;;  %v14434_v12 = vld [vmem:[%s15318_s2 + $0x6d4] ss:$8 sps:$4 sm:$0xff]  }
0x1394   : > { %7781 = vmatprep.subr.bf16.mxu1 %v14386_v31  ;;  %v14432_v31 = vld [vmem:[%s15318_s2 + $0x6d0] ss:$8 sps:$4 sm:$0xff]  }
0x1397   : > { %7782 = vmatpush1.bf16.msra.mxu1 %v14384_v25  ;;  %v14437_v25 = vld [vmem:[%s15318_s2 + $0x6e4] ss:$8 sps:$4 sm:$0xff]  }
0x1398   : > { %7783 = vmatprep.subr.bf16.mxu1 %v14389_v4  ;;  %v14435_v4 = vld [vmem:[%s15318_s2 + $0x6e0] ss:$8 sps:$4 sm:$0xff]  }
0x139b   : > { %7784 = vmatpush1.bf16.msra.mxu1 %v14387_v6  ;;  %v14438_v6 = vld [vmem:[%s15318_s2 + $0x6f0] ss:$8 sps:$4 sm:$0xff]  }
0x139c   : > { %7785 = vmatprep.subr.bf16.mxu1 %v14392_v7  ;;  %v14443_v7 = vld [vmem:[%s15318_s2 + $0x704] ss:$8 sps:$4 sm:$0xff]  }
0x139f   : > { %7786 = vmatpush1.bf16.msra.mxu1 %v14390_v10 }
0x13a0   : > { %7914 = vmatprep.subr.bf16.mxu1 %v16365_v52 }
0x13a2   : > { %7788 = vmatmul.mubr.bf16.vlgmr.msra.gmra.mrb[88].mxu1 %v6260_v1  ;;  %v17732_v1 = vmov 0  }
0x13a3   : > { %7797 = vmatprep.mubr.bf16.mxu1 %v6267_v18  ;;  %7915 = vmatpush1.bf16.msra.mxu1 %v16361_v21  ;;  %v14404_v18 = vld [vmem:[%s15318_s2 + $0x634] ss:$8 sps:$4 sm:$0xff]  }
0x13a4   : > { %7916 = vmatprep.subr.bf16.mxu1 %v16383_v50  ;;  %8668 = vmatprep.subr.bf16.mxu0 %v14404_v18 }
0x13a5   : > { %8669 = vmatpush1.bf16.msra.mxu0 %v14402_v43 }
0x13a6   : > { %8670 = vmatprep.subr.bf16.mxu0 %v14407_v45 }
0x13a7   : > { %7917 = vmatpush1.bf16.msra.mxu1 %v16379_v36 }
0x13a8   : > { %7967 = vmatprep.subr.bf16.mxu1 %v16367_v24 }
0x13aa   : > { %7798 = vmatmul.mubr.bf16.gmra.mrb[92].mxu1 %v6266_v32  ;;  %v14405_v32 = vld [vmem:[%s15318_s2 + $0x640] ss:$8 sps:$4 sm:$0xff]  }
0x13ab   : > { %7946 = vmatprep.mubr.bf16.mxu1 %v17732_v1  ;;  %8671 = vmatpush1.bf16.msra.mxu0 %v14405_v32 }
0x13ac   : > { %8672 = vmatprep.subr.bf16.mxu0 %v14410_v3 }
0x13af   : > { %8673 = vmatpush1.bf16.msra.mxu0 %v14408_v48 }
0x13b0   : > { %8674 = vmatprep.subr.bf16.mxu0 %v14413_v17  ;;  %v14452_v17 = vld [vmem:[%s15318_s2 + $0x734] ss:$8 sps:$4 sm:$0xff]  }
0x13b2   : > { %12415 = vmatmul.mubr.msk.bf16.vlgmr.msra.gmra.mrb[96].mxu1 %vm2548_vm8, %v14885_v14 }
0x13b3   : > { %7968 = vmatpush1.bf16.msra.mxu1 %v16363_v41  ;;  %7956 = vmatprep.mubr.bf16.mxu1 %v17732_v1 }
0x13b4   : > { %7969 = vmatprep.subr.bf16.mxu1 %v16385_v28  ;;  %8675 = vmatpush1.bf16.msra.mxu0 %v14411_v58  ;;  %v14450_v58 = vld [vmem:[%s15318_s2 + $0x730] ss:$8 sps:$4 sm:$0xff]  }
0x13b5   : > { %8676 = vmatprep.subr.bf16.mxu0 %v14416_v60 }
0x13b7   : > { %7970 = vmatpush1.bf16.msra.mxu1 %v16381_v39 }
0x13b8   : > { %8020 = vmatprep.subr.bf16.mxu1 %v16419_v15  ;;  %8677 = vmatpush1.bf16.msra.mxu0 %v14414_v42  ;;  %v14455_v42 = vld [vmem:[%s15318_s2 + $0x744] ss:$8 sps:$4 sm:$0xff]  }
0x13b9   : > { %8678 = vmatprep.subr.bf16.mxu0 %v14419_v29 }
0x13ba   : > { %12416 = vmatmul.mubr.msk.bf16.gmra.mrb[100].mxu1 %vm2548_vm8, %v14886_v23 }
0x13bb   : > { %7999 = vmatprep.mubr.bf16.mxu1 %v17732_v1 }
0x13bc   : > { %8679 = vmatpush1.bf16.msra.mxu0 %v14417_v51 }
0x13bd   : > { %8680 = vmatprep.subr.bf16.mxu0 %v14422_v53 }
0x13c0   : > { %8681 = vmatpush1.bf16.msra.mxu0 %v14420_v59 }
0x13c1   : > { %8682 = vmatprep.subr.bf16.mxu0 %v14425_v34  ;;  %v14453_v34 = vld [vmem:[%s15318_s2 + $0x740] ss:$8 sps:$4 sm:$0xff]  }
0x13c2   : > { %12417 = vmatmul.mubr.msk.bf16.vlgmr.msra.gmra.mrb[104].mxu1 %vm2548_vm8, %v14885_v14 }
0x13c3   : > { %8021 = vmatpush1.bf16.msra.mxu1 %v16417_v13  ;;  %8009 = vmatprep.mubr.bf16.mxu1 %v17732_v1 }
0x13c4   : > { %8022 = vmatprep.subr.bf16.mxu1 %v16429_v54  ;;  %8683 = vmatpush1.bf16.msra.mxu0 %v14423_v55 }
0x13c5   : > { %8684 = vmatprep.subr.bf16.mxu0 %v14428_v49 }
0x13c7   : > { %8023 = vmatpush1.bf16.msra.mxu1 %v16427_v57 }
0x13c8   : > { %8829 = vmatprep.subr.bf16.mxu1 %v16365_v52  ;;  %8685 = vmatpush1.bf16.msra.mxu0 %v14426_v37  ;;  %v14461_v37 = vld [vmem:[%s15318_s2 + $0x764] ss:$8 sps:$4 sm:$0xff]  }
0x13c9   : > { %8686 = vmatprep.subr.bf16.mxu0 %v14431_v16 }
0x13ca   : > { %12418 = vmatmul.mubr.msk.bf16.gmra.mrb[108].mxu1 %vm2548_vm8, %v14886_v23 }
0x13cb   : > { %8052 = vmatprep.mubr.bf16.mxu1 %v17732_v1 }
0x13cc   : > { %8687 = vmatpush1.bf16.msra.mxu0 %v14429_v11 }
0x13cd   : > { %8688 = vmatprep.subr.bf16.mxu0 %v14434_v12 }
0x13d0   : > { %8689 = vmatpush1.bf16.msra.mxu0 %v14432_v31 }
0x13d1   : > { %8690 = vmatprep.subr.bf16.mxu0 %v14437_v25  ;;  %v14459_v25 = vld [vmem:[%s15318_s2 + $0x760] ss:$8 sps:$4 sm:$0xff]  }
0x13d2   : > { %12419 = vmatmul.mubr.msk.bf16.vlgmr.msra.gmra.mrb[112].mxu1 %vm2548_vm8, %v14885_v14  ;;  %v14449_v14 = vld [vmem:[%s15318_s2 + $0x724] ss:$8 sps:$4 sm:$0xff]  }
0x13d3   : > { %8830 = vmatpush1.bf16.msra.mxu1 %v16361_v21  ;;  %8062 = vmatprep.mubr.bf16.mxu1 %v17732_v1 }
0x13d4   : > { %8831 = vmatprep.subr.bf16.mxu1 %v16383_v50  ;;  %8691 = vmatpush1.bf16.msra.mxu0 %v14435_v4 }
0x13d7   : > { %8832 = vmatpush1.bf16.msra.mxu1 %v16379_v36 }
0x13d8   : > { %8882 = vmatprep.subr.bf16.mxu1 %v16367_v24 }
0x13da   : > { %12420 = vmatmul.mubr.msk.bf16.gmra.mrb[116].mxu1 %vm2548_vm8, %v14886_v23  ;;  %v14447_v23 = vld [vmem:[%s15318_s2 + $0x720] ss:$8 sps:$4 sm:$0xff]  }
0x13db   : > { %8861 = vmatprep.mubr.bf16.mxu1 %v17732_v1 }
0x13e2   : > { %12613 = vmatmul.mubr.msk.bf16.vlgmr.msra.gmra.mrb[120].mxu1 %vm2548_vm8, %v14887_v40 }
0x13e3   : > { %8883 = vmatpush1.bf16.msra.mxu1 %v16363_v41  ;;  %8871 = vmatprep.mubr.bf16.mxu1 %v17732_v1 }
0x13e4   : > { %8884 = vmatprep.subr.bf16.mxu1 %v16385_v28 }
0x13e7   : > { %8885 = vmatpush1.bf16.msra.mxu1 %v16381_v39 }
0x13e8   : > { %8935 = vmatprep.subr.bf16.mxu1 %v16419_v15 }
0x13ea   : > { %12614 = vmatmul.mubr.msk.bf16.gmra.mrb[124].mxu1 %vm2548_vm8, %v14888_v35 }
0x13eb   : > { %8914 = vmatprep.mubr.bf16.mxu1 %v17732_v1 }
0x13f2   : > { %12615 = vmatmul.mubr.msk.bf16.vlgmr.msra.gmra.mrb[128].mxu1 %vm2548_vm8, %v14887_v40 }
0x13f3   : > { %8936 = vmatpush1.bf16.msra.mxu1 %v16417_v13  ;;  %8924 = vmatprep.mubr.bf16.mxu1 %v17732_v1 }
0x13f4   : > { %8937 = vmatprep.subr.bf16.mxu1 %v16429_v54 }
0x13f7   : > { %8938 = vmatpush1.bf16.msra.mxu1 %v16427_v57 }
0x13f8   : > { %9744 = vmatprep.subr.bf16.mxu1 %v16365_v52  ;;  %v14440_v52 = vld [vmem:[%s15318_s2 + $0x6f4] ss:$8 sps:$4 sm:$0xff]  }
0x13f9   : > { %8692 = vmatprep.subr.bf16.mxu0 %v14440_v52  ;;  %v14464_v52 = vld [vmem:[%s15318_s2 + $0x774] ss:$8 sps:$4 sm:$0xff]  }
0x13fa   : > { %12616 = vmatmul.mubr.msk.bf16.gmra.mrb[132].mxu1 %vm2548_vm8, %v14888_v35  ;;  %8693 = vmatpush1.bf16.msra.mxu0 %v14438_v6  ;;  %v14462_v6 = vld [vmem:[%s15318_s2 + $0x770] ss:$8 sps:$4 sm:$0xff]  }
0x13fb   : > { %8967 = vmatprep.mubr.bf16.mxu1 %v17732_v1  ;;  %8715 = vmatprep.subr.bf16.mxu0 %v14443_v7 }
0x1402   : > { %12617 = vmatmul.mubr.msk.bf16.vlgmr.msra.gmra.mrb[136].mxu1 %vm2548_vm8, %v14887_v40  ;;  %v14458_v40 = vld [vmem:[%s15318_s2 + $0x754] ss:$8 sps:$4 sm:$0xff]  }
0x1403   : > { %9745 = vmatpush1.bf16.msra.mxu1 %v16361_v21  ;;  %8977 = vmatprep.mubr.bf16.mxu1 %v17732_v1  ;;  %v14889_v21 = vld [vmem:[%s17731_s5 + $0x40] sm:$0xff]  }
0x1404   : > { %9746 = vmatprep.subr.bf16.mxu1 %v16383_v50 }
0x1407   : > { %9747 = vmatpush1.bf16.msra.mxu1 %v16379_v36 }
0x1408   : > { %9797 = vmatprep.subr.bf16.mxu1 %v16367_v24  ;;  %v14890_v24 = vld [vmem:[%s17731_s5 + $0x48] sm:$0xff]  }
0x140a   : > { %12618 = vmatmul.mubr.msk.bf16.gmra.mrb[140].mxu1 %vm2548_vm8, %v14888_v35  ;;  %v14456_v35 = vld [vmem:[%s15318_s2 + $0x750] ss:$8 sps:$4 sm:$0xff]  }
0x140b   : > { %9776 = vmatprep.mubr.bf16.mxu1 %v17732_v1 }
0x1412   : > { %12811 = vmatmul.mubr.msk.bf16.vlgmr.msra.gmra.mrb[144].mxu1 %vm2548_vm8, %v14889_v21 }
0x1413   : > { %9798 = vmatpush1.bf16.msra.mxu1 %v16363_v41  ;;  %9786 = vmatprep.mubr.bf16.mxu1 %v17732_v1 }
0x1414   : > { %9799 = vmatprep.subr.bf16.mxu1 %v16385_v28 }
0x1417   : > { %9800 = vmatpush1.bf16.msra.mxu1 %v16381_v39 }
0x1418   : > { %9850 = vmatprep.subr.bf16.mxu1 %v16419_v15 }
0x141a   : > { %12812 = vmatmul.mubr.msk.bf16.gmra.mrb[148].mxu1 %vm2548_vm8, %v14890_v24 }
0x141b   : > { %9829 = vmatprep.mubr.bf16.mxu1 %v17732_v1 }
0x1422   : > { %12813 = vmatmul.mubr.msk.bf16.vlgmr.msra.gmra.mrb[152].mxu1 %vm2548_vm8, %v14889_v21 }
0x1423   : > { %9851 = vmatpush1.bf16.msra.mxu1 %v16417_v13  ;;  %9839 = vmatprep.mubr.bf16.mxu1 %v17732_v1 }
0x1424   : > { %9852 = vmatprep.subr.bf16.mxu1 %v16429_v54 }
0x1427   : > { %9853 = vmatpush1.bf16.msra.mxu1 %v16427_v57 }
0x142a   : > { %12814 = vmatmul.mubr.msk.bf16.gmra.mrb[156].mxu1 %vm2548_vm8, %v14890_v24 }
0x142b   : > { %9882 = vmatprep.mubr.bf16.mxu1 %v17732_v1 }
0x1432   : > { %12815 = vmatmul.mubr.msk.bf16.vlgmr.msra.gmra.mrb[160].mxu1 %vm2548_vm8, %v14889_v21  ;;  %v14467_v21 = vld [vmem:[%s15318_s2 + $0x784] ss:$8 sps:$4 sm:$0xff]  }
0x1433   : > { %9892 = vmatprep.mubr.bf16.mxu1 %v17732_v1  ;;  %v14441_v1 = vld [vmem:[%s15318_s2 + $0x700] ss:$8 sps:$4 sm:$0xff]  }
0x143a   : > { %12816 = vmatmul.mubr.msk.bf16.gmra.mrb[164].mxu1 %vm2548_vm8, %v14890_v24 }
0x1475   : > { %v16890_v41 = vpop.f32.mrb[88].mxu1 }
0x1476   : > { %v16892_v36 = vpop.f32.mrb[89].mxu1 }
0x1477   : > { %v16894_v39 = vpop.f32.mrb[90].mxu1 }
0x1478   : > { %v16896_v50 = vpop.f32.mrb[91].mxu1 }
0x147d   : > { %v16898_v28 = vpop.f32.mrb[92].mxu1 }
0x147e   : > { %v16900_v13 = vpop.f32.mrb[93].mxu1 }
0x147f   : > { %v16902_v15 = vpop.f32.mrb[94].mxu1 }
0x1480   : > { %v16904_v57 = vpop.f32.mrb[95].mxu1 }
0x1485   : > { %v7948_v54 = vpop.f32.mrb[96].mxu1 }
0x1486   : > { %v7950_v10 = vpop.f32.mrb[97].mxu1 }
0x1487   : > { %v7952_v22 = vpop.f32.mrb[98].mxu1 }
0x1488   : > { %v8073_v26 = vpack.c.bf16 %v7952_v22, %v7948_v54  ;;  %v7954_v44 = vpop.f32.mrb[99].mxu1 }
0x1489   : > { %v8074_v63 = vpack.c.bf16 %v7954_v44, %v7950_v10 }
0x148b   : > { %8694 = vmatprep.mubr.bf16.mxu0 %v8074_v63  ;;  %v14470_v63 = vld [vmem:[%s15318_s2 + $0x794] ss:$8 sps:$4 sm:$0xff]  }
0x148c   : > { %8695 = vmatmul.mubr.bf16.vlgmr.msra.gmra.mrb[88].mxu0 %v8073_v26  ;;  %v14465_v26 = vld [vmem:[%s15318_s2 + $0x780] ss:$8 sps:$4 sm:$0xff]  }
0x148d   : > { %8716 = vmatpush1.bf16.msra.mxu0 %v14441_v1  ;;  %v7958_v18 = vpop.f32.mrb[100].mxu1  ;;  %v14468_v1 = vld [vmem:[%s15318_s2 + $0x790] ss:$8 sps:$4 sm:$0xff]  }
0x148e   : > { %8717 = vmatprep.subr.bf16.mxu0 %v14446_v0  ;;  %v7960_v43 = vpop.f32.mrb[101].mxu1  ;;  %v14473_v0 = vld [vmem:[%s15318_s2 + $0x7a4] ss:$8 sps:$4 sm:$0xff]  }
0x148f   : > { %v7962_v45 = vpop.f32.mrb[102].mxu1 }
0x1490   : > { %v8079_v32 = vpack.c.bf16 %v7962_v45, %v7958_v18  ;;  %v7964_v3 = vpop.f32.mrb[103].mxu1  ;;  %v14476_v18 = vld [vmem:[%s15318_s2 + $0x7b4] ss:$8 sps:$4 sm:$0xff]   ;;  %v14477_v45 = vld [vmem:[%s15318_s2 + $0x7c0] ss:$8 sps:$4 sm:$0xff]  }
0x1491   : > { %8718 = vmatpush1.bf16.msra.mxu0 %v14444_v5  ;;  %v8080_v48 = vpack.c.bf16 %v7964_v3, %v7960_v43  ;;  %v14471_v5 = vld [vmem:[%s15318_s2 + $0x7a0] ss:$8 sps:$4 sm:$0xff]   ;;  %v14479_v43 = vld [vmem:[%s15318_s2 + $0x7c4] ss:$8 sps:$4 sm:$0xff]  }
0x1492   : > { %8719 = vmatprep.subr.bf16.mxu0 %v14449_v14  ;;  %v14474_v14 = vld [vmem:[%s15318_s2 + $0x7b0] ss:$8 sps:$4 sm:$0xff]  }
0x1493   : > { %8704 = vmatprep.mubr.bf16.mxu0 %v8080_v48 }
0x1494   : > { %8705 = vmatmul.mubr.bf16.gmra.mrb[92].mxu0 %v8079_v32  ;;  %v14482_v32 = vld [vmem:[%s15318_s2 + $0x7d4] ss:$8 sps:$4 sm:$0xff]  }
0x1495   : > { %8720 = vmatpush1.bf16.msra.mxu0 %v14447_v23  ;;  %v16913_v60 = vpop.f32.mrb[104].mxu1 }
0x1496   : > { %8721 = vmatprep.subr.bf16.mxu0 %v14452_v17  ;;  %v8003_v29 = vpop.f32.mrb[105].mxu1  ;;  %v14480_v17 = vld [vmem:[%s15318_s2 + $0x7d0] ss:$8 sps:$4 sm:$0xff]  }
0x1497   : > { %v16916_v51 = vpop.f32.mrb[106].mxu1 }
0x1498   : > { %v8075_v53 = vpack.c.bf16 %v16916_v51, %v16913_v60  ;;  %v8007_v59 = vpop.f32.mrb[107].mxu1  ;;  %v14498_v60 = vld [vmem:[%s15318_s2 + $0x830] ss:$8 sps:$4 sm:$0xff]   ;;  %v14503_v51 = vld [vmem:[%s15318_s2 + $0x844] ss:$8 sps:$4 sm:$0xff]  }
0x1499   : > { %8722 = vmatpush1.bf16.msra.mxu0 %v14450_v58  ;;  %v8076_v55 = vpack.c.bf16 %v8007_v59, %v8003_v29  ;;  %v14485_v29 = vld [vmem:[%s15318_s2 + $0x7e4] ss:$8 sps:$4 sm:$0xff]  }
0x149a   : > { %8723 = vmatprep.subr.bf16.mxu0 %v14455_v42 }
0x149b   : > { %8747 = vmatprep.mubr.bf16.mxu0 %v8076_v55  ;;  %v14488_v55 = vld [vmem:[%s15318_s2 + $0x7f4] ss:$8 sps:$4 sm:$0xff]  }
0x149d   : > { %8724 = vmatpush1.bf16.msra.mxu0 %v14453_v34  ;;  %v16923_v49 = vpop.f32.mrb[108].mxu1  ;;  %v14483_v34 = vld [vmem:[%s15318_s2 + $0x7e0] ss:$8 sps:$4 sm:$0xff]  }
0x149e   : > { %8725 = vmatprep.subr.bf16.mxu0 %v14458_v40  ;;  %v16926_v16 = vpop.f32.mrb[109].mxu1 }
0x149f   : > { %v16928_v11 = vpop.f32.mrb[110].mxu1 }
0x14a0   : > { %v8081_v12 = vpack.c.bf16 %v16928_v11, %v16923_v49  ;;  %v16932_v31 = vpop.f32.mrb[111].mxu1  ;;  %v14509_v49 = vld [vmem:[%s15318_s2 + $0x864] ss:$8 sps:$4 sm:$0xff]   ;;  %v14507_v11 = vld [vmem:[%s15318_s2 + $0x860] ss:$8 sps:$4 sm:$0xff]  }
0x14a1   : > { %8726 = vmatpush1.bf16.msra.mxu0 %v14456_v35  ;;  %v8082_v4 = vpack.c.bf16 %v16932_v31, %v16926_v16  ;;  %v14506_v16 = vld [vmem:[%s15318_s2 + $0x854] ss:$8 sps:$4 sm:$0xff]   ;;  %v14504_v31 = vld [vmem:[%s15318_s2 + $0x850] ss:$8 sps:$4 sm:$0xff]  }
0x14a2   : > { %8727 = vmatprep.subr.bf16.mxu0 %v14461_v37  ;;  %v14486_v37 = vld [vmem:[%s15318_s2 + $0x7f0] ss:$8 sps:$4 sm:$0xff]  }
0x14a5   : > { %8728 = vmatpush1.bf16.msra.mxu0 %v14459_v25  ;;  %v16939_v7 = vpop.f32.mrb[112].mxu1 }
0x14a6   : > { %8729 = vmatprep.subr.bf16.mxu0 %v14464_v52  ;;  %v16942_v24 = vpop.f32.mrb[113].mxu1  ;;  %v14491_v52 = vld [vmem:[%s15318_s2 + $0x804] ss:$8 sps:$4 sm:$0xff]  }
0x14a7   : > { %v16944_v54 = vpop.f32.mrb[114].mxu1 }
0x14a8   : > { %v8077_v10 = vpack.c.bf16 %v16944_v54, %v16939_v7  ;;  %v16948_v22 = vpop.f32.mrb[115].mxu1  ;;  %v14546_v7 = vld [vmem:[%s15318_s2 + $0x930] ss:$8 sps:$4 sm:$0xff]   ;;  %v14551_v54 = vld [vmem:[%s15318_s2 + $0x944] ss:$8 sps:$4 sm:$0xff]  }
0x14a9   : > { %8730 = vmatpush1.bf16.msra.mxu0 %v14462_v6  ;;  %v8078_v44 = vpack.c.bf16 %v16948_v22, %v16942_v24  ;;  %v14489_v22 = vld [vmem:[%s15318_s2 + $0x800] ss:$8 sps:$4 sm:$0xff]  }
0x14aa   : > { %8731 = vmatprep.subr.bf16.mxu0 %v14467_v21 }
0x14ad   : > { %8732 = vmatpush1.bf16.msra.mxu0 %v14465_v26  ;;  %v16962_v3 = vpop.f32.mrb[116].mxu1  ;;  %v14494_v26 = vld [vmem:[%s15318_s2 + $0x814] ss:$8 sps:$4 sm:$0xff]  }
0x14ae   : > { %8733 = vmatprep.subr.bf16.mxu0 %v14470_v63  ;;  %v16964_v23 = vpop.f32.mrb[117].mxu1  ;;  %v14492_v63 = vld [vmem:[%s15318_s2 + $0x810] ss:$8 sps:$4 sm:$0xff]  }
0x14af   : > { %v16966_v48 = vpop.f32.mrb[118].mxu1 }
0x14b0   : > { %v8083_v58 = vpack.c.bf16 %v16966_v48, %v16962_v3  ;;  %v16971_v42 = vpop.f32.mrb[119].mxu1  ;;  %v14552_v3 = vld [vmem:[%s15318_s2 + $0x950] ss:$8 sps:$4 sm:$0xff]   ;;  %v14557_v48 = vld [vmem:[%s15318_s2 + $0x964] ss:$8 sps:$4 sm:$0xff]  }
0x14b1   : > { %8734 = vmatpush1.bf16.msra.mxu0 %v14468_v1  ;;  %v8084_v59 = vpack.c.bf16 %v16971_v42, %v16964_v23  ;;  %v14497_v1 = vld [vmem:[%s15318_s2 + $0x824] ss:$8 sps:$4 sm:$0xff]   ;;  %v14554_v23 = vld [vmem:[%s15318_s2 + $0x954] ss:$8 sps:$4 sm:$0xff]  }
0x14b2   : > { %8735 = vmatprep.subr.bf16.mxu0 %v14473_v0  ;;  %v14495_v0 = vld [vmem:[%s15318_s2 + $0x820] ss:$8 sps:$4 sm:$0xff]   ;;  %v14560_v42 = vld [vmem:[%s15318_s2 + $0x974] ss:$8 sps:$4 sm:$0xff]  }
0x14b5   : > { %8736 = vmatpush1.bf16.msra.mxu0 %v14471_v5  ;;  %v16978_v40 = vpop.f32.mrb[120].mxu1  ;;  %v14500_v5 = vld [vmem:[%s15318_s2 + $0x834] ss:$8 sps:$4 sm:$0xff]  }
0x14b6   : > { %8737 = vmatprep.subr.bf16.mxu0 %v14476_v18  ;;  %v16980_v35 = vpop.f32.mrb[121].mxu1  ;;  %v14513_v18 = vld [vmem:[%s15318_s2 + $0x880] ss:$8 sps:$4 sm:$0xff]  }
0x14b7   : > { %v16983_v25 = vpop.f32.mrb[122].mxu1 }
0x14b8   : > { %v8988_v6 = vpack.c.bf16 %v16983_v25, %v16978_v40  ;;  %v16988_v21 = vpop.f32.mrb[123].mxu1  ;;  %v14594_v40 = vld [vmem:[%s15318_s2 + $0xa30] ss:$8 sps:$4 sm:$0xff]   ;;  %v14599_v25 = vld [vmem:[%s15318_s2 + $0xa44] ss:$8 sps:$4 sm:$0xff]  }
0x14b9   : > { %8738 = vmatpush1.bf16.msra.mxu0 %v14474_v14  ;;  %v8989_v24 = vpack.c.bf16 %v16988_v21, %v16980_v35  ;;  %v14518_v14 = vld [vmem:[%s15318_s2 + $0x894] ss:$8 sps:$4 sm:$0xff]   ;;  %v14563_v35 = vld [vmem:[%s15318_s2 + $0x984] ss:$8 sps:$4 sm:$0xff]   ;;  %v14561_v21 = vld [vmem:[%s15318_s2 + $0x980] ss:$8 sps:$4 sm:$0xff]  }
0x14ba   : > { %8739 = vmatprep.subr.bf16.mxu0 %v14479_v43  ;;  %v14516_v43 = vld [vmem:[%s15318_s2 + $0x890] ss:$8 sps:$4 sm:$0xff]  }
0x14bd   : > { %8740 = vmatpush1.bf16.msra.mxu0 %v14477_v45  ;;  %v14521_v45 = vld [vmem:[%s15318_s2 + $0x8a4] ss:$8 sps:$4 sm:$0xff]  }
0x14be   : > { %8741 = vmatprep.subr.bf16.mxu0 %v14482_v32  ;;  %v14519_v32 = vld [vmem:[%s15318_s2 + $0x8a0] ss:$8 sps:$4 sm:$0xff]  }
0x14c1   : > { %8742 = vmatpush1.bf16.msra.mxu0 %v14480_v17  ;;  %v14524_v17 = vld [vmem:[%s15318_s2 + $0x8b4] ss:$8 sps:$4 sm:$0xff]  }
0x14c2   : > { %8743 = vmatprep.subr.bf16.mxu0 %v14485_v29  ;;  %v14522_v29 = vld [vmem:[%s15318_s2 + $0x8b0] ss:$8 sps:$4 sm:$0xff]  }
0x14c5   : > { %8744 = vmatpush1.bf16.msra.mxu0 %v14483_v34  ;;  %v14527_v34 = vld [vmem:[%s15318_s2 + $0x8c4] ss:$8 sps:$4 sm:$0xff]  }
0x14c6   : > { %8745 = vmatprep.subr.bf16.mxu0 %v14488_v55  ;;  %v14525_v55 = vld [vmem:[%s15318_s2 + $0x8c0] ss:$8 sps:$4 sm:$0xff]  }
0x14c9   : > { %8746 = vmatpush1.bf16.msra.mxu0 %v14486_v37  ;;  %v14530_v37 = vld [vmem:[%s15318_s2 + $0x8d4] ss:$8 sps:$4 sm:$0xff]  }
0x14ca   : > { %8768 = vmatprep.subr.bf16.mxu0 %v14491_v52  ;;  %v17027_v52 = vpop.f32.mrb[124].mxu1 }
0x14cc   : > { %8748 = vmatmul.mubr.bf16.vlgmr.msra.gmra.mrb[88].mxu0 %v8075_v53  ;;  %v14501_v53 = vld [vmem:[%s15318_s2 + $0x840] ss:$8 sps:$4 sm:$0xff]  }
0x14cd   : > { %8769 = vmatpush1.bf16.msra.mxu0 %v14489_v22  ;;  %8757 = vmatprep.mubr.bf16.mxu0 %v8082_v4  ;;  %v14510_v4 = vld [vmem:[%s15318_s2 + $0x870] ss:$8 sps:$4 sm:$0xff]   ;;  %v17029_v22 = vpop.f32.mrb[125].mxu1 }
0x14ce   : > { %8770 = vmatprep.subr.bf16.mxu0 %v14494_v26  ;;  %v17031_v26 = vpop.f32.mrb[126].mxu1 }
0x14d1   : > { %8771 = vmatpush1.bf16.msra.mxu0 %v14492_v63  ;;  %v14528_v63 = vld [vmem:[%s15318_s2 + $0x8d0] ss:$8 sps:$4 sm:$0xff]  }
0x14d2   : > { %8772 = vmatprep.subr.bf16.mxu0 %v14497_v1  ;;  %v8994_v1 = vpack.c.bf16 %v17031_v26, %v17027_v52  ;;  %v14600_v52 = vld [vmem:[%s15318_s2 + $0xa50] ss:$8 sps:$4 sm:$0xff]   ;;  %v14605_v26 = vld [vmem:[%s15318_s2 + $0xa64] ss:$8 sps:$4 sm:$0xff]  }
0x14d4   : > { %8758 = vmatmul.mubr.bf16.gmra.mrb[92].mxu0 %v8081_v12  ;;  %v14512_v12 = vld [vmem:[%s15318_s2 + $0x874] ss:$8 sps:$4 sm:$0xff]  }
0x14d5   : > { %8773 = vmatpush1.bf16.msra.mxu0 %v14495_v0  ;;  %8800 = vmatprep.mubr.bf16.mxu0 %v8078_v44  ;;  %v14515_v44 = vld [vmem:[%s15318_s2 + $0x884] ss:$8 sps:$4 sm:$0xff]   ;;  %v17036_v0 = vpop.f32.mrb[127].mxu1 }
0x14d6   : > { %8774 = vmatprep.subr.bf16.mxu0 %v14500_v5  ;;  %v14533_v5 = vld [vmem:[%s15318_s2 + $0x8e4] ss:$8 sps:$4 sm:$0xff]  }
0x14d9   : > { %8775 = vmatpush1.bf16.msra.mxu0 %v14498_v60  ;;  %v8995_v60 = vpack.c.bf16 %v17036_v0, %v17029_v22  ;;  %v14602_v22 = vld [vmem:[%s15318_s2 + $0xa54] ss:$8 sps:$4 sm:$0xff]  }
0x14da   : > { %8776 = vmatprep.subr.bf16.mxu0 %v14503_v51  ;;  %v14531_v51 = vld [vmem:[%s15318_s2 + $0x8e0] ss:$8 sps:$4 sm:$0xff]   ;;  %v14608_v0 = vld [vmem:[%s15318_s2 + $0xa74] ss:$8 sps:$4 sm:$0xff]  }
0x14dd   : > { %8777 = vmatpush1.bf16.msra.mxu0 %v14501_v53  ;;  %v14536_v53 = vld [vmem:[%s15318_s2 + $0x8f4] ss:$8 sps:$4 sm:$0xff]  }
0x14de   : > { %8778 = vmatprep.subr.bf16.mxu0 %v14506_v16  ;;  %v17043_v16 = vpop.f32.mrb[128].mxu1 }
0x14e1   : > { %8779 = vmatpush1.bf16.msra.mxu0 %v14504_v31  ;;  %v17045_v31 = vpop.f32.mrb[129].mxu1 }
0x14e2   : > { %8780 = vmatprep.subr.bf16.mxu0 %v14509_v49  ;;  %v14534_v49 = vld [vmem:[%s15318_s2 + $0x8f0] ss:$8 sps:$4 sm:$0xff]  }
0x14e5   : > { %8781 = vmatpush1.bf16.msra.mxu0 %v14507_v11  ;;  %v17048_v11 = vpop.f32.mrb[130].mxu1 }
0x14e6   : > { %8782 = vmatprep.subr.bf16.mxu0 %v14512_v12  ;;  %v14539_v12 = vld [vmem:[%s15318_s2 + $0x904] ss:$8 sps:$4 sm:$0xff]  }
0x14e9   : > { %8783 = vmatpush1.bf16.msra.mxu0 %v14510_v4  ;;  %v8990_v4 = vpack.c.bf16 %v17048_v11, %v17043_v16  ;;  %v14642_v16 = vld [vmem:[%s15318_s2 + $0xb30] ss:$8 sps:$4 sm:$0xff]   ;;  %v14647_v11 = vld [vmem:[%s15318_s2 + $0xb44] ss:$8 sps:$4 sm:$0xff]  }
0x14ea   : > { %8784 = vmatprep.subr.bf16.mxu0 %v14515_v44  ;;  %v17053_v44 = vpop.f32.mrb[131].mxu1 }
0x14ed   : > { %8785 = vmatpush1.bf16.msra.mxu0 %v14513_v18  ;;  %v8991_v18 = vpack.c.bf16 %v17053_v44, %v17045_v31  ;;  %v14611_v31 = vld [vmem:[%s15318_s2 + $0xa84] ss:$8 sps:$4 sm:$0xff]   ;;  %v14609_v44 = vld [vmem:[%s15318_s2 + $0xa80] ss:$8 sps:$4 sm:$0xff]  }
0x14ee   : > { %8786 = vmatprep.subr.bf16.mxu0 %v14518_v14  ;;  %v14537_v14 = vld [vmem:[%s15318_s2 + $0x900] ss:$8 sps:$4 sm:$0xff]  }
0x14f1   : > { %8787 = vmatpush1.bf16.msra.mxu0 %v14516_v43  ;;  %v14542_v43 = vld [vmem:[%s15318_s2 + $0x914] ss:$8 sps:$4 sm:$0xff]  }
0x14f2   : > { %8788 = vmatprep.subr.bf16.mxu0 %v14521_v45  ;;  %v14540_v45 = vld [vmem:[%s15318_s2 + $0x910] ss:$8 sps:$4 sm:$0xff]  }
0x14f5   : > { %8789 = vmatpush1.bf16.msra.mxu0 %v14519_v32  ;;  %v14545_v32 = vld [vmem:[%s15318_s2 + $0x924] ss:$8 sps:$4 sm:$0xff]  }
0x14f6   : > { %8790 = vmatprep.subr.bf16.mxu0 %v14524_v17  ;;  %v14543_v17 = vld [vmem:[%s15318_s2 + $0x920] ss:$8 sps:$4 sm:$0xff]  }
0x14f9   : > { %8791 = vmatpush1.bf16.msra.mxu0 %v14522_v29  ;;  %v14548_v29 = vld [vmem:[%s15318_s2 + $0x934] ss:$8 sps:$4 sm:$0xff]  }
0x14fa   : > { %8792 = vmatprep.subr.bf16.mxu0 %v14527_v34  ;;  %v14564_v34 = vld [vmem:[%s15318_s2 + $0x990] ss:$8 sps:$4 sm:$0xff]  }
0x14fd   : > { %8793 = vmatpush1.bf16.msra.mxu0 %v14525_v55  ;;  %v14569_v55 = vld [vmem:[%s15318_s2 + $0x9a4] ss:$8 sps:$4 sm:$0xff]  }
0x14fe   : > { %8794 = vmatprep.subr.bf16.mxu0 %v14530_v37  ;;  %v14567_v37 = vld [vmem:[%s15318_s2 + $0x9a0] ss:$8 sps:$4 sm:$0xff]  }
0x1501   : > { %8795 = vmatpush1.bf16.msra.mxu0 %v14528_v63  ;;  %v14572_v63 = vld [vmem:[%s15318_s2 + $0x9b4] ss:$8 sps:$4 sm:$0xff]  }
0x1502   : > { %8796 = vmatprep.subr.bf16.mxu0 %v14533_v5  ;;  %v14570_v5 = vld [vmem:[%s15318_s2 + $0x9b0] ss:$8 sps:$4 sm:$0xff]  }
0x1505   : > { %8797 = vmatpush1.bf16.msra.mxu0 %v14531_v51  ;;  %v14575_v51 = vld [vmem:[%s15318_s2 + $0x9c4] ss:$8 sps:$4 sm:$0xff]  }
0x1506   : > { %8798 = vmatprep.subr.bf16.mxu0 %v14536_v53  ;;  %v14573_v53 = vld [vmem:[%s15318_s2 + $0x9c0] ss:$8 sps:$4 sm:$0xff]  }
0x1509   : > { %8799 = vmatpush1.bf16.msra.mxu0 %v14534_v49  ;;  %v14578_v49 = vld [vmem:[%s15318_s2 + $0x9d4] ss:$8 sps:$4 sm:$0xff]  }
0x150a   : > { %9577 = vmatprep.subr.bf16.mxu0 %v14539_v12  ;;  %v17095_v12 = vpop.f32.mrb[132].mxu1 }
0x150c   : > { %8801 = vmatmul.mubr.bf16.vlgmr.msra.gmra.mrb[88].mxu0 %v8077_v10  ;;  %v14549_v10 = vld [vmem:[%s15318_s2 + $0x940] ss:$8 sps:$4 sm:$0xff]  }
0x150d   : > { %9578 = vmatpush1.bf16.msra.mxu0 %v14537_v14  ;;  %8810 = vmatprep.mubr.bf16.mxu0 %v8084_v59  ;;  %v14558_v59 = vld [vmem:[%s15318_s2 + $0x970] ss:$8 sps:$4 sm:$0xff]   ;;  %v17097_v14 = vpop.f32.mrb[133].mxu1 }
0x150e   : > { %9579 = vmatprep.subr.bf16.mxu0 %v14542_v43  ;;  %v17099_v43 = vpop.f32.mrb[134].mxu1 }
0x1511   : > { %9580 = vmatpush1.bf16.msra.mxu0 %v14540_v45  ;;  %v14576_v45 = vld [vmem:[%s15318_s2 + $0x9d0] ss:$8 sps:$4 sm:$0xff]  }
0x1512   : > { %9581 = vmatprep.subr.bf16.mxu0 %v14545_v32  ;;  %v8996_v32 = vpack.c.bf16 %v17099_v43, %v17095_v12  ;;  %v14648_v12 = vld [vmem:[%s15318_s2 + $0xb50] ss:$8 sps:$4 sm:$0xff]   ;;  %v14653_v43 = vld [vmem:[%s15318_s2 + $0xb64] ss:$8 sps:$4 sm:$0xff]  }
0x1514   : > { %8811 = vmatmul.mubr.bf16.gmra.mrb[92].mxu0 %v8083_v58  ;;  %v14555_v58 = vld [vmem:[%s15318_s2 + $0x960] ss:$8 sps:$4 sm:$0xff]  }
0x1515   : > { %9582 = vmatpush1.bf16.msra.mxu0 %v14543_v17  ;;  %9609 = vmatprep.mubr.bf16.mxu0 %v8989_v24  ;;  %v14566_v24 = vld [vmem:[%s15318_s2 + $0x994] ss:$8 sps:$4 sm:$0xff]   ;;  %v17104_v17 = vpop.f32.mrb[135].mxu1 }
0x1516   : > { %9583 = vmatprep.subr.bf16.mxu0 %v14548_v29  ;;  %v14581_v29 = vld [vmem:[%s15318_s2 + $0x9e4] ss:$8 sps:$4 sm:$0xff]  }
0x1519   : > { %9584 = vmatpush1.bf16.msra.mxu0 %v14546_v7  ;;  %v8997_v7 = vpack.c.bf16 %v17104_v17, %v17097_v14  ;;  %v14650_v14 = vld [vmem:[%s15318_s2 + $0xb54] ss:$8 sps:$4 sm:$0xff]  }
0x151a   : > { %9585 = vmatprep.subr.bf16.mxu0 %v14551_v54  ;;  %v14579_v54 = vld [vmem:[%s15318_s2 + $0x9e0] ss:$8 sps:$4 sm:$0xff]   ;;  %v14656_v17 = vld [vmem:[%s15318_s2 + $0xb74] ss:$8 sps:$4 sm:$0xff]  }
0x151d   : > { %9586 = vmatpush1.bf16.msra.mxu0 %v14549_v10  ;;  %v14584_v10 = vld [vmem:[%s15318_s2 + $0x9f4] ss:$8 sps:$4 sm:$0xff]  }
0x151e   : > { %9587 = vmatprep.subr.bf16.mxu0 %v14554_v23  ;;  %v17111_v23 = vpop.f32.mrb[136].mxu1 }
0x1521   : > { %9588 = vmatpush1.bf16.msra.mxu0 %v14552_v3  ;;  %v17113_v3 = vpop.f32.mrb[137].mxu1 }
0x1522   : > { %9589 = vmatprep.subr.bf16.mxu0 %v14557_v48  ;;  %v14582_v48 = vld [vmem:[%s15318_s2 + $0x9f0] ss:$8 sps:$4 sm:$0xff]  }
0x1525   : > { %9590 = vmatpush1.bf16.msra.mxu0 %v14555_v58  ;;  %v17116_v58 = vpop.f32.mrb[138].mxu1 }
0x1526   : > { %9591 = vmatprep.subr.bf16.mxu0 %v14560_v42  ;;  %v14587_v42 = vld [vmem:[%s15318_s2 + $0xa04] ss:$8 sps:$4 sm:$0xff]  }
0x1529   : > { %9592 = vmatpush1.bf16.msra.mxu0 %v14558_v59  ;;  %v8992_v59 = vpack.c.bf16 %v17116_v58, %v17111_v23  ;;  %v14690_v23 = vld [vmem:[%s15318_s2 + $0xc30] ss:$8 sps:$4 sm:$0xff]   ;;  %v14695_v58 = vld [vmem:[%s15318_s2 + $0xc44] ss:$8 sps:$4 sm:$0xff]  }
0x152a   : > { %9593 = vmatprep.subr.bf16.mxu0 %v14563_v35  ;;  %v17121_v35 = vpop.f32.mrb[139].mxu1 }
0x152d   : > { %9594 = vmatpush1.bf16.msra.mxu0 %v14561_v21  ;;  %v8993_v21 = vpack.c.bf16 %v17121_v35, %v17113_v3  ;;  %v14659_v3 = vld [vmem:[%s15318_s2 + $0xb84] ss:$8 sps:$4 sm:$0xff]   ;;  %v14657_v35 = vld [vmem:[%s15318_s2 + $0xb80] ss:$8 sps:$4 sm:$0xff]  }
0x152e   : > { %9595 = vmatprep.subr.bf16.mxu0 %v14566_v24  ;;  %v14585_v24 = vld [vmem:[%s15318_s2 + $0xa00] ss:$8 sps:$4 sm:$0xff]  }
0x1531   : > { %9596 = vmatpush1.bf16.msra.mxu0 %v14564_v34  ;;  %v14590_v34 = vld [vmem:[%s15318_s2 + $0xa14] ss:$8 sps:$4 sm:$0xff]  }
0x1532   : > { %9597 = vmatprep.subr.bf16.mxu0 %v14569_v55  ;;  %v14588_v55 = vld [vmem:[%s15318_s2 + $0xa10] ss:$8 sps:$4 sm:$0xff]  }
0x1535   : > { %9598 = vmatpush1.bf16.msra.mxu0 %v14567_v37  ;;  %v14593_v37 = vld [vmem:[%s15318_s2 + $0xa24] ss:$8 sps:$4 sm:$0xff]  }
0x1536   : > { %9599 = vmatprep.subr.bf16.mxu0 %v14572_v63  ;;  %v14591_v63 = vld [vmem:[%s15318_s2 + $0xa20] ss:$8 sps:$4 sm:$0xff]  }
0x1539   : > { %9600 = vmatpush1.bf16.msra.mxu0 %v14570_v5  ;;  %v14596_v5 = vld [vmem:[%s15318_s2 + $0xa34] ss:$8 sps:$4 sm:$0xff]  }
0x153a   : > { %9601 = vmatprep.subr.bf16.mxu0 %v14575_v51  ;;  %v14612_v51 = vld [vmem:[%s15318_s2 + $0xa90] ss:$8 sps:$4 sm:$0xff]  }
0x153d   : > { %9602 = vmatpush1.bf16.msra.mxu0 %v14573_v53  ;;  %v14617_v53 = vld [vmem:[%s15318_s2 + $0xaa4] ss:$8 sps:$4 sm:$0xff]  }
0x153e   : > { %9603 = vmatprep.subr.bf16.mxu0 %v14578_v49  ;;  %v14615_v49 = vld [vmem:[%s15318_s2 + $0xaa0] ss:$8 sps:$4 sm:$0xff]  }
0x1541   : > { %9604 = vmatpush1.bf16.msra.mxu0 %v14576_v45  ;;  %v14620_v45 = vld [vmem:[%s15318_s2 + $0xab4] ss:$8 sps:$4 sm:$0xff]  }
0x1542   : > { %9605 = vmatprep.subr.bf16.mxu0 %v14581_v29  ;;  %v14618_v29 = vld [vmem:[%s15318_s2 + $0xab0] ss:$8 sps:$4 sm:$0xff]  }
0x1545   : > { %9606 = vmatpush1.bf16.msra.mxu0 %v14579_v54  ;;  %v14623_v54 = vld [vmem:[%s15318_s2 + $0xac4] ss:$8 sps:$4 sm:$0xff]  }
0x1546   : > { %9607 = vmatprep.subr.bf16.mxu0 %v14584_v10  ;;  %v14621_v10 = vld [vmem:[%s15318_s2 + $0xac0] ss:$8 sps:$4 sm:$0xff]  }
0x1549   : > { %9608 = vmatpush1.bf16.msra.mxu0 %v14582_v48  ;;  %v14626_v48 = vld [vmem:[%s15318_s2 + $0xad4] ss:$8 sps:$4 sm:$0xff]  }
0x154a   : > { %9630 = vmatprep.subr.bf16.mxu0 %v14587_v42  ;;  %v17163_v42 = vpop.f32.mrb[140].mxu1 }
0x154c   : > { %9610 = vmatmul.mubr.bf16.vlgmr.msra.gmra.mrb[88].mxu0 %v8988_v6  ;;  %v14597_v6 = vld [vmem:[%s15318_s2 + $0xa40] ss:$8 sps:$4 sm:$0xff]  }
0x154d   : > { %9631 = vmatpush1.bf16.msra.mxu0 %v14585_v24  ;;  %9619 = vmatprep.mubr.bf16.mxu0 %v8995_v60  ;;  %v14606_v60 = vld [vmem:[%s15318_s2 + $0xa70] ss:$8 sps:$4 sm:$0xff]   ;;  %v17165_v24 = vpop.f32.mrb[141].mxu1 }
0x154e   : > { %9632 = vmatprep.subr.bf16.mxu0 %v14590_v34  ;;  %v17167_v34 = vpop.f32.mrb[142].mxu1 }
0x1551   : > { %9633 = vmatpush1.bf16.msra.mxu0 %v14588_v55  ;;  %v14624_v55 = vld [vmem:[%s15318_s2 + $0xad0] ss:$8 sps:$4 sm:$0xff]  }
0x1552   : > { %9634 = vmatprep.subr.bf16.mxu0 %v14593_v37  ;;  %v8998_v37 = vpack.c.bf16 %v17167_v34, %v17163_v42  ;;  %v14696_v42 = vld [vmem:[%s15318_s2 + $0xc50] ss:$8 sps:$4 sm:$0xff]   ;;  %v14701_v34 = vld [vmem:[%s15318_s2 + $0xc64] ss:$8 sps:$4 sm:$0xff]  }
0x1554   : > { %9620 = vmatmul.mubr.bf16.gmra.mrb[92].mxu0 %v8994_v1  ;;  %v14603_v1 = vld [vmem:[%s15318_s2 + $0xa60] ss:$8 sps:$4 sm:$0xff]  }
0x1555   : > { %9635 = vmatpush1.bf16.msra.mxu0 %v14591_v63  ;;  %9662 = vmatprep.mubr.bf16.mxu0 %v8991_v18  ;;  %v14614_v18 = vld [vmem:[%s15318_s2 + $0xa94] ss:$8 sps:$4 sm:$0xff]   ;;  %v17172_v63 = vpop.f32.mrb[143].mxu1 }
0x1556   : > { %9636 = vmatprep.subr.bf16.mxu0 %v14596_v5  ;;  %v14629_v5 = vld [vmem:[%s15318_s2 + $0xae4] ss:$8 sps:$4 sm:$0xff]  }
0x1559   : > { %9637 = vmatpush1.bf16.msra.mxu0 %v14594_v40  ;;  %v8999_v40 = vpack.c.bf16 %v17172_v63, %v17165_v24  ;;  %v14698_v24 = vld [vmem:[%s15318_s2 + $0xc54] ss:$8 sps:$4 sm:$0xff]  }
0x155a   : > { %9638 = vmatprep.subr.bf16.mxu0 %v14599_v25  ;;  %v14627_v25 = vld [vmem:[%s15318_s2 + $0xae0] ss:$8 sps:$4 sm:$0xff]   ;;  %v14704_v63 = vld [vmem:[%s15318_s2 + $0xc74] ss:$8 sps:$4 sm:$0xff]  }
0x155d   : > { %9639 = vmatpush1.bf16.msra.mxu0 %v14597_v6  ;;  %v14632_v6 = vld [vmem:[%s15318_s2 + $0xaf4] ss:$8 sps:$4 sm:$0xff]  }
0x155e   : > { %9640 = vmatprep.subr.bf16.mxu0 %v14602_v22  ;;  %v17179_v22 = vpop.f32.mrb[144].mxu1 }
0x1561   : > { %9641 = vmatpush1.bf16.msra.mxu0 %v14600_v52  ;;  %v17181_v52 = vpop.f32.mrb[145].mxu1 }
0x1562   : > { %9642 = vmatprep.subr.bf16.mxu0 %v14605_v26  ;;  %v14630_v26 = vld [vmem:[%s15318_s2 + $0xaf0] ss:$8 sps:$4 sm:$0xff]  }
0x1565   : > { %9643 = vmatpush1.bf16.msra.mxu0 %v14603_v1  ;;  %v17184_v1 = vpop.f32.mrb[146].mxu1 }
0x1566   : > { %9644 = vmatprep.subr.bf16.mxu0 %v14608_v0  ;;  %v14635_v0 = vld [vmem:[%s15318_s2 + $0xb04] ss:$8 sps:$4 sm:$0xff]  }
0x1569   : > { %9645 = vmatpush1.bf16.msra.mxu0 %v14606_v60  ;;  %v9903_v60 = vpack.c.bf16 %v17184_v1, %v17179_v22  ;;  %v14737_v22 = vld [vmem:[%s15318_s2 + $0xd24] ss:$8 sps:$4 sm:$0xff]  }
0x156a   : > { %9646 = vmatprep.subr.bf16.mxu0 %v14611_v31  ;;  %v17189_v31 = vpop.f32.mrb[147].mxu1 }
0x156d   : > { %9647 = vmatpush1.bf16.msra.mxu0 %v14609_v44  ;;  %v9904_v44 = vpack.c.bf16 %v17189_v31, %v17181_v52  ;;  %v14707_v52 = vld [vmem:[%s15318_s2 + $0xc84] ss:$8 sps:$4 sm:$0xff]   ;;  %v14705_v31 = vld [vmem:[%s15318_s2 + $0xc80] ss:$8 sps:$4 sm:$0xff]  }
0x156e   : > { %9648 = vmatprep.subr.bf16.mxu0 %v14614_v18  ;;  %v14633_v18 = vld [vmem:[%s15318_s2 + $0xb00] ss:$8 sps:$4 sm:$0xff]  }
0x1571   : > { %9649 = vmatpush1.bf16.msra.mxu0 %v14612_v51  ;;  %v14638_v51 = vld [vmem:[%s15318_s2 + $0xb14] ss:$8 sps:$4 sm:$0xff]  }
0x1572   : > { %9650 = vmatprep.subr.bf16.mxu0 %v14617_v53  ;;  %v14636_v53 = vld [vmem:[%s15318_s2 + $0xb10] ss:$8 sps:$4 sm:$0xff]  }
0x1575   : > { %9651 = vmatpush1.bf16.msra.mxu0 %v14615_v49  ;;  %v14641_v49 = vld [vmem:[%s15318_s2 + $0xb24] ss:$8 sps:$4 sm:$0xff]  }
0x1576   : > { %9652 = vmatprep.subr.bf16.mxu0 %v14620_v45  ;;  %v14639_v45 = vld [vmem:[%s15318_s2 + $0xb20] ss:$8 sps:$4 sm:$0xff]  }
0x1579   : > { %9653 = vmatpush1.bf16.msra.mxu0 %v14618_v29  ;;  %v14644_v29 = vld [vmem:[%s15318_s2 + $0xb34] ss:$8 sps:$4 sm:$0xff]  }
0x157a   : > { %9654 = vmatprep.subr.bf16.mxu0 %v14623_v54  ;;  %v14660_v54 = vld [vmem:[%s15318_s2 + $0xb90] ss:$8 sps:$4 sm:$0xff]  }
0x157d   : > { %9655 = vmatpush1.bf16.msra.mxu0 %v14621_v10  ;;  %v14665_v10 = vld [vmem:[%s15318_s2 + $0xba4] ss:$8 sps:$4 sm:$0xff]  }
0x157e   : > { %9656 = vmatprep.subr.bf16.mxu0 %v14626_v48  ;;  %v14663_v48 = vld [vmem:[%s15318_s2 + $0xba0] ss:$8 sps:$4 sm:$0xff]  }
0x1581   : > { %9657 = vmatpush1.bf16.msra.mxu0 %v14624_v55  ;;  %v14668_v55 = vld [vmem:[%s15318_s2 + $0xbb4] ss:$8 sps:$4 sm:$0xff]  }
0x1582   : > { %9658 = vmatprep.subr.bf16.mxu0 %v14629_v5  ;;  %v14666_v5 = vld [vmem:[%s15318_s2 + $0xbb0] ss:$8 sps:$4 sm:$0xff]  }
0x1585   : > { %9659 = vmatpush1.bf16.msra.mxu0 %v14627_v25  ;;  %v14671_v25 = vld [vmem:[%s15318_s2 + $0xbc4] ss:$8 sps:$4 sm:$0xff]  }
0x1586   : > { %9660 = vmatprep.subr.bf16.mxu0 %v14632_v6  ;;  %v14669_v6 = vld [vmem:[%s15318_s2 + $0xbc0] ss:$8 sps:$4 sm:$0xff]  }
0x1589   : > { %9661 = vmatpush1.bf16.msra.mxu0 %v14630_v26  ;;  %v14674_v26 = vld [vmem:[%s15318_s2 + $0xbd4] ss:$8 sps:$4 sm:$0xff]  }
0x158a   : > { %9683 = vmatprep.subr.bf16.mxu0 %v14635_v0  ;;  %v17231_v0 = vpop.f32.mrb[148].mxu1 }
0x158c   : > { %9663 = vmatmul.mubr.bf16.vlgmr.msra.gmra.mrb[88].mxu0 %v8990_v4  ;;  %v14645_v4 = vld [vmem:[%s15318_s2 + $0xb40] ss:$8 sps:$4 sm:$0xff]  }
0x158d   : > { %9684 = vmatpush1.bf16.msra.mxu0 %v14633_v18  ;;  %9672 = vmatprep.mubr.bf16.mxu0 %v8997_v7  ;;  %v14654_v7 = vld [vmem:[%s15318_s2 + $0xb70] ss:$8 sps:$4 sm:$0xff]   ;;  %v17233_v18 = vpop.f32.mrb[149].mxu1 }
0x158e   : > { %9685 = vmatprep.subr.bf16.mxu0 %v14638_v51  ;;  %v17235_v51 = vpop.f32.mrb[150].mxu1 }
0x1591   : > { %9686 = vmatpush1.bf16.msra.mxu0 %v14636_v53  ;;  %v14672_v53 = vld [vmem:[%s15318_s2 + $0xbd0] ss:$8 sps:$4 sm:$0xff]  }
0x1592   : > { %9687 = vmatprep.subr.bf16.mxu0 %v14641_v49  ;;  %v9909_v49 = vpack.c.bf16 %v17235_v51, %v17231_v0  ;;  %v14744_v0 = vld [vmem:[%s15318_s2 + $0xd50] ss:$8 sps:$4 sm:$0xff]   ;;  %v14749_v51 = vld [vmem:[%s15318_s2 + $0xd64] ss:$8 sps:$4 sm:$0xff]  }
0x1594   : > { %9673 = vmatmul.mubr.bf16.gmra.mrb[92].mxu0 %v8996_v32  ;;  %v14651_v32 = vld [vmem:[%s15318_s2 + $0xb60] ss:$8 sps:$4 sm:$0xff]  }
0x1595   : > { %9688 = vmatpush1.bf16.msra.mxu0 %v14639_v45  ;;  %9715 = vmatprep.mubr.bf16.mxu0 %v8993_v21  ;;  %v14662_v21 = vld [vmem:[%s15318_s2 + $0xb94] ss:$8 sps:$4 sm:$0xff]   ;;  %v17240_v45 = vpop.f32.mrb[151].mxu1 }
0x1596   : > { %9689 = vmatprep.subr.bf16.mxu0 %v14644_v29  ;;  %v14677_v29 = vld [vmem:[%s15318_s2 + $0xbe4] ss:$8 sps:$4 sm:$0xff]  }
0x1599   : > { %9690 = vmatpush1.bf16.msra.mxu0 %v14642_v16  ;;  %v9910_v16 = vpack.c.bf16 %v17240_v45, %v17233_v18  ;;  %v14740_v18 = vld [vmem:[%s15318_s2 + $0xd34] ss:$8 sps:$4 sm:$0xff]   ;;  %v14738_v45 = vld [vmem:[%s15318_s2 + $0xd30] ss:$8 sps:$4 sm:$0xff]  }
0x159a   : > { %9691 = vmatprep.subr.bf16.mxu0 %v14647_v11  ;;  %v14675_v11 = vld [vmem:[%s15318_s2 + $0xbe0] ss:$8 sps:$4 sm:$0xff]  }
0x159d   : > { %9692 = vmatpush1.bf16.msra.mxu0 %v14645_v4  ;;  %v14680_v4 = vld [vmem:[%s15318_s2 + $0xbf4] ss:$8 sps:$4 sm:$0xff]  }
0x159e   : > { %9693 = vmatprep.subr.bf16.mxu0 %v14650_v14  ;;  %v17247_v14 = vpop.f32.mrb[152].mxu1 }
0x15a1   : > { %9694 = vmatpush1.bf16.msra.mxu0 %v14648_v12  ;;  %v17249_v12 = vpop.f32.mrb[153].mxu1 }
0x15a2   : > { %9695 = vmatprep.subr.bf16.mxu0 %v14653_v43  ;;  %v14678_v43 = vld [vmem:[%s15318_s2 + $0xbf0] ss:$8 sps:$4 sm:$0xff]  }
0x15a5   : > { %9696 = vmatpush1.bf16.msra.mxu0 %v14651_v32  ;;  %v17252_v32 = vpop.f32.mrb[154].mxu1 }
0x15a6   : > { %9697 = vmatprep.subr.bf16.mxu0 %v14656_v17  ;;  %v14683_v17 = vld [vmem:[%s15318_s2 + $0xc04] ss:$8 sps:$4 sm:$0xff]  }
0x15a9   : > { %9698 = vmatpush1.bf16.msra.mxu0 %v14654_v7  ;;  %v9905_v7 = vpack.c.bf16 %v17252_v32, %v17247_v14  ;;  %v14786_v14 = vld [vmem:[%s15318_s2 + $0xe30] ss:$8 sps:$4 sm:$0xff]   ;;  %v14791_v32 = vld [vmem:[%s15318_s2 + $0xe44] ss:$8 sps:$4 sm:$0xff]  }
0x15aa   : > { %9699 = vmatprep.subr.bf16.mxu0 %v14659_v3  ;;  %v17257_v3 = vpop.f32.mrb[155].mxu1 }
0x15ad   : > { %9700 = vmatpush1.bf16.msra.mxu0 %v14657_v35  ;;  %v9906_v35 = vpack.c.bf16 %v17257_v3, %v17249_v12  ;;  %v14752_v12 = vld [vmem:[%s15318_s2 + $0xd74] ss:$8 sps:$4 sm:$0xff]   ;;  %v14750_v3 = vld [vmem:[%s15318_s2 + $0xd70] ss:$8 sps:$4 sm:$0xff]  }
0x15ae   : > { %9701 = vmatprep.subr.bf16.mxu0 %v14662_v21  ;;  %v14681_v21 = vld [vmem:[%s15318_s2 + $0xc00] ss:$8 sps:$4 sm:$0xff]  }
0x15b1   : > { %9702 = vmatpush1.bf16.msra.mxu0 %v14660_v54  ;;  %v14686_v54 = vld [vmem:[%s15318_s2 + $0xc14] ss:$8 sps:$4 sm:$0xff]  }
0x15b2   : > { %9703 = vmatprep.subr.bf16.mxu0 %v14665_v10  ;;  %v14684_v10 = vld [vmem:[%s15318_s2 + $0xc10] ss:$8 sps:$4 sm:$0xff]  }
0x15b5   : > { %9704 = vmatpush1.bf16.msra.mxu0 %v14663_v48  ;;  %v14689_v48 = vld [vmem:[%s15318_s2 + $0xc24] ss:$8 sps:$4 sm:$0xff]  }
0x15b6   : > { %9705 = vmatprep.subr.bf16.mxu0 %v14668_v55  ;;  %v14687_v55 = vld [vmem:[%s15318_s2 + $0xc20] ss:$8 sps:$4 sm:$0xff]  }
0x15b9   : > { %9706 = vmatpush1.bf16.msra.mxu0 %v14666_v5  ;;  %v14692_v5 = vld [vmem:[%s15318_s2 + $0xc34] ss:$8 sps:$4 sm:$0xff]  }
0x15ba   : > { %9707 = vmatprep.subr.bf16.mxu0 %v14671_v25  ;;  %v14708_v25 = vld [vmem:[%s15318_s2 + $0xc90] ss:$8 sps:$4 sm:$0xff]  }
0x15bd   : > { %9708 = vmatpush1.bf16.msra.mxu0 %v14669_v6  ;;  %v14713_v6 = vld [vmem:[%s15318_s2 + $0xca4] ss:$8 sps:$4 sm:$0xff]  }
0x15be   : > { %9709 = vmatprep.subr.bf16.mxu0 %v14674_v26  ;;  %v14711_v26 = vld [vmem:[%s15318_s2 + $0xca0] ss:$8 sps:$4 sm:$0xff]  }
0x15c1   : > { %9710 = vmatpush1.bf16.msra.mxu0 %v14672_v53  ;;  %v14716_v53 = vld [vmem:[%s15318_s2 + $0xcb4] ss:$8 sps:$4 sm:$0xff]  }
0x15c2   : > { %9711 = vmatprep.subr.bf16.mxu0 %v14677_v29  ;;  %v14714_v29 = vld [vmem:[%s15318_s2 + $0xcb0] ss:$8 sps:$4 sm:$0xff]  }
0x15c5   : > { %9712 = vmatpush1.bf16.msra.mxu0 %v14675_v11  ;;  %v14719_v11 = vld [vmem:[%s15318_s2 + $0xcc4] ss:$8 sps:$4 sm:$0xff]  }
0x15c6   : > { %9713 = vmatprep.subr.bf16.mxu0 %v14680_v4  ;;  %v14717_v4 = vld [vmem:[%s15318_s2 + $0xcc0] ss:$8 sps:$4 sm:$0xff]  }
0x15c9   : > { %9714 = vmatpush1.bf16.msra.mxu0 %v14678_v43  ;;  %v17298_v43 = vpop.f32.mrb[156].mxu1 }
0x15ca   : > { %10492 = vmatprep.subr.bf16.mxu0 %v14683_v17  ;;  %v14722_v17 = vld [vmem:[%s15318_s2 + $0xcd4] ss:$8 sps:$4 sm:$0xff]  }
0x15cc   : > { %9716 = vmatmul.mubr.bf16.vlgmr.msra.gmra.mrb[88].mxu0 %v8992_v59  ;;  %v14693_v59 = vld [vmem:[%s15318_s2 + $0xc40] ss:$8 sps:$4 sm:$0xff]  }
0x15cd   : > { %10493 = vmatpush1.bf16.msra.mxu0 %v14681_v21  ;;  %9725 = vmatprep.mubr.bf16.mxu0 %v8999_v40  ;;  %v14702_v40 = vld [vmem:[%s15318_s2 + $0xc70] ss:$8 sps:$4 sm:$0xff]   ;;  %v17301_v21 = vpop.f32.mrb[157].mxu1 }
0x15ce   : > { %10494 = vmatprep.subr.bf16.mxu0 %v14686_v54  ;;  %v17303_v54 = vpop.f32.mrb[158].mxu1 }
0x15d1   : > { %10495 = vmatpush1.bf16.msra.mxu0 %v14684_v10  ;;  %v17305_v10 = vpop.f32.mrb[159].mxu1 }
0x15d2   : > { %10496 = vmatprep.subr.bf16.mxu0 %v14689_v48  ;;  %v14720_v48 = vld [vmem:[%s15318_s2 + $0xcd0] ss:$8 sps:$4 sm:$0xff]  }
0x15d4   : > { %9726 = vmatmul.mubr.bf16.gmra.mrb[92].mxu0 %v8998_v37  ;;  %v14699_v37 = vld [vmem:[%s15318_s2 + $0xc60] ss:$8 sps:$4 sm:$0xff]  }
0x15d5   : > { %10497 = vmatpush1.bf16.msra.mxu0 %v14687_v55  ;;  %10524 = vmatprep.mubr.bf16.mxu0 %v9904_v44  ;;  %v14710_v44 = vld [vmem:[%s15318_s2 + $0xc94] ss:$8 sps:$4 sm:$0xff]   ;;  %v9911_v55 = vpack.c.bf16 %v17303_v54, %v17298_v43  ;;  %v14792_v43 = vld [vmem:[%s15318_s2 + $0xe50] ss:$8 sps:$4 sm:$0xff]   ;;  %v14797_v54 = vld [vmem:[%s15318_s2 + $0xe64] ss:$8 sps:$4 sm:$0xff]  }
0x15d6   : > { %10498 = vmatprep.subr.bf16.mxu0 %v14692_v5  ;;  %v9912_v5 = vpack.c.bf16 %v17305_v10, %v17301_v21  ;;  %v14794_v21 = vld [vmem:[%s15318_s2 + $0xe54] ss:$8 sps:$4 sm:$0xff]   ;;  %v14795_v10 = vld [vmem:[%s15318_s2 + $0xe60] ss:$8 sps:$4 sm:$0xff]  }
0x15d9   : > { %10499 = vmatpush1.bf16.msra.mxu0 %v14690_v23  ;;  %v14725_v23 = vld [vmem:[%s15318_s2 + $0xce4] ss:$8 sps:$4 sm:$0xff]  }
0x15da   : > { %10500 = vmatprep.subr.bf16.mxu0 %v14695_v58  ;;  %v14723_v58 = vld [vmem:[%s15318_s2 + $0xce0] ss:$8 sps:$4 sm:$0xff]  }
0x15dd   : > { %10501 = vmatpush1.bf16.msra.mxu0 %v14693_v59  ;;  %v14728_v59 = vld [vmem:[%s15318_s2 + $0xcf4] ss:$8 sps:$4 sm:$0xff]  }
0x15de   : > { %10502 = vmatprep.subr.bf16.mxu0 %v14698_v24  ;;  %v17315_v24 = vpop.f32.mrb[160].mxu1 }
0x15e1   : > { %10503 = vmatpush1.bf16.msra.mxu0 %v14696_v42  ;;  %v17317_v42 = vpop.f32.mrb[161].mxu1 }
0x15e2   : > { %10504 = vmatprep.subr.bf16.mxu0 %v14701_v34  ;;  %v17319_v34 = vpop.f32.mrb[162].mxu1 }
0x15e5   : > { %10505 = vmatpush1.bf16.msra.mxu0 %v14699_v37  ;;  %v14726_v37 = vld [vmem:[%s15318_s2 + $0xcf0] ss:$8 sps:$4 sm:$0xff]  }
0x15e6   : > { %10506 = vmatprep.subr.bf16.mxu0 %v14704_v63  ;;  %v9907_v63 = vpack.c.bf16 %v17319_v34, %v17315_v24 }
0x15e9   : > { %10507 = vmatpush1.bf16.msra.mxu0 %v14702_v40  ;;  %v17324_v40 = vpop.f32.mrb[163].mxu1 }
0x15ea   : > { %10508 = vmatprep.subr.bf16.mxu0 %v14707_v52  ;;  %v14731_v52 = vld [vmem:[%s15318_s2 + $0xd04] ss:$8 sps:$4 sm:$0xff]  }
0x15ed   : > { %10509 = vmatpush1.bf16.msra.mxu0 %v14705_v31  ;;  %v9908_v31 = vpack.c.bf16 %v17324_v40, %v17317_v42  ;;  %v14803_v42 = vld [vmem:[%s15318_s2 + $0xe84] ss:$8 sps:$4 sm:$0xff]   ;;  %v14801_v40 = vld [vmem:[%s15318_s2 + $0xe80] ss:$8 sps:$4 sm:$0xff]  }
0x15ee   : > { %10510 = vmatprep.subr.bf16.mxu0 %v14710_v44  ;;  %v14729_v44 = vld [vmem:[%s15318_s2 + $0xd00] ss:$8 sps:$4 sm:$0xff]  }
0x15f1   : > { %10511 = vmatpush1.bf16.msra.mxu0 %v14708_v25  ;;  %v14734_v25 = vld [vmem:[%s15318_s2 + $0xd14] ss:$8 sps:$4 sm:$0xff]  }
0x15f2   : > { %10512 = vmatprep.subr.bf16.mxu0 %v14713_v6  ;;  %v17331_v6 = vpop.f32.mrb[164].mxu1 }
0x15f5   : > { %10513 = vmatpush1.bf16.msra.mxu0 %v14711_v26  ;;  %v17333_v26 = vpop.f32.mrb[165].mxu1 }
0x15f6   : > { %10514 = vmatprep.subr.bf16.mxu0 %v14716_v53  ;;  %v17338_v53 = vpop.f32.mrb[166].mxu1 }
0x15f9   : > { %10515 = vmatpush1.bf16.msra.mxu0 %v14714_v29  ;;  %v14732_v29 = vld [vmem:[%s15318_s2 + $0xd10] ss:$8 sps:$4 sm:$0xff]  }
0x15fa   : > { %10516 = vmatprep.subr.bf16.mxu0 %v14719_v11  ;;  %v9913_v11 = vpack.c.bf16 %v17338_v53, %v17331_v6 }
0x15fd   : > { %10517 = vmatpush1.bf16.msra.mxu0 %v14717_v4  ;;  %v17346_v4 = vpop.f32.mrb[167].mxu1 }
0x15fe   : > { %10518 = vmatprep.subr.bf16.mxu0 %v14722_v17  ;;  %v9914_v1 = vpack.c.bf16 %v17346_v4, %v17333_v26  ;;  %v14741_v17 = vld [vmem:[%s15318_s2 + $0xd40] ss:$8 sps:$4 sm:$0xff]  }
0x1601   : > { %10519 = vmatpush1.bf16.msra.mxu0 %v14720_v48  ;;  %v14746_v48 = vld [vmem:[%s15318_s2 + $0xd54] ss:$8 sps:$4 sm:$0xff]  }
0x1602   : > { %10520 = vmatprep.subr.bf16.mxu0 %v14725_v23  ;;  %v14753_v23 = vld [vmem:[%s15318_s2 + $0xd80] ss:$8 sps:$4 sm:$0xff]  }
0x1605   : > { %10521 = vmatpush1.bf16.msra.mxu0 %v14723_v58  ;;  %v14758_v58 = vld [vmem:[%s15318_s2 + $0xd94] ss:$8 sps:$4 sm:$0xff]  }
0x1606   : > { %10522 = vmatprep.subr.bf16.mxu0 %v14728_v59  ;;  %v14756_v59 = vld [vmem:[%s15318_s2 + $0xd90] ss:$8 sps:$4 sm:$0xff]  }
0x1609   : > { %10523 = vmatpush1.bf16.msra.mxu0 %v14726_v37  ;;  %v14761_v37 = vld [vmem:[%s15318_s2 + $0xda4] ss:$8 sps:$4 sm:$0xff]  }
0x160a   : > { %10545 = vmatprep.subr.bf16.mxu0 %v14731_v52  ;;  %v14759_v52 = vld [vmem:[%s15318_s2 + $0xda0] ss:$8 sps:$4 sm:$0xff]  }
0x160c   : > { %10525 = vmatmul.mubr.bf16.vlgmr.msra.gmra.mrb[88].mxu0 %v9903_v60  ;;  %v14735_v60 = vld [vmem:[%s15318_s2 + $0xd20] ss:$8 sps:$4 sm:$0xff]  }
0x160d   : > { %10546 = vmatpush1.bf16.msra.mxu0 %v14729_v44  ;;  %10534 = vmatprep.mubr.bf16.mxu0 %v9910_v16  ;;  %v14743_v16 = vld [vmem:[%s15318_s2 + $0xd44] ss:$8 sps:$4 sm:$0xff]   ;;  %v14764_v44 = vld [vmem:[%s15318_s2 + $0xdb4] ss:$8 sps:$4 sm:$0xff]  }
0x160e   : > { %10547 = vmatprep.subr.bf16.mxu0 %v14734_v25  ;;  %v14762_v25 = vld [vmem:[%s15318_s2 + $0xdb0] ss:$8 sps:$4 sm:$0xff]  }
0x1611   : > { %10548 = vmatpush1.bf16.msra.mxu0 %v14732_v29  ;;  %v14767_v29 = vld [vmem:[%s15318_s2 + $0xdc4] ss:$8 sps:$4 sm:$0xff]  }
0x1612   : > { %10549 = vmatprep.subr.bf16.mxu0 %v14737_v22  ;;  %v14765_v22 = vld [vmem:[%s15318_s2 + $0xdc0] ss:$8 sps:$4 sm:$0xff]  }
0x1614   : > { %10535 = vmatmul.mubr.bf16.gmra.mrb[92].mxu0 %v9909_v49  ;;  %v14747_v49 = vld [vmem:[%s15318_s2 + $0xd60] ss:$8 sps:$4 sm:$0xff]  }
0x1615   : > { %10550 = vmatpush1.bf16.msra.mxu0 %v14735_v60  ;;  %10577 = vmatprep.mubr.bf16.mxu0 %v9906_v35  ;;  %v14755_v35 = vld [vmem:[%s15318_s2 + $0xd84] ss:$8 sps:$4 sm:$0xff]   ;;  %v14770_v60 = vld [vmem:[%s15318_s2 + $0xdd4] ss:$8 sps:$4 sm:$0xff]  }
0x1616   : > { %10551 = vmatprep.subr.bf16.mxu0 %v14740_v18  ;;  %v14768_v18 = vld [vmem:[%s15318_s2 + $0xdd0] ss:$8 sps:$4 sm:$0xff]  }
0x1619   : > { %10552 = vmatpush1.bf16.msra.mxu0 %v14738_v45  ;;  %v14773_v45 = vld [vmem:[%s15318_s2 + $0xde4] ss:$8 sps:$4 sm:$0xff]  }
0x161a   : > { %10553 = vmatprep.subr.bf16.mxu0 %v14743_v16  ;;  %v14771_v16 = vld [vmem:[%s15318_s2 + $0xde0] ss:$8 sps:$4 sm:$0xff]  }
0x161d   : > { %10554 = vmatpush1.bf16.msra.mxu0 %v14741_v17  ;;  %v14776_v17 = vld [vmem:[%s15318_s2 + $0xdf4] ss:$8 sps:$4 sm:$0xff]  }
0x161e   : > { %10555 = vmatprep.subr.bf16.mxu0 %v14746_v48  ;;  %v14774_v48 = vld [vmem:[%s15318_s2 + $0xdf0] ss:$8 sps:$4 sm:$0xff]  }
0x1621   : > { %10556 = vmatpush1.bf16.msra.mxu0 %v14744_v0  ;;  %v14779_v0 = vld [vmem:[%s15318_s2 + $0xe04] ss:$8 sps:$4 sm:$0xff]  }
0x1622   : > { %10557 = vmatprep.subr.bf16.mxu0 %v14749_v51  ;;  %v14777_v51 = vld [vmem:[%s15318_s2 + $0xe00] ss:$8 sps:$4 sm:$0xff]  }
0x1625   : > { %10558 = vmatpush1.bf16.msra.mxu0 %v14747_v49  ;;  %v14782_v49 = vld [vmem:[%s15318_s2 + $0xe14] ss:$8 sps:$4 sm:$0xff]  }
0x1626   : > { %10559 = vmatprep.subr.bf16.mxu0 %v14752_v12  ;;  %v14780_v12 = vld [vmem:[%s15318_s2 + $0xe10] ss:$8 sps:$4 sm:$0xff]  }
0x1629   : > { %10560 = vmatpush1.bf16.msra.mxu0 %v14750_v3  ;;  %v14785_v3 = vld [vmem:[%s15318_s2 + $0xe24] ss:$8 sps:$4 sm:$0xff]  }
0x162a   : > { %10561 = vmatprep.subr.bf16.mxu0 %v14755_v35  ;;  %v14783_v35 = vld [vmem:[%s15318_s2 + $0xe20] ss:$8 sps:$4 sm:$0xff]  }
0x162d   : > { %10562 = vmatpush1.bf16.msra.mxu0 %v14753_v23  ;;  %v14788_v23 = vld [vmem:[%s15318_s2 + $0xe34] ss:$8 sps:$4 sm:$0xff]  }
0x162e   : > { %10563 = vmatprep.subr.bf16.mxu0 %v14758_v58  ;;  %v14804_v58 = vld [vmem:[%s15318_s2 + $0xe90] ss:$8 sps:$4 sm:$0xff]  }
0x1631   : > { %10564 = vmatpush1.bf16.msra.mxu0 %v14756_v59  ;;  %v14809_v59 = vld [vmem:[%s15318_s2 + $0xea4] ss:$8 sps:$4 sm:$0xff]  }
0x1632   : > { %10565 = vmatprep.subr.bf16.mxu0 %v14761_v37  ;;  %v14807_v37 = vld [vmem:[%s15318_s2 + $0xea0] ss:$8 sps:$4 sm:$0xff]  }
0x1635   : > { %10566 = vmatpush1.bf16.msra.mxu0 %v14759_v52  ;;  %v14812_v52 = vld [vmem:[%s15318_s2 + $0xeb4] ss:$8 sps:$4 sm:$0xff]  }
0x1636   : > { %10567 = vmatprep.subr.bf16.mxu0 %v14764_v44  ;;  %v14810_v44 = vld [vmem:[%s15318_s2 + $0xeb0] ss:$8 sps:$4 sm:$0xff]  }
0x1639   : > { %10568 = vmatpush1.bf16.msra.mxu0 %v14762_v25  ;;  %v14815_v25 = vld [vmem:[%s15318_s2 + $0xec4] ss:$8 sps:$4 sm:$0xff]  }
0x163a   : > { %10569 = vmatprep.subr.bf16.mxu0 %v14767_v29  ;;  %v14813_v29 = vld [vmem:[%s15318_s2 + $0xec0] ss:$8 sps:$4 sm:$0xff]  }
0x163d   : > { %10570 = vmatpush1.bf16.msra.mxu0 %v14765_v22  ;;  %v14818_v22 = vld [vmem:[%s15318_s2 + $0xed4] ss:$8 sps:$4 sm:$0xff]  }
0x163e   : > { %10571 = vmatprep.subr.bf16.mxu0 %v14770_v60  ;;  %v14816_v60 = vld [vmem:[%s15318_s2 + $0xed0] ss:$8 sps:$4 sm:$0xff]  }
0x1641   : > { %10572 = vmatpush1.bf16.msra.mxu0 %v14768_v18  ;;  %v14821_v18 = vld [vmem:[%s15318_s2 + $0xee4] ss:$8 sps:$4 sm:$0xff]  }
0x1642   : > { %10573 = vmatprep.subr.bf16.mxu0 %v14773_v45  ;;  %v14819_v45 = vld [vmem:[%s15318_s2 + $0xee0] ss:$8 sps:$4 sm:$0xff]  }
0x1645   : > { %10574 = vmatpush1.bf16.msra.mxu0 %v14771_v16  ;;  %v14824_v16 = vld [vmem:[%s15318_s2 + $0xef4] ss:$8 sps:$4 sm:$0xff]  }
0x1646   : > { %10575 = vmatprep.subr.bf16.mxu0 %v14776_v17  ;;  %v14822_v17 = vld [vmem:[%s15318_s2 + $0xef0] ss:$8 sps:$4 sm:$0xff]  }
0x1649   : > { %10576 = vmatpush1.bf16.msra.mxu0 %v14774_v48  ;;  %v10659_v48 = vld [vmem:[%s17733_s21] sm:$0x3] }
0x164a   : > { %10598 = vmatprep.subr.bf16.mxu0 %v14779_v0  ;;  %v10664_v0 = vrot.slane %v10659_v48, %v15425_v8 }
0x164c   : > { %10578 = vmatmul.mubr.bf16.vlgmr.msra.gmra.mrb[88].mxu0 %v9905_v7  ;;  %v14789_v7 = vld [vmem:[%s15318_s2 + $0xe40] ss:$8 sps:$4 sm:$0xff]  }
0x164d   : > { %10599 = vmatpush1.bf16.msra.mxu0 %v14777_v51  ;;  %10587 = vmatprep.mubr.bf16.mxu0 %v9912_v5  ;;  %v14798_v5 = vld [vmem:[%s15318_s2 + $0xe70] ss:$8 sps:$4 sm:$0xff]  }
0x164e   : > { %10600 = vmatprep.subr.bf16.mxu0 %v14782_v49  ;;  %v10668_v49 = vrot.slane %v10659_v48, %v15428_v9 }
0x1651   : > { %10601 = vmatpush1.bf16.msra.mxu0 %v14780_v12 }
0x1652   : > { %10602 = vmatprep.subr.bf16.mxu0 %v14785_v3 }
0x1654   : > { %10588 = vmatmul.mubr.bf16.gmra.mrb[92].mxu0 %v9911_v55  ;;  %v14800_v55 = vld [vmem:[%s15318_s2 + $0xe74] ss:$8 sps:$4 sm:$0xff]  }
0x1655   : > { %10603 = vmatpush1.bf16.msra.mxu0 %v14783_v35  ;;  %10630 = vmatprep.mubr.bf16.mxu0 %v9908_v31  ;;  %v14806_v31 = vld [vmem:[%s15318_s2 + $0xe94] ss:$8 sps:$4 sm:$0xff]  }
0x1656   : > { %10604 = vmatprep.subr.bf16.mxu0 %v14788_v23 }
0x1659   : > { %10605 = vmatpush1.bf16.msra.mxu0 %v14786_v14 }
0x165a   : > { %10606 = vmatprep.subr.bf16.mxu0 %v14791_v32 }
0x165d   : > { %10607 = vmatpush1.bf16.msra.mxu0 %v14789_v7 }
0x165e   : > { %10608 = vmatprep.subr.bf16.mxu0 %v14794_v21 }
0x1661   : > { %10609 = vmatpush1.bf16.msra.mxu0 %v14792_v43 }
0x1662   : > { %10610 = vmatprep.subr.bf16.mxu0 %v14797_v54 }
0x1665   : > { %10611 = vmatpush1.bf16.msra.mxu0 %v14795_v10 }
0x1666   : > { %10612 = vmatprep.subr.bf16.mxu0 %v14800_v55 }
0x1669   : > { %10613 = vmatpush1.bf16.msra.mxu0 %v14798_v5 }
0x166a   : > { %10614 = vmatprep.subr.bf16.mxu0 %v14803_v42 }
0x166d   : > { %10615 = vmatpush1.bf16.msra.mxu0 %v14801_v40 }
0x166e   : > { %10616 = vmatprep.subr.bf16.mxu0 %v14806_v31 }
0x1671   : > { %10617 = vmatpush1.bf16.msra.mxu0 %v14804_v58 }
0x1672   : > { %10618 = vmatprep.subr.bf16.mxu0 %v14809_v59 }
0x1675   : > { %10619 = vmatpush1.bf16.msra.mxu0 %v14807_v37 }
0x1676   : > { %10620 = vmatprep.subr.bf16.mxu0 %v14812_v52 }
0x1679   : > { %10621 = vmatpush1.bf16.msra.mxu0 %v14810_v44 }
0x167a   : > { %10622 = vmatprep.subr.bf16.mxu0 %v14815_v25 }
0x167d   : > { %10623 = vmatpush1.bf16.msra.mxu0 %v14813_v29 }
0x167e   : > { %10624 = vmatprep.subr.bf16.mxu0 %v14818_v22 }
0x1681   : > { %10625 = vmatpush1.bf16.msra.mxu0 %v14816_v60 }
0x1682   : > { %10626 = vmatprep.subr.bf16.mxu0 %v14821_v18 }
0x1685   : > { %10627 = vmatpush1.bf16.msra.mxu0 %v14819_v45 }
0x1686   : > { %10628 = vmatprep.subr.bf16.mxu0 %v14824_v16 }
0x1689   : > { %10629 = vmatpush1.bf16.msra.mxu0 %v14822_v17 }
0x168c   : > { %10631 = vmatmul.mubr.bf16.vlgmr.msra.gmra.mrb[88].mxu0 %v9907_v63 }
0x168d   : > { %10640 = vmatprep.mubr.bf16.mxu0 %v9914_v1 }
0x1694   : > { %10641 = vmatmul.mubr.bf16.gmra.mrb[92].mxu0 %v9913_v11 }
0x175f   : > { %v10632_v51 = vpop.f32.mrb[88].mxu0 }
0x1760   : > { %v13096_v24 = vadd.f32 %v10632_v51, %v16890_v41  ;;  %v10634_v34 = vpop.f32.mrb[89].mxu0 }
0x1761   : > { %v13097_v63 = vadd.f32 %v10634_v34, %v16892_v36  ;;  %v10636_v26 = vpop.f32.mrb[90].mxu0 }
0x1762   : > { %v10671_v4 = vadd.f32 %v13096_v24, %v10664_v0  ;;  %v13098_v6 = vadd.f32 %v10636_v26, %v16894_v39  ;;  %v10638_v53 = vpop.f32.mrb[91].mxu0 }
0x1763   : > { %v10672_v11 = vadd.f32 %v13097_v63, %v10668_v49  ;;  %v13099_v1 = vadd.f32 %v10638_v53, %v16896_v50 }
0x1764   : > { %v10679_v12 = vmul.f32 %v10671_v4, %v15786_v30  ;;  %v10673_v3 = vadd.f32 %v13098_v6, %v10664_v0 }
0x1765   : > { %v10680_v35 = vmul.f32 %v10672_v11, %v15786_v30  ;;  %v10674_v23 = vadd.f32 %v13099_v1, %v10668_v49 }
0x1766   : > { %v10681_v14 = vmul.f32 %v10673_v3, %v15756_v38  ;;  %v10687_v21 = vadd.f32 %v10679_v12, %v15784_v27 }
0x1767   : > { %v10682_v41 = vmul.f32 %v10674_v23, %v15756_v38  ;;  %v10642_v32 = vpop.f32.mrb[92].mxu0  ;;  %v10688_v36 = vadd.f32 %v10680_v35, %v15782_v56 }
0x1768   : > { %v13100_v7 = vadd.f32 %v10642_v32, %v16898_v28  ;;  %v10644_v39 = vpop.f32.mrb[93].mxu0  ;;  %v10689_v31 = vadd.f32 %v10681_v14, %v15780_v61 }
0x1769   : > { %v13101_v50 = vadd.f32 %v10644_v39, %v16900_v13  ;;  %v10646_v43 = vpop.f32.mrb[94].mxu0  ;;  %v10697_v54 = vsel %vm1180_vm1, %v10688_v36, 0.0  ;;  %v10690_v10 = vadd.f32 %v10682_v41, %v15778_v20 }
0x176a   : > { %v10675_v55 = vadd.f32 %v13100_v7, %v10664_v0  ;;  %v13102_v5 = vadd.f32 %v10646_v43, %v16902_v15  ;;  %v10648_v42 = vpop.f32.mrb[95].mxu0  ;;  %v10698_v40 = vadd.f32 %v10697_v54, %v10687_v21 }
0x176b   : > { %v10676_v56 = vadd.f32 %v13101_v50, %v10668_v49  ;;  %v13103_v28 = vadd.f32 %v10648_v42, %v16904_v57  ;;  %v10701_v58 = vsel %vm1180_vm1, %v10690_v10, 0.0 }
0x176c   : > { %v10683_v27 = vmul.f32 %v10675_v55, %v15765_v47  ;;  %v10677_v13 = vadd.f32 %v13102_v5, %v10664_v0  ;;  %10699 = vadd.xlane.f32.xlu1 %v10698_v40  ;;  %v10702_v59 = vadd.f32 %v10701_v58, %v10689_v31 }
0x176d   : > { %v10684_v37 = vmul.f32 %v10676_v56, %v15765_v47  ;;  %v10678_v20 = vadd.f32 %v13103_v28, %v10668_v49  ;;  %v10695_v56 = vld [vmem:[%s981_s3] sm:$0x3] }
0x176e   : > { %10703 = vadd.xlane.f32.xlu0 %v10702_v59  ;;  %v10685_v61 = vmul.f32 %v10677_v13, %v15814_v19  ;;  %v10691_v44 = vadd.f32 %v10683_v27, %v15808_v33  ;;  %v10696_v27 = vld [vmem:[%s985_s8] sm:$0x3]  ;;  %v10773_v59 = vrot.slane %v10695_v56, %v15425_v8  ;;  %s17734_s8 = sld [smem:[#allocation14_spill]] }
0x176f   : > { %v10686_v15 = vmul.f32 %v10678_v20, %v15814_v19  ;;  %v10692_v52 = vadd.f32 %v10684_v37, %v15806_v46  ;;  %v10777_v37 = vrot.slane %v10695_v56, %v15428_v9 }
0x1770   : > { %v10693_v60 = vadd.f32 %v10685_v61, %v15812_v2  ;;  %v10796_v61 = vrot.slane %v10696_v27, %v15428_v9 }
0x1771   : > { %v10705_v57 = vsel %vm1180_vm1, %v10692_v52, 0.0  ;;  %v10694_v25 = vadd.f32 %v10686_v15, %v15810_v62 }
0x1772   : > { %v10706_v29 = vadd.f32 %v10705_v57, %v10691_v44 }
0x1773   : > { %v10709_v22 = vsel %vm1180_vm1, %v10694_v25, 0.0 }
0x1774   : > { %10707 = vadd.xlane.f32.xlu1 %v10706_v29  ;;  %v10710_v18 = vadd.f32 %v10709_v22, %v10693_v60  ;;  %p13009_p8 = scmp.ne.s32.totalorder %s17734_s8, 4 }
0x1775   : > { %s17735_s29 = sld [smem:[#allocation29_spill]] (!%p13009_p8)  ;;  %s17736_s9 = sld [smem:[#allocation30_spill]] (!%p13009_p8) }
0x1778   : > { %10711 = vadd.xlane.f32.xlu1 %v10710_v18 }
0x17f9   : > { %v10700_v45 = vpop.xlane.xlu1 %10699 }
0x17fa   : > { %v10713_v16 = vmul.f32 0.0052083335, %v10700_v45 }
0x17fb   : > { %v10704_v17 = vpop.xlane.xlu0 %10703 }
0x17fc   : > { %v10717_v46 = vsub.f32 %v10687_v21, %v10713_v16  ;;  %v10718_v48 = vsub.f32 %v10688_v36, %v10713_v16  ;;  %v10714_v0 = vmul.f32 0.0052083335, %v10704_v17 }
0x17fe   : > { %v10719_v51 = vsub.f32 %v10689_v31, %v10714_v0  ;;  %v10720_v33 = vsub.f32 %v10690_v10, %v10714_v0  ;;  %v10725_v49 = vmul.f32 %v10717_v46, %v10717_v46  ;;  %v10726_v24 = vmul.f32 %v10718_v48, %v10718_v48 }
0x1800   : > { %v10733_v62 = vsel %vm1180_vm1, %v10726_v24, 0.0  ;;  %v10728_v34 = vmul.f32 %v10720_v33, %v10720_v33  ;;  %v10727_v4 = vmul.f32 %v10719_v51, %v10719_v51 }
0x1801   : > { %v10708_v63 = vpop.xlane.xlu1 %10707  ;;  %v10734_v26 = vadd.f32 %v10733_v62, %v10725_v49 }
0x1802   : > { %v10715_v6 = vmul.f32 0.0052083335, %v10708_v63  ;;  %v10737_v2 = vsel %vm1180_vm1, %v10728_v34, 0.0 }
0x1803   : > { %10735 = vadd.xlane.f32.xlu1 %v10734_v26  ;;  %v10738_v12 = vadd.f32 %v10737_v2, %v10727_v4 }
0x1804   : > { %v10721_v53 = vsub.f32 %v10691_v44, %v10715_v6  ;;  %v10722_v11 = vsub.f32 %v10692_v52, %v10715_v6  ;;  %v10792_v52 = vrot.slane %v10696_v27, %v15425_v8 }
0x1805   : > { %v10712_v1 = vpop.xlane.xlu1 %10711 }
0x1806   : > { %v10716_v3 = vmul.f32 0.0052083335, %v10712_v1  ;;  %v10729_v35 = vmul.f32 %v10721_v53, %v10721_v53  ;;  %v10730_v23 = vmul.f32 %v10722_v11, %v10722_v11 }
0x1807   : > { %10739 = vadd.xlane.f32.xlu1 %v10738_v12 }
0x1808   : > { %v10723_v14 = vsub.f32 %v10693_v60, %v10716_v3  ;;  %v10724_v41 = vsub.f32 %v10694_v25, %v10716_v3  ;;  %v10741_v32 = vsel %vm1180_vm1, %v10730_v23, 0.0 }
0x1809   : > { %v10742_v36 = vadd.f32 %v10741_v32, %v10729_v35  ;;  %v15035_v35 = vmov (!%p13009_p8), 0   ;;  %v14892_v32 = vld [vmem:[%s17735_s29 + $0x8] sm:$0xff] (!%p13009_p8)  }
0x180a   : > { %v10731_v7 = vmul.f32 %v10723_v14, %v10723_v14  ;;  %v10732_v39 = vmul.f32 %v10724_v41, %v10724_v41  ;;  %10948 = vmatprep.subr.bf16.mxu0 (!%p13009_p8), %v15035_v35  ;;  %13304 = vmatprep.subr.bf16.mxu1 (!%p13009_p8), %v15035_v35 }
0x180b   : > { %10743 = vadd.xlane.f32.xlu0 %v10742_v36 }
0x180c   : > { %v10745_v21 = vsel %vm1180_vm1, %v10732_v39, 0.0  ;;  %v14895_v39 = vld [vmem:[%s17735_s29 + $0x20] sm:$0xff] (!%p13009_p8)  }
0x180d   : > { %v10746_v50 = vadd.f32 %v10745_v21, %v10731_v7  ;;  %v14896_v21 = vld [vmem:[%s17735_s29 + $0x28] sm:$0xff] (!%p13009_p8)  }
0x180f   : > { %10747 = vadd.xlane.f32.xlu1 %v10746_v50  ;;  %v14897_v50 = vld [vmem:[%s17735_s29 + $0x30] sm:$0xff] (!%p13009_p8)  }
0x1890   : > { %v10736_v43 = vpop.xlane.xlu1 %10735 }
0x1891   : > { %v10749_v54 = vmul.f32 0.0052083335, %v10736_v43  ;;  %v14898_v43 = vld [vmem:[%s17735_s29 + $0x38] sm:$0xff] (!%p13009_p8)  }
0x1893   : > { %v10753_v10 = vadd.f32 1e-05, %v10749_v54  ;;  %v14899_v54 = vld [vmem:[%s17735_s29 + $0x40] sm:$0xff] (!%p13009_p8)  }
0x1894   : > { %v10740_v55 = vpop.xlane.xlu1 %10739 }
0x1895   : > { %14865 = vrsqrt.f32 %v10753_v10  ;;  %v10750_v5 = vmul.f32 0.0052083335, %v10740_v55  ;;  %v14900_v10 = vld [vmem:[%s17735_s29 + $0x48] sm:$0xff] (!%p13009_p8)   ;;  %v14901_v55 = vld [vmem:[%s17735_s29 + $0x50] sm:$0xff] (!%p13009_p8)  }
0x1897   : > { %v10754_v42 = vadd.f32 1e-05, %v10750_v5  ;;  %v14902_v5 = vld [vmem:[%s17735_s29 + $0x58] sm:$0xff] (!%p13009_p8)  }
0x1898   : > { %v10744_v40 = vpop.xlane.xlu0 %10743 }
0x1899   : > { %14867 = vrsqrt.f32 %v10754_v42  ;;  %v10751_v31 = vmul.f32 0.0052083335, %v10744_v40 }
0x189b   : > { %v10755_v28 = vadd.f32 1e-05, %v10751_v31  ;;  %v13010_v31 = vld [vmem:[%s17736_s9] ss:$0 sm:$0xff] (!%p13009_p8) }
0x189c   : > { %v10748_v58 = vpop.xlane.xlu1 %10747 }
0x189d   : > { %14869 = vrsqrt.f32 %v10755_v28  ;;  %v10752_v13 = vmul.f32 0.0052083335, %v10748_v58 }
0x189f   : > { %v14866_v20 = vpop.eup %14865  ;;  %v10756_v15 = vadd.f32 1e-05, %v10752_v13 }
0x18a0   : > { %v10761_v44 = vmul.f32 %v14866_v20, %v10717_v46  ;;  %v10762_v57 = vmul.f32 %v14866_v20, %v10718_v48 }
0x18a1   : > { %14871 = vrsqrt.f32 %v10756_v15 }
0x18a2   : > { %v10780_v25 = vmul.f32 %v10773_v59, %v10761_v44  ;;  %v10781_v29 = vmul.f32 %v10777_v37, %v10762_v57 }
0x18a3   : > { %v14868_v22 = vpop.eup %14867 }
0x18a4   : > { %v10799_v60 = vadd.f32 %v10792_v52, %v10780_v25  ;;  %v10800_v18 = vadd.f32 %v10796_v61, %v10781_v29  ;;  %v10763_v45 = vmul.f32 %v14868_v22, %v10719_v51  ;;  %v10764_v16 = vmul.f32 %v14868_v22, %v10720_v33 }
0x18a6   : > { %10807 = vst [vmem:[#allocation2] sm:$0xff] %v10799_v60  ;;  %10808 = vst.msk [vmem:[#allocation2 + $0x8] sm:$0xff] %vm1180_vm1, %v10800_v18  ;;  %v10782_v17 = vmul.f32 %v10773_v59, %v10763_v45  ;;  %v10783_v0 = vmul.f32 %v10777_v37, %v10764_v16 }
0x18a7   : > { %v14870_v49 = vpop.eup %14869 }
0x18a8   : > { %v10801_v24 = vadd.f32 %v10792_v52, %v10782_v17  ;;  %v10802_v8 = vadd.f32 %v10796_v61, %v10783_v0  ;;  %v10765_v62 = vmul.f32 %v14870_v49, %v10721_v53  ;;  %v10766_v9 = vmul.f32 %v14870_v49, %v10722_v11  ;;  %v14891_v53 = vld [vmem:[%s17735_s29] sm:$0xff] (!%p13009_p8)  }
0x18a9   : > { %v10820_v11 = vmul.f32 (!%p13009_p8), %v10800_v18, %v15786_v30  ;;  %10949 = vmatpush1.bf16.msra.mxu0 (!%p13009_p8), %v14891_v53  ;;  %13316 = vmatpush1.bf16.msra.mxu1 (!%p13009_p8), %v14891_v53 }
0x18aa   : > { %10809 = vst [vmem:[#allocation2 + $0x10] sm:$0xff] %v10801_v24  ;;  %10810 = vst.msk [vmem:[#allocation2 + $0x18] sm:$0xff] %vm1180_vm1, %v10802_v8  ;;  %v10784_v46 = vmul.f32 %v10773_v59, %v10765_v62  ;;  %v10785_v48 = vmul.f32 %v10777_v37, %v10766_v9  ;;  %v10822_v12 = vmul.f32 (!%p13009_p8), %v10802_v8, %v15756_v38  ;;  %10950 = vmatprep.subr.bf16.mxu0 (!%p13009_p8), %v15035_v35 }
0x18ab   : > { %v14872_v34 = vpop.eup %14871  ;;  %10828 = vst.msk [vmem:[#allocation6 + $0x8] sm:$0xff] (!%p13009_p8), %vm1180_vm1, %v10820_v11  ;;  %13305 = vmatprep.subr.bf16.mxu1 (!%p13009_p8), %v15035_v35 }
0x18ac   : > { %v10803_v63 = vadd.f32 %v10792_v52, %v10784_v46  ;;  %v10804_v26 = vadd.f32 %v10796_v61, %v10785_v48  ;;  %v10767_v51 = vmul.f32 %v14872_v34, %v10723_v14  ;;  %v10768_v33 = vmul.f32 %v14872_v34, %v10724_v41  ;;  %10818 = sbr.rel (%p13009_p8) target bundleno = 6577 (0x19b1), region = 120  ;;  %10830 = vst.msk [vmem:[#allocation6 + $0x18] sm:$0xff] (!%p13009_p8), %vm1180_vm1, %v10822_v12 }
0x18ad   : > { %v17505_v14 = vmul.f32 (!%p13009_p8), %v10799_v60, %v15786_v30  ;;  %v17508_v41 = vmul.f32 (!%p13009_p8), %v10801_v24, %v15756_v38  ;;  %v10836_v36 = vpack.c.bf16 (!%p13009_p8), %v10822_v12, %v10820_v11  ;;  %10951 = vmatpush1.bf16.msra.mxu0 (!%p13009_p8), %v14892_v32  ;;  %13317 = vmatpush1.bf16.msra.mxu1 (!%p13009_p8), %v14892_v32 }
0x18ae   : > { %10811 = vst [vmem:[#allocation2 + $0x20] sm:$0xff] %v10803_v63  ;;  %10812 = vst.msk [vmem:[#allocation2 + $0x28] sm:$0xff] %vm1180_vm1, %v10804_v26  ;;  %v10786_v4 = vmul.f32 %v10773_v59, %v10767_v51  ;;  %v10787_v6 = vmul.f32 %v10777_v37, %v10768_v33  ;;  %v10824_v3 = vmul.f32 (!%p13009_p8), %v10804_v26, %v15765_v47  ;;  %10952 = vmatprep.subr.bf16.mxu0 (!%p13009_p8), %v15035_v35 }
0x18af   : > { %v17517_v7 = vmul.f32 (!%p13009_p8), %v10803_v63, %v15765_v47  ;;  %10827 = vst [vmem:[#allocation6] sm:$0xff] (!%p13009_p8), %v17505_v14  ;;  %10829 = vst [vmem:[#allocation6 + $0x10] sm:$0xff] (!%p13009_p8), %v17508_v41  ;;  %13023 = vmatprep.mubr.msk.bf16.mxu0 (!%p13009_p8), %vm1180_vm1, %v10836_v36  ;;  %v14893_v47 = vld [vmem:[%s17735_s29 + $0x10] sm:$0xff] (!%p13009_p8)   ;;  %13306 = vmatprep.subr.bf16.mxu1 (!%p13009_p8), %v15035_v35  ;;  %v10835_v42 = vpack.c.bf16 (!%p13009_p8), %v17508_v41, %v17505_v14 }
0x18b0   : > { %v10805_v2 = vadd.f32 %v10792_v52, %v10786_v4  ;;  %v10806_v1 = vadd.f32 %v10796_v61, %v10787_v6  ;;  %10832 = vst.msk [vmem:[#allocation6 + $0x28] sm:$0xff] (!%p13009_p8), %vm1180_vm1, %v10824_v3 }
0x18b1   : > { %10831 = vst [vmem:[#allocation6 + $0x20] sm:$0xff] (!%p13009_p8), %v17517_v7  ;;  %10953 = vmatpush1.bf16.msra.mxu0 (!%p13009_p8), %v14893_v47  ;;  %13318 = vmatpush1.bf16.msra.mxu1 (!%p13009_p8), %v14893_v47 }
0x18b2   : > { %10813 = vst [vmem:[#allocation2 + $0x30] sm:$0xff] %v10805_v2  ;;  %10814 = vst.msk [vmem:[#allocation2 + $0x38] sm:$0xff] %vm1180_vm1, %v10806_v1  ;;  %v10826_v23 = vmul.f32 (!%p13009_p8), %v10806_v1, %v15814_v19  ;;  %v17520_v30 = vmul.f32 (!%p13009_p8), %v10805_v2, %v15814_v19  ;;  %v14894_v19 = vld [vmem:[%s17735_s29 + $0x18] sm:$0xff] (!%p13009_p8)   ;;  %10954 = vmatprep.subr.bf16.mxu0 (!%p13009_p8), %v15035_v35  ;;  %13307 = vmatprep.subr.bf16.mxu1 (!%p13009_p8), %v15035_v35 }
0x18b4   : > { %10834 = vst.msk [vmem:[#allocation6 + $0x38] sm:$0xff] %vm1180_vm1, %v10826_v23  ;;  %v10838_v38 = vpack.c.bf16 %v10826_v23, %v10824_v3  ;;  %10833 = vst [vmem:[#allocation6 + $0x30] sm:$0xff] %v17520_v30  ;;  %v10837_v40 = vpack.c.bf16 %v17520_v30, %v17517_v7 }
0x18b5   : > { %10955 = vmatpush1.bf16.msra.mxu0 %v14894_v19  ;;  %13319 = vmatpush1.bf16.msra.mxu1 %v14894_v19 }
0x18b6   : > { %13024 = vmatprep.mubr.msk.bf16.mxu1 %vm1180_vm1, %v10838_v38  ;;  %10956 = vmatprep.subr.bf16.mxu0 %v15035_v35 }
0x18b7   : > { %13308 = vmatprep.subr.bf16.mxu1 %v15035_v35 }
0x18b9   : > { %10957 = vmatpush1.bf16.msra.mxu0 %v14895_v39  ;;  %13320 = vmatpush1.bf16.msra.mxu1 %v14895_v39 }
0x18ba   : > { %10958 = vmatprep.subr.bf16.mxu0 %v15035_v35  ;;  %13309 = vmatprep.subr.bf16.mxu1 %v15035_v35 }
0x18bd   : > { %10959 = vmatpush1.bf16.msra.mxu0 %v14896_v21  ;;  %13321 = vmatpush1.bf16.msra.mxu1 %v14896_v21 }
0x18be   : > { %10960 = vmatprep.subr.bf16.mxu0 %v15035_v35  ;;  %13310 = vmatprep.subr.bf16.mxu1 %v15035_v35 }
0x18c1   : > { %10961 = vmatpush1.bf16.msra.mxu0 %v14897_v50  ;;  %13322 = vmatpush1.bf16.msra.mxu1 %v14897_v50 }
0x18c2   : > { %10962 = vmatprep.subr.bf16.mxu0 %v15035_v35  ;;  %13311 = vmatprep.subr.bf16.mxu1 %v15035_v35 }
0x18c5   : > { %10963 = vmatpush1.bf16.msra.mxu0 %v14898_v43  ;;  %13323 = vmatpush1.bf16.msra.mxu1 %v14898_v43 }
0x18c6   : > { %10964 = vmatprep.subr.bf16.mxu0 %v15035_v35  ;;  %13312 = vmatprep.subr.bf16.mxu1 %v15035_v35 }
0x18c9   : > { %10965 = vmatpush1.bf16.msra.mxu0 %v14899_v54  ;;  %13324 = vmatpush1.bf16.msra.mxu1 %v14899_v54 }
0x18ca   : > { %10966 = vmatprep.subr.bf16.mxu0 %v15035_v35  ;;  %13313 = vmatprep.subr.bf16.mxu1 %v15035_v35 }
0x18cd   : > { %10967 = vmatpush1.bf16.msra.mxu0 %v14900_v10  ;;  %13325 = vmatpush1.bf16.msra.mxu1 %v14900_v10 }
0x18ce   : > { %10968 = vmatprep.subr.bf16.mxu0 %v15035_v35  ;;  %13314 = vmatprep.subr.bf16.mxu1 %v15035_v35 }
0x18d1   : > { %10969 = vmatpush1.bf16.msra.mxu0 %v14901_v55  ;;  %13326 = vmatpush1.bf16.msra.mxu1 %v14901_v55 }
0x18d2   : > { %10970 = vmatprep.subr.bf16.mxu0 %v15035_v35  ;;  %13315 = vmatprep.subr.bf16.mxu1 %v15035_v35 }
0x18d5   : > { %10971 = vmatpush1.bf16.msra.mxu0 %v14902_v5  ;;  %13327 = vmatpush1.bf16.msra.mxu1 %v14902_v5 }
0x18d8   : > { %10981 = vmatmul.mubr.bf16.vlgmr.msra.gmra.mrb[0].mxu0 %v10835_v42  ;;  %10989 = vmatmul.mubr.bf16.vlgmr.msra.gmra.mrb[0].mxu1 %v10837_v40 }
0x19ab   : > { %v10982_v56 = vpop.f32.mrb[0].mxu0  ;;  %v10990_v28 = vpop.f32.mrb[0].mxu1 }
0x19ac   : > { %v10983_v58 = vadd.f32 %v13010_v31, %v10982_v56  ;;  %v10991_v27 = vadd.f32 %v13010_v31, %v10990_v28  ;;  %v10984_v13 = vpop.f32.mrb[1].mxu0  ;;  %v10992_v59 = vpop.f32.mrb[1].mxu1 }
0x19ad   : > { %v10985_v37 = vpop.f32.mrb[2].mxu0  ;;  %v10993_v20 = vpop.f32.mrb[2].mxu1 }
0x19ae   : > { %10997 = vst [vmem:[#allocation7] sm:$0xff] %v10983_v58  ;;  %10999 = vst [vmem:[#allocation7 + $0x10] sm:$0xff] %v10991_v27  ;;  %v10986_v15 = vadd.f32 %v13010_v31, %v10985_v37  ;;  %v10994_v52 = vadd.f32 %v13010_v31, %v10993_v20  ;;  %v10987_v61 = vpop.f32.mrb[3].mxu0  ;;  %v10995_v44 = vpop.f32.mrb[3].mxu1 }
0x19b0   : > { %10998 = vst [vmem:[#allocation7 + $0x8] sm:$0xff] %v10986_v15  ;;  %11000 = vst [vmem:[#allocation7 + $0x18] sm:$0xff] %v10994_v52 }
0x19b1 PF: > { %s17737_s14 = sld [smem:[#allocation14_spill]]  ;;  %s15036_s21 = smov [#allocation6]  }
0x19b2   : > { %s11007_s2 = sshll.u32 %s15036_s21, 4  ;;  %s11008_s2 = int_to_ptr.vmem [resolvable:$true] %s11007_s2 }
0x19b3   : > { %s14933_s30 = scalar_lea.vmem %s11008_s2, 1024  ;;  %p14940_p12 = scmp.lt.s32.totalorder %s11008_s2, %s11008_s2 }
0x19b4   : > { %p14934_p5 = scmp.ne.s32.totalorder %s11008_s2, %s14933_s30  ;;  %p14941_p0 = scmp.lt.s32.totalorder %s14933_s30, %s14933_s30 }
0x19b6   : > { %p14942_p1 = por %p14941_p0, %p14940_p12 }
0x19b7   : > { %p13349_p4 = scmp.eq.s32.totalorder %s17737_s14, 4 }
0x19b9   : > { %p14935_p6 = pnand %p14934_p5, %p13349_p4 }
0x19bb   : > { %p14936_p10 = pneg %p14935_p6 }
0x19bd   : > { %p14943_p2 = pnand %p14942_p1, %p14936_p10 }
0x19bf   : > { %14946 = shalt.err (!%p14943_p2)
}
0x19c0   : > { %s17738_s8 = sld [smem:[#allocation31_spill]] }
0x19c6   : > { %s14947_s25 = scalar_lea.hbm %s17738_s8, 1024 }
0x19c7   : > { %p14948_p11 = scmp.ne.s32.totalorder %s17738_s8, %s14947_s25  ;;  %p14953_p9 = scmp.lt.u32.totalorder %s14947_s25, %s17738_s8 }
0x19c9   : > { %p14949_p13 = pnand %p14948_p11, %p13349_p4 }
0x19cb   : > { %p14950_p3 = pneg %p14949_p13 }
0x19cd   : > { %p14955_p7 = pnand %p14953_p9, %p14950_p3 }
0x19cf   : > { %14958 = shalt.err (!%p14955_p7)
}
0x19d0   : > { %s15037_s4 = smov 256   ;;  %s15038_s6 = smov 16  }
0x19d1   : > { %13337 = dma.vmem_to_hbm [thread:$0]  (%p13349_p4), %s11008_s2, 1024, %s17738_s8, [#allocation5], %s15037_s4, %s15037_s4, %s15038_s6  }
0x19d2   : > { %s15039_s9 = smov [#allocation7]  }
0x19d3   : > { %s11020_s21 = sshll.u32 %s15039_s9, 4  ;;  %s11021_s21 = int_to_ptr.vmem [resolvable:$true] %s11020_s21 }
0x19d4   : > { %s14959_s30 = scalar_lea.vmem %s11021_s21, 512  ;;  %p14966_p10 = scmp.lt.s32.totalorder %s11021_s21, %s11021_s21 }
0x19d5   : > { %p14960_p8 = scmp.ne.s32.totalorder %s11021_s21, %s14959_s30  ;;  %p14967_p12 = scmp.lt.s32.totalorder %s14959_s30, %s14959_s30 }
0x19d7   : > { %p14961_p5 = pnand %p14960_p8, %p13349_p4  ;;  %p14968_p0 = por %p14967_p12, %p14966_p10 }
0x19d9   : > { %p14962_p6 = pneg %p14961_p5 }
0x19db   : > { %p14969_p1 = pnand %p14968_p0, %p14962_p6 }
0x19dd   : > { %14972 = shalt.err (!%p14969_p1)
}
0x19de   : > { %s17739_s25 = sld [smem:[#allocation32_spill]] }
0x19e4   : > { %s17740_s3 = smov %s17739_s25  ;;  %s14973_s7 = scalar_lea.hbm %s17739_s25, 512 }
0x19e5   : > { %p14974_p2 = scmp.ne.s32.totalorder %s17740_s3, %s14973_s7  ;;  %p14979_p3 = scmp.lt.u32.totalorder %s14973_s7, %s17740_s3 }
0x19e7   : > { %p14975_p11 = pnand %p14974_p2, %p13349_p4 }
0x19e9   : > { %p14976_p13 = pneg %p14975_p11 }
0x19eb   : > { %p14981_p9 = pnand %p14979_p3, %p14976_p13 }
0x19ed   : > { %14984 = shalt.err (!%p14981_p9)
}
0x19ee   : > { %s15040_s6 = smov 128   ;;  %s15041_s22 = smov 8  }
0x19ef   : > { %13339 = dma.vmem_to_hbm [thread:$0]  (%p13349_p4), %s11021_s21, 512, %s17740_s3, [#allocation8], %s15040_s6, %s15040_s6, %s15041_s22  }
0x19f0   : > { %15006 = dma.done.wait (%p13349_p4), [#allocation5], 1024  }
0x19f1   : > { %15008 = vsyncadd (%p13349_p4), [#allocation5], 4294966272 }
0x19f2   : > { %15010 = dma.done.wait (%p13349_p4), [#allocation8], 512  }
0x19f3   : > { %15012 = vsyncadd (%p13349_p4), [#allocation8], 4294966784 }
0x19f4 PF: > { %s17741_s25 = sld [smem:[#allocation15_spill]]  ;;  %s17742_s4 = sld [smem:[#allocation12_spill]] }
0x19f5   : > { %s17743_s30 = sld [smem:[#allocation13_spill]]  ;;  %s17744_s24 = sld [smem:[#allocation16_spill]] }
0x19fa   : > { %p36_p7 = scmp.ge.s32.totalorder %s17741_s25, 7  }
0x19fc   :  { %38 = sbr.rel (!%p36_p7) target bundleno = 21 (0x15), region = 219 }
0x1a03   :  { %11040 = vsyncpa [#allocation4], 1 }
0x1a04   :  { %11042 = vsyncpa [#allocation4 + $0x1], 1 }
0x1a05   :  { %11043 = vsyncpa [#allocation5], 1 }
0x1a06   :  { %11045 = vsyncpa [#allocation5 + $0x1], 1 }
0x1a07   :  { %11046 = vsyncpa [#allocation8], 1 }

</bundles_post_ra>
